<compile_context>
chip_gen: v7x
topology: tpu7x:2x2x1
jax: 0.10.0
libtpu: 0.0.40
codegen_flags: <defaults>
</compile_context>

<pallas_src>
import functools
import math

import jax
import jax.numpy as jnp
from jax.experimental import pallas as pl
from jax.experimental.pallas import tpu as pltpu


def _round_up(x, m):
    return ((x + m - 1) // m) * m


# ---------------------------------------------------------------------------
# Pallas kernels
# ---------------------------------------------------------------------------

def _mm_kernel(a_ref, w_ref, b_ref, o_ref, *, relu):
    """Single-K-tile matmul: bf16 operands, f32 accumulate, fused bias(+ReLU)."""
    y = jnp.dot(a_ref[...].astype(jnp.bfloat16), w_ref[...],
                preferred_element_type=jnp.float32) + b_ref[...]
    if relu:
        y = jnp.maximum(y, 0.0)
    o_ref[...] = y


def _affine_kernel(x_ref, s_ref, b_ref, o_ref, *, relu):
    """Row-tiled BatchNorm affine (scale*x + shift), optional ReLU."""
    y = x_ref[...] * s_ref[...] + b_ref[...]
    if relu:
        y = jnp.maximum(y, 0.0)
    o_ref[...] = y


def _combine_kernel(*refs, has_res):
    """relu(x*s1 + b1 [+ r*s2 + b2]): fused BN2 + residual-BN + add + ReLU."""
    if has_res:
        x_ref, s1, b1, r_ref, s2, b2, o_ref = refs
        y = x_ref[...] * s1[...] + b1[...] + r_ref[...] * s2[...] + b2[...]
    else:
        x_ref, s1, b1, o_ref = refs
        y = x_ref[...] * s1[...] + b1[...]
    o_ref[...] = jnp.maximum(y, 0.0)


def _rownorm_kernel(x_ref, o_ref):
    # TODO(synk): scaledTanh / normalizeRAM are not in the prompt; tanh + L1
    # row normalization is a deterministic stand-in.
    t = jnp.tanh(x_ref[...])
    o_ref[...] = t / (jnp.sum(jnp.abs(t), axis=-1, keepdims=True) + 1e-6)


def _tconv_kernel(x_ref, w_ref, b_ref, s_ref, h_ref, o_ref, buf_ref, *,
                  kt, stride, pad_l, pad_r, t_out):
    """Temporal conv (kt,1)/(stride,1) for one batch element.

    Fused BN+ReLU prologue on the input tile, zero time-padding built in a
    VMEM scratch, and kt shifted (rows,Cin)@(Cin,Cout) MXU dots accumulated in
    f32 — no im2col materialization in HBM."""
    T = x_ref.shape[1]
    V = x_ref.shape[2]
    Cin = x_ref.shape[3]
    Cout = w_ref.shape[2]

    x = x_ref[0].astype(jnp.float32)                         # (T, V, Cin)
    x = jnp.maximum(x * s_ref[...].reshape(1, 1, Cin)
                    + h_ref[...].reshape(1, 1, Cin), 0.0)    # fused BN + ReLU
    x = x.astype(jnp.bfloat16)

    if pad_l:
        buf_ref[pl.ds(0, pad_l)] = jnp.zeros((pad_l, V, Cin), jnp.bfloat16)
    buf_ref[pl.ds(pad_l, T)] = x
    if pad_r:
        buf_ref[pl.ds(pad_l + T, pad_r)] = jnp.zeros((pad_r, V, Cin),
                                                     jnp.bfloat16)

    acc = jnp.zeros((t_out * V, Cout), jnp.float32)
    for dt in range(kt):                       # kt is small & static: unrolled
        if stride == 1:
            win = buf_ref[pl.ds(dt, t_out)]
        else:
            win = buf_ref[pl.ds(dt, t_out * stride)]
            win = win.reshape(t_out, stride, V, Cin)[:, 0]
        acc = acc + jnp.dot(win.reshape(t_out * V, Cin), w_ref[dt],
                            preferred_element_type=jnp.float32)
    o_ref[0] = (acc + b_ref[...]).reshape(t_out, V, Cout)


# ---------------------------------------------------------------------------
# Pallas wrappers
# ---------------------------------------------------------------------------

def matmul_fused(a, w, bias, relu=False, block_rows=256):
    """(M,K)@(K,N)+bias (optional ReLU). bf16 MXU operands, f32 accumulate.

    No K grid axis / accumulator (K always fits one tile here); no 128-wide
    padding: K/N use full-extent blocks, K only rounded up to 8."""
    a = a.astype(jnp.float32)
    w = w.astype(jnp.bfloat16)
    M, K = a.shape
    Nc = w.shape[1]
    if K % 8:
        Kp = _round_up(K, 8)
        a = jnp.pad(a, ((0, 0), (0, Kp - K)))
        w = jnp.pad(w, ((0, Kp - K), (0, 0)))
        K = Kp
    Mp = _round_up(M, 8)
    tm = Mp if Mp <= block_rows else block_rows
    Mp = _round_up(M, tm)
    if Mp != M:
        a = jnp.pad(a, ((0, Mp - M), (0, 0)))
    out = pl.pallas_call(
        functools.partial(_mm_kernel, relu=relu),
        out_shape=jax.ShapeDtypeStruct((Mp, Nc), jnp.float32),
        grid=(Mp // tm,),
        in_specs=[pl.BlockSpec((tm, K), lambda i: (i, 0)),
                  pl.BlockSpec((K, Nc), lambda i: (0, 0)),
                  pl.BlockSpec((1, Nc), lambda i: (0, 0))],
        out_specs=pl.BlockSpec((tm, Nc), lambda i: (i, 0)),
        compiler_params=pltpu.CompilerParams(
            dimension_semantics=("parallel",)),
    )(a, w, bias.reshape(1, Nc).astype(jnp.float32))
    return out[:M]


def conv1x1(x, w, b, relu=False):
    """1x1 Conv2d == dense over the channel dim (channels-last)."""
    shp = x.shape
    y = matmul_fused(x.reshape(-1, shp[-1]), w, b, relu=relu)
    return y.reshape(shp[:-1] + (w.shape[1],))


def _row_tiles(R, block_rows):
    Rp = _round_up(R, 8)
    rb = Rp if Rp <= block_rows else block_rows
    Rp = _round_up(R, rb)
    return Rp, rb


def apply_affine(x, scale, shift, relu=False, block_rows=1024):
    C = x.shape[-1]
    x2 = x.reshape(-1, C).astype(jnp.float32)
    R = x2.shape[0]
    Rp, rb = _row_tiles(R, block_rows)
    if Rp != R:
        x2 = jnp.pad(x2, ((0, Rp - R), (0, 0)))
    out = pl.pallas_call(
        functools.partial(_affine_kernel, relu=relu),
        out_shape=jax.ShapeDtypeStruct((Rp, C), jnp.float32),
        grid=(Rp // rb,),
        in_specs=[pl.BlockSpec((rb, C), lambda i: (i, 0)),
                  pl.BlockSpec((1, C), lambda i: (0, 0)),
                  pl.BlockSpec((1, C), lambda i: (0, 0))],
        out_specs=pl.BlockSpec((rb, C), lambda i: (i, 0)),
        compiler_params=pltpu.CompilerParams(
            dimension_semantics=("parallel",)),
    )(x2, scale.reshape(1, C).astype(jnp.float32),
      shift.reshape(1, C).astype(jnp.float32))
    return out[:R].reshape(x.shape)


def bn_add_relu(x, scale, shift, res=None, res_scale=None, res_shift=None,
                block_rows=1024):
    """Fused BN affine (+ residual with its own BN affine) + ReLU, row tiled."""
    C = x.shape[-1]
    x2 = x.reshape(-1, C).astype(jnp.float32)
    R = x2.shape[0]
    has_res = res is not None
    Rp, rb = _row_tiles(R, block_rows)
    if Rp != R:
        x2 = jnp.pad(x2, ((0, Rp - R), (0, 0)))
    args = [x2, scale.reshape(1, C).astype(jnp.float32),
            shift.reshape(1, C).astype(jnp.float32)]
    in_specs = [pl.BlockSpec((rb, C), lambda i: (i, 0)),
                pl.BlockSpec((1, C), lambda i: (0, 0)),
                pl.BlockSpec((1, C), lambda i: (0, 0))]
    if has_res:
        r2 = res.reshape(-1, C).astype(jnp.float32)
        if Rp != R:
            r2 = jnp.pad(r2, ((0, Rp - R), (0, 0)))
        args += [r2, res_scale.reshape(1, C).astype(jnp.float32),
                 res_shift.reshape(1, C).astype(jnp.float32)]
        in_specs += [pl.BlockSpec((rb, C), lambda i: (i, 0)),
                     pl.BlockSpec((1, C), lambda i: (0, 0)),
                     pl.BlockSpec((1, C), lambda i: (0, 0))]
    out = pl.pallas_call(
        functools.partial(_combine_kernel, has_res=has_res),
        out_shape=jax.ShapeDtypeStruct((Rp, C), jnp.float32),
        grid=(Rp // rb,),
        in_specs=in_specs,
        out_specs=pl.BlockSpec((rb, C), lambda i: (i, 0)),
        compiler_params=pltpu.CompilerParams(
            dimension_semantics=("parallel",)),
    )(*args)
    return out[:R].reshape(x.shape)


def ram_normalize(r, block_rows=1024):
    N, T, V, W = r.shape
    x2 = r.reshape(N * T * V, W).astype(jnp.float32)
    R = x2.shape[0]
    Rp, rb = _row_tiles(R, block_rows)
    if Rp != R:
        x2 = jnp.pad(x2, ((0, Rp - R), (0, 0)))
    out = pl.pallas_call(
        _rownorm_kernel,
        out_shape=jax.ShapeDtypeStruct((Rp, W), jnp.float32),
        grid=(Rp // rb,),
        in_specs=[pl.BlockSpec((rb, W), lambda i: (i, 0))],
        out_specs=pl.BlockSpec((rb, W), lambda i: (i, 0)),
        compiler_params=pltpu.CompilerParams(
            dimension_semantics=("parallel",)),
    )(x2)
    return out[:R].reshape(N, T, V, W)


def temporal_conv(x, w, b, kt, stride, scale, shift):
    """x: (B,T,V,Cin) f32; w: (kt,Cin,Cout) bf16; fused BN+ReLU prologue."""
    B, T, V, Cin = x.shape
    Cout = w.shape[2]
    pad = (kt - 1) // 2
    t_out = (T + 2 * pad - kt) // stride + 1
    need = (kt - 1) + t_out * stride
    pad_r = max(pad, need - (T + pad))
    Tp = T + pad + pad_r
    # TODO(synk): for production-size T (~300) the time axis would be tiled
    # with halo DMA; at these shapes one whole-T block per batch element fits.
    return pl.pallas_call(
        functools.partial(_tconv_kernel, kt=kt, stride=stride, pad_l=pad,
                          pad_r=pad_r, t_out=t_out),
        out_shape=jax.ShapeDtypeStruct((B, t_out, V, Cout), jnp.float32),
        grid=(B,),
        in_specs=[pl.BlockSpec((1, T, V, Cin), lambda i: (i, 0, 0, 0)),
                  pl.BlockSpec((kt, Cin, Cout), lambda i: (0, 0, 0)),
                  pl.BlockSpec((1, Cout), lambda i: (0, 0)),
                  pl.BlockSpec((1, Cin), lambda i: (0, 0)),
                  pl.BlockSpec((1, Cin), lambda i: (0, 0))],
        out_specs=pl.BlockSpec((1, t_out, V, Cout), lambda i: (i, 0, 0, 0)),
        scratch_shapes=[pltpu.VMEM((Tp, V, Cin), jnp.bfloat16)],
        compiler_params=pltpu.CompilerParams(
            dimension_semantics=("parallel",)),
    )(x.astype(jnp.float32), w.astype(jnp.bfloat16),
      b.reshape(1, Cout).astype(jnp.float32),
      scale.reshape(1, Cin).astype(jnp.float32),
      shift.reshape(1, Cin).astype(jnp.float32))


# ---------------------------------------------------------------------------
# Glue helpers (stats / tiny contractions kept on XLA by design)
# ---------------------------------------------------------------------------

def bn_scale_shift(x, gamma, beta, eps=1e-5):
    """Training-mode BatchNorm2d stats (biased variance), channels-last."""
    C = x.shape[-1]
    x2 = x.reshape(-1, C).astype(jnp.float32)
    mean = jnp.mean(x2, axis=0)
    var = jnp.maximum(jnp.mean(jnp.square(x2), axis=0) - jnp.square(mean), 0.0)
    scale = gamma / jnp.sqrt(var + eps)
    shift = beta - mean * scale
    return scale, shift


def ram_gen(p, cfg, x, A):
    """RAMGen: builds the relative adjacency matrix RAM (N, T, V, V).
    TODO(synk): RAMGen internals are not in the prompt; deterministic
    synthesized encoder/decoder + relative attention + geometric parts."""
    N, M, T, V, C = x.shape
    h = conv1x1(x, p['enc_w'], p['enc_b'])                        # (N,M,T,V,E)
    A_mean = jnp.mean(A, axis=0)
    h_agg = jnp.maximum(jnp.einsum('nmtve,vw->nmtwe', h, A_mean), 0.0)
    f = conv1x1(h_agg, p['dec_w'], p['dec_b'], relu=True)         # (N,M,T,V,D)
    D = f.shape[-1]
    raw = jnp.zeros((N, T, V, V), jnp.float32)
    if cfg['relative_attention_component']:
        raw = raw + jnp.einsum('ntvd,ntwd->ntvw', f[:, 0], f[:, 1]) \
            / jnp.sqrt(float(D))
    if cfg['geometric_component']:
        cg = min(3, C)
        p0 = x[:, 0, :, :, :cg]
        p1 = x[:, 1, :, :, :cg]
        diff = p0[:, :, :, None, :] - p1[:, :, None, :, :]
        raw = raw - jnp.sqrt(jnp.sum(diff * diff, axis=-1) + 1e-6)
    return ram_normalize(raw)


def ram_branch(p, RAM, kt, stride, res_mode):
    """RAM temporal conv + BN + residual.  Single-channel, kt-deep contraction
    with 1-lane output: kept on the VPU/XLA (an MXU matmul would be ~0%
    utilized), RAM kept lane-dense as (N, T, V*V)."""
    N, T, V, W = RAM.shape
    pad = (kt - 1) // 2
    t_out = (T + 2 * pad - kt) // stride + 1
    x = RAM.reshape(N, T, V * W).astype(jnp.float32)
    xp = jnp.pad(x, ((0, 0), (pad, pad), (0, 0)))
    w = p['ram_tcn_w']
    rt = p['ram_tcn_b']
    for dt in range(kt):
        tap = jax.lax.slice(xp, (0, dt, 0),
                            (N, dt + (t_out - 1) * stride + 1, V * W),
                            (1, stride, 1))
        rt = rt + w[dt] * tap
    mean = jnp.mean(rt)
    var = jnp.maximum(jnp.mean(rt * rt) - mean * mean, 0.0)
    sc = p['ram_bn_g'] / jnp.sqrt(var + 1e-5)
    rt = rt * sc + (p['ram_bn_b'] - mean * sc)
    if res_mode == 'conv':
        rr = x[:, ::stride][:, :t_out] * p['ram_res_w'] + p['ram_res_b']
        m2 = jnp.mean(rr)
        v2 = jnp.maximum(jnp.mean(rr * rr) - m2 * m2, 0.0)
        sc2 = p['ram_res_bn_g'] / jnp.sqrt(v2 + 1e-5)
        rr = rr * sc2 + (p['ram_res_bn_b'] - m2 * sc2)
    elif res_mode == 'identity':
        rr = x[:, :t_out]
    else:
        rr = 0.0
    return ram_normalize((rt + rr).reshape(N, t_out, V, W))


# ---------------------------------------------------------------------------
# DRGCBlock
# ---------------------------------------------------------------------------

def drgc_block(p, cfg, x, RAM, A, kt):
    """x: (N, M, T, V, Cin); RAM: (N, T, V, V); A: (K, V, V)."""
    cin, cout, stride, res_mode = cfg
    N, M, T, V, _ = x.shape
    K = A.shape[0]
    assert M == 2, "dyadic relational GC expects M == 2 instances"
    x_nm = x.reshape(N * M, T, V, cin)

    # ---- residual branch: raw conv output; its BN affine is fused into the
    #      final combine kernel (no extra HBM pass over the residual) ----
    if res_mode == 'conv':
        r = conv1x1(x_nm[:, ::stride], p['res_w'], p['res_b'])
        r_sc, r_sh = bn_scale_shift(r, p['res_bn_g'], p['res_bn_b'])
    elif res_mode == 'identity':
        r = x_nm
        r_sc = jnp.ones((cout,), jnp.float32)
        r_sh = jnp.zeros((cout,), jnp.float32)
    else:
        r, r_sc, r_sh = None, None, None

    # ---- SpatialDyadicRelationalGC (SGC + dyadic RAM aggregation) ----
    # TODO(synk): SpatialDyadicRelationalGC internals are not in the prompt;
    # SGC follows the ST-GCN einsum, the cross-person RAM term is synthesized.
    y = conv1x1(x, p['gc_w'], p['gc_b'])      # merged gcn|drgc 1x1 conv (one matmul)
    xa = y[..., :K * cout].reshape(N, M, T, V, K, cout)
    xr = y[..., K * cout:]
    RAM_s = RAM * p['ram_importance'][0, 0]
    # tiny V=5 / K=3 contractions kept off the MXU (plain XLA / VPU).
    sgc = jnp.einsum('nmtvkc,kvw->nmtwc', xa, A)
    y0 = jnp.einsum('ntvw,ntwc->ntvc', RAM_s, xr[:, 1])
    y1 = jnp.einsum('ntwv,ntwc->ntvc', RAM_s, xr[:, 0])
    xg = sgc + jnp.stack([y0, y1], axis=1)                   # (N,M,T,V,cout)

    # ---- tcn: BN1+ReLU fused as prologue of the temporal-conv kernel,
    #      BN2 + residual + ReLU fused in one combine kernel ----
    xg_nm = xg.reshape(N * M, T, V, cout)
    sc1, sh1 = bn_scale_shift(xg_nm, p['tcn_bn1_g'], p['tcn_bn1_b'])
    h = temporal_conv(xg_nm, p['tcn_w'], p['tcn_b'], kt, stride, sc1, sh1)
    T_out = h.shape[1]
    sc2, sh2 = bn_scale_shift(h, p['tcn_bn2_g'], p['tcn_bn2_b'])
    out = bn_add_relu(h, sc2, sh2, r, r_sc, r_sh)
    x_out = out.reshape(N, M, T_out, V, cout)

    RAM_new = ram_branch(p, RAM, kt, stride, res_mode)
    return x_out, RAM_new, A


# ---------------------------------------------------------------------------
# DyadicRelationalGCN forward
# ---------------------------------------------------------------------------

def drgcn_forward(params, x, block_cfgs, kt, ram_cfg):
    # x: (N, C, T, V, M)  (same as the PyTorch module input)
    N, C, T, V, M = x.shape
    x = x.astype(jnp.float32)

    # data_bn over channels; applied channels-last with a row-tiled kernel.
    x_cl = jnp.transpose(x.reshape(N, C, T, V * M), (0, 2, 3, 1))   # (N,T,VM,C)
    sc, sh = bn_scale_shift(x_cl, params['data_bn_g'], params['data_bn_b'])
    x_cl = apply_affine(x_cl, sc, sh)
    # view(N,C,T,V,M).permute(0,4,1,2,3) -> internal channels-last (N,M,T,V,C)
    x_int = jnp.transpose(x_cl.reshape(N, T, V, M, C), (0, 3, 1, 2, 4))

    A = params['A']
    RAM = ram_gen(params['ramgen'], ram_cfg, x_int,
                  A * params['ramgen_edge_importance'])

    for p_blk, cfg in zip(params['blocks'], block_cfgs):
        x_int, RAM, _ = drgc_block(p_blk, cfg, x_int, RAM,
                                   A * p_blk['edge_importance'], kt)

    # global average pool over (M, T, V): pure reduction, kept in XLA.
    pooled = jnp.mean(x_int, axis=(1, 2, 3))                 # (N, C_last)
    logits = matmul_fused(pooled, params['fcn_w'], params['fcn_b'])
    return logits


# ---------------------------------------------------------------------------
# Deterministic parameter construction
# ---------------------------------------------------------------------------

class KeyGen:
    def __init__(self, key):
        self._key = key

    def __call__(self):
        self._key, sub = jax.random.split(self._key)
        return sub


def _dense_init(kg, fan_in, fan_out):
    w = (jax.random.normal(kg(), (fan_in, fan_out), jnp.float32)
         / math.sqrt(fan_in)).astype(jnp.bfloat16)     # MXU operands live in bf16
    b = 0.01 * jax.random.normal(kg(), (fan_out,), jnp.float32)
    return w, b


def _bn_init(kg, c):
    g = 1.0 + 0.01 * jax.random.normal(kg(), (c,), jnp.float32)
    b = 0.01 * jax.random.normal(kg(), (c,), jnp.float32)
    return g, b


def build_graph_A(K, V):
    # TODO(synk): Graph(**graph_cfg) is not in the prompt; deterministic
    # chain-skeleton stand-in, degree normalized, K partitions.
    adj = jnp.zeros((V, V), jnp.float32)
    idx = jnp.arange(V - 1)
    adj = adj.at[idx, idx + 1].set(1.0).at[idx + 1, idx].set(1.0)
    adj_sl = adj + jnp.eye(V, dtype=jnp.float32)
    a_norm = adj_sl / jnp.sum(adj_sl, axis=1, keepdims=True)
    parts = [jnp.eye(V, dtype=jnp.float32), a_norm, a_norm @ a_norm]
    return jnp.stack(parts[:K], axis=0)


def init_params(key, in_channels, num_class, K, V, kt, enc_ch, dec_ch,
                block_cfgs):
    kg = KeyGen(key)
    params = {
        'A': build_graph_A(K, V),
        'ramgen_edge_importance': jnp.ones((K, V, V), jnp.float32),
    }
    params['data_bn_g'], params['data_bn_b'] = _bn_init(kg, in_channels)
    enc_w, enc_b = _dense_init(kg, in_channels, enc_ch)
    dec_w, dec_b = _dense_init(kg, enc_ch, dec_ch)
    params['ramgen'] = dict(enc_w=enc_w, enc_b=enc_b, dec_w=dec_w, dec_b=dec_b)

    blocks = []
    for (cin, cout, stride, res_mode) in block_cfgs:
        p = {
            'edge_importance': jnp.ones((K, V, V), jnp.float32),
            'ram_importance': jnp.ones((1, 1), jnp.float32),
        }
        gcn_w, gcn_b = _dense_init(kg, cin, cout * K)
        drgc_w, drgc_b = _dense_init(kg, cin, cout)
        # merged gcn + drgc 1x1 conv: one matmul, one HBM read of the LHS
        p['gc_w'] = jnp.concatenate([gcn_w, drgc_w], axis=1)
        p['gc_b'] = jnp.concatenate([gcn_b, drgc_b])
        p['tcn_bn1_g'], p['tcn_bn1_b'] = _bn_init(kg, cout)
        p['tcn_w'] = (jax.random.normal(kg(), (kt, cout, cout), jnp.float32)
                      / math.sqrt(cout * kt)).astype(jnp.bfloat16)
        p['tcn_b'] = 0.01 * jax.random.normal(kg(), (cout,), jnp.float32)
        p['tcn_bn2_g'], p['tcn_bn2_b'] = _bn_init(kg, cout)
        p['ram_tcn_w'] = (jax.random.normal(kg(), (kt,), jnp.float32)
                          / math.sqrt(kt))
        p['ram_tcn_b'] = 0.01 * jax.random.normal(kg(), (), jnp.float32)
        p['ram_bn_g'] = 1.0 + 0.01 * jax.random.normal(kg(), (), jnp.float32)
        p['ram_bn_b'] = 0.01 * jax.random.normal(kg(), (), jnp.float32)
        if res_mode == 'conv':
            p['res_w'], p['res_b'] = _dense_init(kg, cin, cout)
            p['res_bn_g'], p['res_bn_b'] = _bn_init(kg, cout)
            p['ram_res_w'] = 1.0 + 0.1 * jax.random.normal(kg(), (), jnp.float32)
            p['ram_res_b'] = 0.01 * jax.random.normal(kg(), (), jnp.float32)
            p['ram_res_bn_g'] = (1.0 + 0.01
                                 * jax.random.normal(kg(), (), jnp.float32))
            p['ram_res_bn_b'] = 0.01 * jax.random.normal(kg(), (), jnp.float32)
        blocks.append(p)
    params['blocks'] = blocks
    params['fcn_w'], params['fcn_b'] = _dense_init(kg, 256, num_class)
    return params


# ---------------------------------------------------------------------------
# main
# ---------------------------------------------------------------------------

if __name__ == "__main__":
    # small demo shapes consistent with the module: (N, C_in, T, V, M)
    N, C_in, T, V, M = 1, 3, 8, 5, 2
    num_class = 4
    K = 3                     # spatial kernel size (A partitions)
    kt = 3                    # temporal_kernel_size (module default 9; kept small)
    enc_ch, dec_ch = 8, 8     # RAM encoder/decoder channels

    # channel/stride/residual schedule hard-coded in the module's __init__
    block_cfgs = [
        (C_in, 64, 1, 'zero'),
        (64, 64, 1, 'identity'),
        (64, 64, 1, 'identity'),
        (64, 64, 1, 'identity'),
        (64, 128, 2, 'conv'),
        (128, 128, 1, 'identity'),
        (128, 128, 1, 'identity'),
        (128, 256, 2, 'conv'),
        (256, 256, 1, 'identity'),
        (256, 256, 1, 'identity'),
    ]
    ram_cfg = dict(relative_attention_component=True, geometric_component=True)

    key = jax.random.PRNGKey(0)
    k_param, k_x = jax.random.split(key)
    params = init_params(k_param, C_in, num_class, K, V, kt, enc_ch, dec_ch,
                         block_cfgs)
    x = jax.random.normal(k_x, (N, C_in, T, V, M), jnp.float32)

    fwd = jax.jit(functools.partial(drgcn_forward, block_cfgs=block_cfgs,
                                    kt=kt, ram_cfg=ram_cfg))
    logits = jax.block_until_ready(fwd(params, x))
    assert logits.shape == (N, num_class)
    assert bool(jnp.all(jnp.isfinite(logits)))
    print("KERNEL_OK")
</pallas_src>

<mosaic_0001>
module attributes {stable_mosaic.version = 11 : i64} {
  func.func @_affine_kernel(%arg0: i32, %arg1: memref<80x3xf32, #tpu.memory_space<vmem>>, %arg2: memref<1x3xf32, #tpu.memory_space<vmem>>, %arg3: memref<1x3xf32, #tpu.memory_space<vmem>>, %arg4: memref<80x3xf32, #tpu.memory_space<vmem>>) attributes {dimension_semantics = [#tpu.dimension_semantics<parallel>], iteration_bounds = array<i64: 1>, scalar_prefetch = 0 : i64, scratch_operands = 0 : i64, tpu.core_type = #tpu.core_type<tc>, window_params = [{transform_indices = @transform_0, window_bounds = array<i64: 80, 3>}, {pipeline_mode = #tpu.pipeline_mode<synchronous>, transform_indices = @transform_1, window_bounds = array<i64: 1, 3>}, {pipeline_mode = #tpu.pipeline_mode<synchronous>, transform_indices = @transform_2, window_bounds = array<i64: 1, 3>}, {transform_indices = @transform_3, window_bounds = array<i64: 80, 3>}]} {
    %c0 = arith.constant 0 : index
    %c0_0 = arith.constant 0 : index
    %0 = vector.load %arg1[%c0, %c0_0] : memref<80x3xf32, #tpu.memory_space<vmem>>, vector<80x3xf32>
    %c0_1 = arith.constant 0 : index
    %c0_2 = arith.constant 0 : index
    %1 = vector.load %arg2[%c0_1, %c0_2] : memref<1x3xf32, #tpu.memory_space<vmem>>, vector<1x3xf32>
    %2 = vector.broadcast %1 : vector<1x3xf32> to vector<80x3xf32>
    %3 = arith.mulf %0, %2 : vector<80x3xf32>
    %c0_3 = arith.constant 0 : index
    %c0_4 = arith.constant 0 : index
    %4 = vector.load %arg3[%c0_3, %c0_4] : memref<1x3xf32, #tpu.memory_space<vmem>>, vector<1x3xf32>
    %5 = vector.broadcast %4 : vector<1x3xf32> to vector<80x3xf32>
    %6 = arith.addf %3, %5 : vector<80x3xf32>
    %c0_5 = arith.constant 0 : index
    %c0_6 = arith.constant 0 : index
    %7 = vector.load %arg4[%c0_5, %c0_6] : memref<80x3xf32, #tpu.memory_space<vmem>>, vector<80x3xf32>
    tpu.vector_store %arg4[%c0_5, %c0_6], %6 {strides = array<i32>} : memref<80x3xf32, #tpu.memory_space<vmem>>, vector<80x3xf32>,
    return
  }
  func.func @transform_0(%arg0: i32) -> (i32, i32) {
    %c0_i32 = arith.constant 0 : i32
    %c0_i32_0 = arith.constant 0 : i32
    return %arg0, %c0_i32 : i32, i32
  }
  func.func @transform_1(%arg0: i32) -> (i32, i32) {
    %c0_i32 = arith.constant 0 : i32
    %c0_i32_0 = arith.constant 0 : i32
    %c0_i32_1 = arith.constant 0 : i32
    return %c0_i32, %c0_i32_0 : i32, i32
  }
  func.func @transform_2(%arg0: i32) -> (i32, i32) {
    %c0_i32 = arith.constant 0 : i32
    %c0_i32_0 = arith.constant 0 : i32
    %c0_i32_1 = arith.constant 0 : i32
    return %c0_i32, %c0_i32_0 : i32, i32
  }
  func.func @transform_3(%arg0: i32) -> (i32, i32) {
    %c0_i32 = arith.constant 0 : i32
    %c0_i32_0 = arith.constant 0 : i32
    return %arg0, %c0_i32 : i32, i32
  }
}

module attributes {stable_mosaic.version = 11 : i64} {
  func.func @_mm_kernel(%arg0: i32, %arg1: memref<80x8xf32, #tpu.memory_space<vmem>>, %arg2: memref<8x8xbf16, #tpu.memory_space<vmem>>, %arg3: memref<1x8xf32, #tpu.memory_space<vmem>>, %arg4: memref<80x8xf32, #tpu.memory_space<vmem>>) attributes {dimension_semantics = [#tpu.dimension_semantics<parallel>], iteration_bounds = array<i64: 1>, scalar_prefetch = 0 : i64, scratch_operands = 0 : i64, tpu.core_type = #tpu.core_type<tc>, window_params = [{transform_indices = @transform_0, window_bounds = array<i64: 80, 8>}, {pipeline_mode = #tpu.pipeline_mode<synchronous>, transform_indices = @transform_1, window_bounds = array<i64: 8, 8>}, {pipeline_mode = #tpu.pipeline_mode<synchronous>, transform_indices = @transform_2, window_bounds = array<i64: 1, 8>}, {transform_indices = @transform_3, window_bounds = array<i64: 80, 8>}]} {
    %c0 = arith.constant 0 : index
    %c0_0 = arith.constant 0 : index
    %0 = vector.load %arg1[%c0, %c0_0] : memref<80x8xf32, #tpu.memory_space<vmem>>, vector<80x8xf32>
    %1 = arith.truncf %0 : vector<80x8xf32> to vector<80x8xbf16>
    %c0_1 = arith.constant 0 : index
    %c0_2 = arith.constant 0 : index
    %2 = vector.load %arg2[%c0_1, %c0_2] : memref<8x8xbf16, #tpu.memory_space<vmem>>, vector<8x8xbf16>
    %cst = arith.constant dense<0.000000e+00> : vector<80x8xf32>
    %3 = tpu.matmul %1, %2, %cst {dimension_numbers = #tpu.dot_dimension_numbers<[1], [0], [0], [1], [0, 0, 1, 1], [], []>} : vector<80x8xbf16>, vector<8x8xbf16>, vector<80x8xf32> -> vector<80x8xf32>
    %c0_3 = arith.constant 0 : index
    %c0_4 = arith.constant 0 : index
    %4 = vector.load %arg3[%c0_3, %c0_4] : memref<1x8xf32, #tpu.memory_space<vmem>>, vector<1x8xf32>
    %5 = vector.broadcast %4 : vector<1x8xf32> to vector<80x8xf32>
    %6 = arith.addf %3, %5 : vector<80x8xf32>
    %c0_5 = arith.constant 0 : index
    %c0_6 = arith.constant 0 : index
    %7 = vector.load %arg4[%c0_5, %c0_6] : memref<80x8xf32, #tpu.memory_space<vmem>>, vector<80x8xf32>
    tpu.vector_store %arg4[%c0_5, %c0_6], %6 {strides = array<i32>} : memref<80x8xf32, #tpu.memory_space<vmem>>, vector<80x8xf32>,
    return
  }
  func.func @transform_0(%arg0: i32) -> (i32, i32) {
    %c0_i32 = arith.constant 0 : i32
    %c0_i32_0 = arith.constant 0 : i32
    return %arg0, %c0_i32 : i32, i32
  }
  func.func @transform_1(%arg0: i32) -> (i32, i32) {
    %c0_i32 = arith.constant 0 : i32
    %c0_i32_0 = arith.constant 0 : i32
    %c0_i32_1 = arith.constant 0 : i32
    return %c0_i32, %c0_i32_0 : i32, i32
  }
  func.func @transform_2(%arg0: i32) -> (i32, i32) {
    %c0_i32 = arith.constant 0 : i32
    %c0_i32_0 = arith.constant 0 : i32
    %c0_i32_1 = arith.constant 0 : i32
    return %c0_i32, %c0_i32_0 : i32, i32
  }
  func.func @transform_3(%arg0: i32) -> (i32, i32) {
    %c0_i32 = arith.constant 0 : i32
    %c0_i32_0 = arith.constant 0 : i32
    return %arg0, %c0_i32 : i32, i32
  }
}

module attributes {stable_mosaic.version = 11 : i64} {
  func.func @_mm_kernel(%arg0: i32, %arg1: memref<80x8xf32, #tpu.memory_space<vmem>>, %arg2: memref<8x8xbf16, #tpu.memory_space<vmem>>, %arg3: memref<1x8xf32, #tpu.memory_space<vmem>>, %arg4: memref<80x8xf32, #tpu.memory_space<vmem>>) attributes {dimension_semantics = [#tpu.dimension_semantics<parallel>], iteration_bounds = array<i64: 1>, scalar_prefetch = 0 : i64, scratch_operands = 0 : i64, tpu.core_type = #tpu.core_type<tc>, window_params = [{transform_indices = @transform_0, window_bounds = array<i64: 80, 8>}, {pipeline_mode = #tpu.pipeline_mode<synchronous>, transform_indices = @transform_1, window_bounds = array<i64: 8, 8>}, {pipeline_mode = #tpu.pipeline_mode<synchronous>, transform_indices = @transform_2, window_bounds = array<i64: 1, 8>}, {transform_indices = @transform_3, window_bounds = array<i64: 80, 8>}]} {
    %c0 = arith.constant 0 : index
    %c0_0 = arith.constant 0 : index
    %0 = vector.load %arg1[%c0, %c0_0] : memref<80x8xf32, #tpu.memory_space<vmem>>, vector<80x8xf32>
    %1 = arith.truncf %0 : vector<80x8xf32> to vector<80x8xbf16>
    %c0_1 = arith.constant 0 : index
    %c0_2 = arith.constant 0 : index
    %2 = vector.load %arg2[%c0_1, %c0_2] : memref<8x8xbf16, #tpu.memory_space<vmem>>, vector<8x8xbf16>
    %cst = arith.constant dense<0.000000e+00> : vector<80x8xf32>
    %3 = tpu.matmul %1, %2, %cst {dimension_numbers = #tpu.dot_dimension_numbers<[1], [0], [0], [1], [0, 0, 1, 1], [], []>} : vector<80x8xbf16>, vector<8x8xbf16>, vector<80x8xf32> -> vector<80x8xf32>
    %c0_3 = arith.constant 0 : index
    %c0_4 = arith.constant 0 : index
    %4 = vector.load %arg3[%c0_3, %c0_4] : memref<1x8xf32, #tpu.memory_space<vmem>>, vector<1x8xf32>
    %5 = vector.broadcast %4 : vector<1x8xf32> to vector<80x8xf32>
    %6 = arith.addf %3, %5 : vector<80x8xf32>
    %cst_5 = arith.constant 0.000000e+00 : f32
    %7 = vector.broadcast %cst_5 : f32 to vector<80x8xf32>
    %8 = arith.maximumf %6, %7 : vector<80x8xf32>
    %c0_6 = arith.constant 0 : index
    %c0_7 = arith.constant 0 : index
    %9 = vector.load %arg4[%c0_6, %c0_7] : memref<80x8xf32, #tpu.memory_space<vmem>>, vector<80x8xf32>
    tpu.vector_store %arg4[%c0_6, %c0_7], %8 {strides = array<i32>} : memref<80x8xf32, #tpu.memory_space<vmem>>, vector<80x8xf32>,
    return
  }
  func.func @transform_0(%arg0: i32) -> (i32, i32) {
    %c0_i32 = arith.constant 0 : i32
    %c0_i32_0 = arith.constant 0 : i32
    return %arg0, %c0_i32 : i32, i32
  }
  func.func @transform_1(%arg0: i32) -> (i32, i32) {
    %c0_i32 = arith.constant 0 : i32
    %c0_i32_0 = arith.constant 0 : i32
    %c0_i32_1 = arith.constant 0 : i32
    return %c0_i32, %c0_i32_0 : i32, i32
  }
  func.func @transform_2(%arg0: i32) -> (i32, i32) {
    %c0_i32 = arith.constant 0 : i32
    %c0_i32_0 = arith.constant 0 : i32
    %c0_i32_1 = arith.constant 0 : i32
    return %c0_i32, %c0_i32_0 : i32, i32
  }
  func.func @transform_3(%arg0: i32) -> (i32, i32) {
    %c0_i32 = arith.constant 0 : i32
    %c0_i32_0 = arith.constant 0 : i32
    return %arg0, %c0_i32 : i32, i32
  }
}

module attributes {stable_mosaic.version = 11 : i64} {
  func.func @_rownorm_kernel(%arg0: i32, %arg1: memref<40x5xf32, #tpu.memory_space<vmem>>, %arg2: memref<40x5xf32, #tpu.memory_space<vmem>>) attributes {dimension_semantics = [#tpu.dimension_semantics<parallel>], iteration_bounds = array<i64: 1>, scalar_prefetch = 0 : i64, scratch_operands = 0 : i64, tpu.core_type = #tpu.core_type<tc>, window_params = [{transform_indices = @transform_0, window_bounds = array<i64: 40, 5>}, {transform_indices = @transform_1, window_bounds = array<i64: 40, 5>}]} {
    %c0 = arith.constant 0 : index
    %c0_0 = arith.constant 0 : index
    %0 = vector.load %arg1[%c0, %c0_0] : memref<40x5xf32, #tpu.memory_space<vmem>>, vector<40x5xf32>
    %1 = math.tanh %0 : vector<40x5xf32>
    %2 = math.absf %1 : vector<40x5xf32>
    %cst = arith.constant dense<0.000000e+00> : vector<40xf32>
    %3 = vector.multi_reduction <add>, %2, %cst [1] : vector<40x5xf32> to vector<40xf32>
    %4 = vector.shape_cast %3 : vector<40xf32> to vector<40x1xf32>
    %cst_1 = arith.constant 9.99999997E-7 : f32
    %5 = vector.broadcast %cst_1 : f32 to vector<40x1xf32>
    %6 = arith.addf %4, %5 : vector<40x1xf32>
    %7 = vector.broadcast %6 : vector<40x1xf32> to vector<40x5xf32>
    %8 = arith.divf %1, %7 : vector<40x5xf32>
    %c0_2 = arith.constant 0 : index
    %c0_3 = arith.constant 0 : index
    %9 = vector.load %arg2[%c0_2, %c0_3] : memref<40x5xf32, #tpu.memory_space<vmem>>, vector<40x5xf32>
    tpu.vector_store %arg2[%c0_2, %c0_3], %8 {strides = array<i32>} : memref<40x5xf32, #tpu.memory_space<vmem>>, vector<40x5xf32>,
    return
  }
  func.func @transform_0(%arg0: i32) -> (i32, i32) {
    %c0_i32 = arith.constant 0 : i32
    %c0_i32_0 = arith.constant 0 : i32
    return %arg0, %c0_i32 : i32, i32
  }
  func.func @transform_1(%arg0: i32) -> (i32, i32) {
    %c0_i32 = arith.constant 0 : i32
    %c0_i32_0 = arith.constant 0 : i32
    return %arg0, %c0_i32 : i32, i32
  }
}

module attributes {stable_mosaic.version = 11 : i64} {
  func.func @_mm_kernel(%arg0: i32, %arg1: memref<80x8xf32, #tpu.memory_space<vmem>>, %arg2: memref<8x256xbf16, #tpu.memory_space<vmem>>, %arg3: memref<1x256xf32, #tpu.memory_space<vmem>>, %arg4: memref<80x256xf32, #tpu.memory_space<vmem>>) attributes {dimension_semantics = [#tpu.dimension_semantics<parallel>], iteration_bounds = array<i64: 1>, scalar_prefetch = 0 : i64, scratch_operands = 0 : i64, tpu.core_type = #tpu.core_type<tc>, window_params = [{transform_indices = @transform_0, window_bounds = array<i64: 80, 8>}, {pipeline_mode = #tpu.pipeline_mode<synchronous>, transform_indices = @transform_1, window_bounds = array<i64: 8, 256>}, {pipeline_mode = #tpu.pipeline_mode<synchronous>, transform_indices = @transform_2, window_bounds = array<i64: 1, 256>}, {transform_indices = @transform_3, window_bounds = array<i64: 80, 256>}]} {
    %c0 = arith.constant 0 : index
    %c0_0 = arith.constant 0 : index
    %0 = vector.load %arg1[%c0, %c0_0] : memref<80x8xf32, #tpu.memory_space<vmem>>, vector<80x8xf32>
    %1 = arith.truncf %0 : vector<80x8xf32> to vector<80x8xbf16>
    %c0_1 = arith.constant 0 : index
    %c0_2 = arith.constant 0 : index
    %2 = vector.load %arg2[%c0_1, %c0_2] : memref<8x256xbf16, #tpu.memory_space<vmem>>, vector<8x256xbf16>
    %cst = arith.constant dense<0.000000e+00> : vector<80x256xf32>
    %3 = tpu.matmul %1, %2, %cst {dimension_numbers = #tpu.dot_dimension_numbers<[1], [0], [0], [1], [0, 0, 1, 1], [], []>} : vector<80x8xbf16>, vector<8x256xbf16>, vector<80x256xf32> -> vector<80x256xf32>
    %c0_3 = arith.constant 0 : index
    %c0_4 = arith.constant 0 : index
    %4 = vector.load %arg3[%c0_3, %c0_4] : memref<1x256xf32, #tpu.memory_space<vmem>>, vector<1x256xf32>
    %5 = vector.broadcast %4 : vector<1x256xf32> to vector<80x256xf32>
    %6 = arith.addf %3, %5 : vector<80x256xf32>
    %c0_5 = arith.constant 0 : index
    %c0_6 = arith.constant 0 : index
    %7 = vector.load %arg4[%c0_5, %c0_6] : memref<80x256xf32, #tpu.memory_space<vmem>>, vector<80x256xf32>
    tpu.vector_store %arg4[%c0_5, %c0_6], %6 {strides = array<i32>} : memref<80x256xf32, #tpu.memory_space<vmem>>, vector<80x256xf32>,
    return
  }
  func.func @transform_0(%arg0: i32) -> (i32, i32) {
    %c0_i32 = arith.constant 0 : i32
    %c0_i32_0 = arith.constant 0 : i32
    return %arg0, %c0_i32 : i32, i32
  }
  func.func @transform_1(%arg0: i32) -> (i32, i32) {
    %c0_i32 = arith.constant 0 : i32
    %c0_i32_0 = arith.constant 0 : i32
    %c0_i32_1 = arith.constant 0 : i32
    return %c0_i32, %c0_i32_0 : i32, i32
  }
  func.func @transform_2(%arg0: i32) -> (i32, i32) {
    %c0_i32 = arith.constant 0 : i32
    %c0_i32_0 = arith.constant 0 : i32
    %c0_i32_1 = arith.constant 0 : i32
    return %c0_i32, %c0_i32_0 : i32, i32
  }
  func.func @transform_3(%arg0: i32) -> (i32, i32) {
    %c0_i32 = arith.constant 0 : i32
    %c0_i32_0 = arith.constant 0 : i32
    return %arg0, %c0_i32 : i32, i32
  }
}

module attributes {stable_mosaic.version = 11 : i64} {
  func.func @_tconv_kernel(%arg0: i32, %arg1: memref<1x8x5x64xf32, #tpu.memory_space<vmem>>, %arg2: memref<3x64x64xbf16, #tpu.memory_space<vmem>>, %arg3: memref<1x64xf32, #tpu.memory_space<vmem>>, %arg4: memref<1x64xf32, #tpu.memory_space<vmem>>, %arg5: memref<1x64xf32, #tpu.memory_space<vmem>>, %arg6: memref<1x8x5x64xf32, #tpu.memory_space<vmem>>, %arg7: memref<10x5x64xbf16, #tpu.memory_space<vmem>>) attributes {dimension_semantics = [#tpu.dimension_semantics<parallel>], iteration_bounds = array<i64: 2>, scalar_prefetch = 0 : i64, scratch_operands = 1 : i64, tpu.core_type = #tpu.core_type<tc>, window_params = [{transform_indices = @transform_0, window_bounds = array<i64: 1, 8, 5, 64>}, {pipeline_mode = #tpu.pipeline_mode<synchronous>, transform_indices = @transform_1, window_bounds = array<i64: 3, 64, 64>}, {pipeline_mode = #tpu.pipeline_mode<synchronous>, transform_indices = @transform_2, window_bounds = array<i64: 1, 64>}, {pipeline_mode = #tpu.pipeline_mode<synchronous>, transform_indices = @transform_3, window_bounds = array<i64: 1, 64>}, {pipeline_mode = #tpu.pipeline_mode<synchronous>, transform_indices = @transform_4, window_bounds = array<i64: 1, 64>}, {transform_indices = @transform_5, window_bounds = array<i64: 1, 8, 5, 64>}]} {
    %c0 = arith.constant 0 : index
    %c0_0 = arith.constant 0 : index
    %c0_1 = arith.constant 0 : index
    %c0_2 = arith.constant 0 : index
    %0 = vector.load %arg1[%c0, %c0_0, %c0_1, %c0_2] : memref<1x8x5x64xf32, #tpu.memory_space<vmem>>, vector<1x8x5x64xf32>
    %1 = vector.shape_cast %0 : vector<1x8x5x64xf32> to vector<8x5x64xf32>
    %c0_3 = arith.constant 0 : index
    %c0_4 = arith.constant 0 : index
    %2 = vector.load %arg4[%c0_3, %c0_4] : memref<1x64xf32, #tpu.memory_space<vmem>>, vector<1x64xf32>
    %3 = vector.shape_cast %2 : vector<1x64xf32> to vector<1x1x64xf32>
    %4 = vector.broadcast %3 : vector<1x1x64xf32> to vector<8x5x64xf32>
    %5 = arith.mulf %1, %4 : vector<8x5x64xf32>
    %c0_5 = arith.constant 0 : index
    %c0_6 = arith.constant 0 : index
    %6 = vector.load %arg5[%c0_5, %c0_6] : memref<1x64xf32, #tpu.memory_space<vmem>>, vector<1x64xf32>
    %7 = vector.shape_cast %6 : vector<1x64xf32> to vector<1x1x64xf32>
    %8 = vector.broadcast %7 : vector<1x1x64xf32> to vector<8x5x64xf32>
    %9 = arith.addf %5, %8 : vector<8x5x64xf32>
    %cst = arith.constant 0.000000e+00 : f32
    %10 = vector.broadcast %cst : f32 to vector<8x5x64xf32>
    %11 = arith.maximumf %9, %10 : vector<8x5x64xf32>
    %12 = arith.truncf %11 : vector<8x5x64xf32> to vector<8x5x64xbf16>
    %cst_7 = arith.constant 0.000000e+00 : bf16
    %13 = vector.broadcast %cst_7 : bf16 to vector<1x5x64xbf16>
    %c0_8 = arith.constant 0 : index
    %c0_9 = arith.constant 0 : index
    %c0_10 = arith.constant 0 : index
    %14 = vector.load %arg7[%c0_8, %c0_9, %c0_10] : memref<10x5x64xbf16, #tpu.memory_space<vmem>>, vector<1x5x64xbf16>
    tpu.vector_store %arg7[%c0_8, %c0_9, %c0_10], %13 {strides = array<i32>} : memref<10x5x64xbf16, #tpu.memory_space<vmem>>, vector<1x5x64xbf16>,
    %c1 = arith.constant 1 : index
    %c0_11 = arith.constant 0 : index
    %c0_12 = arith.constant 0 : index
    %15 = vector.load %arg7[%c1, %c0_11, %c0_12] : memref<10x5x64xbf16, #tpu.memory_space<vmem>>, vector<8x5x64xbf16>
    tpu.vector_store %arg7[%c1, %c0_11, %c0_12], %12 {strides = array<i32>} : memref<10x5x64xbf16, #tpu.memory_space<vmem>>, vector<8x5x64xbf16>,
    %cst_13 = arith.constant 0.000000e+00 : bf16
    %16 = vector.broadcast %cst_13 : bf16 to vector<1x5x64xbf16>
    %c9 = arith.constant 9 : index
    %c0_14 = arith.constant 0 : index
    %c0_15 = arith.constant 0 : index
    %17 = vector.load %arg7[%c9, %c0_14, %c0_15] : memref<10x5x64xbf16, #tpu.memory_space<vmem>>, vector<1x5x64xbf16>
    tpu.vector_store %arg7[%c9, %c0_14, %c0_15], %16 {strides = array<i32>} : memref<10x5x64xbf16, #tpu.memory_space<vmem>>, vector<1x5x64xbf16>,
    %cst_16 = arith.constant 0.000000e+00 : f32
    %18 = vector.broadcast %cst_16 : f32 to vector<40x64xf32>
    %c0_17 = arith.constant 0 : index
    %c0_18 = arith.constant 0 : index
    %c0_19 = arith.constant 0 : index
    %19 = vector.load %arg7[%c0_17, %c0_18, %c0_19] : memref<10x5x64xbf16, #tpu.memory_space<vmem>>, vector<8x5x64xbf16>
    %20 = vector.shape_cast %19 : vector<8x5x64xbf16> to vector<40x64xbf16>
    %c0_20 = arith.constant 0 : index
    %c0_21 = arith.constant 0 : index
    %c0_22 = arith.constant 0 : index
    %21 = vector.load %arg2[%c0_20, %c0_21, %c0_22] : memref<3x64x64xbf16, #tpu.memory_space<vmem>>, vector<1x64x64xbf16>
    %22 = vector.shape_cast %21 : vector<1x64x64xbf16> to vector<64x64xbf16>
    %cst_23 = arith.constant dense<0.000000e+00> : vector<40x64xf32>
    %23 = tpu.matmul %20, %22, %cst_23 {dimension_numbers = #tpu.dot_dimension_numbers<[1], [0], [0], [1], [0, 0, 1, 1], [], []>} : vector<40x64xbf16>, vector<64x64xbf16>, vector<40x64xf32> -> vector<40x64xf32>
    %24 = arith.addf %18, %23 : vector<40x64xf32>
    %c1_24 = arith.constant 1 : index
    %c0_25 = arith.constant 0 : index
    %c0_26 = arith.constant 0 : index
    %25 = vector.load %arg7[%c1_24, %c0_25, %c0_26] : memref<10x5x64xbf16, #tpu.memory_space<vmem>>, vector<8x5x64xbf16>
    %26 = vector.shape_cast %25 : vector<8x5x64xbf16> to vector<40x64xbf16>
    %c1_27 = arith.constant 1 : index
    %c0_28 = arith.constant 0 : index
    %c0_29 = arith.constant 0 : index
    %27 = vector.load %arg2[%c1_27, %c0_28, %c0_29] : memref<3x64x64xbf16, #tpu.memory_space<vmem>>, vector<1x64x64xbf16>
    %28 = vector.shape_cast %27 : vector<1x64x64xbf16> to vector<64x64xbf16>
    %cst_30 = arith.constant dense<0.000000e+00> : vector<40x64xf32>
    %29 = tpu.matmul %26, %28, %cst_30 {dimension_numbers = #tpu.dot_dimension_numbers<[1], [0], [0], [1], [0, 0, 1, 1], [], []>} : vector<40x64xbf16>, vector<64x64xbf16>, vector<40x64xf32> -> vector<40x64xf32>
    %30 = arith.addf %24, %29 : vector<40x64xf32>
    %c2 = arith.constant 2 : index
    %c0_31 = arith.constant 0 : index
    %c0_32 = arith.constant 0 : index
    %31 = vector.load %arg7[%c2, %c0_31, %c0_32] : memref<10x5x64xbf16, #tpu.memory_space<vmem>>, vector<8x5x64xbf16>
    %32 = vector.shape_cast %31 : vector<8x5x64xbf16> to vector<40x64xbf16>
    %c2_33 = arith.constant 2 : index
    %c0_34 = arith.constant 0 : index
    %c0_35 = arith.constant 0 : index
    %33 = vector.load %arg2[%c2_33, %c0_34, %c0_35] : memref<3x64x64xbf16, #tpu.memory_space<vmem>>, vector<1x64x64xbf16>
    %34 = vector.shape_cast %33 : vector<1x64x64xbf16> to vector<64x64xbf16>
    %cst_36 = arith.constant dense<0.000000e+00> : vector<40x64xf32>
    %35 = tpu.matmul %32, %34, %cst_36 {dimension_numbers = #tpu.dot_dimension_numbers<[1], [0], [0], [1], [0, 0, 1, 1], [], []>} : vector<40x64xbf16>, vector<64x64xbf16>, vector<40x64xf32> -> vector<40x64xf32>
    %36 = arith.addf %30, %35 : vector<40x64xf32>
    %c0_37 = arith.constant 0 : index
    %c0_38 = arith.constant 0 : index
    %37 = vector.load %arg3[%c0_37, %c0_38] : memref<1x64xf32, #tpu.memory_space<vmem>>, vector<1x64xf32>
    %38 = vector.broadcast %37 : vector<1x64xf32> to vector<40x64xf32>
    %39 = arith.addf %36, %38 : vector<40x64xf32>
    %40 = vector.shape_cast %39 : vector<40x64xf32> to vector<8x5x64xf32>
    %c0_39 = arith.constant 0 : index
    %c0_40 = arith.constant 0 : index
    %c0_41 = arith.constant 0 : index
    %c0_42 = arith.constant 0 : index
    %41 = vector.load %arg6[%c0_39, %c0_40, %c0_41, %c0_42] : memref<1x8x5x64xf32, #tpu.memory_space<vmem>>, vector<1x8x5x64xf32>
    %42 = vector.shape_cast %41 : vector<1x8x5x64xf32> to vector<8x5x64xf32>
    %43 = vector.shape_cast %40 : vector<8x5x64xf32> to vector<1x8x5x64xf32>
    tpu.vector_store %arg6[%c0_39, %c0_40, %c0_41, %c0_42], %43 {strides = array<i32>} : memref<1x8x5x64xf32, #tpu.memory_space<vmem>>, vector<1x8x5x64xf32>,
    return
  }
  func.func @transform_0(%arg0: i32) -> (i32, i32, i32, i32) {
    %c0_i32 = arith.constant 0 : i32
    %c0_i32_0 = arith.constant 0 : i32
    %c0_i32_1 = arith.constant 0 : i32
    %c0_i32_2 = arith.constant 0 : i32
    return %arg0, %c0_i32, %c0_i32_0, %c0_i32_1 : i32, i32, i32, i32
  }
  func.func @transform_1(%arg0: i32) -> (i32, i32, i32) {
    %c0_i32 = arith.constant 0 : i32
    %c0_i32_0 = arith.constant 0 : i32
    %c0_i32_1 = arith.constant 0 : i32
    %c0_i32_2 = arith.constant 0 : i32
    return %c0_i32, %c0_i32_0, %c0_i32_1 : i32, i32, i32
  }
  func.func @transform_2(%arg0: i32) -> (i32, i32) {
    %c0_i32 = arith.constant 0 : i32
    %c0_i32_0 = arith.constant 0 : i32
    %c0_i32_1 = arith.constant 0 : i32
    return %c0_i32, %c0_i32_0 : i32, i32
  }
  func.func @transform_3(%arg0: i32) -> (i32, i32) {
    %c0_i32 = arith.constant 0 : i32
    %c0_i32_0 = arith.constant 0 : i32
    %c0_i32_1 = arith.constant 0 : i32
    return %c0_i32, %c0_i32_0 : i32, i32
  }
  func.func @transform_4(%arg0: i32) -> (i32, i32) {
    %c0_i32 = arith.constant 0 : i32
    %c0_i32_0 = arith.constant 0 : i32
    %c0_i32_1 = arith.constant 0 : i32
    return %c0_i32, %c0_i32_0 : i32, i32
  }
  func.func @transform_5(%arg0: i32) -> (i32, i32, i32, i32) {
    %c0_i32 = arith.constant 0 : i32
    %c0_i32_0 = arith.constant 0 : i32
    %c0_i32_1 = arith.constant 0 : i32
    %c0_i32_2 = arith.constant 0 : i32
    return %arg0, %c0_i32, %c0_i32_0, %c0_i32_1 : i32, i32, i32, i32
  }
}

module attributes {stable_mosaic.version = 11 : i64} {
  func.func @_mm_kernel(%arg0: i32, %arg1: memref<80x64xf32, #tpu.memory_space<vmem>>, %arg2: memref<64x256xbf16, #tpu.memory_space<vmem>>, %arg3: memref<1x256xf32, #tpu.memory_space<vmem>>, %arg4: memref<80x256xf32, #tpu.memory_space<vmem>>) attributes {dimension_semantics = [#tpu.dimension_semantics<parallel>], iteration_bounds = array<i64: 1>, scalar_prefetch = 0 : i64, scratch_operands = 0 : i64, tpu.core_type = #tpu.core_type<tc>, window_params = [{transform_indices = @transform_0, window_bounds = array<i64: 80, 64>}, {pipeline_mode = #tpu.pipeline_mode<synchronous>, transform_indices = @transform_1, window_bounds = array<i64: 64, 256>}, {pipeline_mode = #tpu.pipeline_mode<synchronous>, transform_indices = @transform_2, window_bounds = array<i64: 1, 256>}, {transform_indices = @transform_3, window_bounds = array<i64: 80, 256>}]} {
    %c0 = arith.constant 0 : index
    %c0_0 = arith.constant 0 : index
    %0 = vector.load %arg1[%c0, %c0_0] : memref<80x64xf32, #tpu.memory_space<vmem>>, vector<80x64xf32>
    %1 = arith.truncf %0 : vector<80x64xf32> to vector<80x64xbf16>
    %c0_1 = arith.constant 0 : index
    %c0_2 = arith.constant 0 : index
    %2 = vector.load %arg2[%c0_1, %c0_2] : memref<64x256xbf16, #tpu.memory_space<vmem>>, vector<64x256xbf16>
    %cst = arith.constant dense<0.000000e+00> : vector<80x256xf32>
    %3 = tpu.matmul %1, %2, %cst {dimension_numbers = #tpu.dot_dimension_numbers<[1], [0], [0], [1], [0, 0, 1, 1], [], []>} : vector<80x64xbf16>, vector<64x256xbf16>, vector<80x256xf32> -> vector<80x256xf32>
    %c0_3 = arith.constant 0 : index
    %c0_4 = arith.constant 0 : index
    %4 = vector.load %arg3[%c0_3, %c0_4] : memref<1x256xf32, #tpu.memory_space<vmem>>, vector<1x256xf32>
    %5 = vector.broadcast %4 : vector<1x256xf32> to vector<80x256xf32>
    %6 = arith.addf %3, %5 : vector<80x256xf32>
    %c0_5 = arith.constant 0 : index
    %c0_6 = arith.constant 0 : index
    %7 = vector.load %arg4[%c0_5, %c0_6] : memref<80x256xf32, #tpu.memory_space<vmem>>, vector<80x256xf32>
    tpu.vector_store %arg4[%c0_5, %c0_6], %6 {strides = array<i32>} : memref<80x256xf32, #tpu.memory_space<vmem>>, vector<80x256xf32>,
    return
  }
  func.func @transform_0(%arg0: i32) -> (i32, i32) {
    %c0_i32 = arith.constant 0 : i32
    %c0_i32_0 = arith.constant 0 : i32
    return %arg0, %c0_i32 : i32, i32
  }
  func.func @transform_1(%arg0: i32) -> (i32, i32) {
    %c0_i32 = arith.constant 0 : i32
    %c0_i32_0 = arith.constant 0 : i32
    %c0_i32_1 = arith.constant 0 : i32
    return %c0_i32, %c0_i32_0 : i32, i32
  }
  func.func @transform_2(%arg0: i32) -> (i32, i32) {
    %c0_i32 = arith.constant 0 : i32
    %c0_i32_0 = arith.constant 0 : i32
    %c0_i32_1 = arith.constant 0 : i32
    return %c0_i32, %c0_i32_0 : i32, i32
  }
  func.func @transform_3(%arg0: i32) -> (i32, i32) {
    %c0_i32 = arith.constant 0 : i32
    %c0_i32_0 = arith.constant 0 : i32
    return %arg0, %c0_i32 : i32, i32
  }
}

module attributes {stable_mosaic.version = 11 : i64} {
  func.func @_combine_kernel(%arg0: i32, %arg1: memref<80x64xf32, #tpu.memory_space<vmem>>, %arg2: memref<1x64xf32, #tpu.memory_space<vmem>>, %arg3: memref<1x64xf32, #tpu.memory_space<vmem>>, %arg4: memref<80x64xf32, #tpu.memory_space<vmem>>) attributes {dimension_semantics = [#tpu.dimension_semantics<parallel>], iteration_bounds = array<i64: 1>, scalar_prefetch = 0 : i64, scratch_operands = 0 : i64, tpu.core_type = #tpu.core_type<tc>, window_params = [{transform_indices = @transform_0, window_bounds = array<i64: 80, 64>}, {pipeline_mode = #tpu.pipeline_mode<synchronous>, transform_indices = @transform_1, window_bounds = array<i64: 1, 64>}, {pipeline_mode = #tpu.pipeline_mode<synchronous>, transform_indices = @transform_2, window_bounds = array<i64: 1, 64>}, {transform_indices = @transform_3, window_bounds = array<i64: 80, 64>}]} {
    %c0 = arith.constant 0 : index
    %c0_0 = arith.constant 0 : index
    %0 = vector.load %arg1[%c0, %c0_0] : memref<80x64xf32, #tpu.memory_space<vmem>>, vector<80x64xf32>
    %c0_1 = arith.constant 0 : index
    %c0_2 = arith.constant 0 : index
    %1 = vector.load %arg2[%c0_1, %c0_2] : memref<1x64xf32, #tpu.memory_space<vmem>>, vector<1x64xf32>
    %2 = vector.broadcast %1 : vector<1x64xf32> to vector<80x64xf32>
    %3 = arith.mulf %0, %2 : vector<80x64xf32>
    %c0_3 = arith.constant 0 : index
    %c0_4 = arith.constant 0 : index
    %4 = vector.load %arg3[%c0_3, %c0_4] : memref<1x64xf32, #tpu.memory_space<vmem>>, vector<1x64xf32>
    %5 = vector.broadcast %4 : vector<1x64xf32> to vector<80x64xf32>
    %6 = arith.addf %3, %5 : vector<80x64xf32>
    %cst = arith.constant 0.000000e+00 : f32
    %7 = vector.broadcast %cst : f32 to vector<80x64xf32>
    %8 = arith.maximumf %6, %7 : vector<80x64xf32>
    %c0_5 = arith.constant 0 : index
    %c0_6 = arith.constant 0 : index
    %9 = vector.load %arg4[%c0_5, %c0_6] : memref<80x64xf32, #tpu.memory_space<vmem>>, vector<80x64xf32>
    tpu.vector_store %arg4[%c0_5, %c0_6], %8 {strides = array<i32>} : memref<80x64xf32, #tpu.memory_space<vmem>>, vector<80x64xf32>,
    return
  }
  func.func @transform_0(%arg0: i32) -> (i32, i32) {
    %c0_i32 = arith.constant 0 : i32
    %c0_i32_0 = arith.constant 0 : i32
    return %arg0, %c0_i32 : i32, i32
  }
  func.func @transform_1(%arg0: i32) -> (i32, i32) {
    %c0_i32 = arith.constant 0 : i32
    %c0_i32_0 = arith.constant 0 : i32
    %c0_i32_1 = arith.constant 0 : i32
    return %c0_i32, %c0_i32_0 : i32, i32
  }
  func.func @transform_2(%arg0: i32) -> (i32, i32) {
    %c0_i32 = arith.constant 0 : i32
    %c0_i32_0 = arith.constant 0 : i32
    %c0_i32_1 = arith.constant 0 : i32
    return %c0_i32, %c0_i32_0 : i32, i32
  }
  func.func @transform_3(%arg0: i32) -> (i32, i32) {
    %c0_i32 = arith.constant 0 : i32
    %c0_i32_0 = arith.constant 0 : i32
    return %arg0, %c0_i32 : i32, i32
  }
}

module attributes {stable_mosaic.version = 11 : i64} {
  func.func @_mm_kernel(%arg0: i32, %arg1: memref<80x64xf32, #tpu.memory_space<vmem>>, %arg2: memref<64x512xbf16, #tpu.memory_space<vmem>>, %arg3: memref<1x512xf32, #tpu.memory_space<vmem>>, %arg4: memref<80x512xf32, #tpu.memory_space<vmem>>) attributes {dimension_semantics = [#tpu.dimension_semantics<parallel>], iteration_bounds = array<i64: 1>, scalar_prefetch = 0 : i64, scratch_operands = 0 : i64, tpu.core_type = #tpu.core_type<tc>, window_params = [{transform_indices = @transform_0, window_bounds = array<i64: 80, 64>}, {pipeline_mode = #tpu.pipeline_mode<synchronous>, transform_indices = @transform_1, window_bounds = array<i64: 64, 512>}, {pipeline_mode = #tpu.pipeline_mode<synchronous>, transform_indices = @transform_2, window_bounds = array<i64: 1, 512>}, {transform_indices = @transform_3, window_bounds = array<i64: 80, 512>}]} {
    %c0 = arith.constant 0 : index
    %c0_0 = arith.constant 0 : index
    %0 = vector.load %arg1[%c0, %c0_0] : memref<80x64xf32, #tpu.memory_space<vmem>>, vector<80x64xf32>
    %1 = arith.truncf %0 : vector<80x64xf32> to vector<80x64xbf16>
    %c0_1 = arith.constant 0 : index
    %c0_2 = arith.constant 0 : index
    %2 = vector.load %arg2[%c0_1, %c0_2] : memref<64x512xbf16, #tpu.memory_space<vmem>>, vector<64x512xbf16>
    %cst = arith.constant dense<0.000000e+00> : vector<80x512xf32>
    %3 = tpu.matmul %1, %2, %cst {dimension_numbers = #tpu.dot_dimension_numbers<[1], [0], [0], [1], [0, 0, 1, 1], [], []>} : vector<80x64xbf16>, vector<64x512xbf16>, vector<80x512xf32> -> vector<80x512xf32>
    %c0_3 = arith.constant 0 : index
    %c0_4 = arith.constant 0 : index
    %4 = vector.load %arg3[%c0_3, %c0_4] : memref<1x512xf32, #tpu.memory_space<vmem>>, vector<1x512xf32>
    %5 = vector.broadcast %4 : vector<1x512xf32> to vector<80x512xf32>
    %6 = arith.addf %3, %5 : vector<80x512xf32>
    %c0_5 = arith.constant 0 : index
    %c0_6 = arith.constant 0 : index
    %7 = vector.load %arg4[%c0_5, %c0_6] : memref<80x512xf32, #tpu.memory_space<vmem>>, vector<80x512xf32>
    tpu.vector_store %arg4[%c0_5, %c0_6], %6 {strides = array<i32>} : memref<80x512xf32, #tpu.memory_space<vmem>>, vector<80x512xf32>,
    return
  }
  func.func @transform_0(%arg0: i32) -> (i32, i32) {
    %c0_i32 = arith.constant 0 : i32
    %c0_i32_0 = arith.constant 0 : i32
    return %arg0, %c0_i32 : i32, i32
  }
  func.func @transform_1(%arg0: i32) -> (i32, i32) {
    %c0_i32 = arith.constant 0 : i32
    %c0_i32_0 = arith.constant 0 : i32
    %c0_i32_1 = arith.constant 0 : i32
    return %c0_i32, %c0_i32_0 : i32, i32
  }
  func.func @transform_2(%arg0: i32) -> (i32, i32) {
    %c0_i32 = arith.constant 0 : i32
    %c0_i32_0 = arith.constant 0 : i32
    %c0_i32_1 = arith.constant 0 : i32
    return %c0_i32, %c0_i32_0 : i32, i32
  }
  func.func @transform_3(%arg0: i32) -> (i32, i32) {
    %c0_i32 = arith.constant 0 : i32
    %c0_i32_0 = arith.constant 0 : i32
    return %arg0, %c0_i32 : i32, i32
  }
}

module attributes {stable_mosaic.version = 11 : i64} {
  func.func @_combine_kernel(%arg0: i32, %arg1: memref<80x64xf32, #tpu.memory_space<vmem>>, %arg2: memref<1x64xf32, #tpu.memory_space<vmem>>, %arg3: memref<1x64xf32, #tpu.memory_space<vmem>>, %arg4: memref<80x64xf32, #tpu.memory_space<vmem>>, %arg5: memref<1x64xf32, #tpu.memory_space<vmem>>, %arg6: memref<1x64xf32, #tpu.memory_space<vmem>>, %arg7: memref<80x64xf32, #tpu.memory_space<vmem>>) attributes {dimension_semantics = [#tpu.dimension_semantics<parallel>], iteration_bounds = array<i64: 1>, scalar_prefetch = 0 : i64, scratch_operands = 0 : i64, tpu.core_type = #tpu.core_type<tc>, window_params = [{transform_indices = @transform_0, window_bounds = array<i64: 80, 64>}, {pipeline_mode = #tpu.pipeline_mode<synchronous>, transform_indices = @transform_1, window_bounds = array<i64: 1, 64>}, {pipeline_mode = #tpu.pipeline_mode<synchronous>, transform_indices = @transform_2, window_bounds = array<i64: 1, 64>}, {transform_indices = @transform_3, window_bounds = array<i64: 80, 64>}, {pipeline_mode = #tpu.pipeline_mode<synchronous>, transform_indices = @transform_4, window_bounds = array<i64: 1, 64>}, {pipeline_mode = #tpu.pipeline_mode<synchronous>, transform_indices = @transform_5, window_bounds = array<i64: 1, 64>}, {transform_indices = @transform_6, window_bounds = array<i64: 80, 64>}]} {
    %c0 = arith.constant 0 : index
    %c0_0 = arith.constant 0 : index
    %0 = vector.load %arg1[%c0, %c0_0] : memref<80x64xf32, #tpu.memory_space<vmem>>, vector<80x64xf32>
    %c0_1 = arith.constant 0 : index
    %c0_2 = arith.constant 0 : index
    %1 = vector.load %arg2[%c0_1, %c0_2] : memref<1x64xf32, #tpu.memory_space<vmem>>, vector<1x64xf32>
    %2 = vector.broadcast %1 : vector<1x64xf32> to vector<80x64xf32>
    %3 = arith.mulf %0, %2 : vector<80x64xf32>
    %c0_3 = arith.constant 0 : index
    %c0_4 = arith.constant 0 : index
    %4 = vector.load %arg3[%c0_3, %c0_4] : memref<1x64xf32, #tpu.memory_space<vmem>>, vector<1x64xf32>
    %5 = vector.broadcast %4 : vector<1x64xf32> to vector<80x64xf32>
    %6 = arith.addf %3, %5 : vector<80x64xf32>
    %c0_5 = arith.constant 0 : index
    %c0_6 = arith.constant 0 : index
    %7 = vector.load %arg4[%c0_5, %c0_6] : memref<80x64xf32, #tpu.memory_space<vmem>>, vector<80x64xf32>
    %c0_7 = arith.constant 0 : index
    %c0_8 = arith.constant 0 : index
    %8 = vector.load %arg5[%c0_7, %c0_8] : memref<1x64xf32, #tpu.memory_space<vmem>>, vector<1x64xf32>
    %9 = vector.broadcast %8 : vector<1x64xf32> to vector<80x64xf32>
    %10 = arith.mulf %7, %9 : vector<80x64xf32>
    %11 = arith.addf %6, %10 : vector<80x64xf32>
    %c0_9 = arith.constant 0 : index
    %c0_10 = arith.constant 0 : index
    %12 = vector.load %arg6[%c0_9, %c0_10] : memref<1x64xf32, #tpu.memory_space<vmem>>, vector<1x64xf32>
    %13 = vector.broadcast %12 : vector<1x64xf32> to vector<80x64xf32>
    %14 = arith.addf %11, %13 : vector<80x64xf32>
    %cst = arith.constant 0.000000e+00 : f32
    %15 = vector.broadcast %cst : f32 to vector<80x64xf32>
    %16 = arith.maximumf %14, %15 : vector<80x64xf32>
    %c0_11 = arith.constant 0 : index
    %c0_12 = arith.constant 0 : index
    %17 = vector.load %arg7[%c0_11, %c0_12] : memref<80x64xf32, #tpu.memory_space<vmem>>, vector<80x64xf32>
    tpu.vector_store %arg7[%c0_11, %c0_12], %16 {strides = array<i32>} : memref<80x64xf32, #tpu.memory_space<vmem>>, vector<80x64xf32>,
    return
  }
  func.func @transform_0(%arg0: i32) -> (i32, i32) {
    %c0_i32 = arith.constant 0 : i32
    %c0_i32_0 = arith.constant 0 : i32
    return %arg0, %c0_i32 : i32, i32
  }
  func.func @transform_1(%arg0: i32) -> (i32, i32) {
    %c0_i32 = arith.constant 0 : i32
    %c0_i32_0 = arith.constant 0 : i32
    %c0_i32_1 = arith.constant 0 : i32
    return %c0_i32, %c0_i32_0 : i32, i32
  }
  func.func @transform_2(%arg0: i32) -> (i32, i32) {
    %c0_i32 = arith.constant 0 : i32
    %c0_i32_0 = arith.constant 0 : i32
    %c0_i32_1 = arith.constant 0 : i32
    return %c0_i32, %c0_i32_0 : i32, i32
  }
  func.func @transform_3(%arg0: i32) -> (i32, i32) {
    %c0_i32 = arith.constant 0 : i32
    %c0_i32_0 = arith.constant 0 : i32
    return %arg0, %c0_i32 : i32, i32
  }
  func.func @transform_4(%arg0: i32) -> (i32, i32) {
    %c0_i32 = arith.constant 0 : i32
    %c0_i32_0 = arith.constant 0 : i32
    %c0_i32_1 = arith.constant 0 : i32
    return %c0_i32, %c0_i32_0 : i32, i32
  }
  func.func @transform_5(%arg0: i32) -> (i32, i32) {
    %c0_i32 = arith.constant 0 : i32
    %c0_i32_0 = arith.constant 0 : i32
    %c0_i32_1 = arith.constant 0 : i32
    return %c0_i32, %c0_i32_0 : i32, i32
  }
  func.func @transform_6(%arg0: i32) -> (i32, i32) {
    %c0_i32 = arith.constant 0 : i32
    %c0_i32_0 = arith.constant 0 : i32
    return %arg0, %c0_i32 : i32, i32
  }
}

module attributes {stable_mosaic.version = 11 : i64} {
  func.func @_tconv_kernel(%arg0: i32, %arg1: memref<1x8x5x128xf32, #tpu.memory_space<vmem>>, %arg2: memref<3x128x128xbf16, #tpu.memory_space<vmem>>, %arg3: memref<1x128xf32, #tpu.memory_space<vmem>>, %arg4: memref<1x128xf32, #tpu.memory_space<vmem>>, %arg5: memref<1x128xf32, #tpu.memory_space<vmem>>, %arg6: memref<1x4x5x128xf32, #tpu.memory_space<vmem>>, %arg7: memref<10x5x128xbf16, #tpu.memory_space<vmem>>) attributes {dimension_semantics = [#tpu.dimension_semantics<parallel>], iteration_bounds = array<i64: 2>, scalar_prefetch = 0 : i64, scratch_operands = 1 : i64, tpu.core_type = #tpu.core_type<tc>, window_params = [{transform_indices = @transform_0, window_bounds = array<i64: 1, 8, 5, 128>}, {pipeline_mode = #tpu.pipeline_mode<synchronous>, transform_indices = @transform_1, window_bounds = array<i64: 3, 128, 128>}, {pipeline_mode = #tpu.pipeline_mode<synchronous>, transform_indices = @transform_2, window_bounds = array<i64: 1, 128>}, {pipeline_mode = #tpu.pipeline_mode<synchronous>, transform_indices = @transform_3, window_bounds = array<i64: 1, 128>}, {pipeline_mode = #tpu.pipeline_mode<synchronous>, transform_indices = @transform_4, window_bounds = array<i64: 1, 128>}, {transform_indices = @transform_5, window_bounds = array<i64: 1, 4, 5, 128>}]} {
    %c0 = arith.constant 0 : index
    %c0_0 = arith.constant 0 : index
    %c0_1 = arith.constant 0 : index
    %c0_2 = arith.constant 0 : index
    %0 = vector.load %arg1[%c0, %c0_0, %c0_1, %c0_2] : memref<1x8x5x128xf32, #tpu.memory_space<vmem>>, vector<1x8x5x128xf32>
    %1 = vector.shape_cast %0 : vector<1x8x5x128xf32> to vector<8x5x128xf32>
    %c0_3 = arith.constant 0 : index
    %c0_4 = arith.constant 0 : index
    %2 = vector.load %arg4[%c0_3, %c0_4] : memref<1x128xf32, #tpu.memory_space<vmem>>, vector<1x128xf32>
    %3 = vector.shape_cast %2 : vector<1x128xf32> to vector<1x1x128xf32>
    %4 = vector.broadcast %3 : vector<1x1x128xf32> to vector<8x5x128xf32>
    %5 = arith.mulf %1, %4 : vector<8x5x128xf32>
    %c0_5 = arith.constant 0 : index
    %c0_6 = arith.constant 0 : index
    %6 = vector.load %arg5[%c0_5, %c0_6] : memref<1x128xf32, #tpu.memory_space<vmem>>, vector<1x128xf32>
    %7 = vector.shape_cast %6 : vector<1x128xf32> to vector<1x1x128xf32>
    %8 = vector.broadcast %7 : vector<1x1x128xf32> to vector<8x5x128xf32>
    %9 = arith.addf %5, %8 : vector<8x5x128xf32>
    %cst = arith.constant 0.000000e+00 : f32
    %10 = vector.broadcast %cst : f32 to vector<8x5x128xf32>
    %11 = arith.maximumf %9, %10 : vector<8x5x128xf32>
    %12 = arith.truncf %11 : vector<8x5x128xf32> to vector<8x5x128xbf16>
    %cst_7 = arith.constant 0.000000e+00 : bf16
    %13 = vector.broadcast %cst_7 : bf16 to vector<1x5x128xbf16>
    %c0_8 = arith.constant 0 : index
    %c0_9 = arith.constant 0 : index
    %c0_10 = arith.constant 0 : index
    %14 = vector.load %arg7[%c0_8, %c0_9, %c0_10] : memref<10x5x128xbf16, #tpu.memory_space<vmem>>, vector<1x5x128xbf16>
    tpu.vector_store %arg7[%c0_8, %c0_9, %c0_10], %13 {strides = array<i32>} : memref<10x5x128xbf16, #tpu.memory_space<vmem>>, vector<1x5x128xbf16>,
    %c1 = arith.constant 1 : index
    %c0_11 = arith.constant 0 : index
    %c0_12 = arith.constant 0 : index
    %15 = vector.load %arg7[%c1, %c0_11, %c0_12] : memref<10x5x128xbf16, #tpu.memory_space<vmem>>, vector<8x5x128xbf16>
    tpu.vector_store %arg7[%c1, %c0_11, %c0_12], %12 {strides = array<i32>} : memref<10x5x128xbf16, #tpu.memory_space<vmem>>, vector<8x5x128xbf16>,
    %cst_13 = arith.constant 0.000000e+00 : bf16
    %16 = vector.broadcast %cst_13 : bf16 to vector<1x5x128xbf16>
    %c9 = arith.constant 9 : index
    %c0_14 = arith.constant 0 : index
    %c0_15 = arith.constant 0 : index
    %17 = vector.load %arg7[%c9, %c0_14, %c0_15] : memref<10x5x128xbf16, #tpu.memory_space<vmem>>, vector<1x5x128xbf16>
    tpu.vector_store %arg7[%c9, %c0_14, %c0_15], %16 {strides = array<i32>} : memref<10x5x128xbf16, #tpu.memory_space<vmem>>, vector<1x5x128xbf16>,
    %cst_16 = arith.constant 0.000000e+00 : f32
    %18 = vector.broadcast %cst_16 : f32 to vector<20x128xf32>
    %c0_17 = arith.constant 0 : index
    %c0_18 = arith.constant 0 : index
    %c0_19 = arith.constant 0 : index
    %19 = vector.load %arg7[%c0_17, %c0_18, %c0_19] : memref<10x5x128xbf16, #tpu.memory_space<vmem>>, vector<8x5x128xbf16>
    %20 = vector.shape_cast %19 : vector<8x5x128xbf16> to vector<4x2x5x128xbf16>
    %21 = vector.extract_strided_slice %20 {offsets = [0, 0, 0, 0], sizes = [4, 1, 5, 128], strides = [1, 1, 1, 1]} : vector<4x2x5x128xbf16> to vector<4x1x5x128xbf16>
    %22 = vector.shape_cast %21 : vector<4x1x5x128xbf16> to vector<4x5x128xbf16>
    %23 = vector.shape_cast %22 : vector<4x5x128xbf16> to vector<20x128xbf16>
    %c0_20 = arith.constant 0 : index
    %c0_21 = arith.constant 0 : index
    %c0_22 = arith.constant 0 : index
    %24 = vector.load %arg2[%c0_20, %c0_21, %c0_22] : memref<3x128x128xbf16, #tpu.memory_space<vmem>>, vector<1x128x128xbf16>
    %25 = vector.shape_cast %24 : vector<1x128x128xbf16> to vector<128x128xbf16>
    %cst_23 = arith.constant dense<0.000000e+00> : vector<20x128xf32>
    %26 = tpu.matmul %23, %25, %cst_23 {dimension_numbers = #tpu.dot_dimension_numbers<[1], [0], [0], [1], [0, 0, 1, 1], [], []>} : vector<20x128xbf16>, vector<128x128xbf16>, vector<20x128xf32> -> vector<20x128xf32>
    %27 = arith.addf %18, %26 : vector<20x128xf32>
    %c1_24 = arith.constant 1 : index
    %c0_25 = arith.constant 0 : index
    %c0_26 = arith.constant 0 : index
    %28 = vector.load %arg7[%c1_24, %c0_25, %c0_26] : memref<10x5x128xbf16, #tpu.memory_space<vmem>>, vector<8x5x128xbf16>
    %29 = vector.shape_cast %28 : vector<8x5x128xbf16> to vector<4x2x5x128xbf16>
    %30 = vector.extract_strided_slice %29 {offsets = [0, 0, 0, 0], sizes = [4, 1, 5, 128], strides = [1, 1, 1, 1]} : vector<4x2x5x128xbf16> to vector<4x1x5x128xbf16>
    %31 = vector.shape_cast %30 : vector<4x1x5x128xbf16> to vector<4x5x128xbf16>
    %32 = vector.shape_cast %31 : vector<4x5x128xbf16> to vector<20x128xbf16>
    %c1_27 = arith.constant 1 : index
    %c0_28 = arith.constant 0 : index
    %c0_29 = arith.constant 0 : index
    %33 = vector.load %arg2[%c1_27, %c0_28, %c0_29] : memref<3x128x128xbf16, #tpu.memory_space<vmem>>, vector<1x128x128xbf16>
    %34 = vector.shape_cast %33 : vector<1x128x128xbf16> to vector<128x128xbf16>
    %cst_30 = arith.constant dense<0.000000e+00> : vector<20x128xf32>
    %35 = tpu.matmul %32, %34, %cst_30 {dimension_numbers = #tpu.dot_dimension_numbers<[1], [0], [0], [1], [0, 0, 1, 1], [], []>} : vector<20x128xbf16>, vector<128x128xbf16>, vector<20x128xf32> -> vector<20x128xf32>
    %36 = arith.addf %27, %35 : vector<20x128xf32>
    %c2 = arith.constant 2 : index
    %c0_31 = arith.constant 0 : index
    %c0_32 = arith.constant 0 : index
    %37 = vector.load %arg7[%c2, %c0_31, %c0_32] : memref<10x5x128xbf16, #tpu.memory_space<vmem>>, vector<8x5x128xbf16>
    %38 = vector.shape_cast %37 : vector<8x5x128xbf16> to vector<4x2x5x128xbf16>
    %39 = vector.extract_strided_slice %38 {offsets = [0, 0, 0, 0], sizes = [4, 1, 5, 128], strides = [1, 1, 1, 1]} : vector<4x2x5x128xbf16> to vector<4x1x5x128xbf16>
    %40 = vector.shape_cast %39 : vector<4x1x5x128xbf16> to vector<4x5x128xbf16>
    %41 = vector.shape_cast %40 : vector<4x5x128xbf16> to vector<20x128xbf16>
    %c2_33 = arith.constant 2 : index
    %c0_34 = arith.constant 0 : index
    %c0_35 = arith.constant 0 : index
    %42 = vector.load %arg2[%c2_33, %c0_34, %c0_35] : memref<3x128x128xbf16, #tpu.memory_space<vmem>>, vector<1x128x128xbf16>
    %43 = vector.shape_cast %42 : vector<1x128x128xbf16> to vector<128x128xbf16>
    %cst_36 = arith.constant dense<0.000000e+00> : vector<20x128xf32>
    %44 = tpu.matmul %41, %43, %cst_36 {dimension_numbers = #tpu.dot_dimension_numbers<[1], [0], [0], [1], [0, 0, 1, 1], [], []>} : vector<20x128xbf16>, vector<128x128xbf16>, vector<20x128xf32> -> vector<20x128xf32>
    %45 = arith.addf %36, %44 : vector<20x128xf32>
    %c0_37 = arith.constant 0 : index
    %c0_38 = arith.constant 0 : index
    %46 = vector.load %arg3[%c0_37, %c0_38] : memref<1x128xf32, #tpu.memory_space<vmem>>, vector<1x128xf32>
    %47 = vector.broadcast %46 : vector<1x128xf32> to vector<20x128xf32>
    %48 = arith.addf %45, %47 : vector<20x128xf32>
    %49 = vector.shape_cast %48 : vector<20x128xf32> to vector<4x5x128xf32>
    %c0_39 = arith.constant 0 : index
    %c0_40 = arith.constant 0 : index
    %c0_41 = arith.constant 0 : index
    %c0_42 = arith.constant 0 : index
    %50 = vector.load %arg6[%c0_39, %c0_40, %c0_41, %c0_42] : memref<1x4x5x128xf32, #tpu.memory_space<vmem>>, vector<1x4x5x128xf32>
    %51 = vector.shape_cast %50 : vector<1x4x5x128xf32> to vector<4x5x128xf32>
    %52 = vector.shape_cast %49 : vector<4x5x128xf32> to vector<1x4x5x128xf32>
    tpu.vector_store %arg6[%c0_39, %c0_40, %c0_41, %c0_42], %52 {strides = array<i32>} : memref<1x4x5x128xf32, #tpu.memory_space<vmem>>, vector<1x4x5x128xf32>,
    return
  }
  func.func @transform_0(%arg0: i32) -> (i32, i32, i32, i32) {
    %c0_i32 = arith.constant 0 : i32
    %c0_i32_0 = arith.constant 0 : i32
    %c0_i32_1 = arith.constant 0 : i32
    %c0_i32_2 = arith.constant 0 : i32
    return %arg0, %c0_i32, %c0_i32_0, %c0_i32_1 : i32, i32, i32, i32
  }
  func.func @transform_1(%arg0: i32) -> (i32, i32, i32) {
    %c0_i32 = arith.constant 0 : i32
    %c0_i32_0 = arith.constant 0 : i32
    %c0_i32_1 = arith.constant 0 : i32
    %c0_i32_2 = arith.constant 0 : i32
    return %c0_i32, %c0_i32_0, %c0_i32_1 : i32, i32, i32
  }
  func.func @transform_2(%arg0: i32) -> (i32, i32) {
    %c0_i32 = arith.constant 0 : i32
    %c0_i32_0 = arith.constant 0 : i32
    %c0_i32_1 = arith.constant 0 : i32
    return %c0_i32, %c0_i32_0 : i32, i32
  }
  func.func @transform_3(%arg0: i32) -> (i32, i32) {
    %c0_i32 = arith.constant 0 : i32
    %c0_i32_0 = arith.constant 0 : i32
    %c0_i32_1 = arith.constant 0 : i32
    return %c0_i32, %c0_i32_0 : i32, i32
  }
  func.func @transform_4(%arg0: i32) -> (i32, i32) {
    %c0_i32 = arith.constant 0 : i32
    %c0_i32_0 = arith.constant 0 : i32
    %c0_i32_1 = arith.constant 0 : i32
    return %c0_i32, %c0_i32_0 : i32, i32
  }
  func.func @transform_5(%arg0: i32) -> (i32, i32, i32, i32) {
    %c0_i32 = arith.constant 0 : i32
    %c0_i32_0 = arith.constant 0 : i32
    %c0_i32_1 = arith.constant 0 : i32
    %c0_i32_2 = arith.constant 0 : i32
    return %arg0, %c0_i32, %c0_i32_0, %c0_i32_1 : i32, i32, i32, i32
  }
}

module attributes {stable_mosaic.version = 11 : i64} {
  func.func @_mm_kernel(%arg0: i32, %arg1: memref<40x64xf32, #tpu.memory_space<vmem>>, %arg2: memref<64x128xbf16, #tpu.memory_space<vmem>>, %arg3: memref<1x128xf32, #tpu.memory_space<vmem>>, %arg4: memref<40x128xf32, #tpu.memory_space<vmem>>) attributes {dimension_semantics = [#tpu.dimension_semantics<parallel>], iteration_bounds = array<i64: 1>, scalar_prefetch = 0 : i64, scratch_operands = 0 : i64, tpu.core_type = #tpu.core_type<tc>, window_params = [{transform_indices = @transform_0, window_bounds = array<i64: 40, 64>}, {pipeline_mode = #tpu.pipeline_mode<synchronous>, transform_indices = @transform_1, window_bounds = array<i64: 64, 128>}, {pipeline_mode = #tpu.pipeline_mode<synchronous>, transform_indices = @transform_2, window_bounds = array<i64: 1, 128>}, {transform_indices = @transform_3, window_bounds = array<i64: 40, 128>}]} {
    %c0 = arith.constant 0 : index
    %c0_0 = arith.constant 0 : index
    %0 = vector.load %arg1[%c0, %c0_0] : memref<40x64xf32, #tpu.memory_space<vmem>>, vector<40x64xf32>
    %1 = arith.truncf %0 : vector<40x64xf32> to vector<40x64xbf16>
    %c0_1 = arith.constant 0 : index
    %c0_2 = arith.constant 0 : index
    %2 = vector.load %arg2[%c0_1, %c0_2] : memref<64x128xbf16, #tpu.memory_space<vmem>>, vector<64x128xbf16>
    %cst = arith.constant dense<0.000000e+00> : vector<40x128xf32>
    %3 = tpu.matmul %1, %2, %cst {dimension_numbers = #tpu.dot_dimension_numbers<[1], [0], [0], [1], [0, 0, 1, 1], [], []>} : vector<40x64xbf16>, vector<64x128xbf16>, vector<40x128xf32> -> vector<40x128xf32>
    %c0_3 = arith.constant 0 : index
    %c0_4 = arith.constant 0 : index
    %4 = vector.load %arg3[%c0_3, %c0_4] : memref<1x128xf32, #tpu.memory_space<vmem>>, vector<1x128xf32>
    %5 = vector.broadcast %4 : vector<1x128xf32> to vector<40x128xf32>
    %6 = arith.addf %3, %5 : vector<40x128xf32>
    %c0_5 = arith.constant 0 : index
    %c0_6 = arith.constant 0 : index
    %7 = vector.load %arg4[%c0_5, %c0_6] : memref<40x128xf32, #tpu.memory_space<vmem>>, vector<40x128xf32>
    tpu.vector_store %arg4[%c0_5, %c0_6], %6 {strides = array<i32>} : memref<40x128xf32, #tpu.memory_space<vmem>>, vector<40x128xf32>,
    return
  }
  func.func @transform_0(%arg0: i32) -> (i32, i32) {
    %c0_i32 = arith.constant 0 : i32
    %c0_i32_0 = arith.constant 0 : i32
    return %arg0, %c0_i32 : i32, i32
  }
  func.func @transform_1(%arg0: i32) -> (i32, i32) {
    %c0_i32 = arith.constant 0 : i32
    %c0_i32_0 = arith.constant 0 : i32
    %c0_i32_1 = arith.constant 0 : i32
    return %c0_i32, %c0_i32_0 : i32, i32
  }
  func.func @transform_2(%arg0: i32) -> (i32, i32) {
    %c0_i32 = arith.constant 0 : i32
    %c0_i32_0 = arith.constant 0 : i32
    %c0_i32_1 = arith.constant 0 : i32
    return %c0_i32, %c0_i32_0 : i32, i32
  }
  func.func @transform_3(%arg0: i32) -> (i32, i32) {
    %c0_i32 = arith.constant 0 : i32
    %c0_i32_0 = arith.constant 0 : i32
    return %arg0, %c0_i32 : i32, i32
  }
}

module attributes {stable_mosaic.version = 11 : i64} {
  func.func @_combine_kernel(%arg0: i32, %arg1: memref<40x128xf32, #tpu.memory_space<vmem>>, %arg2: memref<1x128xf32, #tpu.memory_space<vmem>>, %arg3: memref<1x128xf32, #tpu.memory_space<vmem>>, %arg4: memref<40x128xf32, #tpu.memory_space<vmem>>, %arg5: memref<1x128xf32, #tpu.memory_space<vmem>>, %arg6: memref<1x128xf32, #tpu.memory_space<vmem>>, %arg7: memref<40x128xf32, #tpu.memory_space<vmem>>) attributes {dimension_semantics = [#tpu.dimension_semantics<parallel>], iteration_bounds = array<i64: 1>, scalar_prefetch = 0 : i64, scratch_operands = 0 : i64, tpu.core_type = #tpu.core_type<tc>, window_params = [{transform_indices = @transform_0, window_bounds = array<i64: 40, 128>}, {pipeline_mode = #tpu.pipeline_mode<synchronous>, transform_indices = @transform_1, window_bounds = array<i64: 1, 128>}, {pipeline_mode = #tpu.pipeline_mode<synchronous>, transform_indices = @transform_2, window_bounds = array<i64: 1, 128>}, {transform_indices = @transform_3, window_bounds = array<i64: 40, 128>}, {pipeline_mode = #tpu.pipeline_mode<synchronous>, transform_indices = @transform_4, window_bounds = array<i64: 1, 128>}, {pipeline_mode = #tpu.pipeline_mode<synchronous>, transform_indices = @transform_5, window_bounds = array<i64: 1, 128>}, {transform_indices = @transform_6, window_bounds = array<i64: 40, 128>}]} {
    %c0 = arith.constant 0 : index
    %c0_0 = arith.constant 0 : index
    %0 = vector.load %arg1[%c0, %c0_0] : memref<40x128xf32, #tpu.memory_space<vmem>>, vector<40x128xf32>
    %c0_1 = arith.constant 0 : index
    %c0_2 = arith.constant 0 : index
    %1 = vector.load %arg2[%c0_1, %c0_2] : memref<1x128xf32, #tpu.memory_space<vmem>>, vector<1x128xf32>
    %2 = vector.broadcast %1 : vector<1x128xf32> to vector<40x128xf32>
    %3 = arith.mulf %0, %2 : vector<40x128xf32>
    %c0_3 = arith.constant 0 : index
    %c0_4 = arith.constant 0 : index
    %4 = vector.load %arg3[%c0_3, %c0_4] : memref<1x128xf32, #tpu.memory_space<vmem>>, vector<1x128xf32>
    %5 = vector.broadcast %4 : vector<1x128xf32> to vector<40x128xf32>
    %6 = arith.addf %3, %5 : vector<40x128xf32>
    %c0_5 = arith.constant 0 : index
    %c0_6 = arith.constant 0 : index
    %7 = vector.load %arg4[%c0_5, %c0_6] : memref<40x128xf32, #tpu.memory_space<vmem>>, vector<40x128xf32>
    %c0_7 = arith.constant 0 : index
    %c0_8 = arith.constant 0 : index
    %8 = vector.load %arg5[%c0_7, %c0_8] : memref<1x128xf32, #tpu.memory_space<vmem>>, vector<1x128xf32>
    %9 = vector.broadcast %8 : vector<1x128xf32> to vector<40x128xf32>
    %10 = arith.mulf %7, %9 : vector<40x128xf32>
    %11 = arith.addf %6, %10 : vector<40x128xf32>
    %c0_9 = arith.constant 0 : index
    %c0_10 = arith.constant 0 : index
    %12 = vector.load %arg6[%c0_9, %c0_10] : memref<1x128xf32, #tpu.memory_space<vmem>>, vector<1x128xf32>
    %13 = vector.broadcast %12 : vector<1x128xf32> to vector<40x128xf32>
    %14 = arith.addf %11, %13 : vector<40x128xf32>
    %cst = arith.constant 0.000000e+00 : f32
    %15 = vector.broadcast %cst : f32 to vector<40x128xf32>
    %16 = arith.maximumf %14, %15 : vector<40x128xf32>
    %c0_11 = arith.constant 0 : index
    %c0_12 = arith.constant 0 : index
    %17 = vector.load %arg7[%c0_11, %c0_12] : memref<40x128xf32, #tpu.memory_space<vmem>>, vector<40x128xf32>
    tpu.vector_store %arg7[%c0_11, %c0_12], %16 {strides = array<i32>} : memref<40x128xf32, #tpu.memory_space<vmem>>, vector<40x128xf32>,
    return
  }
  func.func @transform_0(%arg0: i32) -> (i32, i32) {
    %c0_i32 = arith.constant 0 : i32
    %c0_i32_0 = arith.constant 0 : i32
    return %arg0, %c0_i32 : i32, i32
  }
  func.func @transform_1(%arg0: i32) -> (i32, i32) {
    %c0_i32 = arith.constant 0 : i32
    %c0_i32_0 = arith.constant 0 : i32
    %c0_i32_1 = arith.constant 0 : i32
    return %c0_i32, %c0_i32_0 : i32, i32
  }
  func.func @transform_2(%arg0: i32) -> (i32, i32) {
    %c0_i32 = arith.constant 0 : i32
    %c0_i32_0 = arith.constant 0 : i32
    %c0_i32_1 = arith.constant 0 : i32
    return %c0_i32, %c0_i32_0 : i32, i32
  }
  func.func @transform_3(%arg0: i32) -> (i32, i32) {
    %c0_i32 = arith.constant 0 : i32
    %c0_i32_0 = arith.constant 0 : i32
    return %arg0, %c0_i32 : i32, i32
  }
  func.func @transform_4(%arg0: i32) -> (i32, i32) {
    %c0_i32 = arith.constant 0 : i32
    %c0_i32_0 = arith.constant 0 : i32
    %c0_i32_1 = arith.constant 0 : i32
    return %c0_i32, %c0_i32_0 : i32, i32
  }
  func.func @transform_5(%arg0: i32) -> (i32, i32) {
    %c0_i32 = arith.constant 0 : i32
    %c0_i32_0 = arith.constant 0 : i32
    %c0_i32_1 = arith.constant 0 : i32
    return %c0_i32, %c0_i32_0 : i32, i32
  }
  func.func @transform_6(%arg0: i32) -> (i32, i32) {
    %c0_i32 = arith.constant 0 : i32
    %c0_i32_0 = arith.constant 0 : i32
    return %arg0, %c0_i32 : i32, i32
  }
}

module attributes {stable_mosaic.version = 11 : i64} {
  func.func @_mm_kernel(%arg0: i32, %arg1: memref<40x128xf32, #tpu.memory_space<vmem>>, %arg2: memref<128x512xbf16, #tpu.memory_space<vmem>>, %arg3: memref<1x512xf32, #tpu.memory_space<vmem>>, %arg4: memref<40x512xf32, #tpu.memory_space<vmem>>) attributes {dimension_semantics = [#tpu.dimension_semantics<parallel>], iteration_bounds = array<i64: 1>, scalar_prefetch = 0 : i64, scratch_operands = 0 : i64, tpu.core_type = #tpu.core_type<tc>, window_params = [{transform_indices = @transform_0, window_bounds = array<i64: 40, 128>}, {pipeline_mode = #tpu.pipeline_mode<synchronous>, transform_indices = @transform_1, window_bounds = array<i64: 128, 512>}, {pipeline_mode = #tpu.pipeline_mode<synchronous>, transform_indices = @transform_2, window_bounds = array<i64: 1, 512>}, {transform_indices = @transform_3, window_bounds = array<i64: 40, 512>}]} {
    %c0 = arith.constant 0 : index
    %c0_0 = arith.constant 0 : index
    %0 = vector.load %arg1[%c0, %c0_0] : memref<40x128xf32, #tpu.memory_space<vmem>>, vector<40x128xf32>
    %1 = arith.truncf %0 : vector<40x128xf32> to vector<40x128xbf16>
    %c0_1 = arith.constant 0 : index
    %c0_2 = arith.constant 0 : index
    %2 = vector.load %arg2[%c0_1, %c0_2] : memref<128x512xbf16, #tpu.memory_space<vmem>>, vector<128x512xbf16>
    %cst = arith.constant dense<0.000000e+00> : vector<40x512xf32>
    %3 = tpu.matmul %1, %2, %cst {dimension_numbers = #tpu.dot_dimension_numbers<[1], [0], [0], [1], [0, 0, 1, 1], [], []>} : vector<40x128xbf16>, vector<128x512xbf16>, vector<40x512xf32> -> vector<40x512xf32>
    %c0_3 = arith.constant 0 : index
    %c0_4 = arith.constant 0 : index
    %4 = vector.load %arg3[%c0_3, %c0_4] : memref<1x512xf32, #tpu.memory_space<vmem>>, vector<1x512xf32>
    %5 = vector.broadcast %4 : vector<1x512xf32> to vector<40x512xf32>
    %6 = arith.addf %3, %5 : vector<40x512xf32>
    %c0_5 = arith.constant 0 : index
    %c0_6 = arith.constant 0 : index
    %7 = vector.load %arg4[%c0_5, %c0_6] : memref<40x512xf32, #tpu.memory_space<vmem>>, vector<40x512xf32>
    tpu.vector_store %arg4[%c0_5, %c0_6], %6 {strides = array<i32>} : memref<40x512xf32, #tpu.memory_space<vmem>>, vector<40x512xf32>,
    return
  }
  func.func @transform_0(%arg0: i32) -> (i32, i32) {
    %c0_i32 = arith.constant 0 : i32
    %c0_i32_0 = arith.constant 0 : i32
    return %arg0, %c0_i32 : i32, i32
  }
  func.func @transform_1(%arg0: i32) -> (i32, i32) {
    %c0_i32 = arith.constant 0 : i32
    %c0_i32_0 = arith.constant 0 : i32
    %c0_i32_1 = arith.constant 0 : i32
    return %c0_i32, %c0_i32_0 : i32, i32
  }
  func.func @transform_2(%arg0: i32) -> (i32, i32) {
    %c0_i32 = arith.constant 0 : i32
    %c0_i32_0 = arith.constant 0 : i32
    %c0_i32_1 = arith.constant 0 : i32
    return %c0_i32, %c0_i32_0 : i32, i32
  }
  func.func @transform_3(%arg0: i32) -> (i32, i32) {
    %c0_i32 = arith.constant 0 : i32
    %c0_i32_0 = arith.constant 0 : i32
    return %arg0, %c0_i32 : i32, i32
  }
}

module attributes {stable_mosaic.version = 11 : i64} {
  func.func @_rownorm_kernel(%arg0: i32, %arg1: memref<24x5xf32, #tpu.memory_space<vmem>>, %arg2: memref<24x5xf32, #tpu.memory_space<vmem>>) attributes {dimension_semantics = [#tpu.dimension_semantics<parallel>], iteration_bounds = array<i64: 1>, scalar_prefetch = 0 : i64, scratch_operands = 0 : i64, tpu.core_type = #tpu.core_type<tc>, window_params = [{transform_indices = @transform_0, window_bounds = array<i64: 24, 5>}, {transform_indices = @transform_1, window_bounds = array<i64: 24, 5>}]} {
    %c0 = arith.constant 0 : index
    %c0_0 = arith.constant 0 : index
    %0 = vector.load %arg1[%c0, %c0_0] : memref<24x5xf32, #tpu.memory_space<vmem>>, vector<24x5xf32>
    %1 = math.tanh %0 : vector<24x5xf32>
    %2 = math.absf %1 : vector<24x5xf32>
    %cst = arith.constant dense<0.000000e+00> : vector<24xf32>
    %3 = vector.multi_reduction <add>, %2, %cst [1] : vector<24x5xf32> to vector<24xf32>
    %4 = vector.shape_cast %3 : vector<24xf32> to vector<24x1xf32>
    %cst_1 = arith.constant 9.99999997E-7 : f32
    %5 = vector.broadcast %cst_1 : f32 to vector<24x1xf32>
    %6 = arith.addf %4, %5 : vector<24x1xf32>
    %7 = vector.broadcast %6 : vector<24x1xf32> to vector<24x5xf32>
    %8 = arith.divf %1, %7 : vector<24x5xf32>
    %c0_2 = arith.constant 0 : index
    %c0_3 = arith.constant 0 : index
    %9 = vector.load %arg2[%c0_2, %c0_3] : memref<24x5xf32, #tpu.memory_space<vmem>>, vector<24x5xf32>
    tpu.vector_store %arg2[%c0_2, %c0_3], %8 {strides = array<i32>} : memref<24x5xf32, #tpu.memory_space<vmem>>, vector<24x5xf32>,
    return
  }
  func.func @transform_0(%arg0: i32) -> (i32, i32) {
    %c0_i32 = arith.constant 0 : i32
    %c0_i32_0 = arith.constant 0 : i32
    return %arg0, %c0_i32 : i32, i32
  }
  func.func @transform_1(%arg0: i32) -> (i32, i32) {
    %c0_i32 = arith.constant 0 : i32
    %c0_i32_0 = arith.constant 0 : i32
    return %arg0, %c0_i32 : i32, i32
  }
}

module attributes {stable_mosaic.version = 11 : i64} {
  func.func @_mm_kernel(%arg0: i32, %arg1: memref<24x128xf32, #tpu.memory_space<vmem>>, %arg2: memref<128x256xbf16, #tpu.memory_space<vmem>>, %arg3: memref<1x256xf32, #tpu.memory_space<vmem>>, %arg4: memref<24x256xf32, #tpu.memory_space<vmem>>) attributes {dimension_semantics = [#tpu.dimension_semantics<parallel>], iteration_bounds = array<i64: 1>, scalar_prefetch = 0 : i64, scratch_operands = 0 : i64, tpu.core_type = #tpu.core_type<tc>, window_params = [{transform_indices = @transform_0, window_bounds = array<i64: 24, 128>}, {pipeline_mode = #tpu.pipeline_mode<synchronous>, transform_indices = @transform_1, window_bounds = array<i64: 128, 256>}, {pipeline_mode = #tpu.pipeline_mode<synchronous>, transform_indices = @transform_2, window_bounds = array<i64: 1, 256>}, {transform_indices = @transform_3, window_bounds = array<i64: 24, 256>}]} {
    %c0 = arith.constant 0 : index
    %c0_0 = arith.constant 0 : index
    %0 = vector.load %arg1[%c0, %c0_0] : memref<24x128xf32, #tpu.memory_space<vmem>>, vector<24x128xf32>
    %1 = arith.truncf %0 : vector<24x128xf32> to vector<24x128xbf16>
    %c0_1 = arith.constant 0 : index
    %c0_2 = arith.constant 0 : index
    %2 = vector.load %arg2[%c0_1, %c0_2] : memref<128x256xbf16, #tpu.memory_space<vmem>>, vector<128x256xbf16>
    %cst = arith.constant dense<0.000000e+00> : vector<24x256xf32>
    %3 = tpu.matmul %1, %2, %cst {dimension_numbers = #tpu.dot_dimension_numbers<[1], [0], [0], [1], [0, 0, 1, 1], [], []>} : vector<24x128xbf16>, vector<128x256xbf16>, vector<24x256xf32> -> vector<24x256xf32>
    %c0_3 = arith.constant 0 : index
    %c0_4 = arith.constant 0 : index
    %4 = vector.load %arg3[%c0_3, %c0_4] : memref<1x256xf32, #tpu.memory_space<vmem>>, vector<1x256xf32>
    %5 = vector.broadcast %4 : vector<1x256xf32> to vector<24x256xf32>
    %6 = arith.addf %3, %5 : vector<24x256xf32>
    %c0_5 = arith.constant 0 : index
    %c0_6 = arith.constant 0 : index
    %7 = vector.load %arg4[%c0_5, %c0_6] : memref<24x256xf32, #tpu.memory_space<vmem>>, vector<24x256xf32>
    tpu.vector_store %arg4[%c0_5, %c0_6], %6 {strides = array<i32>} : memref<24x256xf32, #tpu.memory_space<vmem>>, vector<24x256xf32>,
    return
  }
  func.func @transform_0(%arg0: i32) -> (i32, i32) {
    %c0_i32 = arith.constant 0 : i32
    %c0_i32_0 = arith.constant 0 : i32
    return %arg0, %c0_i32 : i32, i32
  }
  func.func @transform_1(%arg0: i32) -> (i32, i32) {
    %c0_i32 = arith.constant 0 : i32
    %c0_i32_0 = arith.constant 0 : i32
    %c0_i32_1 = arith.constant 0 : i32
    return %c0_i32, %c0_i32_0 : i32, i32
  }
  func.func @transform_2(%arg0: i32) -> (i32, i32) {
    %c0_i32 = arith.constant 0 : i32
    %c0_i32_0 = arith.constant 0 : i32
    %c0_i32_1 = arith.constant 0 : i32
    return %c0_i32, %c0_i32_0 : i32, i32
  }
  func.func @transform_3(%arg0: i32) -> (i32, i32) {
    %c0_i32 = arith.constant 0 : i32
    %c0_i32_0 = arith.constant 0 : i32
    return %arg0, %c0_i32 : i32, i32
  }
}

module attributes {stable_mosaic.version = 11 : i64} {
  func.func @_tconv_kernel(%arg0: i32, %arg1: memref<1x4x5x128xf32, #tpu.memory_space<vmem>>, %arg2: memref<3x128x128xbf16, #tpu.memory_space<vmem>>, %arg3: memref<1x128xf32, #tpu.memory_space<vmem>>, %arg4: memref<1x128xf32, #tpu.memory_space<vmem>>, %arg5: memref<1x128xf32, #tpu.memory_space<vmem>>, %arg6: memref<1x4x5x128xf32, #tpu.memory_space<vmem>>, %arg7: memref<6x5x128xbf16, #tpu.memory_space<vmem>>) attributes {dimension_semantics = [#tpu.dimension_semantics<parallel>], iteration_bounds = array<i64: 2>, scalar_prefetch = 0 : i64, scratch_operands = 1 : i64, tpu.core_type = #tpu.core_type<tc>, window_params = [{transform_indices = @transform_0, window_bounds = array<i64: 1, 4, 5, 128>}, {pipeline_mode = #tpu.pipeline_mode<synchronous>, transform_indices = @transform_1, window_bounds = array<i64: 3, 128, 128>}, {pipeline_mode = #tpu.pipeline_mode<synchronous>, transform_indices = @transform_2, window_bounds = array<i64: 1, 128>}, {pipeline_mode = #tpu.pipeline_mode<synchronous>, transform_indices = @transform_3, window_bounds = array<i64: 1, 128>}, {pipeline_mode = #tpu.pipeline_mode<synchronous>, transform_indices = @transform_4, window_bounds = array<i64: 1, 128>}, {transform_indices = @transform_5, window_bounds = array<i64: 1, 4, 5, 128>}]} {
    %c0 = arith.constant 0 : index
    %c0_0 = arith.constant 0 : index
    %c0_1 = arith.constant 0 : index
    %c0_2 = arith.constant 0 : index
    %0 = vector.load %arg1[%c0, %c0_0, %c0_1, %c0_2] : memref<1x4x5x128xf32, #tpu.memory_space<vmem>>, vector<1x4x5x128xf32>
    %1 = vector.shape_cast %0 : vector<1x4x5x128xf32> to vector<4x5x128xf32>
    %c0_3 = arith.constant 0 : index
    %c0_4 = arith.constant 0 : index
    %2 = vector.load %arg4[%c0_3, %c0_4] : memref<1x128xf32, #tpu.memory_space<vmem>>, vector<1x128xf32>
    %3 = vector.shape_cast %2 : vector<1x128xf32> to vector<1x1x128xf32>
    %4 = vector.broadcast %3 : vector<1x1x128xf32> to vector<4x5x128xf32>
    %5 = arith.mulf %1, %4 : vector<4x5x128xf32>
    %c0_5 = arith.constant 0 : index
    %c0_6 = arith.constant 0 : index
    %6 = vector.load %arg5[%c0_5, %c0_6] : memref<1x128xf32, #tpu.memory_space<vmem>>, vector<1x128xf32>
    %7 = vector.shape_cast %6 : vector<1x128xf32> to vector<1x1x128xf32>
    %8 = vector.broadcast %7 : vector<1x1x128xf32> to vector<4x5x128xf32>
    %9 = arith.addf %5, %8 : vector<4x5x128xf32>
    %cst = arith.constant 0.000000e+00 : f32
    %10 = vector.broadcast %cst : f32 to vector<4x5x128xf32>
    %11 = arith.maximumf %9, %10 : vector<4x5x128xf32>
    %12 = arith.truncf %11 : vector<4x5x128xf32> to vector<4x5x128xbf16>
    %cst_7 = arith.constant 0.000000e+00 : bf16
    %13 = vector.broadcast %cst_7 : bf16 to vector<1x5x128xbf16>
    %c0_8 = arith.constant 0 : index
    %c0_9 = arith.constant 0 : index
    %c0_10 = arith.constant 0 : index
    %14 = vector.load %arg7[%c0_8, %c0_9, %c0_10] : memref<6x5x128xbf16, #tpu.memory_space<vmem>>, vector<1x5x128xbf16>
    tpu.vector_store %arg7[%c0_8, %c0_9, %c0_10], %13 {strides = array<i32>} : memref<6x5x128xbf16, #tpu.memory_space<vmem>>, vector<1x5x128xbf16>,
    %c1 = arith.constant 1 : index
    %c0_11 = arith.constant 0 : index
    %c0_12 = arith.constant 0 : index
    %15 = vector.load %arg7[%c1, %c0_11, %c0_12] : memref<6x5x128xbf16, #tpu.memory_space<vmem>>, vector<4x5x128xbf16>
    tpu.vector_store %arg7[%c1, %c0_11, %c0_12], %12 {strides = array<i32>} : memref<6x5x128xbf16, #tpu.memory_space<vmem>>, vector<4x5x128xbf16>,
    %cst_13 = arith.constant 0.000000e+00 : bf16
    %16 = vector.broadcast %cst_13 : bf16 to vector<1x5x128xbf16>
    %c5 = arith.constant 5 : index
    %c0_14 = arith.constant 0 : index
    %c0_15 = arith.constant 0 : index
    %17 = vector.load %arg7[%c5, %c0_14, %c0_15] : memref<6x5x128xbf16, #tpu.memory_space<vmem>>, vector<1x5x128xbf16>
    tpu.vector_store %arg7[%c5, %c0_14, %c0_15], %16 {strides = array<i32>} : memref<6x5x128xbf16, #tpu.memory_space<vmem>>, vector<1x5x128xbf16>,
    %cst_16 = arith.constant 0.000000e+00 : f32
    %18 = vector.broadcast %cst_16 : f32 to vector<20x128xf32>
    %c0_17 = arith.constant 0 : index
    %c0_18 = arith.constant 0 : index
    %c0_19 = arith.constant 0 : index
    %19 = vector.load %arg7[%c0_17, %c0_18, %c0_19] : memref<6x5x128xbf16, #tpu.memory_space<vmem>>, vector<4x5x128xbf16>
    %20 = vector.shape_cast %19 : vector<4x5x128xbf16> to vector<20x128xbf16>
    %c0_20 = arith.constant 0 : index
    %c0_21 = arith.constant 0 : index
    %c0_22 = arith.constant 0 : index
    %21 = vector.load %arg2[%c0_20, %c0_21, %c0_22] : memref<3x128x128xbf16, #tpu.memory_space<vmem>>, vector<1x128x128xbf16>
    %22 = vector.shape_cast %21 : vector<1x128x128xbf16> to vector<128x128xbf16>
    %cst_23 = arith.constant dense<0.000000e+00> : vector<20x128xf32>
    %23 = tpu.matmul %20, %22, %cst_23 {dimension_numbers = #tpu.dot_dimension_numbers<[1], [0], [0], [1], [0, 0, 1, 1], [], []>} : vector<20x128xbf16>, vector<128x128xbf16>, vector<20x128xf32> -> vector<20x128xf32>
    %24 = arith.addf %18, %23 : vector<20x128xf32>
    %c1_24 = arith.constant 1 : index
    %c0_25 = arith.constant 0 : index
    %c0_26 = arith.constant 0 : index
    %25 = vector.load %arg7[%c1_24, %c0_25, %c0_26] : memref<6x5x128xbf16, #tpu.memory_space<vmem>>, vector<4x5x128xbf16>
    %26 = vector.shape_cast %25 : vector<4x5x128xbf16> to vector<20x128xbf16>
    %c1_27 = arith.constant 1 : index
    %c0_28 = arith.constant 0 : index
    %c0_29 = arith.constant 0 : index
    %27 = vector.load %arg2[%c1_27, %c0_28, %c0_29] : memref<3x128x128xbf16, #tpu.memory_space<vmem>>, vector<1x128x128xbf16>
    %28 = vector.shape_cast %27 : vector<1x128x128xbf16> to vector<128x128xbf16>
    %cst_30 = arith.constant dense<0.000000e+00> : vector<20x128xf32>
    %29 = tpu.matmul %26, %28, %cst_30 {dimension_numbers = #tpu.dot_dimension_numbers<[1], [0], [0], [1], [0, 0, 1, 1], [], []>} : vector<20x128xbf16>, vector<128x128xbf16>, vector<20x128xf32> -> vector<20x128xf32>
    %30 = arith.addf %24, %29 : vector<20x128xf32>
    %c2 = arith.constant 2 : index
    %c0_31 = arith.constant 0 : index
    %c0_32 = arith.constant 0 : index
    %31 = vector.load %arg7[%c2, %c0_31, %c0_32] : memref<6x5x128xbf16, #tpu.memory_space<vmem>>, vector<4x5x128xbf16>
    %32 = vector.shape_cast %31 : vector<4x5x128xbf16> to vector<20x128xbf16>
    %c2_33 = arith.constant 2 : index
    %c0_34 = arith.constant 0 : index
    %c0_35 = arith.constant 0 : index
    %33 = vector.load %arg2[%c2_33, %c0_34, %c0_35] : memref<3x128x128xbf16, #tpu.memory_space<vmem>>, vector<1x128x128xbf16>
    %34 = vector.shape_cast %33 : vector<1x128x128xbf16> to vector<128x128xbf16>
    %cst_36 = arith.constant dense<0.000000e+00> : vector<20x128xf32>
    %35 = tpu.matmul %32, %34, %cst_36 {dimension_numbers = #tpu.dot_dimension_numbers<[1], [0], [0], [1], [0, 0, 1, 1], [], []>} : vector<20x128xbf16>, vector<128x128xbf16>, vector<20x128xf32> -> vector<20x128xf32>
    %36 = arith.addf %30, %35 : vector<20x128xf32>
    %c0_37 = arith.constant 0 : index
    %c0_38 = arith.constant 0 : index
    %37 = vector.load %arg3[%c0_37, %c0_38] : memref<1x128xf32, #tpu.memory_space<vmem>>, vector<1x128xf32>
    %38 = vector.broadcast %37 : vector<1x128xf32> to vector<20x128xf32>
    %39 = arith.addf %36, %38 : vector<20x128xf32>
    %40 = vector.shape_cast %39 : vector<20x128xf32> to vector<4x5x128xf32>
    %c0_39 = arith.constant 0 : index
    %c0_40 = arith.constant 0 : index
    %c0_41 = arith.constant 0 : index
    %c0_42 = arith.constant 0 : index
    %41 = vector.load %arg6[%c0_39, %c0_40, %c0_41, %c0_42] : memref<1x4x5x128xf32, #tpu.memory_space<vmem>>, vector<1x4x5x128xf32>
    %42 = vector.shape_cast %41 : vector<1x4x5x128xf32> to vector<4x5x128xf32>
    %43 = vector.shape_cast %40 : vector<4x5x128xf32> to vector<1x4x5x128xf32>
    tpu.vector_store %arg6[%c0_39, %c0_40, %c0_41, %c0_42], %43 {strides = array<i32>} : memref<1x4x5x128xf32, #tpu.memory_space<vmem>>, vector<1x4x5x128xf32>,
    return
  }
  func.func @transform_0(%arg0: i32) -> (i32, i32, i32, i32) {
    %c0_i32 = arith.constant 0 : i32
    %c0_i32_0 = arith.constant 0 : i32
    %c0_i32_1 = arith.constant 0 : i32
    %c0_i32_2 = arith.constant 0 : i32
    return %arg0, %c0_i32, %c0_i32_0, %c0_i32_1 : i32, i32, i32, i32
  }
  func.func @transform_1(%arg0: i32) -> (i32, i32, i32) {
    %c0_i32 = arith.constant 0 : i32
    %c0_i32_0 = arith.constant 0 : i32
    %c0_i32_1 = arith.constant 0 : i32
    %c0_i32_2 = arith.constant 0 : i32
    return %c0_i32, %c0_i32_0, %c0_i32_1 : i32, i32, i32
  }
  func.func @transform_2(%arg0: i32) -> (i32, i32) {
    %c0_i32 = arith.constant 0 : i32
    %c0_i32_0 = arith.constant 0 : i32
    %c0_i32_1 = arith.constant 0 : i32
    return %c0_i32, %c0_i32_0 : i32, i32
  }
  func.func @transform_3(%arg0: i32) -> (i32, i32) {
    %c0_i32 = arith.constant 0 : i32
    %c0_i32_0 = arith.constant 0 : i32
    %c0_i32_1 = arith.constant 0 : i32
    return %c0_i32, %c0_i32_0 : i32, i32
  }
  func.func @transform_4(%arg0: i32) -> (i32, i32) {
    %c0_i32 = arith.constant 0 : i32
    %c0_i32_0 = arith.constant 0 : i32
    %c0_i32_1 = arith.constant 0 : i32
    return %c0_i32, %c0_i32_0 : i32, i32
  }
  func.func @transform_5(%arg0: i32) -> (i32, i32, i32, i32) {
    %c0_i32 = arith.constant 0 : i32
    %c0_i32_0 = arith.constant 0 : i32
    %c0_i32_1 = arith.constant 0 : i32
    %c0_i32_2 = arith.constant 0 : i32
    return %arg0, %c0_i32, %c0_i32_0, %c0_i32_1 : i32, i32, i32, i32
  }
}

module attributes {stable_mosaic.version = 11 : i64} {
  func.func @_mm_kernel(%arg0: i32, %arg1: memref<40x128xf32, #tpu.memory_space<vmem>>, %arg2: memref<128x1024xbf16, #tpu.memory_space<vmem>>, %arg3: memref<1x1024xf32, #tpu.memory_space<vmem>>, %arg4: memref<40x1024xf32, #tpu.memory_space<vmem>>) attributes {dimension_semantics = [#tpu.dimension_semantics<parallel>], iteration_bounds = array<i64: 1>, scalar_prefetch = 0 : i64, scratch_operands = 0 : i64, tpu.core_type = #tpu.core_type<tc>, window_params = [{transform_indices = @transform_0, window_bounds = array<i64: 40, 128>}, {pipeline_mode = #tpu.pipeline_mode<synchronous>, transform_indices = @transform_1, window_bounds = array<i64: 128, 1024>}, {pipeline_mode = #tpu.pipeline_mode<synchronous>, transform_indices = @transform_2, window_bounds = array<i64: 1, 1024>}, {transform_indices = @transform_3, window_bounds = array<i64: 40, 1024>}]} {
    %c0 = arith.constant 0 : index
    %c0_0 = arith.constant 0 : index
    %0 = vector.load %arg1[%c0, %c0_0] : memref<40x128xf32, #tpu.memory_space<vmem>>, vector<40x128xf32>
    %1 = arith.truncf %0 : vector<40x128xf32> to vector<40x128xbf16>
    %c0_1 = arith.constant 0 : index
    %c0_2 = arith.constant 0 : index
    %2 = vector.load %arg2[%c0_1, %c0_2] : memref<128x1024xbf16, #tpu.memory_space<vmem>>, vector<128x1024xbf16>
    %cst = arith.constant dense<0.000000e+00> : vector<40x1024xf32>
    %3 = tpu.matmul %1, %2, %cst {dimension_numbers = #tpu.dot_dimension_numbers<[1], [0], [0], [1], [0, 0, 1, 1], [], []>} : vector<40x128xbf16>, vector<128x1024xbf16>, vector<40x1024xf32> -> vector<40x1024xf32>
    %c0_3 = arith.constant 0 : index
    %c0_4 = arith.constant 0 : index
    %4 = vector.load %arg3[%c0_3, %c0_4] : memref<1x1024xf32, #tpu.memory_space<vmem>>, vector<1x1024xf32>
    %5 = vector.broadcast %4 : vector<1x1024xf32> to vector<40x1024xf32>
    %6 = arith.addf %3, %5 : vector<40x1024xf32>
    %c0_5 = arith.constant 0 : index
    %c0_6 = arith.constant 0 : index
    %7 = vector.load %arg4[%c0_5, %c0_6] : memref<40x1024xf32, #tpu.memory_space<vmem>>, vector<40x1024xf32>
    tpu.vector_store %arg4[%c0_5, %c0_6], %6 {strides = array<i32>} : memref<40x1024xf32, #tpu.memory_space<vmem>>, vector<40x1024xf32>,
    return
  }
  func.func @transform_0(%arg0: i32) -> (i32, i32) {
    %c0_i32 = arith.constant 0 : i32
    %c0_i32_0 = arith.constant 0 : i32
    return %arg0, %c0_i32 : i32, i32
  }
  func.func @transform_1(%arg0: i32) -> (i32, i32) {
    %c0_i32 = arith.constant 0 : i32
    %c0_i32_0 = arith.constant 0 : i32
    %c0_i32_1 = arith.constant 0 : i32
    return %c0_i32, %c0_i32_0 : i32, i32
  }
  func.func @transform_2(%arg0: i32) -> (i32, i32) {
    %c0_i32 = arith.constant 0 : i32
    %c0_i32_0 = arith.constant 0 : i32
    %c0_i32_1 = arith.constant 0 : i32
    return %c0_i32, %c0_i32_0 : i32, i32
  }
  func.func @transform_3(%arg0: i32) -> (i32, i32) {
    %c0_i32 = arith.constant 0 : i32
    %c0_i32_0 = arith.constant 0 : i32
    return %arg0, %c0_i32 : i32, i32
  }
}

module attributes {stable_mosaic.version = 11 : i64} {
  func.func @_tconv_kernel(%arg0: i32, %arg1: memref<1x4x5x256xf32, #tpu.memory_space<vmem>>, %arg2: memref<3x256x256xbf16, #tpu.memory_space<vmem>>, %arg3: memref<1x256xf32, #tpu.memory_space<vmem>>, %arg4: memref<1x256xf32, #tpu.memory_space<vmem>>, %arg5: memref<1x256xf32, #tpu.memory_space<vmem>>, %arg6: memref<1x2x5x256xf32, #tpu.memory_space<vmem>>, %arg7: memref<6x5x256xbf16, #tpu.memory_space<vmem>>) attributes {dimension_semantics = [#tpu.dimension_semantics<parallel>], iteration_bounds = array<i64: 2>, scalar_prefetch = 0 : i64, scratch_operands = 1 : i64, tpu.core_type = #tpu.core_type<tc>, window_params = [{transform_indices = @transform_0, window_bounds = array<i64: 1, 4, 5, 256>}, {pipeline_mode = #tpu.pipeline_mode<synchronous>, transform_indices = @transform_1, window_bounds = array<i64: 3, 256, 256>}, {pipeline_mode = #tpu.pipeline_mode<synchronous>, transform_indices = @transform_2, window_bounds = array<i64: 1, 256>}, {pipeline_mode = #tpu.pipeline_mode<synchronous>, transform_indices = @transform_3, window_bounds = array<i64: 1, 256>}, {pipeline_mode = #tpu.pipeline_mode<synchronous>, transform_indices = @transform_4, window_bounds = array<i64: 1, 256>}, {transform_indices = @transform_5, window_bounds = array<i64: 1, 2, 5, 256>}]} {
    %c0 = arith.constant 0 : index
    %c0_0 = arith.constant 0 : index
    %c0_1 = arith.constant 0 : index
    %c0_2 = arith.constant 0 : index
    %0 = vector.load %arg1[%c0, %c0_0, %c0_1, %c0_2] : memref<1x4x5x256xf32, #tpu.memory_space<vmem>>, vector<1x4x5x256xf32>
    %1 = vector.shape_cast %0 : vector<1x4x5x256xf32> to vector<4x5x256xf32>
    %c0_3 = arith.constant 0 : index
    %c0_4 = arith.constant 0 : index
    %2 = vector.load %arg4[%c0_3, %c0_4] : memref<1x256xf32, #tpu.memory_space<vmem>>, vector<1x256xf32>
    %3 = vector.shape_cast %2 : vector<1x256xf32> to vector<1x1x256xf32>
    %4 = vector.broadcast %3 : vector<1x1x256xf32> to vector<4x5x256xf32>
    %5 = arith.mulf %1, %4 : vector<4x5x256xf32>
    %c0_5 = arith.constant 0 : index
    %c0_6 = arith.constant 0 : index
    %6 = vector.load %arg5[%c0_5, %c0_6] : memref<1x256xf32, #tpu.memory_space<vmem>>, vector<1x256xf32>
    %7 = vector.shape_cast %6 : vector<1x256xf32> to vector<1x1x256xf32>
    %8 = vector.broadcast %7 : vector<1x1x256xf32> to vector<4x5x256xf32>
    %9 = arith.addf %5, %8 : vector<4x5x256xf32>
    %cst = arith.constant 0.000000e+00 : f32
    %10 = vector.broadcast %cst : f32 to vector<4x5x256xf32>
    %11 = arith.maximumf %9, %10 : vector<4x5x256xf32>
    %12 = arith.truncf %11 : vector<4x5x256xf32> to vector<4x5x256xbf16>
    %cst_7 = arith.constant 0.000000e+00 : bf16
    %13 = vector.broadcast %cst_7 : bf16 to vector<1x5x256xbf16>
    %c0_8 = arith.constant 0 : index
    %c0_9 = arith.constant 0 : index
    %c0_10 = arith.constant 0 : index
    %14 = vector.load %arg7[%c0_8, %c0_9, %c0_10] : memref<6x5x256xbf16, #tpu.memory_space<vmem>>, vector<1x5x256xbf16>
    tpu.vector_store %arg7[%c0_8, %c0_9, %c0_10], %13 {strides = array<i32>} : memref<6x5x256xbf16, #tpu.memory_space<vmem>>, vector<1x5x256xbf16>,
    %c1 = arith.constant 1 : index
    %c0_11 = arith.constant 0 : index
    %c0_12 = arith.constant 0 : index
    %15 = vector.load %arg7[%c1, %c0_11, %c0_12] : memref<6x5x256xbf16, #tpu.memory_space<vmem>>, vector<4x5x256xbf16>
    tpu.vector_store %arg7[%c1, %c0_11, %c0_12], %12 {strides = array<i32>} : memref<6x5x256xbf16, #tpu.memory_space<vmem>>, vector<4x5x256xbf16>,
    %cst_13 = arith.constant 0.000000e+00 : bf16
    %16 = vector.broadcast %cst_13 : bf16 to vector<1x5x256xbf16>
    %c5 = arith.constant 5 : index
    %c0_14 = arith.constant 0 : index
    %c0_15 = arith.constant 0 : index
    %17 = vector.load %arg7[%c5, %c0_14, %c0_15] : memref<6x5x256xbf16, #tpu.memory_space<vmem>>, vector<1x5x256xbf16>
    tpu.vector_store %arg7[%c5, %c0_14, %c0_15], %16 {strides = array<i32>} : memref<6x5x256xbf16, #tpu.memory_space<vmem>>, vector<1x5x256xbf16>,
    %cst_16 = arith.constant 0.000000e+00 : f32
    %18 = vector.broadcast %cst_16 : f32 to vector<10x256xf32>
    %c0_17 = arith.constant 0 : index
    %c0_18 = arith.constant 0 : index
    %c0_19 = arith.constant 0 : index
    %19 = vector.load %arg7[%c0_17, %c0_18, %c0_19] : memref<6x5x256xbf16, #tpu.memory_space<vmem>>, vector<4x5x256xbf16>
    %20 = vector.shape_cast %19 : vector<4x5x256xbf16> to vector<2x2x5x256xbf16>
    %21 = vector.extract_strided_slice %20 {offsets = [0, 0, 0, 0], sizes = [2, 1, 5, 256], strides = [1, 1, 1, 1]} : vector<2x2x5x256xbf16> to vector<2x1x5x256xbf16>
    %22 = vector.shape_cast %21 : vector<2x1x5x256xbf16> to vector<2x5x256xbf16>
    %23 = vector.shape_cast %22 : vector<2x5x256xbf16> to vector<10x256xbf16>
    %c0_20 = arith.constant 0 : index
    %c0_21 = arith.constant 0 : index
    %c0_22 = arith.constant 0 : index
    %24 = vector.load %arg2[%c0_20, %c0_21, %c0_22] : memref<3x256x256xbf16, #tpu.memory_space<vmem>>, vector<1x256x256xbf16>
    %25 = vector.shape_cast %24 : vector<1x256x256xbf16> to vector<256x256xbf16>
    %cst_23 = arith.constant dense<0.000000e+00> : vector<10x256xf32>
    %26 = tpu.matmul %23, %25, %cst_23 {dimension_numbers = #tpu.dot_dimension_numbers<[1], [0], [0], [1], [0, 0, 1, 1], [], []>} : vector<10x256xbf16>, vector<256x256xbf16>, vector<10x256xf32> -> vector<10x256xf32>
    %27 = arith.addf %18, %26 : vector<10x256xf32>
    %c1_24 = arith.constant 1 : index
    %c0_25 = arith.constant 0 : index
    %c0_26 = arith.constant 0 : index
    %28 = vector.load %arg7[%c1_24, %c0_25, %c0_26] : memref<6x5x256xbf16, #tpu.memory_space<vmem>>, vector<4x5x256xbf16>
    %29 = vector.shape_cast %28 : vector<4x5x256xbf16> to vector<2x2x5x256xbf16>
    %30 = vector.extract_strided_slice %29 {offsets = [0, 0, 0, 0], sizes = [2, 1, 5, 256], strides = [1, 1, 1, 1]} : vector<2x2x5x256xbf16> to vector<2x1x5x256xbf16>
    %31 = vector.shape_cast %30 : vector<2x1x5x256xbf16> to vector<2x5x256xbf16>
    %32 = vector.shape_cast %31 : vector<2x5x256xbf16> to vector<10x256xbf16>
    %c1_27 = arith.constant 1 : index
    %c0_28 = arith.constant 0 : index
    %c0_29 = arith.constant 0 : index
    %33 = vector.load %arg2[%c1_27, %c0_28, %c0_29] : memref<3x256x256xbf16, #tpu.memory_space<vmem>>, vector<1x256x256xbf16>
    %34 = vector.shape_cast %33 : vector<1x256x256xbf16> to vector<256x256xbf16>
    %cst_30 = arith.constant dense<0.000000e+00> : vector<10x256xf32>
    %35 = tpu.matmul %32, %34, %cst_30 {dimension_numbers = #tpu.dot_dimension_numbers<[1], [0], [0], [1], [0, 0, 1, 1], [], []>} : vector<10x256xbf16>, vector<256x256xbf16>, vector<10x256xf32> -> vector<10x256xf32>
    %36 = arith.addf %27, %35 : vector<10x256xf32>
    %c2 = arith.constant 2 : index
    %c0_31 = arith.constant 0 : index
    %c0_32 = arith.constant 0 : index
    %37 = vector.load %arg7[%c2, %c0_31, %c0_32] : memref<6x5x256xbf16, #tpu.memory_space<vmem>>, vector<4x5x256xbf16>
    %38 = vector.shape_cast %37 : vector<4x5x256xbf16> to vector<2x2x5x256xbf16>
    %39 = vector.extract_strided_slice %38 {offsets = [0, 0, 0, 0], sizes = [2, 1, 5, 256], strides = [1, 1, 1, 1]} : vector<2x2x5x256xbf16> to vector<2x1x5x256xbf16>
    %40 = vector.shape_cast %39 : vector<2x1x5x256xbf16> to vector<2x5x256xbf16>
    %41 = vector.shape_cast %40 : vector<2x5x256xbf16> to vector<10x256xbf16>
    %c2_33 = arith.constant 2 : index
    %c0_34 = arith.constant 0 : index
    %c0_35 = arith.constant 0 : index
    %42 = vector.load %arg2[%c2_33, %c0_34, %c0_35] : memref<3x256x256xbf16, #tpu.memory_space<vmem>>, vector<1x256x256xbf16>
    %43 = vector.shape_cast %42 : vector<1x256x256xbf16> to vector<256x256xbf16>
    %cst_36 = arith.constant dense<0.000000e+00> : vector<10x256xf32>
    %44 = tpu.matmul %41, %43, %cst_36 {dimension_numbers = #tpu.dot_dimension_numbers<[1], [0], [0], [1], [0, 0, 1, 1], [], []>} : vector<10x256xbf16>, vector<256x256xbf16>, vector<10x256xf32> -> vector<10x256xf32>
    %45 = arith.addf %36, %44 : vector<10x256xf32>
    %c0_37 = arith.constant 0 : index
    %c0_38 = arith.constant 0 : index
    %46 = vector.load %arg3[%c0_37, %c0_38] : memref<1x256xf32, #tpu.memory_space<vmem>>, vector<1x256xf32>
    %47 = vector.broadcast %46 : vector<1x256xf32> to vector<10x256xf32>
    %48 = arith.addf %45, %47 : vector<10x256xf32>
    %49 = vector.shape_cast %48 : vector<10x256xf32> to vector<2x5x256xf32>
    %c0_39 = arith.constant 0 : index
    %c0_40 = arith.constant 0 : index
    %c0_41 = arith.constant 0 : index
    %c0_42 = arith.constant 0 : index
    %50 = vector.load %arg6[%c0_39, %c0_40, %c0_41, %c0_42] : memref<1x2x5x256xf32, #tpu.memory_space<vmem>>, vector<1x2x5x256xf32>
    %51 = vector.shape_cast %50 : vector<1x2x5x256xf32> to vector<2x5x256xf32>
    %52 = vector.shape_cast %49 : vector<2x5x256xf32> to vector<1x2x5x256xf32>
    tpu.vector_store %arg6[%c0_39, %c0_40, %c0_41, %c0_42], %52 {strides = array<i32>} : memref<1x2x5x256xf32, #tpu.memory_space<vmem>>, vector<1x2x5x256xf32>,
    return
  }
  func.func @transform_0(%arg0: i32) -> (i32, i32, i32, i32) {
    %c0_i32 = arith.constant 0 : i32
    %c0_i32_0 = arith.constant 0 : i32
    %c0_i32_1 = arith.constant 0 : i32
    %c0_i32_2 = arith.constant 0 : i32
    return %arg0, %c0_i32, %c0_i32_0, %c0_i32_1 : i32, i32, i32, i32
  }
  func.func @transform_1(%arg0: i32) -> (i32, i32, i32) {
    %c0_i32 = arith.constant 0 : i32
    %c0_i32_0 = arith.constant 0 : i32
    %c0_i32_1 = arith.constant 0 : i32
    %c0_i32_2 = arith.constant 0 : i32
    return %c0_i32, %c0_i32_0, %c0_i32_1 : i32, i32, i32
  }
  func.func @transform_2(%arg0: i32) -> (i32, i32) {
    %c0_i32 = arith.constant 0 : i32
    %c0_i32_0 = arith.constant 0 : i32
    %c0_i32_1 = arith.constant 0 : i32
    return %c0_i32, %c0_i32_0 : i32, i32
  }
  func.func @transform_3(%arg0: i32) -> (i32, i32) {
    %c0_i32 = arith.constant 0 : i32
    %c0_i32_0 = arith.constant 0 : i32
    %c0_i32_1 = arith.constant 0 : i32
    return %c0_i32, %c0_i32_0 : i32, i32
  }
  func.func @transform_4(%arg0: i32) -> (i32, i32) {
    %c0_i32 = arith.constant 0 : i32
    %c0_i32_0 = arith.constant 0 : i32
    %c0_i32_1 = arith.constant 0 : i32
    return %c0_i32, %c0_i32_0 : i32, i32
  }
  func.func @transform_5(%arg0: i32) -> (i32, i32, i32, i32) {
    %c0_i32 = arith.constant 0 : i32
    %c0_i32_0 = arith.constant 0 : i32
    %c0_i32_1 = arith.constant 0 : i32
    %c0_i32_2 = arith.constant 0 : i32
    return %arg0, %c0_i32, %c0_i32_0, %c0_i32_1 : i32, i32, i32, i32
  }
}

module attributes {stable_mosaic.version = 11 : i64} {
  func.func @_mm_kernel(%arg0: i32, %arg1: memref<24x256xf32, #tpu.memory_space<vmem>>, %arg2: memref<256x1024xbf16, #tpu.memory_space<vmem>>, %arg3: memref<1x1024xf32, #tpu.memory_space<vmem>>, %arg4: memref<24x1024xf32, #tpu.memory_space<vmem>>) attributes {dimension_semantics = [#tpu.dimension_semantics<parallel>], iteration_bounds = array<i64: 1>, scalar_prefetch = 0 : i64, scratch_operands = 0 : i64, tpu.core_type = #tpu.core_type<tc>, window_params = [{transform_indices = @transform_0, window_bounds = array<i64: 24, 256>}, {pipeline_mode = #tpu.pipeline_mode<synchronous>, transform_indices = @transform_1, window_bounds = array<i64: 256, 1024>}, {pipeline_mode = #tpu.pipeline_mode<synchronous>, transform_indices = @transform_2, window_bounds = array<i64: 1, 1024>}, {transform_indices = @transform_3, window_bounds = array<i64: 24, 1024>}]} {
    %c0 = arith.constant 0 : index
    %c0_0 = arith.constant 0 : index
    %0 = vector.load %arg1[%c0, %c0_0] : memref<24x256xf32, #tpu.memory_space<vmem>>, vector<24x256xf32>
    %1 = arith.truncf %0 : vector<24x256xf32> to vector<24x256xbf16>
    %c0_1 = arith.constant 0 : index
    %c0_2 = arith.constant 0 : index
    %2 = vector.load %arg2[%c0_1, %c0_2] : memref<256x1024xbf16, #tpu.memory_space<vmem>>, vector<256x1024xbf16>
    %cst = arith.constant dense<0.000000e+00> : vector<24x1024xf32>
    %3 = tpu.matmul %1, %2, %cst {dimension_numbers = #tpu.dot_dimension_numbers<[1], [0], [0], [1], [0, 0, 1, 1], [], []>} : vector<24x256xbf16>, vector<256x1024xbf16>, vector<24x1024xf32> -> vector<24x1024xf32>
    %c0_3 = arith.constant 0 : index
    %c0_4 = arith.constant 0 : index
    %4 = vector.load %arg3[%c0_3, %c0_4] : memref<1x1024xf32, #tpu.memory_space<vmem>>, vector<1x1024xf32>
    %5 = vector.broadcast %4 : vector<1x1024xf32> to vector<24x1024xf32>
    %6 = arith.addf %3, %5 : vector<24x1024xf32>
    %c0_5 = arith.constant 0 : index
    %c0_6 = arith.constant 0 : index
    %7 = vector.load %arg4[%c0_5, %c0_6] : memref<24x1024xf32, #tpu.memory_space<vmem>>, vector<24x1024xf32>
    tpu.vector_store %arg4[%c0_5, %c0_6], %6 {strides = array<i32>} : memref<24x1024xf32, #tpu.memory_space<vmem>>, vector<24x1024xf32>,
    return
  }
  func.func @transform_0(%arg0: i32) -> (i32, i32) {
    %c0_i32 = arith.constant 0 : i32
    %c0_i32_0 = arith.constant 0 : i32
    return %arg0, %c0_i32 : i32, i32
  }
  func.func @transform_1(%arg0: i32) -> (i32, i32) {
    %c0_i32 = arith.constant 0 : i32
    %c0_i32_0 = arith.constant 0 : i32
    %c0_i32_1 = arith.constant 0 : i32
    return %c0_i32, %c0_i32_0 : i32, i32
  }
  func.func @transform_2(%arg0: i32) -> (i32, i32) {
    %c0_i32 = arith.constant 0 : i32
    %c0_i32_0 = arith.constant 0 : i32
    %c0_i32_1 = arith.constant 0 : i32
    return %c0_i32, %c0_i32_0 : i32, i32
  }
  func.func @transform_3(%arg0: i32) -> (i32, i32) {
    %c0_i32 = arith.constant 0 : i32
    %c0_i32_0 = arith.constant 0 : i32
    return %arg0, %c0_i32 : i32, i32
  }
}

module attributes {stable_mosaic.version = 11 : i64} {
  func.func @_combine_kernel(%arg0: i32, %arg1: memref<24x256xf32, #tpu.memory_space<vmem>>, %arg2: memref<1x256xf32, #tpu.memory_space<vmem>>, %arg3: memref<1x256xf32, #tpu.memory_space<vmem>>, %arg4: memref<24x256xf32, #tpu.memory_space<vmem>>, %arg5: memref<1x256xf32, #tpu.memory_space<vmem>>, %arg6: memref<1x256xf32, #tpu.memory_space<vmem>>, %arg7: memref<24x256xf32, #tpu.memory_space<vmem>>) attributes {dimension_semantics = [#tpu.dimension_semantics<parallel>], iteration_bounds = array<i64: 1>, scalar_prefetch = 0 : i64, scratch_operands = 0 : i64, tpu.core_type = #tpu.core_type<tc>, window_params = [{transform_indices = @transform_0, window_bounds = array<i64: 24, 256>}, {pipeline_mode = #tpu.pipeline_mode<synchronous>, transform_indices = @transform_1, window_bounds = array<i64: 1, 256>}, {pipeline_mode = #tpu.pipeline_mode<synchronous>, transform_indices = @transform_2, window_bounds = array<i64: 1, 256>}, {transform_indices = @transform_3, window_bounds = array<i64: 24, 256>}, {pipeline_mode = #tpu.pipeline_mode<synchronous>, transform_indices = @transform_4, window_bounds = array<i64: 1, 256>}, {pipeline_mode = #tpu.pipeline_mode<synchronous>, transform_indices = @transform_5, window_bounds = array<i64: 1, 256>}, {transform_indices = @transform_6, window_bounds = array<i64: 24, 256>}]} {
    %c0 = arith.constant 0 : index
    %c0_0 = arith.constant 0 : index
    %0 = vector.load %arg1[%c0, %c0_0] : memref<24x256xf32, #tpu.memory_space<vmem>>, vector<24x256xf32>
    %c0_1 = arith.constant 0 : index
    %c0_2 = arith.constant 0 : index
    %1 = vector.load %arg2[%c0_1, %c0_2] : memref<1x256xf32, #tpu.memory_space<vmem>>, vector<1x256xf32>
    %2 = vector.broadcast %1 : vector<1x256xf32> to vector<24x256xf32>
    %3 = arith.mulf %0, %2 : vector<24x256xf32>
    %c0_3 = arith.constant 0 : index
    %c0_4 = arith.constant 0 : index
    %4 = vector.load %arg3[%c0_3, %c0_4] : memref<1x256xf32, #tpu.memory_space<vmem>>, vector<1x256xf32>
    %5 = vector.broadcast %4 : vector<1x256xf32> to vector<24x256xf32>
    %6 = arith.addf %3, %5 : vector<24x256xf32>
    %c0_5 = arith.constant 0 : index
    %c0_6 = arith.constant 0 : index
    %7 = vector.load %arg4[%c0_5, %c0_6] : memref<24x256xf32, #tpu.memory_space<vmem>>, vector<24x256xf32>
    %c0_7 = arith.constant 0 : index
    %c0_8 = arith.constant 0 : index
    %8 = vector.load %arg5[%c0_7, %c0_8] : memref<1x256xf32, #tpu.memory_space<vmem>>, vector<1x256xf32>
    %9 = vector.broadcast %8 : vector<1x256xf32> to vector<24x256xf32>
    %10 = arith.mulf %7, %9 : vector<24x256xf32>
    %11 = arith.addf %6, %10 : vector<24x256xf32>
    %c0_9 = arith.constant 0 : index
    %c0_10 = arith.constant 0 : index
    %12 = vector.load %arg6[%c0_9, %c0_10] : memref<1x256xf32, #tpu.memory_space<vmem>>, vector<1x256xf32>
    %13 = vector.broadcast %12 : vector<1x256xf32> to vector<24x256xf32>
    %14 = arith.addf %11, %13 : vector<24x256xf32>
    %cst = arith.constant 0.000000e+00 : f32
    %15 = vector.broadcast %cst : f32 to vector<24x256xf32>
    %16 = arith.maximumf %14, %15 : vector<24x256xf32>
    %c0_11 = arith.constant 0 : index
    %c0_12 = arith.constant 0 : index
    %17 = vector.load %arg7[%c0_11, %c0_12] : memref<24x256xf32, #tpu.memory_space<vmem>>, vector<24x256xf32>
    tpu.vector_store %arg7[%c0_11, %c0_12], %16 {strides = array<i32>} : memref<24x256xf32, #tpu.memory_space<vmem>>, vector<24x256xf32>,
    return
  }
  func.func @transform_0(%arg0: i32) -> (i32, i32) {
    %c0_i32 = arith.constant 0 : i32
    %c0_i32_0 = arith.constant 0 : i32
    return %arg0, %c0_i32 : i32, i32
  }
  func.func @transform_1(%arg0: i32) -> (i32, i32) {
    %c0_i32 = arith.constant 0 : i32
    %c0_i32_0 = arith.constant 0 : i32
    %c0_i32_1 = arith.constant 0 : i32
    return %c0_i32, %c0_i32_0 : i32, i32
  }
  func.func @transform_2(%arg0: i32) -> (i32, i32) {
    %c0_i32 = arith.constant 0 : i32
    %c0_i32_0 = arith.constant 0 : i32
    %c0_i32_1 = arith.constant 0 : i32
    return %c0_i32, %c0_i32_0 : i32, i32
  }
  func.func @transform_3(%arg0: i32) -> (i32, i32) {
    %c0_i32 = arith.constant 0 : i32
    %c0_i32_0 = arith.constant 0 : i32
    return %arg0, %c0_i32 : i32, i32
  }
  func.func @transform_4(%arg0: i32) -> (i32, i32) {
    %c0_i32 = arith.constant 0 : i32
    %c0_i32_0 = arith.constant 0 : i32
    %c0_i32_1 = arith.constant 0 : i32
    return %c0_i32, %c0_i32_0 : i32, i32
  }
  func.func @transform_5(%arg0: i32) -> (i32, i32) {
    %c0_i32 = arith.constant 0 : i32
    %c0_i32_0 = arith.constant 0 : i32
    %c0_i32_1 = arith.constant 0 : i32
    return %c0_i32, %c0_i32_0 : i32, i32
  }
  func.func @transform_6(%arg0: i32) -> (i32, i32) {
    %c0_i32 = arith.constant 0 : i32
    %c0_i32_0 = arith.constant 0 : i32
    return %arg0, %c0_i32 : i32, i32
  }
}

module attributes {stable_mosaic.version = 11 : i64} {
  func.func @_rownorm_kernel(%arg0: i32, %arg1: memref<16x5xf32, #tpu.memory_space<vmem>>, %arg2: memref<16x5xf32, #tpu.memory_space<vmem>>) attributes {dimension_semantics = [#tpu.dimension_semantics<parallel>], iteration_bounds = array<i64: 1>, scalar_prefetch = 0 : i64, scratch_operands = 0 : i64, tpu.core_type = #tpu.core_type<tc>, window_params = [{transform_indices = @transform_0, window_bounds = array<i64: 16, 5>}, {transform_indices = @transform_1, window_bounds = array<i64: 16, 5>}]} {
    %c0 = arith.constant 0 : index
    %c0_0 = arith.constant 0 : index
    %0 = vector.load %arg1[%c0, %c0_0] : memref<16x5xf32, #tpu.memory_space<vmem>>, vector<16x5xf32>
    %1 = math.tanh %0 : vector<16x5xf32>
    %2 = math.absf %1 : vector<16x5xf32>
    %cst = arith.constant dense<0.000000e+00> : vector<16xf32>
    %3 = vector.multi_reduction <add>, %2, %cst [1] : vector<16x5xf32> to vector<16xf32>
    %4 = vector.shape_cast %3 : vector<16xf32> to vector<16x1xf32>
    %cst_1 = arith.constant 9.99999997E-7 : f32
    %5 = vector.broadcast %cst_1 : f32 to vector<16x1xf32>
    %6 = arith.addf %4, %5 : vector<16x1xf32>
    %7 = vector.broadcast %6 : vector<16x1xf32> to vector<16x5xf32>
    %8 = arith.divf %1, %7 : vector<16x5xf32>
    %c0_2 = arith.constant 0 : index
    %c0_3 = arith.constant 0 : index
    %9 = vector.load %arg2[%c0_2, %c0_3] : memref<16x5xf32, #tpu.memory_space<vmem>>, vector<16x5xf32>
    tpu.vector_store %arg2[%c0_2, %c0_3], %8 {strides = array<i32>} : memref<16x5xf32, #tpu.memory_space<vmem>>, vector<16x5xf32>,
    return
  }
  func.func @transform_0(%arg0: i32) -> (i32, i32) {
    %c0_i32 = arith.constant 0 : i32
    %c0_i32_0 = arith.constant 0 : i32
    return %arg0, %c0_i32 : i32, i32
  }
  func.func @transform_1(%arg0: i32) -> (i32, i32) {
    %c0_i32 = arith.constant 0 : i32
    %c0_i32_0 = arith.constant 0 : i32
    return %arg0, %c0_i32 : i32, i32
  }
}

module attributes {stable_mosaic.version = 11 : i64} {
  func.func @_tconv_kernel(%arg0: i32, %arg1: memref<1x2x5x256xf32, #tpu.memory_space<vmem>>, %arg2: memref<3x256x256xbf16, #tpu.memory_space<vmem>>, %arg3: memref<1x256xf32, #tpu.memory_space<vmem>>, %arg4: memref<1x256xf32, #tpu.memory_space<vmem>>, %arg5: memref<1x256xf32, #tpu.memory_space<vmem>>, %arg6: memref<1x2x5x256xf32, #tpu.memory_space<vmem>>, %arg7: memref<4x5x256xbf16, #tpu.memory_space<vmem>>) attributes {dimension_semantics = [#tpu.dimension_semantics<parallel>], iteration_bounds = array<i64: 2>, scalar_prefetch = 0 : i64, scratch_operands = 1 : i64, tpu.core_type = #tpu.core_type<tc>, window_params = [{transform_indices = @transform_0, window_bounds = array<i64: 1, 2, 5, 256>}, {pipeline_mode = #tpu.pipeline_mode<synchronous>, transform_indices = @transform_1, window_bounds = array<i64: 3, 256, 256>}, {pipeline_mode = #tpu.pipeline_mode<synchronous>, transform_indices = @transform_2, window_bounds = array<i64: 1, 256>}, {pipeline_mode = #tpu.pipeline_mode<synchronous>, transform_indices = @transform_3, window_bounds = array<i64: 1, 256>}, {pipeline_mode = #tpu.pipeline_mode<synchronous>, transform_indices = @transform_4, window_bounds = array<i64: 1, 256>}, {transform_indices = @transform_5, window_bounds = array<i64: 1, 2, 5, 256>}]} {
    %c0 = arith.constant 0 : index
    %c0_0 = arith.constant 0 : index
    %c0_1 = arith.constant 0 : index
    %c0_2 = arith.constant 0 : index
    %0 = vector.load %arg1[%c0, %c0_0, %c0_1, %c0_2] : memref<1x2x5x256xf32, #tpu.memory_space<vmem>>, vector<1x2x5x256xf32>
    %1 = vector.shape_cast %0 : vector<1x2x5x256xf32> to vector<2x5x256xf32>
    %c0_3 = arith.constant 0 : index
    %c0_4 = arith.constant 0 : index
    %2 = vector.load %arg4[%c0_3, %c0_4] : memref<1x256xf32, #tpu.memory_space<vmem>>, vector<1x256xf32>
    %3 = vector.shape_cast %2 : vector<1x256xf32> to vector<1x1x256xf32>
    %4 = vector.broadcast %3 : vector<1x1x256xf32> to vector<2x5x256xf32>
    %5 = arith.mulf %1, %4 : vector<2x5x256xf32>
    %c0_5 = arith.constant 0 : index
    %c0_6 = arith.constant 0 : index
    %6 = vector.load %arg5[%c0_5, %c0_6] : memref<1x256xf32, #tpu.memory_space<vmem>>, vector<1x256xf32>
    %7 = vector.shape_cast %6 : vector<1x256xf32> to vector<1x1x256xf32>
    %8 = vector.broadcast %7 : vector<1x1x256xf32> to vector<2x5x256xf32>
    %9 = arith.addf %5, %8 : vector<2x5x256xf32>
    %cst = arith.constant 0.000000e+00 : f32
    %10 = vector.broadcast %cst : f32 to vector<2x5x256xf32>
    %11 = arith.maximumf %9, %10 : vector<2x5x256xf32>
    %12 = arith.truncf %11 : vector<2x5x256xf32> to vector<2x5x256xbf16>
    %cst_7 = arith.constant 0.000000e+00 : bf16
    %13 = vector.broadcast %cst_7 : bf16 to vector<1x5x256xbf16>
    %c0_8 = arith.constant 0 : index
    %c0_9 = arith.constant 0 : index
    %c0_10 = arith.constant 0 : index
    %14 = vector.load %arg7[%c0_8, %c0_9, %c0_10] : memref<4x5x256xbf16, #tpu.memory_space<vmem>>, vector<1x5x256xbf16>
    tpu.vector_store %arg7[%c0_8, %c0_9, %c0_10], %13 {strides = array<i32>} : memref<4x5x256xbf16, #tpu.memory_space<vmem>>, vector<1x5x256xbf16>,
    %c1 = arith.constant 1 : index
    %c0_11 = arith.constant 0 : index
    %c0_12 = arith.constant 0 : index
    %15 = vector.load %arg7[%c1, %c0_11, %c0_12] : memref<4x5x256xbf16, #tpu.memory_space<vmem>>, vector<2x5x256xbf16>
    tpu.vector_store %arg7[%c1, %c0_11, %c0_12], %12 {strides = array<i32>} : memref<4x5x256xbf16, #tpu.memory_space<vmem>>, vector<2x5x256xbf16>,
    %cst_13 = arith.constant 0.000000e+00 : bf16
    %16 = vector.broadcast %cst_13 : bf16 to vector<1x5x256xbf16>
    %c3 = arith.constant 3 : index
    %c0_14 = arith.constant 0 : index
    %c0_15 = arith.constant 0 : index
    %17 = vector.load %arg7[%c3, %c0_14, %c0_15] : memref<4x5x256xbf16, #tpu.memory_space<vmem>>, vector<1x5x256xbf16>
    tpu.vector_store %arg7[%c3, %c0_14, %c0_15], %16 {strides = array<i32>} : memref<4x5x256xbf16, #tpu.memory_space<vmem>>, vector<1x5x256xbf16>,
    %cst_16 = arith.constant 0.000000e+00 : f32
    %18 = vector.broadcast %cst_16 : f32 to vector<10x256xf32>
    %c0_17 = arith.constant 0 : index
    %c0_18 = arith.constant 0 : index
    %c0_19 = arith.constant 0 : index
    %19 = vector.load %arg7[%c0_17, %c0_18, %c0_19] : memref<4x5x256xbf16, #tpu.memory_space<vmem>>, vector<2x5x256xbf16>
    %20 = vector.shape_cast %19 : vector<2x5x256xbf16> to vector<10x256xbf16>
    %c0_20 = arith.constant 0 : index
    %c0_21 = arith.constant 0 : index
    %c0_22 = arith.constant 0 : index
    %21 = vector.load %arg2[%c0_20, %c0_21, %c0_22] : memref<3x256x256xbf16, #tpu.memory_space<vmem>>, vector<1x256x256xbf16>
    %22 = vector.shape_cast %21 : vector<1x256x256xbf16> to vector<256x256xbf16>
    %cst_23 = arith.constant dense<0.000000e+00> : vector<10x256xf32>
    %23 = tpu.matmul %20, %22, %cst_23 {dimension_numbers = #tpu.dot_dimension_numbers<[1], [0], [0], [1], [0, 0, 1, 1], [], []>} : vector<10x256xbf16>, vector<256x256xbf16>, vector<10x256xf32> -> vector<10x256xf32>
    %24 = arith.addf %18, %23 : vector<10x256xf32>
    %c1_24 = arith.constant 1 : index
    %c0_25 = arith.constant 0 : index
    %c0_26 = arith.constant 0 : index
    %25 = vector.load %arg7[%c1_24, %c0_25, %c0_26] : memref<4x5x256xbf16, #tpu.memory_space<vmem>>, vector<2x5x256xbf16>
    %26 = vector.shape_cast %25 : vector<2x5x256xbf16> to vector<10x256xbf16>
    %c1_27 = arith.constant 1 : index
    %c0_28 = arith.constant 0 : index
    %c0_29 = arith.constant 0 : index
    %27 = vector.load %arg2[%c1_27, %c0_28, %c0_29] : memref<3x256x256xbf16, #tpu.memory_space<vmem>>, vector<1x256x256xbf16>
    %28 = vector.shape_cast %27 : vector<1x256x256xbf16> to vector<256x256xbf16>
    %cst_30 = arith.constant dense<0.000000e+00> : vector<10x256xf32>
    %29 = tpu.matmul %26, %28, %cst_30 {dimension_numbers = #tpu.dot_dimension_numbers<[1], [0], [0], [1], [0, 0, 1, 1], [], []>} : vector<10x256xbf16>, vector<256x256xbf16>, vector<10x256xf32> -> vector<10x256xf32>
    %30 = arith.addf %24, %29 : vector<10x256xf32>
    %c2 = arith.constant 2 : index
    %c0_31 = arith.constant 0 : index
    %c0_32 = arith.constant 0 : index
    %31 = vector.load %arg7[%c2, %c0_31, %c0_32] : memref<4x5x256xbf16, #tpu.memory_space<vmem>>, vector<2x5x256xbf16>
    %32 = vector.shape_cast %31 : vector<2x5x256xbf16> to vector<10x256xbf16>
    %c2_33 = arith.constant 2 : index
    %c0_34 = arith.constant 0 : index
    %c0_35 = arith.constant 0 : index
    %33 = vector.load %arg2[%c2_33, %c0_34, %c0_35] : memref<3x256x256xbf16, #tpu.memory_space<vmem>>, vector<1x256x256xbf16>
    %34 = vector.shape_cast %33 : vector<1x256x256xbf16> to vector<256x256xbf16>
    %cst_36 = arith.constant dense<0.000000e+00> : vector<10x256xf32>
    %35 = tpu.matmul %32, %34, %cst_36 {dimension_numbers = #tpu.dot_dimension_numbers<[1], [0], [0], [1], [0, 0, 1, 1], [], []>} : vector<10x256xbf16>, vector<256x256xbf16>, vector<10x256xf32> -> vector<10x256xf32>
    %36 = arith.addf %30, %35 : vector<10x256xf32>
    %c0_37 = arith.constant 0 : index
    %c0_38 = arith.constant 0 : index
    %37 = vector.load %arg3[%c0_37, %c0_38] : memref<1x256xf32, #tpu.memory_space<vmem>>, vector<1x256xf32>
    %38 = vector.broadcast %37 : vector<1x256xf32> to vector<10x256xf32>
    %39 = arith.addf %36, %38 : vector<10x256xf32>
    %40 = vector.shape_cast %39 : vector<10x256xf32> to vector<2x5x256xf32>
    %c0_39 = arith.constant 0 : index
    %c0_40 = arith.constant 0 : index
    %c0_41 = arith.constant 0 : index
    %c0_42 = arith.constant 0 : index
    %41 = vector.load %arg6[%c0_39, %c0_40, %c0_41, %c0_42] : memref<1x2x5x256xf32, #tpu.memory_space<vmem>>, vector<1x2x5x256xf32>
    %42 = vector.shape_cast %41 : vector<1x2x5x256xf32> to vector<2x5x256xf32>
    %43 = vector.shape_cast %40 : vector<2x5x256xf32> to vector<1x2x5x256xf32>
    tpu.vector_store %arg6[%c0_39, %c0_40, %c0_41, %c0_42], %43 {strides = array<i32>} : memref<1x2x5x256xf32, #tpu.memory_space<vmem>>, vector<1x2x5x256xf32>,
    return
  }
  func.func @transform_0(%arg0: i32) -> (i32, i32, i32, i32) {
    %c0_i32 = arith.constant 0 : i32
    %c0_i32_0 = arith.constant 0 : i32
    %c0_i32_1 = arith.constant 0 : i32
    %c0_i32_2 = arith.constant 0 : i32
    return %arg0, %c0_i32, %c0_i32_0, %c0_i32_1 : i32, i32, i32, i32
  }
  func.func @transform_1(%arg0: i32) -> (i32, i32, i32) {
    %c0_i32 = arith.constant 0 : i32
    %c0_i32_0 = arith.constant 0 : i32
    %c0_i32_1 = arith.constant 0 : i32
    %c0_i32_2 = arith.constant 0 : i32
    return %c0_i32, %c0_i32_0, %c0_i32_1 : i32, i32, i32
  }
  func.func @transform_2(%arg0: i32) -> (i32, i32) {
    %c0_i32 = arith.constant 0 : i32
    %c0_i32_0 = arith.constant 0 : i32
    %c0_i32_1 = arith.constant 0 : i32
    return %c0_i32, %c0_i32_0 : i32, i32
  }
  func.func @transform_3(%arg0: i32) -> (i32, i32) {
    %c0_i32 = arith.constant 0 : i32
    %c0_i32_0 = arith.constant 0 : i32
    %c0_i32_1 = arith.constant 0 : i32
    return %c0_i32, %c0_i32_0 : i32, i32
  }
  func.func @transform_4(%arg0: i32) -> (i32, i32) {
    %c0_i32 = arith.constant 0 : i32
    %c0_i32_0 = arith.constant 0 : i32
    %c0_i32_1 = arith.constant 0 : i32
    return %c0_i32, %c0_i32_0 : i32, i32
  }
  func.func @transform_5(%arg0: i32) -> (i32, i32, i32, i32) {
    %c0_i32 = arith.constant 0 : i32
    %c0_i32_0 = arith.constant 0 : i32
    %c0_i32_1 = arith.constant 0 : i32
    %c0_i32_2 = arith.constant 0 : i32
    return %arg0, %c0_i32, %c0_i32_0, %c0_i32_1 : i32, i32, i32, i32
  }
}

module attributes {stable_mosaic.version = 11 : i64} {
  func.func @_mm_kernel(%arg0: i32, %arg1: memref<8x256xf32, #tpu.memory_space<vmem>>, %arg2: memref<256x4xbf16, #tpu.memory_space<vmem>>, %arg3: memref<1x4xf32, #tpu.memory_space<vmem>>, %arg4: memref<8x4xf32, #tpu.memory_space<vmem>>) attributes {dimension_semantics = [#tpu.dimension_semantics<parallel>], iteration_bounds = array<i64: 1>, scalar_prefetch = 0 : i64, scratch_operands = 0 : i64, tpu.core_type = #tpu.core_type<tc>, window_params = [{transform_indices = @transform_0, window_bounds = array<i64: 8, 256>}, {pipeline_mode = #tpu.pipeline_mode<synchronous>, transform_indices = @transform_1, window_bounds = array<i64: 256, 4>}, {pipeline_mode = #tpu.pipeline_mode<synchronous>, transform_indices = @transform_2, window_bounds = array<i64: 1, 4>}, {transform_indices = @transform_3, window_bounds = array<i64: 8, 4>}]} {
    %c0 = arith.constant 0 : index
    %c0_0 = arith.constant 0 : index
    %0 = vector.load %arg1[%c0, %c0_0] : memref<8x256xf32, #tpu.memory_space<vmem>>, vector<8x256xf32>
    %1 = arith.truncf %0 : vector<8x256xf32> to vector<8x256xbf16>
    %c0_1 = arith.constant 0 : index
    %c0_2 = arith.constant 0 : index
    %2 = vector.load %arg2[%c0_1, %c0_2] : memref<256x4xbf16, #tpu.memory_space<vmem>>, vector<256x4xbf16>
    %cst = arith.constant dense<0.000000e+00> : vector<8x4xf32>
    %3 = tpu.matmul %1, %2, %cst {dimension_numbers = #tpu.dot_dimension_numbers<[1], [0], [0], [1], [0, 0, 1, 1], [], []>} : vector<8x256xbf16>, vector<256x4xbf16>, vector<8x4xf32> -> vector<8x4xf32>
    %c0_3 = arith.constant 0 : index
    %c0_4 = arith.constant 0 : index
    %4 = vector.load %arg3[%c0_3, %c0_4] : memref<1x4xf32, #tpu.memory_space<vmem>>, vector<1x4xf32>
    %5 = vector.broadcast %4 : vector<1x4xf32> to vector<8x4xf32>
    %6 = arith.addf %3, %5 : vector<8x4xf32>
    %c0_5 = arith.constant 0 : index
    %c0_6 = arith.constant 0 : index
    %7 = vector.load %arg4[%c0_5, %c0_6] : memref<8x4xf32, #tpu.memory_space<vmem>>, vector<8x4xf32>
    tpu.vector_store %arg4[%c0_5, %c0_6], %6 {strides = array<i32>} : memref<8x4xf32, #tpu.memory_space<vmem>>, vector<8x4xf32>,
    return
  }
  func.func @transform_0(%arg0: i32) -> (i32, i32) {
    %c0_i32 = arith.constant 0 : i32
    %c0_i32_0 = arith.constant 0 : i32
    return %arg0, %c0_i32 : i32, i32
  }
  func.func @transform_1(%arg0: i32) -> (i32, i32) {
    %c0_i32 = arith.constant 0 : i32
    %c0_i32_0 = arith.constant 0 : i32
    %c0_i32_1 = arith.constant 0 : i32
    return %c0_i32, %c0_i32_0 : i32, i32
  }
  func.func @transform_2(%arg0: i32) -> (i32, i32) {
    %c0_i32 = arith.constant 0 : i32
    %c0_i32_0 = arith.constant 0 : i32
    %c0_i32_1 = arith.constant 0 : i32
    return %c0_i32, %c0_i32_0 : i32, i32
  }
  func.func @transform_3(%arg0: i32) -> (i32, i32) {
    %c0_i32 = arith.constant 0 : i32
    %c0_i32_0 = arith.constant 0 : i32
    return %arg0, %c0_i32 : i32, i32
  }
}

</mosaic_0001>

<bundles_post_ra>
// kernel: drgcn_forward.46
= control target key start
LH: loop header
LB: loop body
LE: loop exit
PB: predicated region body
PF: predicated region fallthrough
CT: control target
= control target key end

     0   :  { %vm58_vm0 = vcmask 23552   ;;  %s171_s0 = inlined_call_operand.vmem [shape: f32[80,3], index: 0, kind: input, shape index: {}]   ;;  %s172_s1 = inlined_call_operand.vmem [shape: f32[1,3], index: 1, kind: input, shape index: {}]   ;;  %s173_s2 = inlined_call_operand.vmem [shape: f32[1,3], index: 2, kind: input, shape index: {}]   ;;  %s174_s3 = inlined_call_operand.vmem [shape: f32[80,3], index: 3, kind: output, shape index: {}]  }
   0x1   :  { %v14_v0 = vld [vmem:[%s171_s0] sm:$0xff]  ;;  %v15_v4 = vld [vmem:[%s171_s0 + $0x8] sm:$0xff]  ;;  %v16_v5 = vld [vmem:[%s171_s0 + $0x10] sm:$0xff] }
   0x2   :  { %v73_v1 = vld [vmem:[%s172_s1] ss:$0 sm:$0xff]  ;;  %v17_v6 = vld [vmem:[%s171_s0 + $0x18] sm:$0xff]  ;;  %v19_v11 = vld [vmem:[%s171_s0 + $0x28] sm:$0xff] }
   0x3   :  { %v74_v2 = vld [vmem:[%s173_s2] ss:$0 sm:$0xff]  ;;  %v31_v3 = vmul.f32 %v73_v1, %v14_v0  ;;  %v32_v7 = vmul.f32 %v73_v1, %v15_v4  ;;  %v33_v8 = vmul.f32 %v73_v1, %v16_v5  ;;  %v34_v9 = vmul.f32 %v73_v1, %v17_v6  ;;  %v20_v12 = vld [vmem:[%s171_s0 + $0x30] sm:$0xff]  ;;  %v21_v17 = vld [vmem:[%s171_s0 + $0x38] sm:$0xff] }
   0x4   :  { %v18_v10 = vld [vmem:[%s171_s0 + $0x20] sm:$0xff]  ;;  %v36_v15 = vmul.f32 %v73_v1, %v19_v11  ;;  %v37_v16 = vmul.f32 %v73_v1, %v20_v12  ;;  %v23_v19 = vld [vmem:[%s171_s0 + $0x48] sm:$0xff]  ;;  %v38_v23 = vmul.f32 %v73_v1, %v21_v17 }
   0x5   :  { %v48_v13 = vadd.f32 %v74_v2, %v31_v3  ;;  %v35_v14 = vmul.f32 %v73_v1, %v18_v10  ;;  %v22_v18 = vld [vmem:[%s171_s0 + $0x40] sm:$0xff]  ;;  %v49_v20 = vadd.f32 %v74_v2, %v32_v7  ;;  %v50_v21 = vadd.f32 %v74_v2, %v33_v8 }
   0x6   :  { %v51_v22 = vadd.f32 %v74_v2, %v34_v9  ;;  %v53_v25 = vadd.f32 %v74_v2, %v36_v15  ;;  %v54_v26 = vadd.f32 %v74_v2, %v37_v16  ;;  %v39_v27 = vmul.f32 %v73_v1, %v22_v18 }
   0x7   :  { %59 = vst.msk [vmem:[%s174_s3] sm:$0xff] %vm58_vm0, %v48_v13  ;;  %v52_v24 = vadd.f32 %v74_v2, %v35_v14  ;;  %60 = vst.msk [vmem:[%s174_s3 + $0x8] sm:$0xff] %vm58_vm0, %v49_v20  ;;  %v55_v28 = vadd.f32 %v74_v2, %v38_v23  ;;  %v40_v29 = vmul.f32 %v73_v1, %v23_v19 }
   0x8   :  { %61 = vst.msk [vmem:[%s174_s3 + $0x10] sm:$0xff] %vm58_vm0, %v50_v21  ;;  %62 = vst.msk [vmem:[%s174_s3 + $0x18] sm:$0xff] %vm58_vm0, %v51_v22  ;;  %v56_v30 = vadd.f32 %v74_v2, %v39_v27 }
   0x9   :  { %63 = vst.msk [vmem:[%s174_s3 + $0x20] sm:$0xff] %vm58_vm0, %v52_v24  ;;  %64 = vst.msk [vmem:[%s174_s3 + $0x28] sm:$0xff] %vm58_vm0, %v53_v25  ;;  %v57_v31 = vadd.f32 %v74_v2, %v40_v29 }
   0xa   :  { %65 = vst.msk [vmem:[%s174_s3 + $0x30] sm:$0xff] %vm58_vm0, %v54_v26  ;;  %66 = vst.msk [vmem:[%s174_s3 + $0x38] sm:$0xff] %vm58_vm0, %v55_v28 }
   0xb   :  { %67 = vst.msk [vmem:[%s174_s3 + $0x40] sm:$0xff] %vm58_vm0, %v56_v30  ;;  %68 = vst.msk [vmem:[%s174_s3 + $0x48] sm:$0xff] %vm58_vm0, %v57_v31 }

// kernel: drgcn_forward.47
= control target key start
LH: loop header
LB: loop body
LE: loop exit
PB: predicated region body
PF: predicated region fallthrough
CT: control target
= control target key end

     0   :  { %vm54_vm0 = vcmask 1043456   ;;  %v183_v0 = vmov 0.0   ;;  %vm184_vm1 = vmmov 0   ;;  %vm38_vm2 = vcmask 64512   ;;  %s291_s1 = inlined_call_operand.vmem [shape: bf16[8,8], index: 1, kind: input, shape index: {}]   ;;  %s292_s0 = inlined_call_operand.vmem [shape: f32[80,8], index: 0, kind: input, shape index: {}]   ;;  %s293_s2 = inlined_call_operand.vmem [shape: f32[1,8], index: 2, kind: input, shape index: {}]   ;;  %s294_s3 = inlined_call_operand.vmem [shape: f32[80,8], index: 3, kind: output, shape index: {}]  }
   0x1   :  { %157 = vmatprep.subr.bf16.mxu0 %v183_v0  ;;  %v30_v1 = vld [vmem:[%s291_s1] sm:$0xf]  ;;  %159 = vmatprep.mubr.msk.bf16.mxu0 %vm184_vm1, %v183_v0  ;;  %v16_v3 = vld [vmem:[%s292_s0 + $0x8] sm:$0xff]  ;;  %v21_v6 = vld [vmem:[%s292_s0 + $0x30] sm:$0xff] }
   0x2   :  { %v15_v2 = vld [vmem:[%s292_s0] sm:$0xff]  ;;  %v56_v4 = vsel %vm54_vm0, %v30_v1, 0  ;;  %179 = vmatprep.subr.bf16.mxu1 %v183_v0  ;;  %171 = vmatprep.mubr.msk.bf16.mxu1 %vm184_vm1, %v183_v0  ;;  %v22_v7 = vld [vmem:[%s292_s0 + $0x38] sm:$0xff]  ;;  %v17_v9 = vld [vmem:[%s292_s0 + $0x10] sm:$0xff] }
   0x3   :  { %v25_v5 = vpack.c.bf16 %v16_v3, %v15_v2  ;;  %158 = vmatpush3.bf16.msra.mxu0 %v56_v4  ;;  %180 = vmatpush3.bf16.msra.mxu1 %v56_v4  ;;  %v28_v8 = vpack.c.bf16 %v22_v7, %v21_v6  ;;  %v18_v10 = vld [vmem:[%s292_s0 + $0x18] sm:$0xff]  ;;  %v23_v11 = vld [vmem:[%s292_s0 + $0x40] sm:$0xff]  ;;  %v24_v12 = vld [vmem:[%s292_s0 + $0x48] sm:$0xff] }
   0x4   :  { %v26_v13 = vpack.c.bf16 %v18_v10, %v17_v9  ;;  %v29_v14 = vpack.c.bf16 %v24_v12, %v23_v11  ;;  %v19_v15 = vld [vmem:[%s292_s0 + $0x20] sm:$0xff]  ;;  %v20_v16 = vld [vmem:[%s292_s0 + $0x28] sm:$0xff] }
   0x5   :  { %v27_v17 = vpack.c.bf16 %v20_v16, %v19_v15  ;;  %v145_v18 = vld [vmem:[%s293_s2] ss:$0 sm:$0xff] }
   0x6   :  { %160 = vmatmul.mubr.msk.bf16.vlgmr.msra.gmra.mrb[0].mxu0 %vm38_vm2, %v25_v5  ;;  %172 = vmatmul.mubr.msk.bf16.vlgmr.msra.gmra.mrb[0].mxu1 %vm38_vm2, %v28_v8 }
   0x7   :  { %163 = vmatprep.mubr.msk.bf16.mxu0 %vm184_vm1, %v183_v0  ;;  %175 = vmatprep.mubr.msk.bf16.mxu1 %vm184_vm1, %v183_v0 }
   0xe   :  { %164 = vmatmul.mubr.msk.bf16.gmra.mrb[4].mxu0 %vm38_vm2, %v26_v13  ;;  %176 = vmatmul.mubr.msk.bf16.gmra.mrb[4].mxu1 %vm38_vm2, %v29_v14 }
   0xf   :  { %167 = vmatprep.mubr.msk.bf16.mxu0 %vm184_vm1, %v183_v0 }
  0x16   :  { %168 = vmatmul.mubr.msk.bf16.gmra.mrb[8].mxu0 %vm38_vm2, %v27_v17 }
  0xd9   :  { %v92_v19 = vpop.f32.mrb[0].mxu0  ;;  %v116_v20 = vpop.f32.mrb[0].mxu1 }
  0xda   :  { %v93_v21 = vadd.f32 %v145_v18, %v92_v19  ;;  %v161_v22 = vpop.f32.mrb[1].mxu0  ;;  %v117_v23 = vadd.f32 %v145_v18, %v116_v20  ;;  %v173_v24 = vpop.f32.mrb[1].mxu1 }
  0xdb   :  { %v95_v25 = vpop.f32.mrb[2].mxu0  ;;  %v119_v26 = vpop.f32.mrb[2].mxu1 }
  0xdc   :  { %131 = vst.msk [vmem:[%s294_s3] sm:$0xff] %vm38_vm2, %v93_v21  ;;  %v96_v27 = vadd.f32 %v145_v18, %v95_v25  ;;  %v162_v28 = vpop.f32.mrb[3].mxu0  ;;  %137 = vst.msk [vmem:[%s294_s3 + $0x30] sm:$0xff] %vm38_vm2, %v117_v23  ;;  %v120_v29 = vadd.f32 %v145_v18, %v119_v26  ;;  %v174_v30 = vpop.f32.mrb[3].mxu1 }
  0xde   :  { %132 = vst.msk [vmem:[%s294_s3 + $0x8] sm:$0xff] %vm38_vm2, %v96_v27  ;;  %138 = vst.msk [vmem:[%s294_s3 + $0x38] sm:$0xff] %vm38_vm2, %v120_v29 }
  0xe1   :  { %v100_v31 = vpop.f32.mrb[4].mxu0  ;;  %v124_v32 = vpop.f32.mrb[4].mxu1 }
  0xe2   :  { %v101_v33 = vadd.f32 %v145_v18, %v100_v31  ;;  %v165_v34 = vpop.f32.mrb[5].mxu0  ;;  %v125_v35 = vadd.f32 %v145_v18, %v124_v32  ;;  %v177_v36 = vpop.f32.mrb[5].mxu1 }
  0xe3   :  { %v103_v37 = vpop.f32.mrb[6].mxu0  ;;  %v127_v38 = vpop.f32.mrb[6].mxu1 }
  0xe4   :  { %133 = vst.msk [vmem:[%s294_s3 + $0x10] sm:$0xff] %vm38_vm2, %v101_v33  ;;  %v104_v39 = vadd.f32 %v145_v18, %v103_v37  ;;  %v166_v40 = vpop.f32.mrb[7].mxu0  ;;  %139 = vst.msk [vmem:[%s294_s3 + $0x40] sm:$0xff] %vm38_vm2, %v125_v35  ;;  %v128_v41 = vadd.f32 %v145_v18, %v127_v38  ;;  %v178_v42 = vpop.f32.mrb[7].mxu1 }
  0xe6   :  { %134 = vst.msk [vmem:[%s294_s3 + $0x18] sm:$0xff] %vm38_vm2, %v104_v39  ;;  %140 = vst.msk [vmem:[%s294_s3 + $0x48] sm:$0xff] %vm38_vm2, %v128_v41 }
  0xe9   :  { %v108_v43 = vpop.f32.mrb[8].mxu0 }
  0xea   :  { %v109_v44 = vadd.f32 %v145_v18, %v108_v43  ;;  %v169_v45 = vpop.f32.mrb[9].mxu0 }
  0xeb   :  { %v111_v46 = vpop.f32.mrb[10].mxu0 }
  0xec   :  { %135 = vst.msk [vmem:[%s294_s3 + $0x20] sm:$0xff] %vm38_vm2, %v109_v44  ;;  %v112_v47 = vadd.f32 %v145_v18, %v111_v46  ;;  %v170_v48 = vpop.f32.mrb[11].mxu0 }
  0xee   :  { %136 = vst.msk [vmem:[%s294_s3 + $0x28] sm:$0xff] %vm38_vm2, %v112_v47 }

// kernel: drgcn_forward.48
= control target key start
LH: loop header
LB: loop body
LE: loop exit
PB: predicated region body
PF: predicated region fallthrough
CT: control target
= control target key end

     0   :  { %vm54_vm0 = vcmask 1043456   ;;  %v193_v0 = vmov 0.0   ;;  %vm194_vm1 = vmmov 0   ;;  %vm38_vm2 = vcmask 64512   ;;  %s301_s1 = inlined_call_operand.vmem [shape: bf16[8,8], index: 1, kind: input, shape index: {}]   ;;  %s302_s0 = inlined_call_operand.vmem [shape: f32[80,8], index: 0, kind: input, shape index: {}]   ;;  %s303_s2 = inlined_call_operand.vmem [shape: f32[1,8], index: 2, kind: input, shape index: {}]   ;;  %s304_s3 = inlined_call_operand.vmem [shape: f32[80,8], index: 3, kind: output, shape index: {}]  }
   0x1   :  { %167 = vmatprep.subr.bf16.mxu0 %v193_v0  ;;  %v30_v1 = vld [vmem:[%s301_s1] sm:$0xf]  ;;  %169 = vmatprep.mubr.msk.bf16.mxu0 %vm194_vm1, %v193_v0  ;;  %v16_v3 = vld [vmem:[%s302_s0 + $0x8] sm:$0xff]  ;;  %v21_v6 = vld [vmem:[%s302_s0 + $0x30] sm:$0xff] }
   0x2   :  { %v15_v2 = vld [vmem:[%s302_s0] sm:$0xff]  ;;  %v56_v4 = vsel %vm54_vm0, %v30_v1, 0  ;;  %189 = vmatprep.subr.bf16.mxu1 %v193_v0  ;;  %181 = vmatprep.mubr.msk.bf16.mxu1 %vm194_vm1, %v193_v0  ;;  %v22_v7 = vld [vmem:[%s302_s0 + $0x38] sm:$0xff]  ;;  %v17_v9 = vld [vmem:[%s302_s0 + $0x10] sm:$0xff] }
   0x3   :  { %v25_v5 = vpack.c.bf16 %v16_v3, %v15_v2  ;;  %168 = vmatpush3.bf16.msra.mxu0 %v56_v4  ;;  %190 = vmatpush3.bf16.msra.mxu1 %v56_v4  ;;  %v28_v8 = vpack.c.bf16 %v22_v7, %v21_v6  ;;  %v18_v10 = vld [vmem:[%s302_s0 + $0x18] sm:$0xff]  ;;  %v23_v11 = vld [vmem:[%s302_s0 + $0x40] sm:$0xff]  ;;  %v24_v12 = vld [vmem:[%s302_s0 + $0x48] sm:$0xff] }
   0x4   :  { %v26_v13 = vpack.c.bf16 %v18_v10, %v17_v9  ;;  %v29_v14 = vpack.c.bf16 %v24_v12, %v23_v11  ;;  %v19_v15 = vld [vmem:[%s302_s0 + $0x20] sm:$0xff]  ;;  %v20_v16 = vld [vmem:[%s302_s0 + $0x28] sm:$0xff] }
   0x5   :  { %v27_v17 = vpack.c.bf16 %v20_v16, %v19_v15  ;;  %v155_v18 = vld [vmem:[%s303_s2] ss:$0 sm:$0xff] }
   0x6   :  { %170 = vmatmul.mubr.msk.bf16.vlgmr.msra.gmra.mrb[0].mxu0 %vm38_vm2, %v25_v5  ;;  %182 = vmatmul.mubr.msk.bf16.vlgmr.msra.gmra.mrb[0].mxu1 %vm38_vm2, %v28_v8 }
   0x7   :  { %173 = vmatprep.mubr.msk.bf16.mxu0 %vm194_vm1, %v193_v0  ;;  %185 = vmatprep.mubr.msk.bf16.mxu1 %vm194_vm1, %v193_v0 }
   0xe   :  { %174 = vmatmul.mubr.msk.bf16.gmra.mrb[4].mxu0 %vm38_vm2, %v26_v13  ;;  %186 = vmatmul.mubr.msk.bf16.gmra.mrb[4].mxu1 %vm38_vm2, %v29_v14 }
   0xf   :  { %177 = vmatprep.mubr.msk.bf16.mxu0 %vm194_vm1, %v193_v0 }
  0x16   :  { %178 = vmatmul.mubr.msk.bf16.gmra.mrb[8].mxu0 %vm38_vm2, %v27_v17 }
  0xd9   :  { %v92_v19 = vpop.f32.mrb[0].mxu0  ;;  %v116_v20 = vpop.f32.mrb[0].mxu1 }
  0xda   :  { %v93_v21 = vadd.f32 %v155_v18, %v92_v19  ;;  %v171_v22 = vpop.f32.mrb[1].mxu0  ;;  %v117_v23 = vadd.f32 %v155_v18, %v116_v20  ;;  %v183_v24 = vpop.f32.mrb[1].mxu1 }
  0xdb   :  { %v95_v25 = vpop.f32.mrb[2].mxu0  ;;  %v119_v26 = vpop.f32.mrb[2].mxu1 }
  0xdc   :  { %v131_v27 = vmax.f32 %v93_v21, 0.0  ;;  %v96_v28 = vadd.f32 %v155_v18, %v95_v25  ;;  %v172_v29 = vpop.f32.mrb[3].mxu0  ;;  %v137_v30 = vmax.f32 %v117_v23, 0.0  ;;  %v120_v31 = vadd.f32 %v155_v18, %v119_v26  ;;  %v184_v32 = vpop.f32.mrb[3].mxu1 }
  0xde   :  { %141 = vst.msk [vmem:[%s304_s3] sm:$0xff] %vm38_vm2, %v131_v27  ;;  %v132_v33 = vmax.f32 %v96_v28, 0.0  ;;  %147 = vst.msk [vmem:[%s304_s3 + $0x30] sm:$0xff] %vm38_vm2, %v137_v30  ;;  %v138_v34 = vmax.f32 %v120_v31, 0.0 }
  0xe0   :  { %142 = vst.msk [vmem:[%s304_s3 + $0x8] sm:$0xff] %vm38_vm2, %v132_v33  ;;  %148 = vst.msk [vmem:[%s304_s3 + $0x38] sm:$0xff] %vm38_vm2, %v138_v34 }
  0xe1   :  { %v100_v35 = vpop.f32.mrb[4].mxu0  ;;  %v124_v36 = vpop.f32.mrb[4].mxu1 }
  0xe2   :  { %v101_v37 = vadd.f32 %v155_v18, %v100_v35  ;;  %v175_v38 = vpop.f32.mrb[5].mxu0  ;;  %v125_v39 = vadd.f32 %v155_v18, %v124_v36  ;;  %v187_v40 = vpop.f32.mrb[5].mxu1 }
  0xe3   :  { %v103_v41 = vpop.f32.mrb[6].mxu0  ;;  %v127_v42 = vpop.f32.mrb[6].mxu1 }
  0xe4   :  { %v133_v43 = vmax.f32 %v101_v37, 0.0  ;;  %v104_v44 = vadd.f32 %v155_v18, %v103_v41  ;;  %v176_v45 = vpop.f32.mrb[7].mxu0  ;;  %v139_v46 = vmax.f32 %v125_v39, 0.0  ;;  %v128_v47 = vadd.f32 %v155_v18, %v127_v42  ;;  %v188_v48 = vpop.f32.mrb[7].mxu1 }
  0xe6   :  { %143 = vst.msk [vmem:[%s304_s3 + $0x10] sm:$0xff] %vm38_vm2, %v133_v43  ;;  %v134_v49 = vmax.f32 %v104_v44, 0.0  ;;  %149 = vst.msk [vmem:[%s304_s3 + $0x40] sm:$0xff] %vm38_vm2, %v139_v46  ;;  %v140_v50 = vmax.f32 %v128_v47, 0.0 }
  0xe8   :  { %144 = vst.msk [vmem:[%s304_s3 + $0x18] sm:$0xff] %vm38_vm2, %v134_v49  ;;  %150 = vst.msk [vmem:[%s304_s3 + $0x48] sm:$0xff] %vm38_vm2, %v140_v50 }
  0xe9   :  { %v108_v51 = vpop.f32.mrb[8].mxu0 }
  0xea   :  { %v109_v52 = vadd.f32 %v155_v18, %v108_v51  ;;  %v179_v53 = vpop.f32.mrb[9].mxu0 }
  0xeb   :  { %v111_v54 = vpop.f32.mrb[10].mxu0 }
  0xec   :  { %v135_v55 = vmax.f32 %v109_v52, 0.0  ;;  %v112_v56 = vadd.f32 %v155_v18, %v111_v54  ;;  %v180_v57 = vpop.f32.mrb[11].mxu0 }
  0xee   :  { %145 = vst.msk [vmem:[%s304_s3 + $0x20] sm:$0xff] %vm38_vm2, %v135_v55  ;;  %v136_v58 = vmax.f32 %v112_v56, 0.0 }
  0xf0   :  { %146 = vst.msk [vmem:[%s304_s3 + $0x28] sm:$0xff] %vm38_vm2, %v136_v58 }

// kernel: drgcn_forward.49
= control target key start
LH: loop header
LB: loop body
LE: loop exit
PB: predicated region body
PF: predicated region fallthrough
CT: control target
= control target key end

     0   :  { %vm23_vm0 = vcmask 39936   ;;  %s133_s0 = inlined_call_operand.vmem [shape: f32[40,5], index: 0, kind: input, shape index: {}]   ;;  %s134_s1 = inlined_call_operand.vmem [shape: f32[40,5], index: 1, kind: output, shape index: {}]  }
   0x1   :  { %v8_v0 = vld [vmem:[%s133_s0] sm:$0xff]  ;;  %v10_v1 = vld [vmem:[%s133_s0 + $0x10] sm:$0xff]  ;;  %v9_v2 = vld [vmem:[%s133_s0 + $0x8] sm:$0xff] }
   0x2   :  { %63 = vtanh.f32 %v8_v0  ;;  %v11_v3 = vld [vmem:[%s133_s0 + $0x18] sm:$0xff]  ;;  %v12_v4 = vld [vmem:[%s133_s0 + $0x20] sm:$0xff] }
   0x3   :  { %65 = vtanh.f32 %v10_v1 }
   0x4   :  { %67 = vtanh.f32 %v9_v2 }
   0x5   :  { %69 = vtanh.f32 %v11_v3 }
   0x6   :  { %71 = vtanh.f32 %v12_v4 }
   0xc   :  { %v64_v5 = vpop.eup %63 }
   0xd   :  { %v66_v6 = vpop.eup %65  ;;  %v18_v7 = vand.u32 2147483647, %v64_v5 }
   0xe   :  { %v68_v8 = vpop.eup %67  ;;  %v20_v9 = vand.u32 2147483647, %v66_v6 }
   0xf   :  { %v70_v10 = vpop.eup %69  ;;  %v24_v11 = vsel %vm23_vm0, %v18_v7, 0.0  ;;  %v19_v12 = vand.u32 2147483647, %v68_v8 }
  0x10   :  { %v72_v13 = vpop.eup %71  ;;  %25 = vadd.xlane.f32.xlu0 %v24_v11  ;;  %v30_v14 = vsel %vm23_vm0, %v20_v9, 0.0  ;;  %v21_v15 = vand.u32 2147483647, %v70_v10 }
  0x11   :  { %31 = vadd.xlane.f32.xlu1 %v30_v14  ;;  %v27_v16 = vsel %vm23_vm0, %v19_v12, 0.0  ;;  %v22_v17 = vand.u32 2147483647, %v72_v13 }
  0x12   :  { %v33_v18 = vsel %vm23_vm0, %v21_v15, 0.0 }
  0x13   :  { %v36_v19 = vsel %vm23_vm0, %v22_v17, 0.0 }
  0x14   :  { %28 = vadd.xlane.f32.xlu0 %v27_v16 }
  0x15   :  { %34 = vadd.xlane.f32.xlu1 %v33_v18 }
  0x18   :  { %37 = vadd.xlane.f32.xlu0 %v36_v19 }
  0x9d   :  { %v26_v20 = vpop.xlane.xlu0 %25 }
  0x9e   :  { %v39_v21 = vadd.f32 1e-06, %v26_v20  ;;  %v32_v22 = vpop.xlane.xlu1 %31 }
  0x9f   :  { %v41_v23 = vadd.f32 1e-06, %v32_v22 }
  0xa0   :  { %73 = vrcp.f32 %v39_v21 }
  0xa1   :  { %75 = vrcp.f32 %v41_v23  ;;  %v29_v24 = vpop.xlane.xlu0 %28 }
  0xa2   :  { %v40_v25 = vadd.f32 1e-06, %v29_v24  ;;  %v35_v26 = vpop.xlane.xlu1 %34 }
  0xa3   :  { %v42_v27 = vadd.f32 1e-06, %v35_v26 }
  0xa4   :  { %77 = vrcp.f32 %v40_v25 }
  0xa5   :  { %79 = vrcp.f32 %v42_v27  ;;  %v38_v28 = vpop.xlane.xlu0 %37 }
  0xa6   :  { %v43_v29 = vadd.f32 1e-06, %v38_v28 }
  0xa8   :  { %81 = vrcp.f32 %v43_v29 }
  0xaa   :  { %v74_v30 = vpop.eup %73 }
  0xab   :  { %v76_v31 = vpop.eup %75  ;;  %v45_v32 = vmul.f32 %v74_v30, %v64_v5 }
  0xac   :  { %v49_v33 = vmul.f32 %v76_v31, %v66_v6 }
  0xad   :  { %54 = vst.msk [vmem:[%s134_s1] sm:$0xff] %vm23_vm0, %v45_v32 }
  0xae   :  { %v78_v34 = vpop.eup %77  ;;  %56 = vst.msk [vmem:[%s134_s1 + $0x10] sm:$0xff] %vm23_vm0, %v49_v33 }
  0xaf   :  { %v80_v35 = vpop.eup %79  ;;  %v47_v36 = vmul.f32 %v78_v34, %v68_v8 }
  0xb0   :  { %v51_v37 = vmul.f32 %v80_v35, %v70_v10 }
  0xb1   :  { %55 = vst.msk [vmem:[%s134_s1 + $0x8] sm:$0xff] %vm23_vm0, %v47_v36 }
  0xb2   :  { %v82_v38 = vpop.eup %81  ;;  %57 = vst.msk [vmem:[%s134_s1 + $0x18] sm:$0xff] %vm23_vm0, %v51_v37 }
  0xb3   :  { %v53_v39 = vmul.f32 %v82_v38, %v72_v13 }
  0xb5   :  { %58 = vst.msk [vmem:[%s134_s1 + $0x20] sm:$0xff] %vm23_vm0, %v53_v39 }

// kernel: drgcn_forward.50
= control target key start
LH: loop header
LB: loop body
LE: loop exit
PB: predicated region body
PF: predicated region fallthrough
CT: control target
= control target key end

     0   :  { %vm64_vm0 = vcmask 1043456   ;;  %v191_v1 = vmov 0   ;;  %vm48_vm1 = vcmask 64512   ;;  %v33_v20 = vlaneseq  ;;  %s313_s1 = inlined_call_operand.vmem [shape: bf16[8,256], index: 1, kind: input, shape index: {}]   ;;  %s314_s0 = inlined_call_operand.vmem [shape: f32[80,8], index: 0, kind: input, shape index: {}]   ;;  %s315_s2 = inlined_call_operand.vmem [shape: f32[1,256], index: 2, kind: input, shape index: {}]   ;;  %s316_s3 = inlined_call_operand.vmem [shape: f32[80,256], index: 3, kind: output, shape index: {}]  }
   0x1   :  { %v30_v0 = vld [vmem:[%s313_s1] sm:$0xff]  ;;  %103 = vmatprep.mubr.bf16.mxu0 %v191_v1  ;;  %v16_v3 = vld [vmem:[%s314_s0 + $0x8] sm:$0xff]  ;;  %133 = vmatprep.mubr.bf16.mxu1 %v191_v1  ;;  %v21_v6 = vld [vmem:[%s314_s0 + $0x30] sm:$0xff] }
   0x2   :  { %v15_v2 = vld [vmem:[%s314_s0] sm:$0xff]  ;;  %v179_v4 = vcombine.high %v30_v0, %v30_v0  ;;  %v178_v5 = vcombine.low %v30_v0, %v30_v0  ;;  %v22_v7 = vld [vmem:[%s314_s0 + $0x38] sm:$0xff]  ;;  %v17_v11 = vld [vmem:[%s314_s0 + $0x10] sm:$0xff]  ;;  %v34_v21 = vshrl.u32 %v33_v20, 7 }
   0x3   :  { %v25_v9 = vpack.c.bf16 %v16_v3, %v15_v2  ;;  %v28_v10 = vpack.c.bf16 %v22_v7, %v21_v6  ;;  %v18_v12 = vld [vmem:[%s314_s0 + $0x18] sm:$0xff]  ;;  %v23_v13 = vld [vmem:[%s314_s0 + $0x40] sm:$0xff]  ;;  %v24_v14 = vld [vmem:[%s314_s0 + $0x48] sm:$0xff] }
   0x4   :  { %180 = vmatprep.subr.msk.bf16.mxu0 %vm64_vm0, %v179_v4  ;;  %v66_v8 = vsel %vm64_vm0, %v178_v5, 0  ;;  %186 = vmatprep.subr.msk.bf16.mxu1 %vm64_vm0, %v179_v4  ;;  %v26_v15 = vpack.c.bf16 %v18_v12, %v17_v11  ;;  %v29_v16 = vpack.c.bf16 %v24_v14, %v23_v13  ;;  %v19_v17 = vld [vmem:[%s314_s0 + $0x20] sm:$0xff]  ;;  %v20_v18 = vld [vmem:[%s314_s0 + $0x28] sm:$0xff]  ;;  %v35_v22 = vsub.s32 0, %v34_v21 }
   0x5   :  { %72 = vmatpush1.bf16.msra.mxu0 %v66_v8  ;;  %187 = vmatpush1.bf16.msra.mxu1 %v66_v8  ;;  %v27_v19 = vpack.c.bf16 %v20_v18, %v19_v17  ;;  %v31_v23 = vld [vmem:[%s315_s2] sm:$0x3]  ;;  %v39_v24 = vsub.s32 1, %v34_v21 }
   0x6   :  { %v36_v25 = vrot.slane %v31_v23, %v35_v22 }
   0x7   :  { %v40_v26 = vrot.slane %v31_v23, %v39_v24 }
   0x8   :  { %181 = vmatmul.mubr.msk.bf16.vlgmr.msra.gmra.mrb[0].mxu0 %vm48_vm1, %v25_v9  ;;  %184 = vmatmul.mubr.msk.bf16.vlgmr.msra.gmra.mrb[0].mxu1 %vm48_vm1, %v28_v10 }
   0x9   :  { %113 = vmatprep.mubr.bf16.mxu0 %v191_v1  ;;  %143 = vmatprep.mubr.bf16.mxu1 %v191_v1 }
  0x10   :  { %182 = vmatmul.mubr.msk.bf16.gmra.mrb[4].mxu0 %vm48_vm1, %v26_v15  ;;  %185 = vmatmul.mubr.msk.bf16.gmra.mrb[4].mxu1 %vm48_vm1, %v29_v16 }
  0x11   :  { %123 = vmatprep.mubr.bf16.mxu0 %v191_v1 }
  0x18   :  { %183 = vmatmul.mubr.msk.bf16.gmra.mrb[8].mxu0 %vm48_vm1, %v27_v19 }
  0xdb   :  { %v105_v27 = vpop.f32.mrb[0].mxu0  ;;  %v135_v28 = vpop.f32.mrb[0].mxu1 }
  0xdc   :  { %v106_v29 = vadd.f32 %v105_v27, %v36_v25  ;;  %v107_v30 = vpop.f32.mrb[1].mxu0  ;;  %v136_v31 = vadd.f32 %v135_v28, %v36_v25  ;;  %v137_v32 = vpop.f32.mrb[1].mxu1 }
  0xdd   :  { %v108_v33 = vadd.f32 %v107_v30, %v40_v26  ;;  %v109_v34 = vpop.f32.mrb[2].mxu0  ;;  %v138_v35 = vadd.f32 %v137_v32, %v40_v26  ;;  %v139_v36 = vpop.f32.mrb[2].mxu1 }
  0xde   :  { %154 = vst [vmem:[%s316_s3] sm:$0xff] %v106_v29  ;;  %v110_v37 = vadd.f32 %v109_v34, %v36_v25  ;;  %v111_v38 = vpop.f32.mrb[3].mxu0  ;;  %166 = vst [vmem:[%s316_s3 + $0x60] sm:$0xff] %v136_v31  ;;  %v140_v39 = vadd.f32 %v139_v36, %v36_v25  ;;  %v141_v40 = vpop.f32.mrb[3].mxu1 }
  0xdf   :  { %155 = vst [vmem:[%s316_s3 + $0x8] sm:$0xff] %v108_v33  ;;  %v112_v41 = vadd.f32 %v111_v38, %v40_v26  ;;  %167 = vst [vmem:[%s316_s3 + $0x68] sm:$0xff] %v138_v35  ;;  %v142_v42 = vadd.f32 %v141_v40, %v40_v26 }
  0xe0   :  { %156 = vst [vmem:[%s316_s3 + $0x10] sm:$0xff] %v110_v37  ;;  %168 = vst [vmem:[%s316_s3 + $0x70] sm:$0xff] %v140_v39 }
  0xe1   :  { %157 = vst [vmem:[%s316_s3 + $0x18] sm:$0xff] %v112_v41  ;;  %169 = vst [vmem:[%s316_s3 + $0x78] sm:$0xff] %v142_v42 }
  0xe3   :  { %v115_v43 = vpop.f32.mrb[4].mxu0  ;;  %v145_v44 = vpop.f32.mrb[4].mxu1 }
  0xe4   :  { %v116_v45 = vadd.f32 %v115_v43, %v36_v25  ;;  %v117_v46 = vpop.f32.mrb[5].mxu0  ;;  %v146_v47 = vadd.f32 %v145_v44, %v36_v25  ;;  %v147_v48 = vpop.f32.mrb[5].mxu1 }
  0xe5   :  { %v118_v49 = vadd.f32 %v117_v46, %v40_v26  ;;  %v119_v50 = vpop.f32.mrb[6].mxu0  ;;  %v148_v51 = vadd.f32 %v147_v48, %v40_v26  ;;  %v149_v52 = vpop.f32.mrb[6].mxu1 }
  0xe6   :  { %158 = vst [vmem:[%s316_s3 + $0x20] sm:$0xff] %v116_v45  ;;  %v120_v53 = vadd.f32 %v119_v50, %v36_v25  ;;  %v121_v54 = vpop.f32.mrb[7].mxu0  ;;  %170 = vst [vmem:[%s316_s3 + $0x80] sm:$0xff] %v146_v47  ;;  %v150_v55 = vadd.f32 %v149_v52, %v36_v25  ;;  %v151_v56 = vpop.f32.mrb[7].mxu1 }
  0xe7   :  { %159 = vst [vmem:[%s316_s3 + $0x28] sm:$0xff] %v118_v49  ;;  %v122_v57 = vadd.f32 %v121_v54, %v40_v26  ;;  %171 = vst [vmem:[%s316_s3 + $0x88] sm:$0xff] %v148_v51  ;;  %v152_v58 = vadd.f32 %v151_v56, %v40_v26 }
  0xe8   :  { %160 = vst [vmem:[%s316_s3 + $0x30] sm:$0xff] %v120_v53  ;;  %172 = vst [vmem:[%s316_s3 + $0x90] sm:$0xff] %v150_v55 }
  0xe9   :  { %161 = vst [vmem:[%s316_s3 + $0x38] sm:$0xff] %v122_v57  ;;  %173 = vst [vmem:[%s316_s3 + $0x98] sm:$0xff] %v152_v58 }
  0xeb   :  { %v125_v59 = vpop.f32.mrb[8].mxu0 }
  0xec   :  { %v126_v60 = vadd.f32 %v125_v59, %v36_v25  ;;  %v127_v61 = vpop.f32.mrb[9].mxu0 }
  0xed   :  { %v128_v62 = vadd.f32 %v127_v61, %v40_v26  ;;  %v129_v63 = vpop.f32.mrb[10].mxu0 }
  0xee   :  { %162 = vst [vmem:[%s316_s3 + $0x40] sm:$0xff] %v126_v60  ;;  %v130_v0 = vadd.f32 %v129_v63, %v36_v25  ;;  %v131_v1 = vpop.f32.mrb[11].mxu0 }
  0xef   :  { %163 = vst [vmem:[%s316_s3 + $0x48] sm:$0xff] %v128_v62  ;;  %v132_v2 = vadd.f32 %v131_v1, %v40_v26 }
  0xf0   :  { %164 = vst [vmem:[%s316_s3 + $0x50] sm:$0xff] %v130_v0 }
  0xf1   :  { %165 = vst [vmem:[%s316_s3 + $0x58] sm:$0xff] %v132_v2 }

// kernel: drgcn_forward.54
= control target key start
LH: loop header
LB: loop body
LE: loop exit
PB: predicated region body
PF: predicated region fallthrough
CT: control target
= control target key end

     0   :  { %v247_v1 = vmov 0   ;;  %vm90_vm0 = vcmask 523264   ;;  %v40_v24 = vlaneseq  ;;  %s390_s1 = inlined_call_operand.vmem [shape: bf16[64,256], index: 1, kind: input, shape index: {}]   ;;  %s391_s0 = inlined_call_operand.vmem [shape: f32[80,64], index: 0, kind: input, shape index: {}]   ;;  %s392_s2 = inlined_call_operand.vmem [shape: f32[1,256], index: 2, kind: input, shape index: {}]   ;;  %s393_s3 = inlined_call_operand.vmem [shape: f32[80,256], index: 3, kind: output, shape index: {}]  }
   0x1   :  { %v235_v0 = vld [vmem:[%s390_s1 + $0x4] ss:$8 sps:$4 sm:$0xff]   ;;  %138 = vmatprep.mubr.bf16.mxu0 %v247_v1  ;;  %168 = vmatprep.mubr.bf16.mxu1 %v247_v1  ;;  %v237_v2 = vld [vmem:[%s390_s1] ss:$8 sps:$4 sm:$0xff]   ;;  %v238_v3 = vld [vmem:[%s390_s1 + $0x14] ss:$8 sps:$4 sm:$0xff]  }
   0x2   :  { %106 = vmatprep.subr.bf16.mxu0 %v235_v0  ;;  %226 = vmatprep.subr.bf16.mxu1 %v235_v0  ;;  %v240_v4 = vld [vmem:[%s390_s1 + $0x10] ss:$8 sps:$4 sm:$0xff]   ;;  %v241_v5 = vld [vmem:[%s390_s1 + $0x24] ss:$8 sps:$4 sm:$0xff]   ;;  %v243_v6 = vld [vmem:[%s390_s1 + $0x20] ss:$8 sps:$4 sm:$0xff]  }
   0x3   :  { %107 = vmatpush1.bf16.msra.mxu0 %v237_v2  ;;  %230 = vmatpush1.bf16.msra.mxu1 %v237_v2  ;;  %v244_v7 = vld [vmem:[%s390_s1 + $0x34] ss:$8 sps:$4 sm:$0xff]   ;;  %v246_v8 = vld [vmem:[%s390_s1 + $0x30] ss:$8 sps:$4 sm:$0xff]   ;;  %v15_v9 = vld [vmem:[%s391_s0] sm:$0xff]  ;;  %v41_v25 = vshrl.u32 %v40_v24, 7 }
   0x4   :  { %108 = vmatprep.subr.bf16.mxu0 %v238_v3  ;;  %227 = vmatprep.subr.bf16.mxu1 %v238_v3  ;;  %v16_v10 = vld [vmem:[%s391_s0 + $0x8] sm:$0xff]  ;;  %v21_v11 = vld [vmem:[%s391_s0 + $0x30] sm:$0xff]  ;;  %v22_v12 = vld [vmem:[%s391_s0 + $0x38] sm:$0xff] }
   0x5   :  { %v25_v13 = vpack.c.bf16 %v16_v10, %v15_v9  ;;  %v28_v14 = vpack.c.bf16 %v22_v12, %v21_v11  ;;  %v17_v15 = vld [vmem:[%s391_s0 + $0x10] sm:$0xff]  ;;  %v18_v16 = vld [vmem:[%s391_s0 + $0x18] sm:$0xff]  ;;  %v23_v17 = vld [vmem:[%s391_s0 + $0x40] sm:$0xff]  ;;  %v42_v26 = vsub.s32 0, %v41_v25  ;;  %v46_v28 = vsub.s32 1, %v41_v25 }
   0x6   :  { %v24_v18 = vld [vmem:[%s391_s0 + $0x48] sm:$0xff]  ;;  %v26_v19 = vpack.c.bf16 %v18_v16, %v17_v15  ;;  %v19_v21 = vld [vmem:[%s391_s0 + $0x20] sm:$0xff] }
   0x7   :  { %109 = vmatpush1.bf16.msra.mxu0 %v240_v4  ;;  %231 = vmatpush1.bf16.msra.mxu1 %v240_v4  ;;  %v29_v20 = vpack.c.bf16 %v24_v18, %v23_v17  ;;  %v20_v22 = vld [vmem:[%s391_s0 + $0x28] sm:$0xff]  ;;  %v38_v27 = vld [vmem:[%s392_s2] sm:$0x3] }
   0x8   :  { %110 = vmatprep.subr.bf16.mxu0 %v241_v5  ;;  %228 = vmatprep.subr.bf16.mxu1 %v241_v5  ;;  %v27_v23 = vpack.c.bf16 %v20_v22, %v19_v21  ;;  %v43_v29 = vrot.slane %v38_v27, %v42_v26  ;;  %v47_v30 = vrot.slane %v38_v27, %v46_v28 }
   0xb   :  { %111 = vmatpush1.bf16.msra.mxu0 %v243_v6  ;;  %232 = vmatpush1.bf16.msra.mxu1 %v243_v6 }
   0xc   :  { %112 = vmatprep.subr.bf16.mxu0 %v244_v7  ;;  %229 = vmatprep.subr.bf16.mxu1 %v244_v7 }
   0xf   :  { %113 = vmatpush1.bf16.msra.mxu0 %v246_v8  ;;  %233 = vmatpush1.bf16.msra.mxu1 %v246_v8 }
  0x12   :  { %221 = vmatmul.mubr.msk.bf16.vlgmr.msra.gmra.mrb[0].mxu0 %vm90_vm0, %v25_v13  ;;  %224 = vmatmul.mubr.msk.bf16.vlgmr.msra.gmra.mrb[0].mxu1 %vm90_vm0, %v28_v14 }
  0x13   :  { %148 = vmatprep.mubr.bf16.mxu0 %v247_v1  ;;  %178 = vmatprep.mubr.bf16.mxu1 %v247_v1 }
  0x1a   :  { %222 = vmatmul.mubr.msk.bf16.gmra.mrb[4].mxu0 %vm90_vm0, %v26_v19  ;;  %225 = vmatmul.mubr.msk.bf16.gmra.mrb[4].mxu1 %vm90_vm0, %v29_v20 }
  0x1b   :  { %158 = vmatprep.mubr.bf16.mxu0 %v247_v1 }
  0x22   :  { %223 = vmatmul.mubr.msk.bf16.gmra.mrb[8].mxu0 %vm90_vm0, %v27_v23 }
  0xe5   :  { %v140_v31 = vpop.f32.mrb[0].mxu0  ;;  %v170_v32 = vpop.f32.mrb[0].mxu1 }
  0xe6   :  { %v141_v33 = vadd.f32 %v140_v31, %v43_v29  ;;  %v142_v34 = vpop.f32.mrb[1].mxu0  ;;  %v171_v35 = vadd.f32 %v170_v32, %v43_v29  ;;  %v172_v36 = vpop.f32.mrb[1].mxu1 }
  0xe7   :  { %v143_v37 = vadd.f32 %v142_v34, %v47_v30  ;;  %v144_v38 = vpop.f32.mrb[2].mxu0  ;;  %v173_v39 = vadd.f32 %v172_v36, %v47_v30  ;;  %v174_v40 = vpop.f32.mrb[2].mxu1 }
  0xe8   :  { %189 = vst [vmem:[%s393_s3] sm:$0xff] %v141_v33  ;;  %v145_v41 = vadd.f32 %v144_v38, %v43_v29  ;;  %v146_v42 = vpop.f32.mrb[3].mxu0  ;;  %201 = vst [vmem:[%s393_s3 + $0x60] sm:$0xff] %v171_v35  ;;  %v175_v43 = vadd.f32 %v174_v40, %v43_v29  ;;  %v176_v44 = vpop.f32.mrb[3].mxu1 }
  0xe9   :  { %190 = vst [vmem:[%s393_s3 + $0x8] sm:$0xff] %v143_v37  ;;  %v147_v45 = vadd.f32 %v146_v42, %v47_v30  ;;  %202 = vst [vmem:[%s393_s3 + $0x68] sm:$0xff] %v173_v39  ;;  %v177_v46 = vadd.f32 %v176_v44, %v47_v30 }
  0xea   :  { %191 = vst [vmem:[%s393_s3 + $0x10] sm:$0xff] %v145_v41  ;;  %203 = vst [vmem:[%s393_s3 + $0x70] sm:$0xff] %v175_v43 }
  0xeb   :  { %192 = vst [vmem:[%s393_s3 + $0x18] sm:$0xff] %v147_v45  ;;  %204 = vst [vmem:[%s393_s3 + $0x78] sm:$0xff] %v177_v46 }
  0xed   :  { %v150_v47 = vpop.f32.mrb[4].mxu0  ;;  %v180_v48 = vpop.f32.mrb[4].mxu1 }
  0xee   :  { %v151_v49 = vadd.f32 %v150_v47, %v43_v29  ;;  %v152_v50 = vpop.f32.mrb[5].mxu0  ;;  %v181_v51 = vadd.f32 %v180_v48, %v43_v29  ;;  %v182_v52 = vpop.f32.mrb[5].mxu1 }
  0xef   :  { %v153_v53 = vadd.f32 %v152_v50, %v47_v30  ;;  %v154_v54 = vpop.f32.mrb[6].mxu0  ;;  %v183_v55 = vadd.f32 %v182_v52, %v47_v30  ;;  %v184_v56 = vpop.f32.mrb[6].mxu1 }
  0xf0   :  { %193 = vst [vmem:[%s393_s3 + $0x20] sm:$0xff] %v151_v49  ;;  %v155_v57 = vadd.f32 %v154_v54, %v43_v29  ;;  %v156_v58 = vpop.f32.mrb[7].mxu0  ;;  %205 = vst [vmem:[%s393_s3 + $0x80] sm:$0xff] %v181_v51  ;;  %v185_v59 = vadd.f32 %v184_v56, %v43_v29  ;;  %v186_v60 = vpop.f32.mrb[7].mxu1 }
  0xf1   :  { %194 = vst [vmem:[%s393_s3 + $0x28] sm:$0xff] %v153_v53  ;;  %v157_v61 = vadd.f32 %v156_v58, %v47_v30  ;;  %206 = vst [vmem:[%s393_s3 + $0x88] sm:$0xff] %v183_v55  ;;  %v187_v62 = vadd.f32 %v186_v60, %v47_v30 }
  0xf2   :  { %195 = vst [vmem:[%s393_s3 + $0x30] sm:$0xff] %v155_v57  ;;  %207 = vst [vmem:[%s393_s3 + $0x90] sm:$0xff] %v185_v59 }
  0xf3   :  { %196 = vst [vmem:[%s393_s3 + $0x38] sm:$0xff] %v157_v61  ;;  %208 = vst [vmem:[%s393_s3 + $0x98] sm:$0xff] %v187_v62 }
  0xf5   :  { %v160_v63 = vpop.f32.mrb[8].mxu0 }
  0xf6   :  { %v161_v0 = vadd.f32 %v160_v63, %v43_v29  ;;  %v162_v1 = vpop.f32.mrb[9].mxu0 }
  0xf7   :  { %v163_v2 = vadd.f32 %v162_v1, %v47_v30  ;;  %v164_v3 = vpop.f32.mrb[10].mxu0 }
  0xf8   :  { %197 = vst [vmem:[%s393_s3 + $0x40] sm:$0xff] %v161_v0  ;;  %v165_v4 = vadd.f32 %v164_v3, %v43_v29  ;;  %v166_v5 = vpop.f32.mrb[11].mxu0 }
  0xf9   :  { %198 = vst [vmem:[%s393_s3 + $0x48] sm:$0xff] %v163_v2  ;;  %v167_v6 = vadd.f32 %v166_v5, %v47_v30 }
  0xfa   :  { %199 = vst [vmem:[%s393_s3 + $0x50] sm:$0xff] %v165_v4 }
  0xfb   :  { %200 = vst [vmem:[%s393_s3 + $0x58] sm:$0xff] %v167_v6 }

// kernel: drgcn_forward.52
= control target key start
LH: loop header
LB: loop body
LE: loop exit
PB: predicated region body
PF: predicated region fallthrough
CT: control target
= control target key end

     0   :  { %vm68_vm0 = vcmask 523264   ;;  %s181_s0 = inlined_call_operand.vmem [shape: f32[80,64], index: 0, kind: input, shape index: {}]   ;;  %s182_s1 = inlined_call_operand.vmem [shape: f32[1,64], index: 1, kind: input, shape index: {}]   ;;  %s183_s2 = inlined_call_operand.vmem [shape: f32[1,64], index: 2, kind: input, shape index: {}]   ;;  %s184_s3 = inlined_call_operand.vmem [shape: f32[80,64], index: 3, kind: output, shape index: {}]  }
   0x1   :  { %v14_v0 = vld [vmem:[%s181_s0] sm:$0xff]  ;;  %v15_v4 = vld [vmem:[%s181_s0 + $0x8] sm:$0xff]  ;;  %v16_v5 = vld [vmem:[%s181_s0 + $0x10] sm:$0xff] }
   0x2   :  { %v83_v1 = vld [vmem:[%s182_s1] ss:$0 sm:$0xff]  ;;  %v17_v6 = vld [vmem:[%s181_s0 + $0x18] sm:$0xff]  ;;  %v19_v11 = vld [vmem:[%s181_s0 + $0x28] sm:$0xff] }
   0x3   :  { %v84_v2 = vld [vmem:[%s183_s2] ss:$0 sm:$0xff]  ;;  %v31_v3 = vmul.f32 %v83_v1, %v14_v0  ;;  %v32_v7 = vmul.f32 %v83_v1, %v15_v4  ;;  %v33_v8 = vmul.f32 %v83_v1, %v16_v5  ;;  %v34_v9 = vmul.f32 %v83_v1, %v17_v6  ;;  %v20_v12 = vld [vmem:[%s181_s0 + $0x30] sm:$0xff]  ;;  %v21_v17 = vld [vmem:[%s181_s0 + $0x38] sm:$0xff] }
   0x4   :  { %v18_v10 = vld [vmem:[%s181_s0 + $0x20] sm:$0xff]  ;;  %v36_v15 = vmul.f32 %v83_v1, %v19_v11  ;;  %v37_v16 = vmul.f32 %v83_v1, %v20_v12  ;;  %v38_v21 = vmul.f32 %v83_v1, %v21_v17  ;;  %v23_v27 = vld [vmem:[%s181_s0 + $0x48] sm:$0xff] }
   0x5   :  { %v48_v13 = vadd.f32 %v84_v2, %v31_v3  ;;  %v35_v14 = vmul.f32 %v83_v1, %v18_v10  ;;  %v49_v18 = vadd.f32 %v84_v2, %v32_v7  ;;  %v50_v19 = vadd.f32 %v84_v2, %v33_v8  ;;  %v22_v22 = vld [vmem:[%s181_s0 + $0x40] sm:$0xff] }
   0x6   :  { %v51_v20 = vadd.f32 %v84_v2, %v34_v9  ;;  %v53_v25 = vadd.f32 %v84_v2, %v36_v15  ;;  %v54_v26 = vadd.f32 %v84_v2, %v37_v16  ;;  %v55_v31 = vadd.f32 %v84_v2, %v38_v21 }
   0x7   :  { %v58_v23 = vmax.f32 %v48_v13, 0.0  ;;  %v52_v24 = vadd.f32 %v84_v2, %v35_v14  ;;  %v59_v28 = vmax.f32 %v49_v18, 0.0  ;;  %v60_v29 = vmax.f32 %v50_v19, 0.0 }
   0x8   :  { %v61_v30 = vmax.f32 %v51_v20, 0.0  ;;  %v63_v33 = vmax.f32 %v53_v25, 0.0  ;;  %v64_v34 = vmax.f32 %v54_v26, 0.0  ;;  %v39_v35 = vmul.f32 %v83_v1, %v22_v22 }
   0x9   :  { %69 = vst.msk [vmem:[%s184_s3] sm:$0xff] %vm68_vm0, %v58_v23  ;;  %v62_v32 = vmax.f32 %v52_v24, 0.0  ;;  %70 = vst.msk [vmem:[%s184_s3 + $0x8] sm:$0xff] %vm68_vm0, %v59_v28  ;;  %v65_v36 = vmax.f32 %v55_v31, 0.0  ;;  %v40_v37 = vmul.f32 %v83_v1, %v23_v27 }
   0xa   :  { %71 = vst.msk [vmem:[%s184_s3 + $0x10] sm:$0xff] %vm68_vm0, %v60_v29  ;;  %72 = vst.msk [vmem:[%s184_s3 + $0x18] sm:$0xff] %vm68_vm0, %v61_v30  ;;  %v56_v38 = vadd.f32 %v84_v2, %v39_v35 }
   0xb   :  { %73 = vst.msk [vmem:[%s184_s3 + $0x20] sm:$0xff] %vm68_vm0, %v62_v32  ;;  %74 = vst.msk [vmem:[%s184_s3 + $0x28] sm:$0xff] %vm68_vm0, %v63_v33  ;;  %v57_v39 = vadd.f32 %v84_v2, %v40_v37 }
   0xc   :  { %75 = vst.msk [vmem:[%s184_s3 + $0x30] sm:$0xff] %vm68_vm0, %v64_v34  ;;  %76 = vst.msk [vmem:[%s184_s3 + $0x38] sm:$0xff] %vm68_vm0, %v65_v36  ;;  %v66_v40 = vmax.f32 %v56_v38, 0.0 }
   0xd   :  { %v67_v41 = vmax.f32 %v57_v39, 0.0 }
   0xe   :  { %77 = vst.msk [vmem:[%s184_s3 + $0x40] sm:$0xff] %vm68_vm0, %v66_v40 }
   0xf   :  { %78 = vst.msk [vmem:[%s184_s3 + $0x48] sm:$0xff] %vm68_vm0, %v67_v41 }

// kernel: drgcn_forward.51
= control target key start
LH: loop header
LB: loop body
LE: loop exit
PB: predicated region body
PF: predicated region fallthrough
CT: control target
= control target key end

     0   :  { %s2677_s18 = smov 0   ;;  %s3147_s0 = inlined_call_operand.vmem [shape: f32[2,8,5,64], index: 0, kind: input, shape index: {}]   ;;  %s3148_s1 = inlined_call_operand.vmem [shape: bf16[3,64,64], index: 1, kind: input, shape index: {}]   ;;  %s3149_s2 = inlined_call_operand.vmem [shape: f32[1,64], index: 2, kind: input, shape index: {}]   ;;  %s3150_s3 = inlined_call_operand.vmem [shape: f32[1,64], index: 3, kind: input, shape index: {}]   ;;  %s3151_s4 = inlined_call_operand.vmem [shape: f32[1,64], index: 4, kind: input, shape index: {}]   ;;  %s3152_s5 = inlined_call_operand.vmem [shape: f32[2,8,5,64], index: 5, kind: output, shape index: {}]  }
   0x1 LB: > { %s2407_s19 = sadd.s32 4294967295, %s2642_s18   ;;  %p2411_p0 = scmp.ge.s32.totalorder %s2642_s18, 1  ;;  %s2642_s18 = sphi %s2677_s18, %s15_s18  }
   0x2   : > { %p187_p1 = scmp.lt.s32.totalorder %s2642_s18, 3 }
   0x4   : > { %p188_p2 = pnand %p2411_p0, %p187_p1 }
   0x5   : > { %v2624_v0 = vld [vmem:[%s3148_s1 + $0x20] sm:$0xff] (!%p188_p2)   ;;  %v2644_v1 = vmov (!%p188_p2), 0.0   ;;  %v2625_v2 = vld [vmem:[%s3148_s1 + $0x28] sm:$0xff] (!%p188_p2)   ;;  %p215_p3 = scmp.lt.s32.totalorder (!%p188_p2), %s2407_s19, 1  ;;  %vm2645_vm0 = vmmov (!%p188_p2), 0   ;;  %v2626_v3 = vld [vmem:[%s3148_s1 + $0x30] sm:$0xff] (!%p188_p2)   ;;  %v342_v5 = vlaneseq (!%p188_p2) }
   0x6   : > { %191 = sbr.rel (%p188_p2) target bundleno = 333 (0x14d), region = 40  ;;  %2605 = vmatprep.subr.bf16.mxu1 (!%p188_p2), %v2644_v1  ;;  %2545 = vmatprep.subr.bf16.mxu0 (!%p188_p2), %v2644_v1  ;;  %v2708_v4 = vld [vmem:[%s3150_s3] ss:$0 sm:$0xff] (!%p188_p2)  ;;  %vm280_vm1 = vcmask (!%p188_p2), 518144   ;;  %v2627_v16 = vld [vmem:[%s3148_s1 + $0x38] sm:$0xff] (!%p188_p2)   ;;  %vm978_vm4 = vcmask (!%p188_p2), 523264  }
   0x7   : > { %2609 = vmatpush3.bf16.msra.mxu1 (!%p188_p2), %v2624_v0  ;;  %2546 = vmatpush3.bf16.msra.mxu0 (!%p188_p2), %v2624_v0  ;;  %v2722_v6 = vld [vmem:[%s3151_s4] ss:$0 sm:$0xff] (!%p188_p2)  ;;  %v2736_v17 = vshrl.u32 (!%p188_p2), %v342_v5, 7  ;;  %vm281_vm2 = vsmask.f32 (!%p188_p2), 2304  ;;  %vm2343_vm5 = vcmask (!%p188_p2), 520192  }
   0x8   : > { %2606 = vmatprep.subr.bf16.mxu1 (!%p188_p2), %v2644_v1  ;;  %2547 = vmatprep.subr.bf16.mxu0 (!%p188_p2), %v2644_v1  ;;  %v2646_v23 = vmov (!%p188_p2), 1966171168   ;;  %v305_v25 = vld [vmem:[#allocation2 + $0x1c] sm:$0x7] (!%p188_p2)  ;;  %v308_v26 = vld [vmem:[#allocation2 + $0x20] sm:$0x7] (!%p188_p2)  ;;  %vm2751_vm3 = vmand (!%p188_p2), %vm280_vm1, %vm281_vm2 }
   0x9   : > { %2561 = vmatprep.mubr.msk.bf16.mxu1 (!%p188_p2), %vm2645_vm0, %v2644_v1  ;;  %2553 = vmatprep.mubr.msk.bf16.mxu0 (!%p188_p2), %vm2645_vm0, %v2644_v1  ;;  %v340_v24 = vunpack.c.l.s4 (!%p188_p2), %v2646_v23  ;;  %v287_v33 = vld [vmem:[#allocation2 + $0x4] sm:$0x7] (!%p188_p2)  ;;  %v290_v34 = vld [vmem:[#allocation2 + $0x8] sm:$0x7] (!%p188_p2)  ;;  %v293_v35 = vld [vmem:[#allocation2 + $0xc] sm:$0x7] (!%p188_p2) }
   0xa   : > { %v296_v41 = vld [vmem:[#allocation2 + $0x10] sm:$0x7] (!%p188_p2)  ;;  %v283_v61 = vld [vmem:[#allocation2] sm:$0x7] (!%p188_p2)  ;;  %v312_v62 = vld [vmem:[#allocation2 + $0x24] sm:$0x7] (!%p188_p2) }
   0xb   : > { %2610 = vmatpush3.bf16.msra.mxu1 (!%p188_p2), %v2625_v2  ;;  %2548 = vmatpush3.bf16.msra.mxu0 (!%p188_p2), %v2625_v2  ;;  %v341_v44 = vunpack.c.0.s8 (!%p188_p2), %v340_v24  ;;  %v284_v2 = vsel (!%p188_p2), %vm2751_vm3, 0, %v283_v61  ;;  %v299_v5 = vld [vmem:[#allocation2 + $0x14] sm:$0x7] (!%p188_p2) }
   0xc   : > { %2607 = vmatprep.subr.bf16.mxu1 (!%p188_p2), %v2644_v1  ;;  %2549 = vmatprep.subr.bf16.mxu0 (!%p188_p2), %v2644_v1  ;;  %285 = vst [vmem:[#allocation2] sm:$0x7] (!%p188_p2), %v284_v2 }
   0xd   : > { %s3156_s19 = smov (!%p215_p3, %s2407_s19), 1 }
   0xe   : > { %s2522_s26 = sshll.u32 %s3156_s19, 6 }
   0xf   : > { %s2717_s6 = scalar_lea.vmem %s3147_s0, %s2522_s26  ;;  %2611 = vmatpush3.bf16.msra.mxu1 %v2626_v3  ;;  %2550 = vmatpush3.bf16.msra.mxu0 %v2626_v3  ;;  %v313_v3 = vsel %vm2751_vm3, 0, %v312_v62  ;;  %s3073_s9 = scalar_lea.vmem %s3152_s5, %s2522_s26 }
  0x10   : > { %v232_v7 = vld [vmem:[%s2717_s6 + $0x30] sm:$0x1f]  ;;  %v233_v8 = vld [vmem:[%s2717_s6 + $0x38] sm:$0x1f]  ;;  %v226_v9 = vld [vmem:[%s2717_s6] sm:$0x1f]  ;;  %2608 = vmatprep.subr.bf16.mxu1 %v2644_v1  ;;  %2551 = vmatprep.subr.bf16.mxu0 %v2644_v1 }
  0x11   : > { %v247_v10 = vmul.f32 %v2708_v4, %v232_v7  ;;  %v248_v11 = vmul.f32 %v2708_v4, %v233_v8  ;;  %v227_v12 = vld [vmem:[%s2717_s6 + $0x8] sm:$0x1f]  ;;  %v228_v13 = vld [vmem:[%s2717_s6 + $0x10] sm:$0x1f]  ;;  %v229_v14 = vld [vmem:[%s2717_s6 + $0x18] sm:$0x1f]  ;;  %v241_v15 = vmul.f32 %v2708_v4, %v226_v9 }
  0x12   : > { %v242_v18 = vmul.f32 %v2708_v4, %v227_v12  ;;  %v243_v19 = vmul.f32 %v2708_v4, %v228_v13  ;;  %v244_v20 = vmul.f32 %v2708_v4, %v229_v14  ;;  %v230_v45 = vld [vmem:[%s2717_s6 + $0x20] sm:$0x1f]  ;;  %v231_v50 = vld [vmem:[%s2717_s6 + $0x28] sm:$0x1f]  ;;  %v302_v7 = vld [vmem:[#allocation2 + $0x18] sm:$0x7] }
  0x13   : > { %v262_v21 = vadd.f32 %v2722_v6, %v247_v10  ;;  %v263_v22 = vadd.f32 %v2722_v6, %v248_v11  ;;  %v256_v27 = vadd.f32 %v2722_v6, %v241_v15  ;;  %2612 = vmatpush3.bf16.msra.mxu1 %v2627_v16  ;;  %2552 = vmatpush3.bf16.msra.mxu0 %v2627_v16 }
  0x14   : > { %v257_v28 = vadd.f32 %v2722_v6, %v242_v18  ;;  %v258_v29 = vadd.f32 %v2722_v6, %v243_v19  ;;  %v259_v30 = vadd.f32 %v2722_v6, %v244_v20  ;;  %2565 = vmatprep.subr.bf16.mxu1 %v2644_v1  ;;  %2585 = vmatprep.subr.bf16.mxu0 %v2644_v1 }
  0x15   : > { %v270_v31 = vmax.f32 %v262_v21, 0.0  ;;  %v271_v32 = vmax.f32 %v263_v22, 0.0  ;;  %v264_v37 = vmax.f32 %v256_v27, 0.0  ;;  %v245_v53 = vmul.f32 %v2708_v4, %v230_v45  ;;  %314 = vst [vmem:[#allocation2 + $0x24] sm:$0x7] %v313_v3 }
  0x16   : > { %v265_v38 = vmax.f32 %v257_v28, 0.0  ;;  %v266_v39 = vmax.f32 %v258_v29, 0.0  ;;  %v267_v40 = vmax.f32 %v259_v30, 0.0  ;;  %v246_v54 = vmul.f32 %v2708_v4, %v231_v50 }
  0x17   : > { %v278_v42 = vpack.c.bf16 %v270_v31, %v270_v31  ;;  %v279_v43 = vpack.c.bf16 %v271_v32, %v271_v32  ;;  %v272_v46 = vpack.c.bf16 %v264_v37, %v264_v37  ;;  %v260_v59 = vadd.f32 %v2722_v6, %v245_v53 }
  0x18   : > { %v273_v47 = vpack.c.bf16 %v265_v38, %v265_v38  ;;  %v274_v48 = vpack.c.bf16 %v266_v39, %v266_v39  ;;  %v275_v49 = vpack.c.bf16 %v267_v40, %v267_v40  ;;  %v261_v60 = vadd.f32 %v2722_v6, %v246_v54 }
  0x19   : > { %v306_v51 = vsel %vm2751_vm3, %v278_v42, %v305_v25  ;;  %v309_v52 = vsel %vm2751_vm3, %v279_v43, %v308_v26  ;;  %v288_v55 = vsel %vm2751_vm3, %v272_v46, %v287_v33  ;;  %v268_v63 = vmax.f32 %v260_v59, 0.0 }
  0x1a   : > { %307 = vst [vmem:[#allocation2 + $0x1c] sm:$0x7] %v306_v51  ;;  %310 = vst [vmem:[#allocation2 + $0x20] sm:$0x7] %v309_v52  ;;  %v291_v56 = vsel %vm2751_vm3, %v273_v47, %v290_v34  ;;  %v294_v57 = vsel %vm2751_vm3, %v274_v48, %v293_v35  ;;  %v297_v58 = vsel %vm2751_vm3, %v275_v49, %v296_v41  ;;  %v269_v0 = vmax.f32 %v261_v60, 0.0 }
  0x1b   : > { %289 = vst [vmem:[#allocation2 + $0x4] sm:$0x7] %v288_v55  ;;  %292 = vst [vmem:[#allocation2 + $0x8] sm:$0x7] %v291_v56  ;;  %v2780_v4 = vsub.s32 %v341_v44, %v2736_v17  ;;  %v276_v8 = vpack.c.bf16 %v268_v63, %v268_v63 }
  0x1c   : > { %295 = vst [vmem:[#allocation2 + $0xc] sm:$0x7] %v294_v57  ;;  %298 = vst [vmem:[#allocation2 + $0x10] sm:$0x7] %v297_v58  ;;  %v277_v9 = vpack.c.bf16 %v269_v0, %v269_v0 }
  0x1d   : > { %v300_v10 = vsel %vm2751_vm3, %v276_v8, %v299_v5 }
  0x1e   : > { %v303_v11 = vsel %vm2751_vm3, %v277_v9, %v302_v7  ;;  %301 = vst [vmem:[#allocation2 + $0x14] sm:$0x7] %v300_v10 }
  0x1f   : > { %304 = vst [vmem:[#allocation2 + $0x18] sm:$0x7] %v303_v11 }
  0x21   : > { %v2432_v6 = vld.sshfl [vmem:[#allocation2 + $0x1c] sm:$0x13 pattern:$0x75316420] }
  0x22   : > { %v2433_v12 = vld.sshfl [vmem:[#allocation2 + $0x20] sm:$0x13 pattern:$0x75316420]  ;;  %v724_v13 = vcombine.high %v2432_v6, %v2432_v6  ;;  %v2787_v14 = vrot.slane %v2432_v6, %v2780_v4 }
  0x23   : > { %v747_v15 = vcombine.high %v2433_v12, %v2433_v12  ;;  %v2790_v16 = vrot.slane %v2433_v12, %v2780_v4  ;;  %v2426_v17 = vld.sshfl [vmem:[#allocation2 + $0x4] sm:$0x13 pattern:$0x75316420] }
  0x24   : > { %v2793_v18 = vrot.slane %v724_v13, %v2780_v4  ;;  %v2797_v19 = vcombine.high %v2787_v14, %v2787_v14  ;;  %v2427_v20 = vld.sshfl [vmem:[#allocation2 + $0x8] sm:$0x13 pattern:$0x75316420]  ;;  %v586_v21 = vcombine.high %v2426_v17, %v2426_v17  ;;  %v2800_v22 = vrot.slane %v2426_v17, %v2780_v4  ;;  %v2628_v6 = vld [vmem:[%s3148_s1] sm:$0xff]  }
  0x25   : > { %v2803_v23 = vrot.slane %v747_v15, %v2780_v4  ;;  %v2807_v24 = vcombine.high %v2790_v16, %v2790_v16  ;;  %v799_v25 = vunpack.i.h.s16 %v2790_v16  ;;  %v2428_v26 = vld.sshfl [vmem:[#allocation2 + $0xc] sm:$0x13 pattern:$0x75316420]  ;;  %v609_v27 = vcombine.high %v2427_v20, %v2427_v20 }
  0x26   : > { %v2451_v28 = vpack.i.b16 %v2790_v16, %v2797_v19  ;;  %v2429_v29 = vld.sshfl [vmem:[#allocation2 + $0x10] sm:$0x13 pattern:$0x75316420]  ;;  %v2813_v30 = vrot.slane %v586_v21, %v2780_v4  ;;  %v2817_v31 = vcombine.high %v2800_v22, %v2800_v22  ;;  %v2820_v32 = vrot.slane %v2427_v20, %v2780_v4 }
  0x27   : > { %v801_v33 = vunpack.i.h.s16 %v2803_v23  ;;  %v2452_v34 = vpack.i.b16 %v2803_v23, %v799_v25  ;;  %v2825_v35 = vrot.slane %v609_v27, %v2780_v4  ;;  %v632_v36 = vcombine.high %v2428_v26, %v2428_v26  ;;  %v2430_v49 = vld.sshfl [vmem:[#allocation2 + $0x14] sm:$0x13 pattern:$0x75316420] }
  0x28   : > { %v930_v37 = vcombine.low %v2793_v18, %v2451_v28  ;;  %v2830_v38 = vcombine.high %v2820_v32, %v2820_v32  ;;  %v2833_v39 = vrot.slane %v2428_v26, %v2780_v4  ;;  %v2836_v40 = vrot.slane %v2429_v29, %v2780_v4  ;;  %v2431_v53 = vld.sshfl [vmem:[#allocation2 + $0x18] sm:$0x13 pattern:$0x75316420] }
  0x29   : > { %v2453_v41 = vpack.i.b16 %v2807_v24, %v801_v33  ;;  %v2840_v42 = vrot.slane %v632_v36, %v2780_v4  ;;  %v769_v43 = vunpack.i.h.s16 %v2820_v32  ;;  %v771_v44 = vunpack.i.h.s16 %v2825_v35 }
  0x2a   : > { %v938_v45 = vrot.slane %v930_v37, %v2780_v4  ;;  %v2847_v46 = vcombine.high %v2833_v39, %v2833_v39  ;;  %v2442_v47 = vpack.i.b16 %v2820_v32, %v2817_v31  ;;  %v832_v48 = vcombine.low %v2800_v22, %v2813_v30 }
  0x2b   : > { %v931_v50 = vcombine.low %v2452_v34, %v2453_v41  ;;  %v2443_v51 = vpack.i.b16 %v2825_v35, %v769_v43  ;;  %v2444_v52 = vpack.i.b16 %v2830_v38, %v771_v44  ;;  %v655_v54 = vcombine.high %v2429_v29, %v2429_v29  ;;  %v2418_v29 = vld.sshfl [vmem:[#allocation2] sm:$0x13 pattern:$0x75316420]  ;;  %v2630_v43 = vld [vmem:[%s3148_s1 + $0x8] sm:$0xff]  }
  0x2c   : > { %v2445_v55 = vpack.i.b16 %v2836_v40, %v2847_v46  ;;  %v842_v56 = vrot.slane %v832_v48, %v2780_v4  ;;  %v2860_v57 = vcombine.high %v2836_v40, %v2836_v40  ;;  %v678_v58 = vcombine.high %v2430_v49, %v2430_v49  ;;  %v2629_v48 = vld [vmem:[%s3148_s1 + $0x40] sm:$0xff]  }
  0x2d   : > { %v945_v59 = vrot.slane %v931_v50, %v2780_v4  ;;  %v833_v60 = vcombine.low %v2442_v47, %v2443_v51  ;;  %v834_v61 = vcombine.low %v2444_v52, %v2833_v39  ;;  %v2865_v62 = vrot.slane %v655_v54, %v2780_v4 }
  0x2e   : > { %v835_v63 = vcombine.low %v2840_v42, %v2445_v55  ;;  %v2869_v0 = vrot.slane %v2430_v49, %v2780_v4  ;;  %v2872_v2 = vrot.slane %v678_v58, %v2780_v4  ;;  %v701_v3 = vcombine.high %v2431_v53, %v2431_v53 }
  0x2f   : > { %v946_v5 = vcombine.low %v938_v45, %v945_v59  ;;  %v849_v7 = vrot.slane %v833_v60, %v2780_v4  ;;  %v856_v8 = vrot.slane %v834_v61, %v2780_v4  ;;  %v2877_v9 = vrot.slane %v2431_v53, %v2780_v4 }
  0x30   : > { %v863_v10 = vrot.slane %v835_v63, %v2780_v4  ;;  %v2885_v11 = vcombine.high %v2869_v0, %v2869_v0  ;;  %v2888_v12 = vrot.slane %v701_v3, %v2780_v4  ;;  %v779_v13 = vunpack.i.h.s16 %v2836_v40  ;;  %v2632_v63 = vld [vmem:[%s3148_s1 + $0x10] sm:$0xff]  }
  0x31   : > { %v953_v15 = vrot.slane %v946_v5, %v2780_v4  ;;  %v864_v17 = vcombine.low %v842_v56, %v849_v7  ;;  %v2894_v20 = vcombine.high %v2877_v9, %v2877_v9  ;;  %v781_v21 = vunpack.i.h.s16 %v2865_v62 }
  0x32   : > { %v865_v25 = vcombine.low %v856_v8, %v863_v10  ;;  %v789_v26 = vunpack.i.h.s16 %v2877_v9  ;;  %v791_v27 = vunpack.i.h.s16 %v2888_v12  ;;  %v2446_v28 = vpack.i.b16 %v2865_v62, %v779_v13 }
  0x33   : > { %2562 = vmatmul.mubr.msk.bf16.vlgmr.msra.gmra.mrb[0].mxu1 %vm978_vm4, %v953_v15  ;;  %v872_v33 = vrot.slane %v864_v17, %v2780_v4  ;;  %v2447_v34 = vpack.i.b16 %v2860_v57, %v781_v21  ;;  %v2448_v36 = vpack.i.b16 %v2877_v9, %v2885_v11  ;;  %v882_v37 = vcombine.low %v2869_v0, %v2872_v2 }
  0x34   : > { %2566 = vmatpush3.bf16.msra.mxu1 %v2628_v6  ;;  %v879_v41 = vrot.slane %v865_v25, %v2780_v4  ;;  %v2449_v44 = vpack.i.b16 %v2888_v12, %v789_v26  ;;  %v2450_v45 = vpack.i.b16 %v2894_v20, %v791_v27  ;;  %2573 = vmatprep.mubr.msk.bf16.mxu1 %vm2645_vm0, %v2644_v1  ;;  %v521_v47 = vunpack.i.h.s16 %v2800_v22 }
  0x35   : > { %2567 = vmatprep.subr.bf16.mxu1 %v2644_v1  ;;  %v881_v49 = vcombine.low %v2446_v28, %v2447_v34  ;;  %v898_v50 = vrot.slane %v882_v37, %v2780_v4  ;;  %v338_v51 = vcombine.high %v2418_v29, %v2418_v29  ;;  %v345_v52 = vrot.slane %v2418_v29, %v2780_v4 }
  0x36   : > { %v880_v53 = vcombine.low %v872_v33, %v879_v41  ;;  %v883_v54 = vcombine.low %v2448_v36, %v2449_v44  ;;  %v884_v55 = vcombine.low %v2450_v45, %v2787_v14  ;;  %v523_v56 = vunpack.i.h.s16 %v2813_v30  ;;  %v2633_v33 = vld [vmem:[%s3148_s1 + $0x50] sm:$0xff]  }
  0x37   : > { %v891_v58 = vrot.slane %v881_v49, %v2780_v4  ;;  %v352_v59 = vrot.slane %v338_v51, %v2780_v4  ;;  %v353_v60 = vcombine.high %v345_v52, %v345_v52  ;;  %v2462_v61 = vpack.i.b16 %v2813_v30, %v521_v47  ;;  %v2631_v30 = vld [vmem:[%s3148_s1 + $0x48] sm:$0xff]  }
  0x38   : > { %2554 = vmatmul.mubr.msk.bf16.vlgmr.msra.gmra.mrb[0].mxu0 %vm978_vm4, %v880_v53  ;;  %2568 = vmatpush3.bf16.msra.mxu1 %v2630_v43  ;;  %v905_v3 = vrot.slane %v883_v54, %v2780_v4  ;;  %v912_v5 = vrot.slane %v884_v55, %v2780_v4  ;;  %v2463_v7 = vpack.i.b16 %v2817_v31, %v523_v56  ;;  %v1482_v8 = vunpack.i.h.s16 %v2833_v39 }
  0x39   : > { %2586 = vmatpush3.bf16.msra.mxu0 %v2629_v48  ;;  %2569 = vmatprep.subr.bf16.mxu1 %v2644_v1  ;;  %v913_v6 = vcombine.low %v891_v58, %v898_v50  ;;  %v2461_v10 = vpack.i.b16 %v2800_v22, %v353_v60  ;;  %v2464_v13 = vpack.i.b16 %v2833_v39, %v2830_v38  ;;  %v1484_v15 = vunpack.i.h.s16 %v2840_v42  ;;  %v2634_v38 = vld [vmem:[%s3148_s1 + $0x18] sm:$0xff]  }
  0x3a   : > { %2587 = vmatprep.subr.bf16.mxu0 %v2644_v1  ;;  %2557 = vmatprep.mubr.msk.bf16.mxu0 %vm2645_vm0, %v2644_v1  ;;  %v914_v31 = vcombine.low %v905_v3, %v912_v5  ;;  %v1064_v17 = vcombine.low %v345_v52, %v352_v59  ;;  %v1066_v21 = vcombine.low %v2463_v7, %v2820_v32  ;;  %v541_v49 = vunpack.i.h.s16 %v2869_v0 }
  0x3b   : > { %v921_v25 = vrot.slane %v913_v6, %v2780_v4  ;;  %v1065_v26 = vcombine.low %v2461_v10, %v2462_v61  ;;  %v1067_v27 = vcombine.low %v2825_v35, %v2464_v13  ;;  %v2497_v29 = vpack.i.b16 %v2840_v42, %v1482_v8 }
  0x3c   : > { %2570 = vmatpush3.bf16.msra.mxu1 %v2632_v63  ;;  %v928_v22 = vrot.slane %v914_v31, %v2780_v4  ;;  %v1074_v39 = vrot.slane %v1064_v17, %v2780_v4  ;;  %v1088_v28 = vrot.slane %v1066_v21, %v2780_v4  ;;  %v2498_v37 = vpack.i.b16 %v2847_v46, %v1484_v15 }
  0x3d   : > { %2588 = vmatpush3.bf16.msra.mxu0 %v2631_v30  ;;  %2571 = vmatprep.subr.bf16.mxu1 %v2644_v1  ;;  %v1081_v34 = vrot.slane %v1065_v26, %v2780_v4  ;;  %v1095_v36 = vrot.slane %v1067_v27, %v2780_v4  ;;  %v2499_v43 = vpack.i.b16 %v2869_v0, %v2860_v57  ;;  %v543_v57 = vunpack.i.h.s16 %v2872_v2 }
  0x3e   : > { %2589 = vmatprep.subr.bf16.mxu0 %v2644_v1  ;;  %v929_v41 = vcombine.low %v921_v25, %v928_v22  ;;  %v1545_v42 = vcombine.low %v2820_v32, %v2825_v35  ;;  %v1546_v44 = vcombine.low %v2464_v13, %v2497_v29  ;;  %v1547_v48 = vcombine.low %v2498_v37, %v2836_v40  ;;  %v2635_v32 = vld [vmem:[%s3148_s1 + $0x58] sm:$0xff]   ;;  %v2487_v22 = vld.sshfl [vmem:[#allocation2 + $0x24] sm:$0x13 pattern:$0x75316420] }
  0x3f   : > { %v1096_v45 = vcombine.low %v1074_v39, %v1081_v34  ;;  %v1097_v47 = vcombine.low %v1088_v28, %v1095_v36  ;;  %v1548_v46 = vcombine.low %v2865_v62, %v2499_v43  ;;  %v2468_v56 = vpack.i.b16 %v2872_v2, %v541_v49 }
  0x40   : > { %2558 = vmatmul.mubr.msk.bf16.gmra.mrb[4].mxu0 %vm978_vm4, %v929_v41  ;;  %2572 = vmatpush3.bf16.msra.mxu1 %v2634_v38  ;;  %v1555_v50 = vrot.slane %v1545_v42, %v2780_v4  ;;  %v1562_v51 = vrot.slane %v1546_v44, %v2780_v4  ;;  %v1569_v52 = vrot.slane %v1547_v48, %v2780_v4  ;;  %v1502_v7 = vunpack.i.h.s16 %v2787_v14 }
  0x41   : > { %2590 = vmatpush3.bf16.msra.mxu0 %v2633_v33  ;;  %v1104_v35 = vrot.slane %v1096_v45, %v2780_v4  ;;  %v1111_v0 = vrot.slane %v1097_v47, %v2780_v4  ;;  %2593 = vmatprep.mubr.msk.bf16.mxu0 %vm2645_vm0, %v2644_v1  ;;  %v1576_v53 = vrot.slane %v1548_v46, %v2780_v4  ;;  %v1504_v30 = vunpack.i.h.s16 %v2793_v18 }
  0x42   : > { %2591 = vmatprep.subr.bf16.mxu0 %v2644_v1  ;;  %v1577_v54 = vcombine.low %v1555_v50, %v1562_v51  ;;  %v2469_v58 = vpack.i.b16 %v2885_v11, %v543_v57  ;;  %v1113_v61 = vcombine.low %v2497_v29, %v2498_v37  ;;  %v1114_v63 = vcombine.low %v2836_v40, %v2865_v62 }
  0x43   : > { %v1112_v55 = vcombine.low %v1104_v35, %v1111_v0  ;;  %v1578_v59 = vcombine.low %v1569_v52, %v1576_v53  ;;  %v1115_v3 = vcombine.low %v2499_v43, %v2468_v56  ;;  %v2502_v13 = vpack.i.b16 %v2787_v14, %v2894_v20 }
  0x44   : > { %v1585_v60 = vrot.slane %v1577_v54, %v2780_v4  ;;  %v1116_v5 = vcombine.low %v2469_v58, %v2877_v9  ;;  %v1123_v2 = vrot.slane %v1113_v61, %v2780_v4  ;;  %v1130_v11 = vrot.slane %v1114_v63, %v2780_v4 }
  0x45   : > { %2592 = vmatpush3.bf16.msra.mxu0 %v2635_v32  ;;  %2574 = vmatmul.mubr.msk.bf16.vlgmr.msra.gmra.mrb[4].mxu1 %vm978_vm4, %v1112_v55  ;;  %v1592_v8 = vrot.slane %v1578_v59, %v2780_v4  ;;  %v1137_v40 = vrot.slane %v1115_v3, %v2780_v4  ;;  %v2503_v15 = vpack.i.b16 %v2793_v18, %v1502_v7 }
  0x46   : > { %2577 = vmatprep.mubr.msk.bf16.mxu1 %vm2645_vm0, %v2644_v1  ;;  %v1144_v62 = vrot.slane %v1116_v5, %v2780_v4  ;;  %v1145_v10 = vcombine.low %v1123_v2, %v1130_v11  ;;  %v2504_v17 = vpack.i.b16 %v2797_v19, %v1504_v30  ;;  %v1594_v21 = vcombine.low %v2468_v56, %v2469_v58 }
  0x47   : > { %v1593_v6 = vcombine.low %v1585_v60, %v1592_v8  ;;  %v1595_v25 = vcombine.low %v2877_v9, %v2888_v12  ;;  %v1596_v27 = vcombine.low %v2502_v13, %v2503_v15  ;;  %v1460_v29 = vcombine.high %v2487_v22, %v2487_v22 }
  0x48   : > { %v1146_v31 = vcombine.low %v1137_v40, %v1144_v62  ;;  %v1153_v26 = vrot.slane %v1145_v10, %v2780_v4  ;;  %v1597_v14 = vcombine.low %v2504_v17, %v2790_v16  ;;  %v1604_v18 = vrot.slane %v1594_v21, %v2780_v4 }
  0x49   : > { %2594 = vmatmul.mubr.msk.bf16.vlgmr.msra.gmra.mrb[8].mxu0 %vm978_vm4, %v1593_v6  ;;  %v1611_v19 = vrot.slane %v1595_v25, %v2780_v4  ;;  %v1618_v20 = vrot.slane %v1596_v27, %v2780_v4  ;;  %v1162_v33 = vcombine.low %v2888_v12, %v2502_v13  ;;  %v1163_v34 = vcombine.low %v2503_v15, %v2504_v17  ;;  %v3043_v6 = vld [vmem:[%s3149_s2] ss:$0 sm:$0xff] }
  0x4a   : > { %v1160_v38 = vrot.slane %v1146_v31, %v2780_v4  ;;  %2597 = vmatprep.mubr.msk.bf16.mxu0 %vm2645_vm0, %v2644_v1  ;;  %v1625_v39 = vrot.slane %v1597_v14, %v2780_v4  ;;  %v1467_v36 = vrot.slane %v2487_v22, %v2780_v4  ;;  %v1474_v41 = vrot.slane %v1460_v29, %v2780_v4 }
  0x4b   : > { %v1626_v28 = vcombine.low %v1604_v18, %v1611_v19  ;;  %v1170_v43 = vrot.slane %v1162_v33, %v2780_v4  ;;  %v1177_v42 = vrot.slane %v1163_v34, %v2780_v4 }
  0x4c   : > { %v1161_v9 = vcombine.low %v1153_v26, %v1160_v38  ;;  %v1627_v37 = vcombine.low %v1618_v20, %v1625_v39  ;;  %v1475_v44 = vcombine.high %v1467_v36, %v1467_v36  ;;  %v1512_v45 = vunpack.i.h.s16 %v1467_v36 }
  0x4d   : > { %v1634_v16 = vrot.slane %v1626_v28, %v2780_v4  ;;  %v1514_v47 = vunpack.i.h.s16 %v1474_v41  ;;  %v2505_v48 = vpack.i.b16 %v1467_v36, %v2807_v24  ;;  %v1178_v49 = vcombine.low %v1170_v43, %v1177_v42 }
  0x4e   : > { %2578 = vmatmul.mubr.msk.bf16.gmra.mrb[8].mxu1 %vm978_vm4, %v1161_v9  ;;  %v1641_v12 = vrot.slane %v1627_v37, %v2780_v4  ;;  %v2506_v46 = vpack.i.b16 %v1474_v41, %v1512_v45 }
  0x4f   : > { %2581 = vmatprep.mubr.msk.bf16.mxu1 %vm2645_vm0, %v2644_v1  ;;  %v2507_v51 = vpack.i.b16 %v1475_v44, %v1514_v47  ;;  %v1643_v57 = vcombine.low %v2803_v23, %v2505_v48  ;;  %v1185_v32 = vrot.slane %v1178_v49, %v2780_v4 }
  0x50   : > { %v1642_v50 = vcombine.low %v1634_v16, %v1641_v12 }
  0x51   : > { %v1644_v35 = vcombine.low %v2506_v46, %v2507_v51  ;;  %v1651_v0 = vrot.slane %v1643_v57, %v2780_v4 }
  0x52   : > { %2598 = vmatmul.mubr.msk.bf16.gmra.mrb[12].mxu0 %vm978_vm4, %v1642_v50 }
  0x53   : > { %2601 = vmatprep.mubr.msk.bf16.mxu0 %vm2645_vm0, %v2644_v1  ;;  %v1658_v24 = vrot.slane %v1644_v35, %v2780_v4 }
  0x55   : > { %v1659_v52 = vcombine.low %v1651_v0, %v1658_v24 }
  0x56   : > { %2582 = vmatmul.mubr.msk.bf16.gmra.mrb[12].mxu1 %vm978_vm4, %v1185_v32 }
  0x57   : > { %v1666_v53 = vrot.slane %v1659_v52, %v2780_v4 }
  0x5a   : > { %2602 = vmatmul.mubr.msk.bf16.gmra.mrb[16].mxu0 %vm978_vm4, %v1666_v53 }
 0x106   : > { %v3038_v23 = vpop.f32.mrb[0].mxu1 }
 0x107   : > { %v2563_v54 = vpop.f32.mrb[1].mxu1 }
 0x108   : > { %v1041_v55 = vpop.f32.mrb[2].mxu1 }
 0x109   : > { %v2564_v56 = vpop.f32.mrb[3].mxu1 }
 0x10b   : > { %v1022_v58 = vpop.f32.mrb[0].mxu0 }
 0x10c   : > { %v2555_v59 = vpop.f32.mrb[1].mxu0 }
 0x10d   : > { %v1025_v60 = vpop.f32.mrb[2].mxu0 }
 0x10e   : > { %v2556_v61 = vpop.f32.mrb[3].mxu0 }
 0x113   : > { %v1030_v63 = vpop.f32.mrb[4].mxu0 }
 0x114   : > { %v2559_v1 = vpop.f32.mrb[5].mxu0 }
 0x115   : > { %v1033_v3 = vpop.f32.mrb[6].mxu0 }
 0x116   : > { %v2560_v5 = vpop.f32.mrb[7].mxu0 }
 0x118   : > { %v1253_v7 = vpop.f32.mrb[4].mxu1 }
 0x119   : > { %v1254_v8 = vadd.f32 %v1253_v7, %v1022_v58  ;;  %v2575_v2 = vpop.f32.mrb[5].mxu1 }
 0x11a   : > { %v1256_v11 = vpop.f32.mrb[6].mxu1 }
 0x11b   : > { %v1257_v30 = vadd.f32 %v1256_v11, %v1025_v60  ;;  %v2576_v40 = vpop.f32.mrb[7].mxu1 }
 0x11c   : > { %v1734_v62 = vpop.f32.mrb[8].mxu0 }
 0x11d   : > { %v1756_v10 = vadd.f32 %v1734_v62, %v1254_v8  ;;  %v2595_v13 = vpop.f32.mrb[9].mxu0 }
 0x11e   : > { %v1737_v15 = vpop.f32.mrb[10].mxu0 }
 0x11f   : > { %v1768_v31 = vadd.f32 %v3043_v6, %v1756_v10  ;;  %v1757_v17 = vadd.f32 %v1737_v15, %v1257_v30  ;;  %v2596_v21 = vpop.f32.mrb[11].mxu0 }
 0x121   : > { %v1778_v25 = vcombine.high %v1768_v31, %v1768_v31  ;;  %v1785_v26 = vrot.slane %v1768_v31, %v2780_v4  ;;  %v1769_v27 = vadd.f32 %v3043_v6, %v1757_v17  ;;  %v1261_v22 = vpop.f32.mrb[8].mxu1 }
 0x122   : > { %v1262_v38 = vadd.f32 %v1261_v22, %v1030_v63  ;;  %v2579_v14 = vpop.f32.mrb[9].mxu1 }
 0x123   : > { %v1792_v18 = vrot.slane %v1778_v25, %v2780_v4  ;;  %v1793_v19 = vcombine.high %v1785_v26, %v1785_v26  ;;  %v1827_v20 = vcombine.high %v1769_v27, %v1769_v27  ;;  %v1264_v9 = vpop.f32.mrb[10].mxu1  ;;  %v1801_v39 = vrot.slane %v1785_v26, %v2780_v4 }
 0x124   : > { %v1834_v28 = vrot.slane %v1769_v27, %v2780_v4  ;;  %v1265_v29 = vadd.f32 %v1264_v9, %v1033_v3  ;;  %v2580_v33 = vpop.f32.mrb[11].mxu1 }
 0x125   : > { %v1794_v34 = vcombine.high %v1792_v18, %v1792_v18  ;;  %v1808_v36 = vrot.slane %v1792_v18, %v2780_v4  ;;  %v1815_v37 = vrot.slane %v1793_v19, %v2780_v4  ;;  %v1841_v16 = vrot.slane %v1827_v20, %v2780_v4  ;;  %v1742_v47 = vpop.f32.mrb[12].mxu0 }
 0x126   : > { %v1842_v41 = vcombine.high %v1834_v28, %v1834_v28  ;;  %v1850_v43 = vrot.slane %v1834_v28, %v2780_v4  ;;  %v2599_v51 = vpop.f32.mrb[13].mxu0  ;;  %v1758_v5 = vadd.f32 %v1742_v47, %v1262_v38 }
 0x127   : > { %v1822_v42 = vrot.slane %v1794_v34, %v2780_v4  ;;  %v1824_v44 = vcombine.high %v1808_v36, %v1808_v36  ;;  %v2023_v45 = vcombine.low %v1801_v39, %v1815_v37  ;;  %v2516_v12 = vcombine.high %v1801_v39, %v1815_v37  ;;  %v1745_v24 = vpop.f32.mrb[14].mxu0 }
 0x128   : > { %v2045_v48 = vrot.slane %v1808_v36, %v2780_v4  ;;  %v1843_v49 = vcombine.high %v1841_v16, %v1841_v16  ;;  %v1857_v46 = vrot.slane %v1841_v16, %v2780_v4  ;;  %v1864_v50 = vrot.slane %v1842_v41, %v2780_v4  ;;  %v2600_v55 = vpop.f32.mrb[15].mxu0 }
 0x129   : > { %v2031_v57 = vrot.slane %v2023_v45, %v2780_v4  ;;  %v2038_v32 = vrot.slane %v2516_v12, %v2780_v4  ;;  %v2062_v35 = vcombine.low %v1822_v42, %v1824_v44  ;;  %v1826_v0 = vcombine.high %v1822_v42, %v1822_v42  ;;  %v1269_v52 = vpop.f32.mrb[12].mxu1 }
 0x12a   : > { %v1871_v53 = vrot.slane %v1843_v49, %v2780_v4  ;;  %v1873_v54 = vcombine.high %v1857_v46, %v1857_v46  ;;  %v2583_v56 = vpop.f32.mrb[13].mxu1  ;;  %v2084_v60 = vrot.slane %v1864_v50, %v2780_v4  ;;  %v2517_v61 = vcombine.high %v1850_v43, %v1864_v50 }
 0x12b   : > { %v2046_v58 = vcombine.low %v2031_v57, %v2038_v32  ;;  %v2063_v59 = vcombine.low %v1826_v0, %v1850_v43  ;;  %v1272_v63 = vpop.f32.mrb[14].mxu1  ;;  %v2060_v1 = vrot.slane %v2045_v48, %v2780_v4  ;;  %v2070_v2 = vrot.slane %v2062_v35, %v2780_v4 }
 0x12c   : > { %v2102_v3 = vcombine.low %v1857_v46, %v1871_v53  ;;  %v2584_v7 = vpop.f32.mrb[15].mxu1  ;;  %v2123_v30 = vrot.slane %v1873_v54, %v2780_v4  ;;  %v2109_v40 = vrot.slane %v2517_v61, %v2780_v4  ;;  %v1770_v10 = vadd.f32 %v3043_v6, %v1758_v5 }
 0x12d   : > { %v2053_v8 = vrot.slane %v2046_v58, %v2780_v4  ;;  %v2077_v11 = vrot.slane %v2063_v59, %v2780_v4  ;;  %v1759_v13 = vadd.f32 %v1745_v24, %v1265_v29  ;;  %v2099_v17 = vrot.slane %v2084_v60, %v2780_v4  ;;  %v1750_v25 = vpop.f32.mrb[16].mxu0 }
 0x12e   : > { %v2116_v62 = vrot.slane %v2102_v3, %v2780_v4  ;;  %v1270_v21 = vadd.f32 %v1269_v52, %v3038_v23  ;;  %v1876_v27 = vcombine.high %v1770_v10, %v1770_v10  ;;  %v1883_v22 = vrot.slane %v1770_v10, %v2780_v4  ;;  %v2603_v14 = vpop.f32.mrb[17].mxu0 }
 0x12f   : > { %v2061_v15 = vcombine.low %v2053_v8, %v2060_v1  ;;  %v2085_v31 = vcombine.low %v2070_v2, %v2077_v11  ;;  %v1771_v38 = vadd.f32 %v3043_v6, %v1759_v13  ;;  %v2138_v19 = vrot.slane %v2123_v30, %v2780_v4  ;;  %v1753_v39 = vpop.f32.mrb[18].mxu0 }
 0x130   : > { %v2124_v26 = vcombine.low %v2109_v40, %v2116_v62  ;;  %v1875_v20 = vcombine.high %v1871_v53, %v1871_v53  ;;  %v1760_v9 = vadd.f32 %v1750_v25, %v1270_v21  ;;  %v1890_v28 = vrot.slane %v1876_v27, %v2780_v4  ;;  %v2604_v34 = vpop.f32.mrb[19].mxu0 }
 0x131   : > { %2344 = vst.msk [vmem:[%s3073_s9] sm:$0x1f] %vm2343_vm5, %v2061_v15  ;;  %v2092_v18 = vrot.slane %v2085_v31, %v2780_v4  ;;  %v1891_v29 = vcombine.high %v1883_v22, %v1883_v22  ;;  %v1899_v33 = vrot.slane %v1883_v22, %v2780_v4  ;;  %v1925_v37 = vcombine.high %v1771_v38, %v1771_v38 }
 0x132   : > { %v2131_v23 = vrot.slane %v2124_v26, %v2780_v4  ;;  %v1932_v16 = vrot.slane %v1771_v38, %v2780_v4  ;;  %v1772_v41 = vadd.f32 %v3043_v6, %v1760_v9  ;;  %v1892_v42 = vcombine.high %v1890_v28, %v1890_v28 }
 0x133   : > { %v2100_v36 = vcombine.low %v2092_v18, %v2099_v17  ;;  %v1913_v44 = vrot.slane %v1891_v29, %v2780_v4  ;;  %v1921_v45 = vcombine.high %v1899_v33, %v1899_v33  ;;  %v2140_v12 = vcombine.low %v1875_v20, %v1899_v33 }
 0x134   : > { %v2139_v43 = vcombine.low %v2131_v23, %v2138_v19  ;;  %v1939_v47 = vrot.slane %v1925_v37, %v2780_v4  ;;  %v1940_v48 = vcombine.high %v1932_v16, %v1932_v16  ;;  %v1906_v49 = vrot.slane %v1890_v28, %v2780_v4 }
 0x135   : > { %2345 = vst.msk [vmem:[%s3073_s9 + $0x8] sm:$0x1f] %vm2343_vm5, %v2100_v36  ;;  %v1920_v46 = vrot.slane %v1892_v42, %v2780_v4  ;;  %v1923_v50 = vcombine.high %v1913_v44, %v1913_v44  ;;  %v1948_v6 = vrot.slane %v1932_v16, %v2780_v4  ;;  %v2141_v51 = vcombine.low %v1913_v44, %v1921_v45 }
 0x136   : > { %2346 = vst.msk [vmem:[%s3073_s9 + $0x10] sm:$0x1f] %vm2343_vm5, %v2139_v43  ;;  %v2148_v57 = vrot.slane %v2140_v12, %v2780_v4  ;;  %v1941_v32 = vcombine.high %v1939_v47, %v1939_v47  ;;  %v1974_v35 = vcombine.high %v1772_v41, %v1772_v41  ;;  %v1962_v53 = vrot.slane %v1940_v48, %v2780_v4 }
 0x137   : > { %v2162_v0 = vrot.slane %v1923_v50, %v2780_v4  ;;  %v2179_v24 = vcombine.low %v1906_v49, %v1920_v46  ;;  %v2518_v52 = vcombine.high %v1906_v49, %v1920_v46  ;;  %v2155_v54 = vrot.slane %v2141_v51, %v2780_v4 }
 0x138   : > { %v1969_v55 = vrot.slane %v1941_v32, %v2780_v4  ;;  %v1970_v56 = vcombine.high %v1948_v6, %v1948_v6  ;;  %v2201_v58 = vrot.slane %v1948_v6, %v2780_v4  ;;  %v1955_v61 = vrot.slane %v1939_v47, %v2780_v4 }
 0x139   : > { %v2187_v59 = vrot.slane %v2179_v24, %v2780_v4  ;;  %v2194_v60 = vrot.slane %v2518_v52, %v2780_v4  ;;  %v1972_v63 = vcombine.high %v1962_v53, %v1962_v53  ;;  %v2163_v1 = vcombine.low %v2148_v57, %v2155_v54 }
 0x13a   : > { %v2177_v3 = vrot.slane %v2162_v0, %v2780_v4  ;;  %v2218_v5 = vcombine.low %v1962_v53, %v1970_v56  ;;  %v2216_v8 = vrot.slane %v2201_v58, %v2780_v4  ;;  %v1981_v11 = vrot.slane %v1772_v41, %v2780_v4 }
 0x13b   : > { %v2202_v7 = vcombine.low %v2187_v59, %v2194_v60  ;;  %v2219_v2 = vcombine.low %v1972_v63, %v1955_v61  ;;  %v2170_v30 = vrot.slane %v2163_v1, %v2780_v4  ;;  %v2240_v40 = vrot.slane %v1969_v55, %v2780_v4 }
 0x13c   : > { %v2519_v62 = vcombine.high %v1955_v61, %v1969_v55  ;;  %v1988_v10 = vrot.slane %v1974_v35, %v2780_v4  ;;  %v2226_v15 = vrot.slane %v2218_v5, %v2780_v4  ;;  %v1989_v17 = vcombine.high %v1981_v11, %v1981_v11 }
 0x13d   : > { %v2209_v13 = vrot.slane %v2202_v7, %v2780_v4  ;;  %v2233_v31 = vrot.slane %v2219_v2, %v2780_v4  ;;  %v2178_v21 = vcombine.low %v2170_v30, %v2177_v3  ;;  %v1997_v26 = vrot.slane %v1981_v11, %v2780_v4 }
 0x13e   : > { %v1990_v25 = vcombine.high %v1988_v10, %v1988_v10  ;;  %v2004_v27 = vrot.slane %v1988_v10, %v2780_v4  ;;  %v2011_v14 = vrot.slane %v1989_v17, %v2780_v4  ;;  %v2255_v39 = vrot.slane %v2240_v40, %v2780_v4 }
 0x13f   : > { %v2217_v22 = vcombine.low %v2209_v13, %v2216_v8  ;;  %v2241_v38 = vcombine.low %v2226_v15, %v2233_v31  ;;  %2347 = vst.msk [vmem:[%s3073_s9 + $0x18] sm:$0x1f] %vm2343_vm5, %v2178_v21  ;;  %v2019_v19 = vcombine.high %v1997_v26, %v1997_v26  ;;  %v2265_v29 = vrot.slane %v2519_v62, %v2780_v4 }
 0x140   : > { %v2018_v18 = vrot.slane %v1990_v25, %v2780_v4  ;;  %v2020_v20 = vcombine.high %v2004_v27, %v2004_v27  ;;  %v2021_v23 = vcombine.high %v2011_v14, %v2011_v14  ;;  %v2258_v28 = vcombine.low %v1997_v26, %v2011_v14 }
 0x141   : > { %v2248_v9 = vrot.slane %v2241_v38, %v2780_v4  ;;  %2348 = vst.msk [vmem:[%s3073_s9 + $0x20] sm:$0x1f] %vm2343_vm5, %v2217_v22  ;;  %v2279_v16 = vrot.slane %v2019_v19, %v2780_v4 }
 0x142   : > { %v2022_v33 = vcombine.high %v2018_v18, %v2018_v18  ;;  %v2297_v34 = vcombine.low %v2018_v18, %v2020_v20  ;;  %v2272_v37 = vrot.slane %v2258_v28, %v2780_v4  ;;  %v2296_v41 = vcombine.low %v2021_v23, %v2004_v27 }
 0x143   : > { %v2256_v36 = vcombine.low %v2248_v9, %v2255_v39  ;;  %v2294_v47 = vrot.slane %v2279_v16, %v2780_v4 }
 0x144   : > { %v2311_v43 = vrot.slane %v2297_v34, %v2780_v4  ;;  %v2280_v42 = vcombine.low %v2265_v29, %v2272_v37  ;;  %v2304_v44 = vrot.slane %v2296_v41, %v2780_v4  ;;  %v2318_v45 = vrot.slane %v2022_v33, %v2780_v4 }
 0x145   : > { %2349 = vst.msk [vmem:[%s3073_s9 + $0x28] sm:$0x1f] %vm2343_vm5, %v2256_v36 }
 0x146   : > { %v2287_v12 = vrot.slane %v2280_v42, %v2780_v4  ;;  %v2319_v48 = vcombine.low %v2304_v44, %v2311_v43  ;;  %v2333_v50 = vrot.slane %v2318_v45, %v2780_v4 }
 0x148   : > { %v2295_v49 = vcombine.low %v2287_v12, %v2294_v47  ;;  %v2326_v46 = vrot.slane %v2319_v48, %v2780_v4 }
 0x14a   : > { %v2334_v6 = vcombine.low %v2326_v46, %v2333_v50  ;;  %2350 = vst.msk [vmem:[%s3073_s9 + $0x30] sm:$0x1f] %vm2343_vm5, %v2295_v49 }
 0x14c   : > { %2351 = vst.msk [vmem:[%s3073_s9 + $0x38] sm:$0x1f] %vm2343_vm5, %v2334_v6 }
 0x14d PF: > { %s15_s18 = sadd.s32 1, %s2642_s18  }
 0x14e   : > { %p12_p4 = scmp.ge.s32.totalorder %s15_s18, 4  }
 0x150   :  { %14 = sbr.rel (!%p12_p4) target bundleno = 1 (0x1), region = 75 }

// kernel: drgcn_forward.67
= control target key start
LH: loop header
LB: loop body
LE: loop exit
PB: predicated region body
PF: predicated region fallthrough
CT: control target
= control target key end

     0   :  { %v425_v1 = vmov 0   ;;  %vm148_vm0 = vcmask 523264   ;;  %v48_v32 = vlaneseq  ;;  %s705_s1 = inlined_call_operand.vmem [shape: bf16[64,512], index: 1, kind: input, shape index: {}]   ;;  %s706_s0 = inlined_call_operand.vmem [shape: f32[80,64], index: 0, kind: input, shape index: {}]   ;;  %s707_s2 = inlined_call_operand.vmem [shape: f32[1,512], index: 2, kind: input, shape index: {}]   ;;  %s708_s3 = inlined_call_operand.vmem [shape: f32[80,512], index: 3, kind: output, shape index: {}]  }
   0x1   :  { %v401_v0 = vld [vmem:[%s705_s1 + $0x4] ss:$16 sps:$4 sm:$0xff]   ;;  %196 = vmatprep.mubr.bf16.mxu0 %v425_v1  ;;  %279 = vmatprep.mubr.bf16.mxu1 %v425_v1  ;;  %v403_v2 = vld [vmem:[%s705_s1 + $0xc] ss:$16 sps:$4 sm:$0xff]   ;;  %v405_v3 = vld [vmem:[%s705_s1] ss:$16 sps:$4 sm:$0xff]  }
   0x2   :  { %164 = vmatprep.subr.bf16.mxu0 %v401_v0  ;;  %v406_v4 = vld [vmem:[%s705_s1 + $0x8] ss:$16 sps:$4 sm:$0xff]   ;;  %247 = vmatprep.subr.bf16.mxu1 %v403_v2  ;;  %v407_v5 = vld [vmem:[%s705_s1 + $0x24] ss:$16 sps:$4 sm:$0xff]   ;;  %v409_v6 = vld [vmem:[%s705_s1 + $0x2c] ss:$16 sps:$4 sm:$0xff]  }
   0x3   :  { %165 = vmatpush1.bf16.msra.mxu0 %v405_v3  ;;  %248 = vmatpush1.bf16.msra.mxu1 %v406_v4  ;;  %v411_v7 = vld [vmem:[%s705_s1 + $0x20] ss:$16 sps:$4 sm:$0xff]   ;;  %v412_v8 = vld [vmem:[%s705_s1 + $0x28] ss:$16 sps:$4 sm:$0xff]   ;;  %v413_v9 = vld [vmem:[%s705_s1 + $0x44] ss:$16 sps:$4 sm:$0xff]  }
   0x4   :  { %166 = vmatprep.subr.bf16.mxu0 %v407_v5  ;;  %249 = vmatprep.subr.bf16.mxu1 %v409_v6  ;;  %v415_v10 = vld [vmem:[%s705_s1 + $0x4c] ss:$16 sps:$4 sm:$0xff]   ;;  %v417_v11 = vld [vmem:[%s705_s1 + $0x40] ss:$16 sps:$4 sm:$0xff]   ;;  %v418_v12 = vld [vmem:[%s705_s1 + $0x48] ss:$16 sps:$4 sm:$0xff]  }
   0x5   :  { %v419_v13 = vld [vmem:[%s705_s1 + $0x64] ss:$16 sps:$4 sm:$0xff]   ;;  %v421_v14 = vld [vmem:[%s705_s1 + $0x6c] ss:$16 sps:$4 sm:$0xff]   ;;  %v423_v15 = vld [vmem:[%s705_s1 + $0x60] ss:$16 sps:$4 sm:$0xff]  }
   0x6   :  { %v424_v16 = vld [vmem:[%s705_s1 + $0x68] ss:$16 sps:$4 sm:$0xff]   ;;  %v15_v17 = vld [vmem:[%s706_s0] sm:$0xff]  ;;  %v17_v20 = vld [vmem:[%s706_s0 + $0x10] sm:$0xff]  ;;  %v49_v33 = vshrl.u32 %v48_v32, 7 }
   0x7   :  { %167 = vmatpush1.bf16.msra.mxu0 %v411_v7  ;;  %250 = vmatpush1.bf16.msra.mxu1 %v412_v8  ;;  %v16_v18 = vld [vmem:[%s706_s0 + $0x8] sm:$0xff]  ;;  %v18_v21 = vld [vmem:[%s706_s0 + $0x18] sm:$0xff]  ;;  %v19_v23 = vld [vmem:[%s706_s0 + $0x20] sm:$0xff] }
   0x8   :  { %168 = vmatprep.subr.bf16.mxu0 %v413_v9  ;;  %251 = vmatprep.subr.bf16.mxu1 %v415_v10  ;;  %v25_v19 = vpack.c.bf16 %v16_v18, %v15_v17  ;;  %v26_v22 = vpack.c.bf16 %v18_v21, %v17_v20  ;;  %v20_v24 = vld [vmem:[%s706_s0 + $0x28] sm:$0xff]  ;;  %v21_v26 = vld [vmem:[%s706_s0 + $0x30] sm:$0xff]  ;;  %v22_v27 = vld [vmem:[%s706_s0 + $0x38] sm:$0xff]  ;;  %v50_v34 = vsub.s32 0, %v49_v33  ;;  %v58_v35 = vsub.s32 2, %v49_v33 }
   0x9   :  { %v27_v25 = vpack.c.bf16 %v20_v24, %v19_v23  ;;  %v28_v28 = vpack.c.bf16 %v22_v27, %v21_v26  ;;  %v23_v29 = vld [vmem:[%s706_s0 + $0x40] sm:$0xff]  ;;  %v24_v30 = vld [vmem:[%s706_s0 + $0x48] sm:$0xff]  ;;  %v54_v37 = vsub.s32 1, %v49_v33  ;;  %v62_v38 = vsub.s32 3, %v49_v33 }
   0xa   :  { %v29_v31 = vpack.c.bf16 %v24_v30, %v23_v29  ;;  %v46_v36 = vld [vmem:[%s707_s2] sm:$0xf] }
   0xb   :  { %169 = vmatpush1.bf16.msra.mxu0 %v417_v11  ;;  %252 = vmatpush1.bf16.msra.mxu1 %v418_v12  ;;  %v537_v39 = vrot.slane %v46_v36, %v50_v34  ;;  %v539_v40 = vrot.slane %v46_v36, %v58_v35  ;;  %v541_v41 = vrot.slane %v46_v36, %v54_v37 }
   0xc   :  { %170 = vmatprep.subr.bf16.mxu0 %v419_v13  ;;  %253 = vmatprep.subr.bf16.mxu1 %v421_v14  ;;  %v543_v42 = vrot.slane %v46_v36, %v62_v38 }
   0xf   :  { %171 = vmatpush1.bf16.msra.mxu0 %v423_v15  ;;  %254 = vmatpush1.bf16.msra.mxu1 %v424_v16 }
  0x12   :  { %390 = vmatmul.mubr.msk.bf16.vlgmr.msra.gmra.mrb[0].mxu0 %vm148_vm0, %v25_v19  ;;  %395 = vmatmul.mubr.msk.bf16.vlgmr.msra.gmra.mrb[0].mxu1 %vm148_vm0, %v25_v19 }
  0x13   :  { %206 = vmatprep.mubr.bf16.mxu0 %v425_v1  ;;  %289 = vmatprep.mubr.bf16.mxu1 %v425_v1 }
  0x1a   :  { %391 = vmatmul.mubr.msk.bf16.gmra.mrb[4].mxu0 %vm148_vm0, %v26_v22  ;;  %396 = vmatmul.mubr.msk.bf16.gmra.mrb[4].mxu1 %vm148_vm0, %v26_v22 }
  0x1b   :  { %216 = vmatprep.mubr.bf16.mxu0 %v425_v1  ;;  %299 = vmatprep.mubr.bf16.mxu1 %v425_v1 }
  0x22   :  { %392 = vmatmul.mubr.msk.bf16.gmra.mrb[8].mxu0 %vm148_vm0, %v27_v25  ;;  %397 = vmatmul.mubr.msk.bf16.gmra.mrb[8].mxu1 %vm148_vm0, %v27_v25 }
  0x23   :  { %226 = vmatprep.mubr.bf16.mxu0 %v425_v1  ;;  %309 = vmatprep.mubr.bf16.mxu1 %v425_v1 }
  0x2a   :  { %393 = vmatmul.mubr.msk.bf16.gmra.mrb[12].mxu0 %vm148_vm0, %v28_v28  ;;  %398 = vmatmul.mubr.msk.bf16.gmra.mrb[12].mxu1 %vm148_vm0, %v28_v28 }
  0x2b   :  { %236 = vmatprep.mubr.bf16.mxu0 %v425_v1  ;;  %319 = vmatprep.mubr.bf16.mxu1 %v425_v1 }
  0x32   :  { %394 = vmatmul.mubr.msk.bf16.gmra.mrb[16].mxu0 %vm148_vm0, %v29_v31  ;;  %399 = vmatmul.mubr.msk.bf16.gmra.mrb[16].mxu1 %vm148_vm0, %v29_v31 }
  0xe5   :  { %v198_v43 = vpop.f32.mrb[0].mxu0  ;;  %v281_v44 = vpop.f32.mrb[0].mxu1 }
  0xe6   :  { %v199_v45 = vadd.f32 %v198_v43, %v537_v39  ;;  %v282_v46 = vadd.f32 %v281_v44, %v539_v40  ;;  %v200_v47 = vpop.f32.mrb[1].mxu0  ;;  %v283_v48 = vpop.f32.mrb[1].mxu1 }
  0xe7   :  { %v201_v49 = vadd.f32 %v200_v47, %v541_v41  ;;  %v284_v50 = vadd.f32 %v283_v48, %v543_v42  ;;  %v202_v51 = vpop.f32.mrb[2].mxu0  ;;  %v285_v52 = vpop.f32.mrb[2].mxu1 }
  0xe8   :  { %330 = vst [vmem:[%s708_s3] sm:$0xff] %v199_v45  ;;  %332 = vst [vmem:[%s708_s3 + $0x10] sm:$0xff] %v282_v46  ;;  %v203_v53 = vadd.f32 %v202_v51, %v537_v39  ;;  %v286_v54 = vadd.f32 %v285_v52, %v539_v40  ;;  %v204_v55 = vpop.f32.mrb[3].mxu0  ;;  %v287_v56 = vpop.f32.mrb[3].mxu1 }
  0xe9   :  { %331 = vst [vmem:[%s708_s3 + $0x8] sm:$0xff] %v201_v49  ;;  %333 = vst [vmem:[%s708_s3 + $0x18] sm:$0xff] %v284_v50  ;;  %v205_v57 = vadd.f32 %v204_v55, %v541_v41  ;;  %v288_v58 = vadd.f32 %v287_v56, %v543_v42 }
  0xea   :  { %334 = vst [vmem:[%s708_s3 + $0x20] sm:$0xff] %v203_v53  ;;  %336 = vst [vmem:[%s708_s3 + $0x30] sm:$0xff] %v286_v54 }
  0xeb   :  { %335 = vst [vmem:[%s708_s3 + $0x28] sm:$0xff] %v205_v57  ;;  %337 = vst [vmem:[%s708_s3 + $0x38] sm:$0xff] %v288_v58 }
  0xed   :  { %v208_v59 = vpop.f32.mrb[4].mxu0  ;;  %v291_v60 = vpop.f32.mrb[4].mxu1 }
  0xee   :  { %v209_v61 = vadd.f32 %v208_v59, %v537_v39  ;;  %v292_v62 = vadd.f32 %v291_v60, %v539_v40  ;;  %v210_v63 = vpop.f32.mrb[5].mxu0  ;;  %v293_v0 = vpop.f32.mrb[5].mxu1 }
  0xef   :  { %v211_v1 = vadd.f32 %v210_v63, %v541_v41  ;;  %v294_v2 = vadd.f32 %v293_v0, %v543_v42  ;;  %v212_v3 = vpop.f32.mrb[6].mxu0  ;;  %v295_v4 = vpop.f32.mrb[6].mxu1 }
  0xf0   :  { %338 = vst [vmem:[%s708_s3 + $0x40] sm:$0xff] %v209_v61  ;;  %340 = vst [vmem:[%s708_s3 + $0x50] sm:$0xff] %v292_v62  ;;  %v213_v5 = vadd.f32 %v212_v3, %v537_v39  ;;  %v296_v6 = vadd.f32 %v295_v4, %v539_v40  ;;  %v214_v7 = vpop.f32.mrb[7].mxu0  ;;  %v297_v8 = vpop.f32.mrb[7].mxu1 }
  0xf1   :  { %339 = vst [vmem:[%s708_s3 + $0x48] sm:$0xff] %v211_v1  ;;  %341 = vst [vmem:[%s708_s3 + $0x58] sm:$0xff] %v294_v2  ;;  %v215_v9 = vadd.f32 %v214_v7, %v541_v41  ;;  %v298_v10 = vadd.f32 %v297_v8, %v543_v42 }
  0xf2   :  { %342 = vst [vmem:[%s708_s3 + $0x60] sm:$0xff] %v213_v5  ;;  %344 = vst [vmem:[%s708_s3 + $0x70] sm:$0xff] %v296_v6 }
  0xf3   :  { %343 = vst [vmem:[%s708_s3 + $0x68] sm:$0xff] %v215_v9  ;;  %345 = vst [vmem:[%s708_s3 + $0x78] sm:$0xff] %v298_v10 }
  0xf5   :  { %v218_v11 = vpop.f32.mrb[8].mxu0  ;;  %v301_v12 = vpop.f32.mrb[8].mxu1 }
  0xf6   :  { %v219_v13 = vadd.f32 %v218_v11, %v537_v39  ;;  %v302_v14 = vadd.f32 %v301_v12, %v539_v40  ;;  %v220_v15 = vpop.f32.mrb[9].mxu0  ;;  %v303_v16 = vpop.f32.mrb[9].mxu1 }
  0xf7   :  { %v221_v17 = vadd.f32 %v220_v15, %v541_v41  ;;  %v304_v18 = vadd.f32 %v303_v16, %v543_v42  ;;  %v222_v19 = vpop.f32.mrb[10].mxu0  ;;  %v305_v20 = vpop.f32.mrb[10].mxu1 }
  0xf8   :  { %346 = vst [vmem:[%s708_s3 + $0x80] sm:$0xff] %v219_v13  ;;  %348 = vst [vmem:[%s708_s3 + $0x90] sm:$0xff] %v302_v14  ;;  %v223_v21 = vadd.f32 %v222_v19, %v537_v39  ;;  %v306_v22 = vadd.f32 %v305_v20, %v539_v40  ;;  %v224_v23 = vpop.f32.mrb[11].mxu0  ;;  %v307_v24 = vpop.f32.mrb[11].mxu1 }
  0xf9   :  { %347 = vst [vmem:[%s708_s3 + $0x88] sm:$0xff] %v221_v17  ;;  %349 = vst [vmem:[%s708_s3 + $0x98] sm:$0xff] %v304_v18  ;;  %v225_v25 = vadd.f32 %v224_v23, %v541_v41  ;;  %v308_v26 = vadd.f32 %v307_v24, %v543_v42 }
  0xfa   :  { %350 = vst [vmem:[%s708_s3 + $0xa0] sm:$0xff] %v223_v21  ;;  %352 = vst [vmem:[%s708_s3 + $0xb0] sm:$0xff] %v306_v22 }
  0xfb   :  { %351 = vst [vmem:[%s708_s3 + $0xa8] sm:$0xff] %v225_v25  ;;  %353 = vst [vmem:[%s708_s3 + $0xb8] sm:$0xff] %v308_v26 }
  0xfd   :  { %v228_v27 = vpop.f32.mrb[12].mxu0  ;;  %v311_v28 = vpop.f32.mrb[12].mxu1 }
  0xfe   :  { %v229_v29 = vadd.f32 %v228_v27, %v537_v39  ;;  %v312_v30 = vadd.f32 %v311_v28, %v539_v40  ;;  %v230_v31 = vpop.f32.mrb[13].mxu0  ;;  %v313_v32 = vpop.f32.mrb[13].mxu1 }
  0xff   :  { %v231_v33 = vadd.f32 %v230_v31, %v541_v41  ;;  %v314_v34 = vadd.f32 %v313_v32, %v543_v42  ;;  %v232_v35 = vpop.f32.mrb[14].mxu0  ;;  %v315_v36 = vpop.f32.mrb[14].mxu1 }
 0x100   :  { %354 = vst [vmem:[%s708_s3 + $0xc0] sm:$0xff] %v229_v29  ;;  %356 = vst [vmem:[%s708_s3 + $0xd0] sm:$0xff] %v312_v30  ;;  %v233_v37 = vadd.f32 %v232_v35, %v537_v39  ;;  %v316_v38 = vadd.f32 %v315_v36, %v539_v40  ;;  %v234_v43 = vpop.f32.mrb[15].mxu0  ;;  %v317_v44 = vpop.f32.mrb[15].mxu1 }
 0x101   :  { %355 = vst [vmem:[%s708_s3 + $0xc8] sm:$0xff] %v231_v33  ;;  %357 = vst [vmem:[%s708_s3 + $0xd8] sm:$0xff] %v314_v34  ;;  %v235_v45 = vadd.f32 %v234_v43, %v541_v41  ;;  %v318_v46 = vadd.f32 %v317_v44, %v543_v42 }
 0x102   :  { %358 = vst [vmem:[%s708_s3 + $0xe0] sm:$0xff] %v233_v37  ;;  %360 = vst [vmem:[%s708_s3 + $0xf0] sm:$0xff] %v316_v38 }
 0x103   :  { %359 = vst [vmem:[%s708_s3 + $0xe8] sm:$0xff] %v235_v45  ;;  %361 = vst [vmem:[%s708_s3 + $0xf8] sm:$0xff] %v318_v46 }
 0x105   :  { %v238_v47 = vpop.f32.mrb[16].mxu0  ;;  %v321_v48 = vpop.f32.mrb[16].mxu1 }
 0x106   :  { %v239_v49 = vadd.f32 %v238_v47, %v537_v39  ;;  %v322_v50 = vadd.f32 %v321_v48, %v539_v40  ;;  %v240_v51 = vpop.f32.mrb[17].mxu0  ;;  %v323_v52 = vpop.f32.mrb[17].mxu1 }
 0x107   :  { %v241_v53 = vadd.f32 %v240_v51, %v541_v41  ;;  %v324_v54 = vadd.f32 %v323_v52, %v543_v42  ;;  %v242_v55 = vpop.f32.mrb[18].mxu0  ;;  %v325_v56 = vpop.f32.mrb[18].mxu1 }
 0x108   :  { %362 = vst [vmem:[%s708_s3 + $0x100] sm:$0xff] %v239_v49  ;;  %364 = vst [vmem:[%s708_s3 + $0x110] sm:$0xff] %v322_v50  ;;  %v243_v57 = vadd.f32 %v242_v55, %v537_v39  ;;  %v326_v58 = vadd.f32 %v325_v56, %v539_v40  ;;  %v244_v59 = vpop.f32.mrb[19].mxu0  ;;  %v327_v60 = vpop.f32.mrb[19].mxu1 }
 0x109   :  { %363 = vst [vmem:[%s708_s3 + $0x108] sm:$0xff] %v241_v53  ;;  %365 = vst [vmem:[%s708_s3 + $0x118] sm:$0xff] %v324_v54  ;;  %v245_v61 = vadd.f32 %v244_v59, %v541_v41  ;;  %v328_v62 = vadd.f32 %v327_v60, %v543_v42 }
 0x10a   :  { %366 = vst [vmem:[%s708_s3 + $0x120] sm:$0xff] %v243_v57  ;;  %368 = vst [vmem:[%s708_s3 + $0x130] sm:$0xff] %v326_v58 }
 0x10b   :  { %367 = vst [vmem:[%s708_s3 + $0x128] sm:$0xff] %v245_v61  ;;  %369 = vst [vmem:[%s708_s3 + $0x138] sm:$0xff] %v328_v62 }

// kernel: drgcn_forward.56
= control target key start
LH: loop header
LB: loop body
LE: loop exit
PB: predicated region body
PF: predicated region fallthrough
CT: control target
= control target key end

     0   :  { %vm131_vm0 = vcmask 523264   ;;  %s345_s0 = inlined_call_operand.vmem [shape: f32[80,64], index: 0, kind: input, shape index: {}]   ;;  %s346_s1 = inlined_call_operand.vmem [shape: f32[1,64], index: 1, kind: input, shape index: {}]   ;;  %s347_s2 = inlined_call_operand.vmem [shape: f32[1,64], index: 2, kind: input, shape index: {}]   ;;  %s348_s3 = inlined_call_operand.vmem [shape: f32[80,64], index: 3, kind: input, shape index: {}]   ;;  %s349_s4 = inlined_call_operand.vmem [shape: f32[1,64], index: 4, kind: input, shape index: {}]   ;;  %s350_s5 = inlined_call_operand.vmem [shape: f32[1,64], index: 5, kind: input, shape index: {}]   ;;  %s351_s6 = inlined_call_operand.vmem [shape: f32[80,64], index: 6, kind: output, shape index: {}]  }
   0x1   :  { %v23_v0 = vld [vmem:[%s345_s0] sm:$0xff]  ;;  %v24_v8 = vld [vmem:[%s345_s0 + $0x8] sm:$0xff]  ;;  %v25_v10 = vld [vmem:[%s345_s0 + $0x10] sm:$0xff] }
   0x2   :  { %v191_v1 = vld [vmem:[%s346_s1] ss:$0 sm:$0xff]  ;;  %v68_v9 = vld [vmem:[%s348_s3 + $0x8] sm:$0xff]  ;;  %v69_v15 = vld [vmem:[%s348_s3 + $0x10] sm:$0xff] }
   0x3   :  { %v196_v2 = vld [vmem:[%s347_s2] ss:$0 sm:$0xff]  ;;  %v40_v3 = vmul.f32 %v191_v1, %v23_v0  ;;  %v41_v12 = vmul.f32 %v191_v1, %v24_v8  ;;  %v42_v14 = vmul.f32 %v191_v1, %v25_v10  ;;  %v26_v16 = vld [vmem:[%s345_s0 + $0x18] sm:$0xff]  ;;  %v28_v23 = vld [vmem:[%s345_s0 + $0x28] sm:$0xff] }
   0x4   :  { %v67_v4 = vld [vmem:[%s348_s3] sm:$0xff]  ;;  %v70_v17 = vld [vmem:[%s348_s3 + $0x18] sm:$0xff]  ;;  %v43_v19 = vmul.f32 %v191_v1, %v26_v16  ;;  %v72_v28 = vld [vmem:[%s348_s3 + $0x28] sm:$0xff]  ;;  %v45_v33 = vmul.f32 %v191_v1, %v28_v23 }
   0x5   :  { %v205_v5 = vld [vmem:[%s349_s4] ss:$0 sm:$0xff]  ;;  %v57_v11 = vadd.f32 %v196_v2, %v40_v3  ;;  %v58_v25 = vadd.f32 %v196_v2, %v41_v12  ;;  %v59_v26 = vadd.f32 %v196_v2, %v42_v14  ;;  %v29_v29 = vld [vmem:[%s345_s0 + $0x30] sm:$0xff]  ;;  %v30_v39 = vld [vmem:[%s345_s0 + $0x38] sm:$0xff] }
   0x6   :  { %v84_v6 = vmul.f32 %v205_v5, %v67_v4  ;;  %v211_v7 = vld [vmem:[%s350_s5] ss:$0 sm:$0xff]  ;;  %v85_v13 = vmul.f32 %v205_v5, %v68_v9  ;;  %v86_v18 = vmul.f32 %v205_v5, %v69_v15  ;;  %v87_v20 = vmul.f32 %v205_v5, %v70_v17  ;;  %v73_v30 = vld [vmem:[%s348_s3 + $0x30] sm:$0xff]  ;;  %v74_v44 = vld [vmem:[%s348_s3 + $0x38] sm:$0xff] }
   0x7   :  { %v27_v21 = vld [vmem:[%s345_s0 + $0x20] sm:$0xff]  ;;  %v60_v31 = vadd.f32 %v196_v2, %v43_v19  ;;  %v89_v34 = vmul.f32 %v205_v5, %v72_v28  ;;  %v62_v41 = vadd.f32 %v196_v2, %v45_v33  ;;  %v46_v42 = vmul.f32 %v191_v1, %v29_v29  ;;  %v32_v55 = vld [vmem:[%s345_s0 + $0x48] sm:$0xff] }
   0x8   :  { %v71_v22 = vld [vmem:[%s348_s3 + $0x20] sm:$0xff]  ;;  %v94_v24 = vadd.f32 %v84_v6, %v57_v11  ;;  %v44_v27 = vmul.f32 %v191_v1, %v27_v21  ;;  %v95_v36 = vadd.f32 %v85_v13, %v58_v25  ;;  %v96_v37 = vadd.f32 %v86_v18, %v59_v26  ;;  %v76_v60 = vld [vmem:[%s348_s3 + $0x48] sm:$0xff] }
   0x9   :  { %v88_v32 = vmul.f32 %v205_v5, %v71_v22  ;;  %v97_v40 = vadd.f32 %v87_v20, %v60_v31  ;;  %v90_v43 = vmul.f32 %v205_v5, %v73_v30  ;;  %v99_v50 = vadd.f32 %v89_v34, %v62_v41  ;;  %v31_v53 = vld [vmem:[%s345_s0 + $0x40] sm:$0xff] }
   0xa   :  { %v111_v35 = vadd.f32 %v211_v7, %v94_v24  ;;  %v61_v38 = vadd.f32 %v196_v2, %v44_v27  ;;  %v112_v46 = vadd.f32 %v211_v7, %v95_v36  ;;  %v113_v47 = vadd.f32 %v211_v7, %v96_v37  ;;  %v75_v54 = vld [vmem:[%s348_s3 + $0x40] sm:$0xff] }
   0xb   :  { %v114_v49 = vadd.f32 %v211_v7, %v97_v40  ;;  %v63_v51 = vadd.f32 %v196_v2, %v46_v42  ;;  %v47_v52 = vmul.f32 %v191_v1, %v30_v39  ;;  %v91_v59 = vmul.f32 %v205_v5, %v74_v44 }
   0xc   :  { %v121_v45 = vmax.f32 %v111_v35, 0.0  ;;  %v98_v48 = vadd.f32 %v88_v32, %v61_v38  ;;  %v122_v56 = vmax.f32 %v112_v46, 0.0  ;;  %v123_v57 = vmax.f32 %v113_v47, 0.0 }
   0xd   :  { %v124_v61 = vmax.f32 %v114_v49, 0.0  ;;  %v116_v62 = vadd.f32 %v211_v7, %v99_v50  ;;  %v100_v63 = vadd.f32 %v90_v43, %v63_v51  ;;  %v64_v0 = vadd.f32 %v196_v2, %v47_v52 }
   0xe   :  { %132 = vst.msk [vmem:[%s351_s6] sm:$0xff] %vm131_vm0, %v121_v45  ;;  %v115_v58 = vadd.f32 %v211_v7, %v98_v48  ;;  %133 = vst.msk [vmem:[%s351_s6 + $0x8] sm:$0xff] %vm131_vm0, %v122_v56  ;;  %v48_v4 = vmul.f32 %v191_v1, %v31_v53  ;;  %v92_v6 = vmul.f32 %v205_v5, %v75_v54 }
   0xf   :  { %134 = vst.msk [vmem:[%s351_s6 + $0x10] sm:$0xff] %vm131_vm0, %v123_v57  ;;  %v49_v8 = vmul.f32 %v191_v1, %v32_v55  ;;  %135 = vst.msk [vmem:[%s351_s6 + $0x18] sm:$0xff] %vm131_vm0, %v124_v61  ;;  %v126_v9 = vmax.f32 %v116_v62, 0.0  ;;  %v117_v10 = vadd.f32 %v211_v7, %v100_v63  ;;  %v101_v11 = vadd.f32 %v91_v59, %v64_v0 }
  0x10   :  { %v125_v3 = vmax.f32 %v115_v58, 0.0  ;;  %v93_v12 = vmul.f32 %v205_v5, %v76_v60  ;;  %v65_v13 = vadd.f32 %v196_v2, %v48_v4 }
  0x11   :  { %v66_v1 = vadd.f32 %v196_v2, %v49_v8  ;;  %137 = vst.msk [vmem:[%s351_s6 + $0x28] sm:$0xff] %vm131_vm0, %v126_v9  ;;  %v127_v14 = vmax.f32 %v117_v10, 0.0  ;;  %v118_v15 = vadd.f32 %v211_v7, %v101_v11 }
  0x12   :  { %136 = vst.msk [vmem:[%s351_s6 + $0x20] sm:$0xff] %vm131_vm0, %v125_v3  ;;  %v102_v16 = vadd.f32 %v92_v6, %v65_v13 }
  0x13   :  { %v103_v17 = vadd.f32 %v93_v12, %v66_v1  ;;  %138 = vst.msk [vmem:[%s351_s6 + $0x30] sm:$0xff] %vm131_vm0, %v127_v14  ;;  %v128_v5 = vmax.f32 %v118_v15, 0.0 }
  0x14   :  { %v119_v18 = vadd.f32 %v211_v7, %v102_v16 }
  0x15   :  { %v120_v2 = vadd.f32 %v211_v7, %v103_v17  ;;  %139 = vst.msk [vmem:[%s351_s6 + $0x38] sm:$0xff] %vm131_vm0, %v128_v5 }
  0x16   :  { %v129_v19 = vmax.f32 %v119_v18, 0.0 }
  0x17   :  { %v130_v20 = vmax.f32 %v120_v2, 0.0 }
  0x18   :  { %140 = vst.msk [vmem:[%s351_s6 + $0x40] sm:$0xff] %vm131_vm0, %v129_v19 }
  0x19   :  { %141 = vst.msk [vmem:[%s351_s6 + $0x48] sm:$0xff] %vm131_vm0, %v130_v20 }

// kernel: drgcn_forward.66
= control target key start
LH: loop header
LB: loop body
LE: loop exit
PB: predicated region body
PF: predicated region fallthrough
CT: control target
= control target key end

     0   :  { %v186_v0 = vmov 0.0   ;;  %vm187_vm0 = vmmov 0   ;;  %vm62_vm1 = vcmask 523264   ;;  %s256_s1 = inlined_call_operand.vmem [shape: bf16[64,128], index: 1, kind: input, shape index: {}]   ;;  %s257_s0 = inlined_call_operand.vmem [shape: f32[40,64], index: 0, kind: input, shape index: {}]   ;;  %s258_s2 = inlined_call_operand.vmem [shape: f32[1,128], index: 2, kind: input, shape index: {}]   ;;  %s259_s3 = inlined_call_operand.vmem [shape: f32[40,128], index: 3, kind: output, shape index: {}]  }
   0x1   :  { %172 = vmatprep.subr.bf16.mxu1 %v186_v0  ;;  %v182_v1 = vld [vmem:[%s256_s1] sm:$0xff]   ;;  %152 = vmatprep.subr.bf16.mxu0 %v186_v0  ;;  %v183_v2 = vld [vmem:[%s256_s1 + $0x8] sm:$0xff]   ;;  %v184_v3 = vld [vmem:[%s256_s1 + $0x10] sm:$0xff]  }
   0x2   :  { %164 = vmatprep.mubr.msk.bf16.mxu1 %vm187_vm0, %v186_v0  ;;  %160 = vmatprep.mubr.msk.bf16.mxu0 %vm187_vm0, %v186_v0  ;;  %v185_v4 = vld [vmem:[%s256_s1 + $0x18] sm:$0xff]   ;;  %v17_v5 = vld [vmem:[%s257_s0 + $0x10] sm:$0xff]  ;;  %v15_v7 = vld [vmem:[%s257_s0] sm:$0xff] }
   0x3   :  { %176 = vmatpush3.bf16.msra.mxu1 %v182_v1  ;;  %153 = vmatpush3.bf16.msra.mxu0 %v182_v1  ;;  %v18_v6 = vld [vmem:[%s257_s0 + $0x18] sm:$0xff]  ;;  %v16_v8 = vld [vmem:[%s257_s0 + $0x8] sm:$0xff]  ;;  %v19_v11 = vld [vmem:[%s257_s0 + $0x20] sm:$0xff] }
   0x4   :  { %173 = vmatprep.subr.bf16.mxu1 %v186_v0  ;;  %154 = vmatprep.subr.bf16.mxu0 %v186_v0  ;;  %v21_v9 = vpack.c.bf16 %v18_v6, %v17_v5  ;;  %v20_v10 = vpack.c.bf16 %v16_v8, %v15_v7  ;;  %v22_v12 = vpack.c.bf16 %v19_v11, %v19_v11  ;;  %v137_v13 = vld [vmem:[%s258_s2] ss:$0 sm:$0xff] }
   0x7   :  { %177 = vmatpush3.bf16.msra.mxu1 %v183_v2  ;;  %155 = vmatpush3.bf16.msra.mxu0 %v183_v2 }
   0x8   :  { %174 = vmatprep.subr.bf16.mxu1 %v186_v0  ;;  %156 = vmatprep.subr.bf16.mxu0 %v186_v0 }
   0xb   :  { %178 = vmatpush3.bf16.msra.mxu1 %v184_v3  ;;  %157 = vmatpush3.bf16.msra.mxu0 %v184_v3 }
   0xc   :  { %175 = vmatprep.subr.bf16.mxu1 %v186_v0  ;;  %158 = vmatprep.subr.bf16.mxu0 %v186_v0 }
   0xf   :  { %179 = vmatpush3.bf16.msra.mxu1 %v185_v4  ;;  %159 = vmatpush3.bf16.msra.mxu0 %v185_v4 }
  0x12   :  { %165 = vmatmul.mubr.msk.bf16.vlgmr.msra.gmra.mrb[0].mxu1 %vm62_vm1, %v21_v9  ;;  %161 = vmatmul.mubr.msk.bf16.vlgmr.msra.gmra.mrb[0].mxu0 %vm62_vm1, %v20_v10 }
  0x13   :  { %168 = vmatprep.mubr.msk.bf16.mxu1 %vm187_vm0, %v186_v0 }
  0x1a   :  { %169 = vmatmul.mubr.msk.bf16.gmra.mrb[4].mxu1 %vm62_vm1, %v22_v12 }
  0xe5   :  { %v114_v14 = vpop.f32.mrb[0].mxu1  ;;  %v106_v15 = vpop.f32.mrb[0].mxu0 }
  0xe6   :  { %v115_v16 = vadd.f32 %v137_v13, %v114_v14  ;;  %v166_v17 = vpop.f32.mrb[1].mxu1  ;;  %v107_v18 = vadd.f32 %v137_v13, %v106_v15  ;;  %v162_v19 = vpop.f32.mrb[1].mxu0 }
  0xe7   :  { %v117_v20 = vpop.f32.mrb[2].mxu1  ;;  %v109_v21 = vpop.f32.mrb[2].mxu0 }
  0xe8   :  { %130 = vst [vmem:[%s259_s3 + $0x10] sm:$0xff] %v115_v16  ;;  %v118_v22 = vadd.f32 %v137_v13, %v117_v20  ;;  %128 = vst [vmem:[%s259_s3] sm:$0xff] %v107_v18  ;;  %v167_v23 = vpop.f32.mrb[3].mxu1  ;;  %v110_v24 = vadd.f32 %v137_v13, %v109_v21  ;;  %v163_v25 = vpop.f32.mrb[3].mxu0 }
  0xea   :  { %131 = vst [vmem:[%s259_s3 + $0x18] sm:$0xff] %v118_v22  ;;  %129 = vst [vmem:[%s259_s3 + $0x8] sm:$0xff] %v110_v24 }
  0xed   :  { %v122_v26 = vpop.f32.mrb[4].mxu1 }
  0xee   :  { %v123_v27 = vadd.f32 %v137_v13, %v122_v26  ;;  %v170_v28 = vpop.f32.mrb[5].mxu1 }
  0xef   :  { %v125_v29 = vpop.f32.mrb[6].mxu1 }
  0xf0   :  { %132 = vst [vmem:[%s259_s3 + $0x20] sm:$0xff] %v123_v27  ;;  %v171_v30 = vpop.f32.mrb[7].mxu1 }

// kernel: drgcn_forward.69
= control target key start
LH: loop header
LB: loop body
LE: loop exit
PB: predicated region body
PF: predicated region fallthrough
CT: control target
= control target key end

     0   :  { %s196_s0 = inlined_call_operand.vmem [shape: f32[40,128], index: 0, kind: input, shape index: {}]   ;;  %s197_s1 = inlined_call_operand.vmem [shape: f32[1,128], index: 1, kind: input, shape index: {}]   ;;  %s198_s2 = inlined_call_operand.vmem [shape: f32[1,128], index: 2, kind: input, shape index: {}]   ;;  %s199_s3 = inlined_call_operand.vmem [shape: f32[40,128], index: 3, kind: input, shape index: {}]   ;;  %s200_s4 = inlined_call_operand.vmem [shape: f32[1,128], index: 4, kind: input, shape index: {}]   ;;  %s201_s5 = inlined_call_operand.vmem [shape: f32[1,128], index: 5, kind: input, shape index: {}]   ;;  %s202_s6 = inlined_call_operand.vmem [shape: f32[40,128], index: 6, kind: output, shape index: {}]  }
   0x1   :  { %v23_v0 = vld [vmem:[%s196_s0] sm:$0xff]  ;;  %v24_v7 = vld [vmem:[%s196_s0 + $0x8] sm:$0xff]  ;;  %v25_v9 = vld [vmem:[%s196_s0 + $0x10] sm:$0xff] }
   0x2   :  { %v100_v1 = vld [vmem:[%s197_s1] ss:$0 sm:$0xff]  ;;  %v53_v8 = vld [vmem:[%s199_s3 + $0x8] sm:$0xff]  ;;  %v54_v14 = vld [vmem:[%s199_s3 + $0x10] sm:$0xff] }
   0x3   :  { %v101_v2 = vld [vmem:[%s198_s2] ss:$0 sm:$0xff]  ;;  %v35_v3 = vmul.f32 %v100_v1, %v23_v0  ;;  %v36_v11 = vmul.f32 %v100_v1, %v24_v7  ;;  %v37_v13 = vmul.f32 %v100_v1, %v25_v9  ;;  %v26_v15 = vld [vmem:[%s196_s0 + $0x18] sm:$0xff] }
   0x4   :  { %v52_v4 = vld [vmem:[%s199_s3] sm:$0xff]  ;;  %v55_v16 = vld [vmem:[%s199_s3 + $0x18] sm:$0xff]  ;;  %v38_v19 = vmul.f32 %v100_v1, %v26_v15 }
   0x5   :  { %v102_v5 = vld [vmem:[%s200_s4] ss:$0 sm:$0xff]  ;;  %v47_v10 = vadd.f32 %v101_v2, %v35_v3  ;;  %v48_v24 = vadd.f32 %v101_v2, %v36_v11  ;;  %v49_v25 = vadd.f32 %v101_v2, %v37_v13 }
   0x6   :  { %v64_v6 = vmul.f32 %v102_v5, %v52_v4  ;;  %v65_v12 = vmul.f32 %v102_v5, %v53_v8  ;;  %v103_v17 = vld [vmem:[%s201_s5] ss:$0 sm:$0xff]  ;;  %v66_v18 = vmul.f32 %v102_v5, %v54_v14  ;;  %v67_v20 = vmul.f32 %v102_v5, %v55_v16 }
   0x7   :  { %v27_v21 = vld [vmem:[%s196_s0 + $0x20] sm:$0xff]  ;;  %v50_v27 = vadd.f32 %v101_v2, %v38_v19 }
   0x8   :  { %v56_v22 = vld [vmem:[%s199_s3 + $0x20] sm:$0xff]  ;;  %v69_v23 = vadd.f32 %v64_v6, %v47_v10  ;;  %v39_v26 = vmul.f32 %v100_v1, %v27_v21  ;;  %v70_v30 = vadd.f32 %v65_v12, %v48_v24  ;;  %v71_v31 = vadd.f32 %v66_v18, %v49_v25 }
   0x9   :  { %v68_v28 = vmul.f32 %v102_v5, %v56_v22  ;;  %v72_v33 = vadd.f32 %v67_v20, %v50_v27 }
   0xa   :  { %v81_v29 = vadd.f32 %v103_v17, %v69_v23  ;;  %v51_v32 = vadd.f32 %v101_v2, %v39_v26  ;;  %v82_v35 = vadd.f32 %v103_v17, %v70_v30  ;;  %v83_v36 = vadd.f32 %v103_v17, %v71_v31 }
   0xb   :  { %v84_v38 = vadd.f32 %v103_v17, %v72_v33 }
   0xc   :  { %v86_v34 = vmax.f32 %v81_v29, 0.0  ;;  %v73_v37 = vadd.f32 %v68_v28, %v51_v32  ;;  %v87_v39 = vmax.f32 %v82_v35, 0.0  ;;  %v88_v40 = vmax.f32 %v83_v36, 0.0 }
   0xd   :  { %v89_v42 = vmax.f32 %v84_v38, 0.0 }
   0xe   :  { %91 = vst [vmem:[%s202_s6] sm:$0xff] %v86_v34  ;;  %v85_v41 = vadd.f32 %v103_v17, %v73_v37  ;;  %92 = vst [vmem:[%s202_s6 + $0x8] sm:$0xff] %v87_v39 }
   0xf   :  { %93 = vst [vmem:[%s202_s6 + $0x10] sm:$0xff] %v88_v40  ;;  %94 = vst [vmem:[%s202_s6 + $0x18] sm:$0xff] %v89_v42 }
  0x10   :  { %v90_v43 = vmax.f32 %v85_v41, 0.0 }
  0x12   :  { %95 = vst [vmem:[%s202_s6 + $0x20] sm:$0xff] %v90_v43 }

// kernel: drgcn_forward.68
= control target key start
LH: loop header
LB: loop body
LE: loop exit
PB: predicated region body
PF: predicated region fallthrough
CT: control target
= control target key end

     0   :  { %s1865_s18 = smov 0   ;;  %s2150_s0 = inlined_call_operand.vmem [shape: f32[2,8,5,128], index: 0, kind: input, shape index: {}]   ;;  %s2151_s1 = inlined_call_operand.vmem [shape: bf16[3,128,128], index: 1, kind: input, shape index: {}]   ;;  %s2152_s2 = inlined_call_operand.vmem [shape: f32[1,128], index: 2, kind: input, shape index: {}]   ;;  %s2153_s3 = inlined_call_operand.vmem [shape: f32[1,128], index: 3, kind: input, shape index: {}]   ;;  %s2154_s4 = inlined_call_operand.vmem [shape: f32[1,128], index: 4, kind: input, shape index: {}]   ;;  %s2155_s5 = inlined_call_operand.vmem [shape: f32[2,4,5,128], index: 5, kind: output, shape index: {}]  }
   0x1 LB: > { %s1599_s19 = sadd.s32 4294967295, %s1832_s18   ;;  %p1603_p0 = scmp.ge.s32.totalorder %s1832_s18, 1  ;;  %s1832_s18 = sphi %s1865_s18, %s15_s18  }
   0x2   : > { %p187_p1 = scmp.lt.s32.totalorder %s1832_s18, 3 }
   0x4   : > { %p188_p2 = pnand %p1603_p0, %p187_p1 }
   0x5   : > { %v1802_v0 = vld [vmem:[%s2151_s1 + $0x40] sm:$0xff] (!%p188_p2)   ;;  %v1804_v2 = vld [vmem:[%s2151_s1 + $0x48] sm:$0xff] (!%p188_p2)   ;;  %p215_p3 = scmp.lt.s32.totalorder (!%p188_p2), %s1599_s19, 1  ;;  %v1806_v4 = vld [vmem:[%s2151_s1 + $0x50] sm:$0xff] (!%p188_p2)   ;;  %vm280_vm0 = vcmask (!%p188_p2), 1042432   ;;  %v334_v12 = vlaneseq (!%p188_p2) }
   0x6   : > { %191 = sbr.rel (%p188_p2) target bundleno = 332 (0x14c), region = 40  ;;  %v1803_v1 = vld [vmem:[%s2151_s1] sm:$0xff] (!%p188_p2)   ;;  %1733 = vmatprep.subr.bf16.mxu0 (!%p188_p2), %v1802_v0  ;;  %v1805_v3 = vld [vmem:[%s2151_s1 + $0x8] sm:$0xff] (!%p188_p2)   ;;  %v1807_v5 = vld [vmem:[%s2151_s1 + $0x10] sm:$0xff] (!%p188_p2)   ;;  %vm281_vm1 = vsmask.f32 (!%p188_p2), 2304 }
   0x7   : > { %1734 = vmatpush3.bf16.msra.mxu0 (!%p188_p2), %v1802_v0  ;;  %1753 = vmatprep.subr.bf16.mxu1 (!%p188_p2), %v1803_v1  ;;  %v1808_v6 = vld [vmem:[%s2151_s1 + $0x58] sm:$0xff] (!%p188_p2)   ;;  %v1810_v8 = vld [vmem:[%s2151_s1 + $0x60] sm:$0xff] (!%p188_p2)   ;;  %v1812_v10 = vld [vmem:[%s2151_s1 + $0x68] sm:$0xff] (!%p188_p2)   ;;  %v1938_v25 = vshrl.u32 (!%p188_p2), %v334_v12, 7  ;;  %v1834_v36 = vmov (!%p188_p2), 1966171168  }
   0x8   : > { %1754 = vmatpush3.bf16.msra.mxu1 (!%p188_p2), %v1803_v1  ;;  %1735 = vmatprep.subr.bf16.mxu0 (!%p188_p2), %v1804_v2  ;;  %v1809_v7 = vld [vmem:[%s2151_s1 + $0x18] sm:$0xff] (!%p188_p2)   ;;  %v1811_v9 = vld [vmem:[%s2151_s1 + $0x20] sm:$0xff] (!%p188_p2)   ;;  %v1813_v11 = vld [vmem:[%s2151_s1 + $0x28] sm:$0xff] (!%p188_p2)   ;;  %v332_v37 = vunpack.c.l.s4 (!%p188_p2), %v1834_v36 }
   0x9   : > { %1755 = vmatprep.subr.bf16.mxu1 (!%p188_p2), %v1805_v3  ;;  %v1924_v17 = vld [vmem:[%s2153_s3] ss:$0 sm:$0xff] (!%p188_p2)  ;;  %v1814_v23 = vld [vmem:[%s2151_s1 + $0x70] sm:$0xff] (!%p188_p2)   ;;  %v312_v24 = vld [vmem:[#allocation2 + $0x24] sm:$0x7] (!%p188_p2) }
   0xa   : > { %v1929_v18 = vld [vmem:[%s2154_s4] ss:$0 sm:$0xff] (!%p188_p2)  ;;  %vm1944_vm2 = vmand (!%p188_p2), %vm280_vm0, %vm281_vm1  ;;  %v1815_v32 = vld [vmem:[%s2151_s1 + $0x30] sm:$0xff] (!%p188_p2)   ;;  %v333_v58 = vunpack.c.0.s8 (!%p188_p2), %v332_v37 }
   0xb   : > { %1736 = vmatpush3.bf16.msra.mxu0 (!%p188_p2), %v1804_v2  ;;  %v287_v34 = vld [vmem:[#allocation2 + $0x4] sm:$0x7] (!%p188_p2)  ;;  %v313_v35 = vsel (!%p188_p2), %vm1944_vm2, 0, %v312_v24  ;;  %v283_v40 = vld [vmem:[#allocation2] sm:$0x7] (!%p188_p2)  ;;  %v1816_v46 = vld [vmem:[%s2151_s1 + $0x78] sm:$0xff] (!%p188_p2)  }
   0xc   : > { %1756 = vmatpush3.bf16.msra.mxu1 (!%p188_p2), %v1805_v3  ;;  %1737 = vmatprep.subr.bf16.mxu0 (!%p188_p2), %v1806_v4  ;;  %v293_v44 = vld [vmem:[#allocation2 + $0xc] sm:$0x7] (!%p188_p2)  ;;  %314 = vst [vmem:[#allocation2 + $0x24] sm:$0x7] (!%p188_p2), %v313_v35  ;;  %v299_v48 = vld [vmem:[#allocation2 + $0x14] sm:$0x7] (!%p188_p2) }
   0xd   : > { %s2159_s19 = smov (!%p215_p3, %s1599_s19), 1  ;;  %1757 = vmatprep.subr.bf16.mxu1 %v1807_v5  ;;  %v305_v49 = vld [vmem:[#allocation2 + $0x1c] sm:$0x7]  ;;  %v284_v56 = vsel %vm1944_vm2, 0, %v283_v40  ;;  %v290_v61 = vld [vmem:[#allocation2 + $0x8] sm:$0x7] }
   0xe   : > { %s1701_s11 = sshll.u32 %s2159_s19, 6  ;;  %v1817_v52 = vld [vmem:[%s2151_s1 + $0x38] sm:$0xff]   ;;  %285 = vst [vmem:[#allocation2] sm:$0x7] %v284_v56  ;;  %v296_v2 = vld [vmem:[#allocation2 + $0x10] sm:$0x7] }
   0xf   : > { %1738 = vmatpush3.bf16.msra.mxu0 %v1806_v4  ;;  %s1909_s20 = scalar_lea.vmem %s2150_s0, %s1701_s11  ;;  %v302_v3 = vld [vmem:[#allocation2 + $0x18] sm:$0x7]  ;;  %v1980_v4 = vld [vmem:[%s2151_s1 + $0x80] sm:$0xff]   ;;  %v1819_v29 = vld [vmem:[%s2151_s1 + $0x88] sm:$0xff]   ;;  %s1702_s7 = sshll.u32 %s2159_s19, 5 }
  0x10   : > { %1758 = vmatpush3.bf16.msra.mxu1 %v1807_v5  ;;  %1739 = vmatprep.subr.bf16.mxu0 %v1808_v6  ;;  %v226_v13 = vld [vmem:[%s1909_s20] sm:$0x1f]  ;;  %v228_v14 = vld [vmem:[%s1909_s20 + $0x10] sm:$0x1f]  ;;  %v227_v30 = vld [vmem:[%s1909_s20 + $0x8] sm:$0x1f]  ;;  %s224_s9 = scalar_lea.vmem %s2155_s5, %s1702_s7 }
  0x11   : > { %1759 = vmatprep.subr.bf16.mxu1 %v1809_v7  ;;  %v230_v15 = vld [vmem:[%s1909_s20 + $0x20] sm:$0x1f]  ;;  %v232_v16 = vld [vmem:[%s1909_s20 + $0x30] sm:$0x1f]  ;;  %v241_v19 = vmul.f32 %v1924_v17, %v226_v13  ;;  %v243_v20 = vmul.f32 %v1924_v17, %v228_v14  ;;  %v229_v31 = vld [vmem:[%s1909_s20 + $0x18] sm:$0x1f]  ;;  %v242_v39 = vmul.f32 %v1924_v17, %v227_v30 }
  0x12   : > { %v245_v21 = vmul.f32 %v1924_v17, %v230_v15  ;;  %v247_v22 = vmul.f32 %v1924_v17, %v232_v16  ;;  %v231_v38 = vld [vmem:[%s1909_s20 + $0x28] sm:$0x1f]  ;;  %v244_v45 = vmul.f32 %v1924_v17, %v229_v31  ;;  %v233_v15 = vld [vmem:[%s1909_s20 + $0x38] sm:$0x1f] }
  0x13   : > { %1740 = vmatpush3.bf16.msra.mxu0 %v1808_v6  ;;  %v256_v26 = vadd.f32 %v1929_v18, %v241_v19  ;;  %v258_v27 = vadd.f32 %v1929_v18, %v243_v20  ;;  %v246_v50 = vmul.f32 %v1924_v17, %v231_v38  ;;  %v257_v51 = vadd.f32 %v1929_v18, %v242_v39 }
  0x14   : > { %1760 = vmatpush3.bf16.msra.mxu1 %v1809_v7  ;;  %1741 = vmatprep.subr.bf16.mxu0 %v1810_v8  ;;  %v260_v28 = vadd.f32 %v1929_v18, %v245_v21  ;;  %v262_v33 = vadd.f32 %v1929_v18, %v247_v22  ;;  %v259_v59 = vadd.f32 %v1929_v18, %v244_v45 }
  0x15   : > { %1761 = vmatprep.subr.bf16.mxu1 %v1811_v9  ;;  %v264_v41 = vmax.f32 %v256_v26, 0.0  ;;  %v266_v42 = vmax.f32 %v258_v27, 0.0  ;;  %v261_v60 = vadd.f32 %v1929_v18, %v246_v50  ;;  %v265_v1 = vmax.f32 %v257_v51, 0.0 }
  0x16   : > { %v268_v43 = vmax.f32 %v260_v28, 0.0  ;;  %v270_v47 = vmax.f32 %v262_v33, 0.0  ;;  %v267_v6 = vmax.f32 %v259_v59, 0.0  ;;  %v248_v19 = vmul.f32 %v1924_v17, %v233_v15 }
  0x17   : > { %1742 = vmatpush3.bf16.msra.mxu0 %v1810_v8  ;;  %v272_v53 = vpack.c.bf16 %v264_v41, %v264_v41  ;;  %v274_v54 = vpack.c.bf16 %v266_v42, %v266_v42  ;;  %v269_v7 = vmax.f32 %v261_v60, 0.0  ;;  %v273_v8 = vpack.c.bf16 %v265_v1, %v265_v1  ;;  %v1610_v16 = vld.sshfl [vmem:[#allocation2] sm:$0x13 pattern:$0x75316420] }
  0x18   : > { %1762 = vmatpush3.bf16.msra.mxu1 %v1811_v9  ;;  %1743 = vmatprep.subr.bf16.mxu0 %v1812_v10  ;;  %v276_v55 = vpack.c.bf16 %v268_v43, %v268_v43  ;;  %v278_v57 = vpack.c.bf16 %v270_v47, %v270_v47  ;;  %v1985_v9 = vsub.s32 %v333_v58, %v1938_v25 }
  0x19   : > { %1763 = vmatprep.subr.bf16.mxu1 %v1813_v11  ;;  %v288_v62 = vsel %vm1944_vm2, %v272_v53, %v287_v34  ;;  %v294_v63 = vsel %vm1944_vm2, %v274_v54, %v293_v44  ;;  %v291_v12 = vsel %vm1944_vm2, %v273_v8, %v290_v61  ;;  %v330_v20 = vcombine.high %v1610_v16, %v1610_v16 }
  0x1a   : > { %v300_v0 = vsel %vm1944_vm2, %v276_v55, %v299_v48  ;;  %289 = vst [vmem:[#allocation2 + $0x4] sm:$0x7] %v288_v62  ;;  %295 = vst [vmem:[#allocation2 + $0xc] sm:$0x7] %v294_v63  ;;  %v306_v5 = vsel %vm1944_vm2, %v278_v57, %v305_v49  ;;  %v337_v21 = vrot.slane %v1610_v16, %v1985_v9 }
  0x1b   : > { %1744 = vmatpush3.bf16.msra.mxu0 %v1812_v10  ;;  %301 = vst [vmem:[#allocation2 + $0x14] sm:$0x7] %v300_v0  ;;  %307 = vst [vmem:[#allocation2 + $0x1c] sm:$0x7] %v306_v5  ;;  %v275_v10 = vpack.c.bf16 %v267_v6, %v267_v6  ;;  %v344_v27 = vrot.slane %v330_v20, %v1985_v9 }
  0x1c   : > { %1764 = vmatpush3.bf16.msra.mxu1 %v1813_v11  ;;  %1745 = vmatprep.subr.bf16.mxu0 %v1814_v23  ;;  %v277_v11 = vpack.c.bf16 %v269_v7, %v269_v7  ;;  %292 = vst [vmem:[#allocation2 + $0x8] sm:$0x7] %v291_v12 }
  0x1d   : > { %1765 = vmatprep.subr.bf16.mxu1 %v1815_v32  ;;  %v297_v13 = vsel %vm1944_vm2, %v275_v10, %v296_v2  ;;  %v770_v8 = vcombine.low %v337_v21, %v344_v27 }
  0x1e   : > { %v303_v14 = vsel %vm1944_vm2, %v277_v11, %v302_v3  ;;  %298 = vst [vmem:[#allocation2 + $0x10] sm:$0x7] %v297_v13 }
  0x1f   : > { %1746 = vmatpush3.bf16.msra.mxu0 %v1814_v23  ;;  %304 = vst [vmem:[#allocation2 + $0x18] sm:$0x7] %v303_v14  ;;  %v1998_v23 = vadd.f32 %v1929_v18, %v248_v19  ;;  %v780_v15 = vrot.slane %v770_v8, %v1985_v9 }
  0x20   : > { %1766 = vmatpush3.bf16.msra.mxu1 %v1815_v32  ;;  %1747 = vmatprep.subr.bf16.mxu0 %v1816_v46  ;;  %v345_v32 = vcombine.high %v337_v21, %v337_v21 }
  0x21   : > { %1767 = vmatprep.subr.bf16.mxu1 %v1817_v52  ;;  %v1614_v22 = vld.sshfl [vmem:[#allocation2 + $0x4] sm:$0x13 pattern:$0x75316420]  ;;  %v271_v17 = vmax.f32 %v1998_v23, 0.0 }
  0x22   : > { %v1615_v24 = vld.sshfl [vmem:[#allocation2 + $0xc] sm:$0x13 pattern:$0x75316420]  ;;  %v466_v25 = vcombine.high %v1614_v22, %v1614_v22  ;;  %v473_v26 = vrot.slane %v1614_v22, %v1985_v9 }
  0x23   : > { %1748 = vmatpush3.bf16.msra.mxu0 %v1816_v46  ;;  %v1616_v28 = vld.sshfl [vmem:[#allocation2 + $0x14] sm:$0x13 pattern:$0x75316420]  ;;  %v489_v30 = vcombine.high %v1615_v24, %v1615_v24  ;;  %v496_v31 = vrot.slane %v1615_v24, %v1985_v9 }
  0x24   : > { %1768 = vmatpush3.bf16.msra.mxu1 %v1817_v52  ;;  %1773 = vmatprep.subr.bf16.mxu0 %v1980_v4  ;;  %v1617_v33 = vld.sshfl [vmem:[#allocation2 + $0x1c] sm:$0x13 pattern:$0x75316420]  ;;  %v480_v34 = vrot.slane %v466_v25, %v1985_v9  ;;  %v481_v35 = vcombine.high %v473_v26, %v473_v26  ;;  %v512_v36 = vcombine.high %v1616_v28, %v1616_v28 }
  0x25   : > { %v519_v18 = vrot.slane %v1616_v28, %v1985_v9  ;;  %v503_v37 = vrot.slane %v489_v30, %v1985_v9  ;;  %v504_v38 = vcombine.high %v496_v31, %v496_v31  ;;  %v2008_v39 = vrot.slane %v1617_v33, %v1985_v9  ;;  %v1611_v41 = vld.sshfl [vmem:[#allocation2 + $0x8] sm:$0x13 pattern:$0x75316420] }
  0x26   : > { %v557_v40 = vunpack.i.h.s16 %v496_v31  ;;  %v526_v42 = vrot.slane %v512_v36, %v1985_v9  ;;  %v1634_v44 = vpack.i.b16 %v496_v31, %v481_v35  ;;  %v598_v45 = vcombine.low %v473_v26, %v480_v34  ;;  %v1612_v46 = vld.sshfl [vmem:[#allocation2 + $0x10] sm:$0x13 pattern:$0x75316420] }
  0x27   : > { %v527_v43 = vcombine.high %v519_v18, %v519_v18  ;;  %v559_v47 = vunpack.i.h.s16 %v503_v37  ;;  %v1613_v49 = vld.sshfl [vmem:[#allocation2 + $0x18] sm:$0x13 pattern:$0x75316420]  ;;  %v353_v50 = vcombine.high %v1611_v41, %v1611_v41  ;;  %v2012_v51 = vrot.slane %v1611_v41, %v1985_v9 }
  0x28   : > { %v1635_v48 = vpack.i.b16 %v503_v37, %v557_v40  ;;  %v608_v53 = vrot.slane %v598_v45, %v1985_v9  ;;  %v376_v54 = vcombine.high %v1612_v46, %v1612_v46  ;;  %v2017_v55 = vrot.slane %v1612_v46, %v1985_v9  ;;  %v308_v37 = vld [vmem:[#allocation2 + $0x20] sm:$0x7] }
  0x29   : > { %v1637_v52 = vpack.i.b16 %v2008_v39, %v527_v43  ;;  %v1636_v56 = vpack.i.b16 %v504_v38, %v559_v47  ;;  %v2020_v58 = vrot.slane %v353_v50, %v1985_v9  ;;  %v2024_v59 = vcombine.high %v2012_v51, %v2012_v51 }
  0x2a   : > { %v599_v57 = vcombine.low %v1634_v44, %v1635_v48  ;;  %v390_v61 = vrot.slane %v376_v54, %v1985_v9  ;;  %v391_v62 = vcombine.high %v2017_v55, %v2017_v55  ;;  %v2030_v63 = vrot.slane %v1613_v49, %v1985_v9 }
  0x2b   : > { %v601_v60 = vcombine.low %v526_v42, %v1637_v52  ;;  %v600_v0 = vcombine.low %v1636_v56, %v519_v18  ;;  %v421_v2 = vunpack.i.h.s16 %v2012_v51  ;;  %v423_v3 = vunpack.i.h.s16 %v2020_v58 }
  0x2c   : > { %v615_v1 = vrot.slane %v599_v57, %v1985_v9  ;;  %v1648_v6 = vpack.i.b16 %v2012_v51, %v345_v32  ;;  %v1651_v7 = vpack.i.b16 %v2030_v63, %v391_v62  ;;  %v535_v16 = vcombine.high %v1617_v33, %v1617_v33 }
  0x2d   : > { %v629_v5 = vrot.slane %v601_v60, %v1985_v9  ;;  %v622_v10 = vrot.slane %v600_v0, %v1985_v9  ;;  %v1649_v12 = vpack.i.b16 %v2020_v58, %v421_v2  ;;  %v1650_v13 = vpack.i.b16 %v2024_v59, %v423_v3 }
  0x2e   : > { %v630_v11 = vcombine.low %v608_v53, %v615_v1  ;;  %v773_v14 = vcombine.low %v390_v61, %v1651_v7  ;;  %v550_v19 = vcombine.high %v2008_v39, %v2008_v39  ;;  %v549_v26 = vrot.slane %v535_v16, %v1985_v9 }
  0x2f   : > { %v631_v20 = vcombine.low %v622_v10, %v629_v5  ;;  %v771_v24 = vcombine.low %v1648_v6, %v1649_v12  ;;  %v772_v21 = vcombine.low %v1650_v13, %v2017_v55  ;;  %v567_v27 = vunpack.i.h.s16 %v2008_v39  ;;  %v1822_v12 = vld [vmem:[%s2151_s1 + $0xa0] sm:$0xff]  }
  0x30   : > { %v638_v22 = vrot.slane %v630_v11, %v1985_v9  ;;  %v801_v25 = vrot.slane %v773_v14, %v1985_v9  ;;  %v399_v28 = vcombine.high %v1613_v49, %v1613_v49  ;;  %v414_v33 = vcombine.high %v2030_v63, %v2030_v63 }
  0x31   : > { %v645_v30 = vrot.slane %v631_v20, %v1985_v9  ;;  %v787_v31 = vrot.slane %v771_v24, %v1985_v9  ;;  %v794_v32 = vrot.slane %v772_v21, %v1985_v9  ;;  %v569_v34 = vunpack.i.h.s16 %v549_v26 }
  0x32   : > { %v1638_v35 = vpack.i.b16 %v549_v26, %v567_v27  ;;  %v413_v36 = vrot.slane %v399_v28, %v1985_v9  ;;  %v431_v18 = vunpack.i.h.s16 %v2030_v63  ;;  %v279_v41 = vpack.c.bf16 %v271_v17, %v271_v17  ;;  %v1824_v26 = vld [vmem:[%s2151_s1 + $0xb0] sm:$0xff]   ;;  %v1825_v28 = vld [vmem:[%s2151_s1 + $0xb8] sm:$0xff]  }
  0x33   : > { %v646_v38 = vcombine.low %v638_v22, %v645_v30  ;;  %v802_v40 = vcombine.low %v780_v15, %v787_v31  ;;  %v803_v39 = vcombine.low %v794_v32, %v801_v25  ;;  %v1639_v42 = vpack.i.b16 %v550_v19, %v569_v34  ;;  %v1823_v22 = vld [vmem:[%s2151_s1 + $0xa8] sm:$0xff]  }
  0x34   : > { %v433_v43 = vunpack.i.h.s16 %v413_v36  ;;  %v1652_v44 = vpack.i.b16 %v413_v36, %v431_v18  ;;  %v1039_v45 = vunpack.i.h.s16 %v2017_v55  ;;  %v309_v48 = vsel %vm1944_vm2, %v279_v41, %v308_v37 }
  0x35   : > { %1749 = vmatprep.mubr.bf16.mxu0 %v646_v38  ;;  %v810_v46 = vrot.slane %v802_v40, %v1985_v9  ;;  %v817_v47 = vrot.slane %v803_v39, %v1985_v9  ;;  %v1041_v49 = vunpack.i.h.s16 %v390_v61  ;;  %v647_v50 = vcombine.low %v1638_v35, %v1639_v42  ;;  %310 = vst [vmem:[#allocation2 + $0x20] sm:$0x7] %v309_v48 }
  0x36   : > { %v1653_v52 = vpack.i.b16 %v414_v33, %v433_v43  ;;  %v1682_v23 = vpack.i.b16 %v2017_v55, %v2024_v59  ;;  %v1683_v17 = vpack.i.b16 %v390_v61, %v1039_v45  ;;  %v1080_v1 = vcombine.low %v2012_v51, %v2020_v58  ;;  %v1696_v43 = vld [vmem:[%s2152_s2] ss:$0 sm:$0xff] }
  0x37   : > { %v818_v53 = vcombine.low %v810_v46, %v817_v47  ;;  %v654_v54 = vrot.slane %v647_v50, %v1985_v9  ;;  %v1684_v57 = vpack.i.b16 %v391_v62, %v1041_v49  ;;  %v1820_v62 = vld [vmem:[%s2151_s1 + $0x90] sm:$0xff]  }
  0x38   : > { %v819_v56 = vcombine.low %v1652_v44, %v1653_v52  ;;  %v1081_v2 = vcombine.low %v1682_v23, %v1683_v17  ;;  %v1090_v5 = vrot.slane %v1080_v1, %v1985_v9 }
  0x39   : > { %1769 = vmatprep.mubr.bf16.mxu1 %v818_v53  ;;  %v661_v60 = vrot.slane %v654_v54, %v1985_v9  ;;  %v1082_v61 = vcombine.low %v1684_v57, %v2030_v63 }
  0x3a   : > { %v826_v0 = vrot.slane %v819_v56, %v1985_v9  ;;  %v1097_v51 = vrot.slane %v1081_v2, %v1985_v9 }
  0x3b   : > { %1750 = vmatmul.mubr.bf16.vlgmr.msra.gmra.mrb[0].mxu0 %v661_v60  ;;  %v1104_v7 = vrot.slane %v1082_v61, %v1985_v9 }
  0x3c   : > { %v833_v55 = vrot.slane %v826_v0, %v1985_v9  ;;  %1774 = vmatpush3.bf16.msra.mxu0 %v1980_v4  ;;  %v1665_v59 = vld.sshfl [vmem:[#allocation2 + $0x20] sm:$0x13 pattern:$0x75316420]  ;;  %v1821_v4 = vld [vmem:[%s2151_s1 + $0x98] sm:$0xff]   ;;  %v1112_v8 = vcombine.low %v1090_v5, %v1097_v51 }
  0x3d   : > { %1775 = vmatprep.subr.bf16.mxu0 %v1819_v29  ;;  %v1024_v3 = vrot.slane %v1665_v59, %v1985_v9  ;;  %v1017_v6 = vcombine.high %v1665_v59, %v1665_v59 }
  0x3e   : > { %1770 = vmatmul.mubr.bf16.vlgmr.msra.gmra.mrb[0].mxu1 %v833_v55  ;;  %v1120_v14 = vrot.slane %v1112_v8, %v1985_v9 }
  0x3f   : > { %v1685_v58 = vpack.i.b16 %v1024_v3, %v414_v33  ;;  %v1031_v11 = vrot.slane %v1017_v6, %v1985_v9  ;;  %v1032_v16 = vcombine.high %v1024_v3, %v1024_v3  ;;  %v1049_v19 = vunpack.i.h.s16 %v1024_v3 }
  0x40   : > { %1776 = vmatpush3.bf16.msra.mxu0 %v1819_v29 }
  0x41   : > { %1777 = vmatprep.subr.bf16.mxu0 %v1820_v62  ;;  %v1083_v63 = vcombine.low %v413_v36, %v1685_v58  ;;  %v1051_v20 = vunpack.i.h.s16 %v1031_v11  ;;  %v1686_v21 = vpack.i.b16 %v1031_v11, %v1049_v19 }
  0x43   : > { %v1111_v10 = vrot.slane %v1083_v63, %v1985_v9  ;;  %v1687_v25 = vpack.i.b16 %v1032_v16, %v1051_v20 }
  0x44   : > { %1778 = vmatpush3.bf16.msra.mxu0 %v1820_v62 }
  0x45   : > { %1779 = vmatprep.subr.bf16.mxu0 %v1821_v4  ;;  %v1113_v13 = vcombine.low %v1104_v7, %v1111_v10  ;;  %v1129_v27 = vcombine.low %v1686_v21, %v1687_v25 }
  0x47   : > { %v1127_v15 = vrot.slane %v1113_v13, %v1985_v9  ;;  %v1136_v30 = vrot.slane %v1129_v27, %v1985_v9 }
  0x48   : > { %1780 = vmatpush3.bf16.msra.mxu0 %v1821_v4 }
  0x49   : > { %1781 = vmatprep.subr.bf16.mxu0 %v1822_v12  ;;  %v1128_v24 = vcombine.low %v1120_v14, %v1127_v15  ;;  %v1143_v31 = vrot.slane %v1136_v30, %v1985_v9 }
  0x4b   : > { %1789 = vmatprep.mubr.bf16.mxu0 %v1128_v24 }
  0x4c   : > { %1782 = vmatpush3.bf16.msra.mxu0 %v1822_v12 }
  0x4d   : > { %1783 = vmatprep.subr.bf16.mxu0 %v1823_v22 }
  0x50   : > { %1784 = vmatpush3.bf16.msra.mxu0 %v1823_v22 }
  0x51   : > { %1785 = vmatprep.subr.bf16.mxu0 %v1824_v26 }
  0x54   : > { %1786 = vmatpush3.bf16.msra.mxu0 %v1824_v26 }
  0x55   : > { %1787 = vmatprep.subr.bf16.mxu0 %v1825_v28 }
  0x58   : > { %1788 = vmatpush3.bf16.msra.mxu0 %v1825_v28 }
  0x5b   : > { %1790 = vmatmul.mubr.bf16.vlgmr.msra.gmra.mrb[4].mxu0 %v1143_v31 }
 0x10e   : > { %v1751_v32 = vpop.f32.mrb[0].mxu0 }
 0x10f   : > { %v746_v33 = vpop.f32.mrb[1].mxu0 }
 0x110   : > { %v1752_v35 = vpop.f32.mrb[2].mxu0 }
 0x111   : > { %v1771_v34 = vpop.f32.mrb[0].mxu1  ;;  %v749_v37 = vpop.f32.mrb[3].mxu0 }
 0x112   : > { %v927_v36 = vadd.f32 %v1771_v34, %v1751_v32  ;;  %v918_v18 = vpop.f32.mrb[1].mxu1 }
 0x113   : > { %v919_v38 = vadd.f32 %v918_v18, %v746_v33  ;;  %v1772_v40 = vpop.f32.mrb[2].mxu1 }
 0x114   : > { %v921_v39 = vpop.f32.mrb[3].mxu1 }
 0x115   : > { %v922_v41 = vadd.f32 %v921_v39, %v749_v37 }
 0x12e   : > { %v1791_v42 = vpop.f32.mrb[4].mxu0 }
 0x12f   : > { %v1244_v44 = vadd.f32 %v1791_v42, %v927_v36  ;;  %v1228_v45 = vpop.f32.mrb[5].mxu0 }
 0x130   : > { %v1242_v46 = vadd.f32 %v1228_v45, %v919_v38  ;;  %v1792_v47 = vpop.f32.mrb[6].mxu0 }
 0x131   : > { %v1254_v48 = vadd.f32 %v1696_v43, %v1244_v44  ;;  %v1231_v49 = vpop.f32.mrb[7].mxu0 }
 0x132   : > { %v1252_v50 = vadd.f32 %v1696_v43, %v1242_v46  ;;  %v1243_v52 = vadd.f32 %v1231_v49, %v922_v41 }
 0x133   : > { %v1362_v23 = vrot.slane %v1254_v48, %v1985_v9 }
 0x134   : > { %v1258_v17 = vcombine.high %v1252_v50, %v1252_v50  ;;  %v1265_v53 = vrot.slane %v1252_v50, %v1985_v9  ;;  %v1253_v54 = vadd.f32 %v1696_v43, %v1243_v52 }
 0x135   : > { %v1363_v56 = vcombine.high %v1362_v23, %v1362_v23  ;;  %v1370_v57 = vrot.slane %v1362_v23, %v1985_v9 }
 0x136   : > { %v1272_v60 = vrot.slane %v1258_v17, %v1985_v9  ;;  %v1273_v0 = vcombine.high %v1265_v53, %v1265_v53  ;;  %v1307_v29 = vcombine.high %v1253_v54, %v1253_v54  ;;  %v1281_v1 = vrot.slane %v1265_v53, %v1985_v9 }
 0x137   : > { %v1314_v2 = vrot.slane %v1253_v54, %v1985_v9  ;;  %v1377_v3 = vrot.slane %v1363_v56, %v1985_v9  ;;  %v1378_v5 = vcombine.high %v1370_v57, %v1370_v57 }
 0x138   : > { %v1274_v55 = vcombine.high %v1272_v60, %v1272_v60  ;;  %v1288_v59 = vrot.slane %v1272_v60, %v1985_v9  ;;  %v1295_v61 = vrot.slane %v1273_v0, %v1985_v9  ;;  %v1321_v62 = vrot.slane %v1307_v29, %v1985_v9 }
 0x139   : > { %v1322_v51 = vcombine.high %v1314_v2, %v1314_v2  ;;  %v1330_v10 = vrot.slane %v1314_v2, %v1985_v9  ;;  %v1379_v15 = vcombine.high %v1377_v3, %v1377_v3  ;;  %v1498_v16 = vcombine.low %v1377_v3, %v1378_v5 }
 0x13a   : > { %v1302_v58 = vrot.slane %v1274_v55, %v1985_v9  ;;  %v1304_v6 = vcombine.high %v1288_v59, %v1288_v59  ;;  %v1380_v4 = vcombine.low %v1281_v1, %v1295_v61  ;;  %v1697_v63 = vcombine.high %v1281_v1, %v1295_v61 }
 0x13b   : > { %v1402_v7 = vrot.slane %v1288_v59, %v1985_v9  ;;  %v1323_v8 = vcombine.high %v1321_v62, %v1321_v62  ;;  %v1337_v19 = vrot.slane %v1321_v62, %v1985_v9  ;;  %v1344_v20 = vrot.slane %v1322_v51, %v1985_v9 }
 0x13c   : > { %v1388_v11 = vrot.slane %v1380_v4, %v1985_v9  ;;  %v1395_v12 = vrot.slane %v1697_v63, %v1985_v9  ;;  %v1419_v13 = vcombine.low %v1302_v58, %v1304_v6  ;;  %v1306_v14 = vcombine.high %v1302_v58, %v1302_v58 }
 0x13d   : > { %v1417_v24 = vrot.slane %v1402_v7, %v1985_v9  ;;  %v1351_v21 = vrot.slane %v1323_v8, %v1985_v9  ;;  %v1353_v26 = vcombine.high %v1337_v19, %v1337_v19  ;;  %v1441_v28 = vrot.slane %v1344_v20, %v1985_v9 }
 0x13e   : > { %v1403_v22 = vcombine.low %v1388_v11, %v1395_v12  ;;  %v1420_v25 = vcombine.low %v1306_v14, %v1330_v10  ;;  %v1427_v27 = vrot.slane %v1419_v13, %v1985_v9  ;;  %v1698_v30 = vcombine.high %v1330_v10, %v1344_v20 }
 0x13f   : > { %v1355_v32 = vcombine.high %v1351_v21, %v1351_v21  ;;  %v1459_v34 = vcombine.low %v1337_v19, %v1351_v21  ;;  %v1480_v36 = vrot.slane %v1353_v26, %v1985_v9  ;;  %v1512_v39 = vrot.slane %v1498_v16, %v1985_v9 }
 0x140   : > { %v1410_v31 = vrot.slane %v1403_v22, %v1985_v9  ;;  %v1434_v33 = vrot.slane %v1420_v25, %v1985_v9  ;;  %v1466_v35 = vrot.slane %v1698_v30, %v1985_v9  ;;  %v1519_v41 = vrot.slane %v1379_v15, %v1985_v9 }
 0x141   : > { %v1473_v38 = vrot.slane %v1459_v34, %v1985_v9  ;;  %v1497_v40 = vcombine.low %v1355_v32, %v1370_v57  ;;  %v1456_v43 = vrot.slane %v1441_v28, %v1985_v9  ;;  %v1495_v48 = vrot.slane %v1480_v36, %v1985_v9 }
 0x142   : > { %v1418_v18 = vcombine.low %v1410_v31, %v1417_v24  ;;  %v1442_v37 = vcombine.low %v1427_v27, %v1434_v33  ;;  %v1534_v50 = vrot.slane %v1519_v41, %v1985_v9 }
 0x143   : > { %v1481_v44 = vcombine.low %v1466_v35, %v1473_v38  ;;  %v1505_v45 = vrot.slane %v1497_v40, %v1985_v9 }
 0x144   : > { %1540 = vst [vmem:[%s224_s9] sm:$0x1f] %v1418_v18  ;;  %v1449_v42 = vrot.slane %v1442_v37, %v1985_v9 }
 0x145   : > { %v1488_v47 = vrot.slane %v1481_v44, %v1985_v9  ;;  %v1520_v49 = vcombine.low %v1505_v45, %v1512_v39 }
 0x146   : > { %v1457_v46 = vcombine.low %v1449_v42, %v1456_v43 }
 0x147   : > { %v1496_v52 = vcombine.low %v1488_v47, %v1495_v48  ;;  %v1527_v23 = vrot.slane %v1520_v49, %v1985_v9 }
 0x148   : > { %1541 = vst [vmem:[%s224_s9 + $0x8] sm:$0x1f] %v1457_v46 }
 0x149   : > { %v1535_v17 = vcombine.low %v1527_v23, %v1534_v50  ;;  %1542 = vst [vmem:[%s224_s9 + $0x10] sm:$0x1f] %v1496_v52 }
 0x14b   : > { %1543 = vst [vmem:[%s224_s9 + $0x18] sm:$0x1f] %v1535_v17 }
 0x14c PF: > { %s15_s18 = sadd.s32 1, %s1832_s18  }
 0x14d   : > { %p12_p4 = scmp.ge.s32.totalorder %s15_s18, 4  }
 0x14f   :  { %14 = sbr.rel (!%p12_p4) target bundleno = 1 (0x1), region = 75 }

// kernel: drgcn_forward.71
= control target key start
LH: loop header
LB: loop body
LE: loop exit
PB: predicated region body
PF: predicated region fallthrough
CT: control target
= control target key end

     0   :  { %v464_v1 = vmov 0   ;;  %v57_v41 = vlaneseq  ;;  %s665_s1 = inlined_call_operand.vmem [shape: bf16[128,512], index: 1, kind: input, shape index: {}]   ;;  %s666_s0 = inlined_call_operand.vmem [shape: f32[40,128], index: 0, kind: input, shape index: {}]   ;;  %s667_s2 = inlined_call_operand.vmem [shape: f32[1,512], index: 2, kind: input, shape index: {}]   ;;  %s668_s3 = inlined_call_operand.vmem [shape: f32[40,512], index: 3, kind: output, shape index: {}]  }
   0x1   :  { %v416_v0 = vld [vmem:[%s665_s1 + $0x4] ss:$16 sps:$4 sm:$0xff]   ;;  %269 = vmatprep.mubr.bf16.mxu0 %v464_v1  ;;  %330 = vmatprep.mubr.bf16.mxu1 %v464_v1  ;;  %v418_v2 = vld [vmem:[%s665_s1 + $0xc] ss:$16 sps:$4 sm:$0xff]   ;;  %v420_v3 = vld [vmem:[%s665_s1] ss:$16 sps:$4 sm:$0xff]  }
   0x2   :  { %237 = vmatprep.subr.bf16.mxu0 %v416_v0  ;;  %v421_v4 = vld [vmem:[%s665_s1 + $0x8] ss:$16 sps:$4 sm:$0xff]   ;;  %298 = vmatprep.subr.bf16.mxu1 %v418_v2  ;;  %v422_v5 = vld [vmem:[%s665_s1 + $0x24] ss:$16 sps:$4 sm:$0xff]   ;;  %v424_v6 = vld [vmem:[%s665_s1 + $0x2c] ss:$16 sps:$4 sm:$0xff]  }
   0x3   :  { %238 = vmatpush1.bf16.msra.mxu0 %v420_v3  ;;  %299 = vmatpush1.bf16.msra.mxu1 %v421_v4  ;;  %v426_v7 = vld [vmem:[%s665_s1 + $0x20] ss:$16 sps:$4 sm:$0xff]   ;;  %v427_v8 = vld [vmem:[%s665_s1 + $0x28] ss:$16 sps:$4 sm:$0xff]   ;;  %v428_v9 = vld [vmem:[%s665_s1 + $0x44] ss:$16 sps:$4 sm:$0xff]  }
   0x4   :  { %239 = vmatprep.subr.bf16.mxu0 %v422_v5  ;;  %300 = vmatprep.subr.bf16.mxu1 %v424_v6  ;;  %v430_v10 = vld [vmem:[%s665_s1 + $0x4c] ss:$16 sps:$4 sm:$0xff]   ;;  %v432_v11 = vld [vmem:[%s665_s1 + $0x40] ss:$16 sps:$4 sm:$0xff]   ;;  %v433_v12 = vld [vmem:[%s665_s1 + $0x48] ss:$16 sps:$4 sm:$0xff]  }
   0x5   :  { %v434_v13 = vld [vmem:[%s665_s1 + $0x64] ss:$16 sps:$4 sm:$0xff]   ;;  %v436_v14 = vld [vmem:[%s665_s1 + $0x6c] ss:$16 sps:$4 sm:$0xff]   ;;  %v438_v15 = vld [vmem:[%s665_s1 + $0x60] ss:$16 sps:$4 sm:$0xff]  }
   0x6   :  { %v439_v16 = vld [vmem:[%s665_s1 + $0x68] ss:$16 sps:$4 sm:$0xff]   ;;  %v440_v17 = vld [vmem:[%s665_s1 + $0x84] ss:$16 sps:$4 sm:$0xff]   ;;  %v442_v18 = vld [vmem:[%s665_s1 + $0x8c] ss:$16 sps:$4 sm:$0xff]  }
   0x7   :  { %240 = vmatpush1.bf16.msra.mxu0 %v426_v7  ;;  %301 = vmatpush1.bf16.msra.mxu1 %v427_v8  ;;  %v444_v19 = vld [vmem:[%s665_s1 + $0x80] ss:$16 sps:$4 sm:$0xff]   ;;  %v445_v20 = vld [vmem:[%s665_s1 + $0x88] ss:$16 sps:$4 sm:$0xff]   ;;  %v446_v21 = vld [vmem:[%s665_s1 + $0xa4] ss:$16 sps:$4 sm:$0xff]  }
   0x8   :  { %241 = vmatprep.subr.bf16.mxu0 %v428_v9  ;;  %302 = vmatprep.subr.bf16.mxu1 %v430_v10  ;;  %v448_v22 = vld [vmem:[%s665_s1 + $0xac] ss:$16 sps:$4 sm:$0xff]   ;;  %v450_v23 = vld [vmem:[%s665_s1 + $0xa0] ss:$16 sps:$4 sm:$0xff]   ;;  %v451_v24 = vld [vmem:[%s665_s1 + $0xa8] ss:$16 sps:$4 sm:$0xff]  }
   0x9   :  { %v452_v25 = vld [vmem:[%s665_s1 + $0xc4] ss:$16 sps:$4 sm:$0xff]   ;;  %v454_v26 = vld [vmem:[%s665_s1 + $0xcc] ss:$16 sps:$4 sm:$0xff]   ;;  %v456_v27 = vld [vmem:[%s665_s1 + $0xc0] ss:$16 sps:$4 sm:$0xff]  }
   0xa   :  { %v457_v28 = vld [vmem:[%s665_s1 + $0xc8] ss:$16 sps:$4 sm:$0xff]   ;;  %v458_v29 = vld [vmem:[%s665_s1 + $0xe4] ss:$16 sps:$4 sm:$0xff]   ;;  %v460_v30 = vld [vmem:[%s665_s1 + $0xec] ss:$16 sps:$4 sm:$0xff]  }
   0xb   :  { %242 = vmatpush1.bf16.msra.mxu0 %v432_v11  ;;  %303 = vmatpush1.bf16.msra.mxu1 %v433_v12  ;;  %v462_v31 = vld [vmem:[%s665_s1 + $0xe0] ss:$16 sps:$4 sm:$0xff]   ;;  %v463_v32 = vld [vmem:[%s665_s1 + $0xe8] ss:$16 sps:$4 sm:$0xff]   ;;  %v58_v42 = vshrl.u32 %v57_v41, 7 }
   0xc   :  { %243 = vmatprep.subr.bf16.mxu0 %v434_v13  ;;  %304 = vmatprep.subr.bf16.mxu1 %v436_v14  ;;  %v15_v33 = vld [vmem:[%s666_s0] sm:$0xff]  ;;  %v16_v34 = vld [vmem:[%s666_s0 + $0x8] sm:$0xff]  ;;  %v17_v36 = vld [vmem:[%s666_s0 + $0x10] sm:$0xff] }
   0xd   :  { %v20_v35 = vpack.c.bf16 %v16_v34, %v15_v33  ;;  %v18_v37 = vld [vmem:[%s666_s0 + $0x18] sm:$0xff]  ;;  %v19_v39 = vld [vmem:[%s666_s0 + $0x20] sm:$0xff]  ;;  %v59_v43 = vsub.s32 0, %v58_v42  ;;  %v67_v44 = vsub.s32 2, %v58_v42  ;;  %v63_v46 = vsub.s32 1, %v58_v42 }
   0xe   :  { %v21_v38 = vpack.c.bf16 %v18_v37, %v17_v36  ;;  %v22_v40 = vpack.c.bf16 %v19_v39, %v19_v39  ;;  %v55_v45 = vld [vmem:[%s667_s2] sm:$0xf]  ;;  %v71_v47 = vsub.s32 3, %v58_v42 }
   0xf   :  { %244 = vmatpush1.bf16.msra.mxu0 %v438_v15  ;;  %305 = vmatpush1.bf16.msra.mxu1 %v439_v16  ;;  %v60_v48 = vrot.slane %v55_v45, %v59_v43  ;;  %v68_v49 = vrot.slane %v55_v45, %v67_v44  ;;  %v64_v50 = vrot.slane %v55_v45, %v63_v46 }
  0x10   :  { %245 = vmatprep.subr.bf16.mxu0 %v440_v17  ;;  %306 = vmatprep.subr.bf16.mxu1 %v442_v18  ;;  %v72_v51 = vrot.slane %v55_v45, %v71_v47 }
  0x13   :  { %246 = vmatpush1.bf16.msra.mxu0 %v444_v19  ;;  %307 = vmatpush1.bf16.msra.mxu1 %v445_v20 }
  0x14   :  { %247 = vmatprep.subr.bf16.mxu0 %v446_v21  ;;  %308 = vmatprep.subr.bf16.mxu1 %v448_v22 }
  0x17   :  { %248 = vmatpush1.bf16.msra.mxu0 %v450_v23  ;;  %309 = vmatpush1.bf16.msra.mxu1 %v451_v24 }
  0x18   :  { %249 = vmatprep.subr.bf16.mxu0 %v452_v25  ;;  %310 = vmatprep.subr.bf16.mxu1 %v454_v26 }
  0x1b   :  { %250 = vmatpush1.bf16.msra.mxu0 %v456_v27  ;;  %311 = vmatpush1.bf16.msra.mxu1 %v457_v28 }
  0x1c   :  { %251 = vmatprep.subr.bf16.mxu0 %v458_v29  ;;  %312 = vmatprep.subr.bf16.mxu1 %v460_v30 }
  0x1f   :  { %252 = vmatpush1.bf16.msra.mxu0 %v462_v31  ;;  %313 = vmatpush1.bf16.msra.mxu1 %v463_v32 }
  0x22   :  { %270 = vmatmul.mubr.bf16.vlgmr.msra.gmra.mrb[0].mxu0 %v20_v35  ;;  %331 = vmatmul.mubr.bf16.vlgmr.msra.gmra.mrb[0].mxu1 %v20_v35 }
  0x23   :  { %279 = vmatprep.mubr.bf16.mxu0 %v464_v1  ;;  %340 = vmatprep.mubr.bf16.mxu1 %v464_v1 }
  0x2a   :  { %280 = vmatmul.mubr.bf16.gmra.mrb[4].mxu0 %v21_v38  ;;  %341 = vmatmul.mubr.bf16.gmra.mrb[4].mxu1 %v21_v38 }
  0x2b   :  { %289 = vmatprep.mubr.bf16.mxu0 %v464_v1  ;;  %350 = vmatprep.mubr.bf16.mxu1 %v464_v1 }
  0x32   :  { %290 = vmatmul.mubr.bf16.gmra.mrb[8].mxu0 %v22_v40  ;;  %351 = vmatmul.mubr.bf16.gmra.mrb[8].mxu1 %v22_v40 }
  0xf5   :  { %v271_v52 = vpop.f32.mrb[0].mxu0  ;;  %v332_v53 = vpop.f32.mrb[0].mxu1 }
  0xf6   :  { %v272_v54 = vadd.f32 %v271_v52, %v60_v48  ;;  %v333_v55 = vadd.f32 %v332_v53, %v68_v49  ;;  %v273_v56 = vpop.f32.mrb[1].mxu0  ;;  %v334_v57 = vpop.f32.mrb[1].mxu1 }
  0xf7   :  { %v274_v58 = vadd.f32 %v273_v56, %v64_v50  ;;  %v335_v59 = vadd.f32 %v334_v57, %v72_v51  ;;  %v275_v60 = vpop.f32.mrb[2].mxu0  ;;  %v336_v61 = vpop.f32.mrb[2].mxu1 }
  0xf8   :  { %359 = vst [vmem:[%s668_s3] sm:$0xff] %v272_v54  ;;  %361 = vst [vmem:[%s668_s3 + $0x10] sm:$0xff] %v333_v55  ;;  %v276_v62 = vadd.f32 %v275_v60, %v60_v48  ;;  %v337_v63 = vadd.f32 %v336_v61, %v68_v49  ;;  %v277_v0 = vpop.f32.mrb[3].mxu0  ;;  %v338_v1 = vpop.f32.mrb[3].mxu1 }
  0xf9   :  { %360 = vst [vmem:[%s668_s3 + $0x8] sm:$0xff] %v274_v58  ;;  %362 = vst [vmem:[%s668_s3 + $0x18] sm:$0xff] %v335_v59  ;;  %v278_v2 = vadd.f32 %v277_v0, %v64_v50  ;;  %v339_v3 = vadd.f32 %v338_v1, %v72_v51 }
  0xfa   :  { %363 = vst [vmem:[%s668_s3 + $0x20] sm:$0xff] %v276_v62  ;;  %365 = vst [vmem:[%s668_s3 + $0x30] sm:$0xff] %v337_v63 }
  0xfb   :  { %364 = vst [vmem:[%s668_s3 + $0x28] sm:$0xff] %v278_v2  ;;  %366 = vst [vmem:[%s668_s3 + $0x38] sm:$0xff] %v339_v3 }
  0xfd   :  { %v281_v4 = vpop.f32.mrb[4].mxu0  ;;  %v342_v5 = vpop.f32.mrb[4].mxu1 }
  0xfe   :  { %v282_v6 = vadd.f32 %v281_v4, %v60_v48  ;;  %v343_v7 = vadd.f32 %v342_v5, %v68_v49  ;;  %v283_v8 = vpop.f32.mrb[5].mxu0  ;;  %v344_v9 = vpop.f32.mrb[5].mxu1 }
  0xff   :  { %v284_v10 = vadd.f32 %v283_v8, %v64_v50  ;;  %v345_v11 = vadd.f32 %v344_v9, %v72_v51  ;;  %v285_v12 = vpop.f32.mrb[6].mxu0  ;;  %v346_v13 = vpop.f32.mrb[6].mxu1 }
 0x100   :  { %367 = vst [vmem:[%s668_s3 + $0x40] sm:$0xff] %v282_v6  ;;  %369 = vst [vmem:[%s668_s3 + $0x50] sm:$0xff] %v343_v7  ;;  %v286_v14 = vadd.f32 %v285_v12, %v60_v48  ;;  %v347_v15 = vadd.f32 %v346_v13, %v68_v49  ;;  %v287_v16 = vpop.f32.mrb[7].mxu0  ;;  %v348_v17 = vpop.f32.mrb[7].mxu1 }
 0x101   :  { %368 = vst [vmem:[%s668_s3 + $0x48] sm:$0xff] %v284_v10  ;;  %370 = vst [vmem:[%s668_s3 + $0x58] sm:$0xff] %v345_v11  ;;  %v288_v18 = vadd.f32 %v287_v16, %v64_v50  ;;  %v349_v19 = vadd.f32 %v348_v17, %v72_v51 }
 0x102   :  { %371 = vst [vmem:[%s668_s3 + $0x60] sm:$0xff] %v286_v14  ;;  %373 = vst [vmem:[%s668_s3 + $0x70] sm:$0xff] %v347_v15 }
 0x103   :  { %372 = vst [vmem:[%s668_s3 + $0x68] sm:$0xff] %v288_v18  ;;  %374 = vst [vmem:[%s668_s3 + $0x78] sm:$0xff] %v349_v19 }
 0x105   :  { %v291_v20 = vpop.f32.mrb[8].mxu0  ;;  %v352_v21 = vpop.f32.mrb[8].mxu1 }
 0x106   :  { %v292_v22 = vadd.f32 %v291_v20, %v60_v48  ;;  %v353_v23 = vadd.f32 %v352_v21, %v68_v49  ;;  %v293_v24 = vpop.f32.mrb[9].mxu0  ;;  %v354_v25 = vpop.f32.mrb[9].mxu1 }
 0x107   :  { %v294_v26 = vadd.f32 %v293_v24, %v64_v50  ;;  %v355_v27 = vadd.f32 %v354_v25, %v72_v51  ;;  %v295_v28 = vpop.f32.mrb[10].mxu0  ;;  %v356_v29 = vpop.f32.mrb[10].mxu1 }
 0x108   :  { %375 = vst [vmem:[%s668_s3 + $0x80] sm:$0xff] %v292_v22  ;;  %377 = vst [vmem:[%s668_s3 + $0x90] sm:$0xff] %v353_v23  ;;  %v296_v30 = vpop.f32.mrb[11].mxu0  ;;  %v357_v31 = vpop.f32.mrb[11].mxu1 }
 0x109   :  { %376 = vst [vmem:[%s668_s3 + $0x88] sm:$0xff] %v294_v26  ;;  %378 = vst [vmem:[%s668_s3 + $0x98] sm:$0xff] %v355_v27 }

// kernel: drgcn_forward.70
= control target key start
LH: loop header
LB: loop body
LE: loop exit
PB: predicated region body
PF: predicated region fallthrough
CT: control target
= control target key end

     0   :  { %vm17_vm0 = vcmask 39936   ;;  %s89_s0 = inlined_call_operand.vmem [shape: f32[24,5], index: 0, kind: input, shape index: {}]   ;;  %s90_s1 = inlined_call_operand.vmem [shape: f32[24,5], index: 1, kind: output, shape index: {}]  }
   0x1   :  { %v8_v0 = vld [vmem:[%s89_s0] sm:$0xff]  ;;  %v10_v1 = vld [vmem:[%s89_s0 + $0x10] sm:$0xff]  ;;  %v9_v2 = vld [vmem:[%s89_s0 + $0x8] sm:$0xff] }
   0x2   :  { %43 = vtanh.f32 %v8_v0 }
   0x3   :  { %45 = vtanh.f32 %v10_v1 }
   0x4   :  { %47 = vtanh.f32 %v9_v2 }
   0xc   :  { %v44_v3 = vpop.eup %43 }
   0xd   :  { %v46_v4 = vpop.eup %45  ;;  %v14_v5 = vand.u32 2147483647, %v44_v3 }
   0xe   :  { %v48_v6 = vpop.eup %47  ;;  %v16_v7 = vand.u32 2147483647, %v46_v4 }
   0xf   :  { %v18_v8 = vsel %vm17_vm0, %v14_v5, 0.0  ;;  %v15_v9 = vand.u32 2147483647, %v48_v6 }
  0x10   :  { %19 = vadd.xlane.f32.xlu0 %v18_v8  ;;  %v24_v10 = vsel %vm17_vm0, %v16_v7, 0.0 }
  0x11   :  { %25 = vadd.xlane.f32.xlu1 %v24_v10  ;;  %v21_v11 = vsel %vm17_vm0, %v15_v9, 0.0 }
  0x14   :  { %22 = vadd.xlane.f32.xlu0 %v21_v11 }
  0x9d   :  { %v20_v12 = vpop.xlane.xlu0 %19 }
  0x9e   :  { %v27_v13 = vadd.f32 1e-06, %v20_v12  ;;  %v26_v14 = vpop.xlane.xlu1 %25 }
  0x9f   :  { %v29_v15 = vadd.f32 1e-06, %v26_v14 }
  0xa0   :  { %49 = vrcp.f32 %v27_v13 }
  0xa1   :  { %51 = vrcp.f32 %v29_v15  ;;  %v23_v16 = vpop.xlane.xlu0 %22 }
  0xa2   :  { %v28_v17 = vadd.f32 1e-06, %v23_v16 }
  0xa4   :  { %53 = vrcp.f32 %v28_v17 }
  0xaa   :  { %v50_v18 = vpop.eup %49 }
  0xab   :  { %v52_v19 = vpop.eup %51  ;;  %v31_v20 = vmul.f32 %v50_v18, %v44_v3 }
  0xac   :  { %v35_v21 = vmul.f32 %v52_v19, %v46_v4 }
  0xad   :  { %36 = vst.msk [vmem:[%s90_s1] sm:$0xff] %vm17_vm0, %v31_v20 }
  0xae   :  { %v54_v22 = vpop.eup %53  ;;  %38 = vst.msk [vmem:[%s90_s1 + $0x10] sm:$0xff] %vm17_vm0, %v35_v21 }
  0xaf   :  { %v33_v23 = vmul.f32 %v54_v22, %v48_v6 }
  0xb1   :  { %37 = vst.msk [vmem:[%s90_s1 + $0x8] sm:$0xff] %vm17_vm0, %v33_v23 }

// kernel: drgcn_forward.79
= control target key start
LH: loop header
LB: loop body
LE: loop exit
PB: predicated region body
PF: predicated region fallthrough
CT: control target
= control target key end

     0   :  { %v246_v1 = vmov 0   ;;  %v38_v22 = vlaneseq  ;;  %s345_s1 = inlined_call_operand.vmem [shape: bf16[128,256], index: 1, kind: input, shape index: {}]   ;;  %s346_s0 = inlined_call_operand.vmem [shape: f32[24,128], index: 0, kind: input, shape index: {}]   ;;  %s347_s2 = inlined_call_operand.vmem [shape: f32[1,256], index: 2, kind: input, shape index: {}]   ;;  %s348_s3 = inlined_call_operand.vmem [shape: f32[24,256], index: 3, kind: output, shape index: {}]  }
   0x1   :  { %v222_v0 = vld [vmem:[%s345_s1 + $0x4] ss:$8 sps:$4 sm:$0xff]   ;;  %160 = vmatprep.mubr.bf16.mxu0 %v246_v1  ;;  %170 = vmatprep.mubr.bf16.mxu1 %v246_v1  ;;  %v224_v2 = vld [vmem:[%s345_s1] ss:$8 sps:$4 sm:$0xff]   ;;  %v225_v3 = vld [vmem:[%s345_s1 + $0x14] ss:$8 sps:$4 sm:$0xff]  }
   0x2   :  { %128 = vmatprep.subr.bf16.mxu0 %v222_v0  ;;  %205 = vmatprep.subr.bf16.mxu1 %v222_v0  ;;  %v227_v4 = vld [vmem:[%s345_s1 + $0x10] ss:$8 sps:$4 sm:$0xff]   ;;  %v228_v5 = vld [vmem:[%s345_s1 + $0x24] ss:$8 sps:$4 sm:$0xff]   ;;  %v230_v6 = vld [vmem:[%s345_s1 + $0x20] ss:$8 sps:$4 sm:$0xff]  }
   0x3   :  { %129 = vmatpush1.bf16.msra.mxu0 %v224_v2  ;;  %213 = vmatpush1.bf16.msra.mxu1 %v224_v2  ;;  %v231_v7 = vld [vmem:[%s345_s1 + $0x34] ss:$8 sps:$4 sm:$0xff]   ;;  %v233_v8 = vld [vmem:[%s345_s1 + $0x30] ss:$8 sps:$4 sm:$0xff]   ;;  %v234_v9 = vld [vmem:[%s345_s1 + $0x44] ss:$8 sps:$4 sm:$0xff]  }
   0x4   :  { %130 = vmatprep.subr.bf16.mxu0 %v225_v3  ;;  %206 = vmatprep.subr.bf16.mxu1 %v225_v3  ;;  %v236_v10 = vld [vmem:[%s345_s1 + $0x40] ss:$8 sps:$4 sm:$0xff]   ;;  %v237_v11 = vld [vmem:[%s345_s1 + $0x54] ss:$8 sps:$4 sm:$0xff]   ;;  %v239_v12 = vld [vmem:[%s345_s1 + $0x50] ss:$8 sps:$4 sm:$0xff]  }
   0x5   :  { %v240_v13 = vld [vmem:[%s345_s1 + $0x64] ss:$8 sps:$4 sm:$0xff]   ;;  %v242_v14 = vld [vmem:[%s345_s1 + $0x60] ss:$8 sps:$4 sm:$0xff]   ;;  %v243_v15 = vld [vmem:[%s345_s1 + $0x74] ss:$8 sps:$4 sm:$0xff]  }
   0x6   :  { %v245_v16 = vld [vmem:[%s345_s1 + $0x70] ss:$8 sps:$4 sm:$0xff]   ;;  %v15_v17 = vld [vmem:[%s346_s0] sm:$0xff]  ;;  %v16_v18 = vld [vmem:[%s346_s0 + $0x8] sm:$0xff]  ;;  %v39_v23 = vshrl.u32 %v38_v22, 7 }
   0x7   :  { %131 = vmatpush1.bf16.msra.mxu0 %v227_v4  ;;  %214 = vmatpush1.bf16.msra.mxu1 %v227_v4  ;;  %v17_v19 = vld [vmem:[%s346_s0 + $0x10] sm:$0xff]  ;;  %v18_v20 = vpack.c.bf16 %v16_v18, %v15_v17  ;;  %v36_v25 = vld [vmem:[%s347_s2] sm:$0x3] }
   0x8   :  { %132 = vmatprep.subr.bf16.mxu0 %v228_v5  ;;  %207 = vmatprep.subr.bf16.mxu1 %v228_v5  ;;  %v19_v21 = vpack.c.bf16 %v17_v19, %v17_v19  ;;  %v40_v24 = vsub.s32 0, %v39_v23  ;;  %v44_v26 = vsub.s32 1, %v39_v23 }
   0xa   :  { %v41_v27 = vrot.slane %v36_v25, %v40_v24  ;;  %v45_v28 = vrot.slane %v36_v25, %v44_v26 }
   0xb   :  { %133 = vmatpush1.bf16.msra.mxu0 %v230_v6  ;;  %215 = vmatpush1.bf16.msra.mxu1 %v230_v6 }
   0xc   :  { %134 = vmatprep.subr.bf16.mxu0 %v231_v7  ;;  %208 = vmatprep.subr.bf16.mxu1 %v231_v7 }
   0xf   :  { %135 = vmatpush1.bf16.msra.mxu0 %v233_v8  ;;  %216 = vmatpush1.bf16.msra.mxu1 %v233_v8 }
  0x10   :  { %136 = vmatprep.subr.bf16.mxu0 %v234_v9  ;;  %209 = vmatprep.subr.bf16.mxu1 %v234_v9 }
  0x13   :  { %137 = vmatpush1.bf16.msra.mxu0 %v236_v10  ;;  %217 = vmatpush1.bf16.msra.mxu1 %v236_v10 }
  0x14   :  { %138 = vmatprep.subr.bf16.mxu0 %v237_v11  ;;  %210 = vmatprep.subr.bf16.mxu1 %v237_v11 }
  0x17   :  { %139 = vmatpush1.bf16.msra.mxu0 %v239_v12  ;;  %218 = vmatpush1.bf16.msra.mxu1 %v239_v12 }
  0x18   :  { %140 = vmatprep.subr.bf16.mxu0 %v240_v13  ;;  %211 = vmatprep.subr.bf16.mxu1 %v240_v13 }
  0x1b   :  { %141 = vmatpush1.bf16.msra.mxu0 %v242_v14  ;;  %219 = vmatpush1.bf16.msra.mxu1 %v242_v14 }
  0x1c   :  { %142 = vmatprep.subr.bf16.mxu0 %v243_v15  ;;  %212 = vmatprep.subr.bf16.mxu1 %v243_v15 }
  0x1f   :  { %143 = vmatpush1.bf16.msra.mxu0 %v245_v16  ;;  %220 = vmatpush1.bf16.msra.mxu1 %v245_v16 }
  0x22   :  { %161 = vmatmul.mubr.bf16.vlgmr.msra.gmra.mrb[0].mxu0 %v18_v20  ;;  %171 = vmatmul.mubr.bf16.vlgmr.msra.gmra.mrb[0].mxu1 %v19_v21 }
  0xf5   :  { %v162_v29 = vpop.f32.mrb[0].mxu0  ;;  %v172_v30 = vpop.f32.mrb[0].mxu1 }
  0xf6   :  { %v163_v31 = vadd.f32 %v162_v29, %v41_v27  ;;  %v173_v32 = vadd.f32 %v172_v30, %v41_v27  ;;  %v164_v33 = vpop.f32.mrb[1].mxu0  ;;  %v174_v34 = vpop.f32.mrb[1].mxu1 }
  0xf7   :  { %v165_v35 = vadd.f32 %v164_v33, %v45_v28  ;;  %v175_v36 = vadd.f32 %v174_v34, %v45_v28  ;;  %v166_v37 = vpop.f32.mrb[2].mxu0  ;;  %v176_v38 = vpop.f32.mrb[2].mxu1 }
  0xf8   :  { %179 = vst [vmem:[%s348_s3] sm:$0xff] %v163_v31  ;;  %183 = vst [vmem:[%s348_s3 + $0x20] sm:$0xff] %v173_v32  ;;  %v167_v39 = vadd.f32 %v166_v37, %v41_v27  ;;  %v168_v40 = vpop.f32.mrb[3].mxu0  ;;  %v177_v41 = vpop.f32.mrb[3].mxu1 }
  0xf9   :  { %180 = vst [vmem:[%s348_s3 + $0x8] sm:$0xff] %v165_v35  ;;  %184 = vst [vmem:[%s348_s3 + $0x28] sm:$0xff] %v175_v36  ;;  %v169_v42 = vadd.f32 %v168_v40, %v45_v28 }
  0xfa   :  { %181 = vst [vmem:[%s348_s3 + $0x10] sm:$0xff] %v167_v39 }
  0xfb   :  { %182 = vst [vmem:[%s348_s3 + $0x18] sm:$0xff] %v169_v42 }

// kernel: drgcn_forward.80
= control target key start
LH: loop header
LB: loop body
LE: loop exit
PB: predicated region body
PF: predicated region fallthrough
CT: control target
= control target key end

     0   :  { %v802_v3 = vmov 0   ;;  %s1197_s1 = inlined_call_operand.vmem [shape: bf16[128,1024], index: 1, kind: input, shape index: {}]   ;;  %s1198_s0 = inlined_call_operand.vmem [shape: f32[40,128], index: 0, kind: input, shape index: {}]   ;;  %s1199_s2 = inlined_call_operand.vmem [shape: f32[1,1024], index: 2, kind: input, shape index: {}]   ;;  %s1200_s3 = inlined_call_operand.vmem [shape: f32[40,1024], index: 3, kind: output, shape index: {}]  }
   0x1   :  { %v23_v0 = vld [vmem:[%s1197_s1] sm:$0xff]  ;;  %v24_v2 = vld [vmem:[%s1197_s1 + $0x8] sm:$0xff]  ;;  %481 = vmatprep.mubr.bf16.mxu0 %v802_v3  ;;  %542 = vmatprep.mubr.bf16.mxu1 %v802_v3  ;;  %v25_v63 = vld [vmem:[%s1197_s1 + $0x10] sm:$0xff] }
   0x2   :  { %v27_v1 = vld [vmem:[%s1197_s1 + $0x20] sm:$0xff]  ;;  %v28_v5 = vld [vmem:[%s1197_s1 + $0x28] sm:$0xff] }
   0x3   :  { %v738_v4 = vcombine.high %v23_v0, %v27_v1  ;;  %v737_v6 = vcombine.low %v23_v0, %v27_v1  ;;  %v31_v7 = vld [vmem:[%s1197_s1 + $0x40] sm:$0xff]  ;;  %v740_v9 = vcombine.high %v24_v2, %v28_v5  ;;  %v739_v10 = vcombine.low %v24_v2, %v28_v5  ;;  %v32_v12 = vld [vmem:[%s1197_s1 + $0x48] sm:$0xff]  ;;  %v29_v0 = vld [vmem:[%s1197_s1 + $0x30] sm:$0xff] }
   0x4   :  { %v35_v8 = vld [vmem:[%s1197_s1 + $0x60] sm:$0xff]  ;;  %v36_v13 = vld [vmem:[%s1197_s1 + $0x68] sm:$0xff]  ;;  %v26_v1 = vld [vmem:[%s1197_s1 + $0x18] sm:$0xff] }
   0x5   :  { %v746_v11 = vcombine.high %v31_v7, %v35_v8  ;;  %v39_v14 = vld [vmem:[%s1197_s1 + $0x80] sm:$0xff]  ;;  %449 = vmatprep.subr.bf16.mxu0 %v738_v4  ;;  %v748_v15 = vcombine.high %v32_v12, %v36_v13  ;;  %v40_v17 = vld [vmem:[%s1197_s1 + $0x88] sm:$0xff]  ;;  %510 = vmatprep.subr.bf16.mxu1 %v740_v9  ;;  %v745_v19 = vcombine.low %v31_v7, %v35_v8  ;;  %v30_v2 = vld [vmem:[%s1197_s1 + $0x38] sm:$0xff] }
   0x6   :  { %v43_v16 = vld [vmem:[%s1197_s1 + $0xa0] sm:$0xff]  ;;  %v44_v18 = vld [vmem:[%s1197_s1 + $0xa8] sm:$0xff]  ;;  %450 = vmatpush1.bf16.msra.mxu0 %v737_v6  ;;  %511 = vmatpush1.bf16.msra.mxu1 %v739_v10  ;;  %v747_v20 = vcombine.low %v32_v12, %v36_v13  ;;  %v742_v8 = vcombine.high %v25_v63, %v29_v0  ;;  %v744_v9 = vcombine.high %v26_v1, %v30_v2  ;;  %v33_v10 = vld [vmem:[%s1197_s1 + $0x50] sm:$0xff] }
   0x7   :  { %451 = vmatprep.subr.bf16.mxu0 %v746_v11  ;;  %v754_v21 = vcombine.high %v39_v14, %v43_v16  ;;  %512 = vmatprep.subr.bf16.mxu1 %v748_v15  ;;  %v756_v22 = vcombine.high %v40_v17, %v44_v18  ;;  %v47_v23 = vld [vmem:[%s1197_s1 + $0xc0] sm:$0xff]  ;;  %v48_v25 = vld [vmem:[%s1197_s1 + $0xc8] sm:$0xff]  ;;  %v753_v27 = vcombine.low %v39_v14, %v43_v16  ;;  %v37_v11 = vld [vmem:[%s1197_s1 + $0x70] sm:$0xff] }
   0x8   :  { %v51_v24 = vld [vmem:[%s1197_s1 + $0xe0] sm:$0xff]  ;;  %v52_v26 = vld [vmem:[%s1197_s1 + $0xe8] sm:$0xff]  ;;  %v755_v28 = vcombine.low %v40_v17, %v44_v18  ;;  %v34_v13 = vld [vmem:[%s1197_s1 + $0x58] sm:$0xff]  ;;  %v741_v15 = vcombine.low %v25_v63, %v29_v0  ;;  %v743_v16 = vcombine.low %v26_v1, %v30_v2  ;;  %v750_v17 = vcombine.high %v33_v10, %v37_v11 }
   0x9   :  { %v762_v29 = vcombine.high %v47_v23, %v51_v24  ;;  %v764_v30 = vcombine.high %v48_v25, %v52_v26  ;;  %v55_v31 = vld [vmem:[%s1197_s1 + $0x100] sm:$0xff]  ;;  %v56_v33 = vld [vmem:[%s1197_s1 + $0x108] sm:$0xff]  ;;  %v761_v35 = vcombine.low %v47_v23, %v51_v24  ;;  %v763_v36 = vcombine.low %v48_v25, %v52_v26  ;;  %v38_v14 = vld [vmem:[%s1197_s1 + $0x78] sm:$0xff] }
   0xa   :  { %452 = vmatpush1.bf16.msra.mxu0 %v745_v19  ;;  %513 = vmatpush1.bf16.msra.mxu1 %v747_v20  ;;  %v59_v32 = vld [vmem:[%s1197_s1 + $0x120] sm:$0xff]  ;;  %v60_v34 = vld [vmem:[%s1197_s1 + $0x128] sm:$0xff]  ;;  %v752_v18 = vcombine.high %v34_v13, %v38_v14  ;;  %v41_v19 = vld [vmem:[%s1197_s1 + $0x90] sm:$0xff]  ;;  %v749_v23 = vcombine.low %v33_v10, %v37_v11  ;;  %v751_v26 = vcombine.low %v34_v13, %v38_v14  ;;  %v89_v11 = vlaneseq }
   0xb   :  { %453 = vmatprep.subr.bf16.mxu0 %v754_v21  ;;  %514 = vmatprep.subr.bf16.mxu1 %v756_v22  ;;  %v770_v37 = vcombine.high %v55_v31, %v59_v32  ;;  %v772_v38 = vcombine.high %v56_v33, %v60_v34  ;;  %v63_v39 = vld [vmem:[%s1197_s1 + $0x140] sm:$0xff]  ;;  %v64_v41 = vld [vmem:[%s1197_s1 + $0x148] sm:$0xff]  ;;  %v769_v43 = vcombine.low %v55_v31, %v59_v32  ;;  %v45_v20 = vld [vmem:[%s1197_s1 + $0xb0] sm:$0xff] }
   0xc   :  { %v67_v40 = vld [vmem:[%s1197_s1 + $0x160] sm:$0xff]  ;;  %v68_v42 = vld [vmem:[%s1197_s1 + $0x168] sm:$0xff]  ;;  %v771_v44 = vcombine.low %v56_v33, %v60_v34  ;;  %v42_v21 = vld [vmem:[%s1197_s1 + $0x98] sm:$0xff]  ;;  %v757_v34 = vcombine.low %v41_v19, %v45_v20  ;;  %v1054_v13 = vshrl.u32 %v89_v11, 7 }
   0xd   :  { %v778_v45 = vcombine.high %v63_v39, %v67_v40  ;;  %v780_v46 = vcombine.high %v64_v41, %v68_v42  ;;  %v71_v47 = vld [vmem:[%s1197_s1 + $0x180] sm:$0xff]  ;;  %v72_v49 = vld [vmem:[%s1197_s1 + $0x188] sm:$0xff]  ;;  %v777_v51 = vcombine.low %v63_v39, %v67_v40  ;;  %v779_v52 = vcombine.low %v64_v41, %v68_v42  ;;  %v46_v22 = vld [vmem:[%s1197_s1 + $0xb8] sm:$0xff] }
   0xe   :  { %454 = vmatpush1.bf16.msra.mxu0 %v753_v27  ;;  %515 = vmatpush1.bf16.msra.mxu1 %v755_v28  ;;  %v75_v48 = vld [vmem:[%s1197_s1 + $0x1a0] sm:$0xff]  ;;  %v76_v50 = vld [vmem:[%s1197_s1 + $0x1a8] sm:$0xff]  ;;  %v17_v24 = vld [vmem:[%s1198_s0 + $0x10] sm:$0xff]  ;;  %v758_v27 = vcombine.high %v41_v19, %v45_v20  ;;  %v760_v28 = vcombine.high %v42_v21, %v46_v22  ;;  %v91_v14 = vsub.s32 0, %v1054_v13 }
   0xf   :  { %455 = vmatprep.subr.bf16.mxu0 %v762_v29  ;;  %516 = vmatprep.subr.bf16.mxu1 %v764_v30  ;;  %v786_v53 = vcombine.high %v71_v47, %v75_v48  ;;  %v788_v54 = vcombine.high %v72_v49, %v76_v50  ;;  %v79_v55 = vld [vmem:[%s1197_s1 + $0x1c0] sm:$0xff]  ;;  %v80_v57 = vld [vmem:[%s1197_s1 + $0x1c8] sm:$0xff]  ;;  %v785_v59 = vcombine.low %v71_v47, %v75_v48  ;;  %v18_v25 = vld [vmem:[%s1198_s0 + $0x18] sm:$0xff] }
  0x10   :  { %v83_v56 = vld [vmem:[%s1197_s1 + $0x1e0] sm:$0xff]  ;;  %v84_v58 = vld [vmem:[%s1197_s1 + $0x1e8] sm:$0xff]  ;;  %v787_v60 = vcombine.low %v72_v49, %v76_v50  ;;  %v49_v29 = vld [vmem:[%s1197_s1 + $0xd0] sm:$0xff]  ;;  %v987_v33 = vpack.c.bf16 %v18_v25, %v17_v24 }
  0x11   :  { %v794_v61 = vcombine.high %v79_v55, %v83_v56  ;;  %v796_v62 = vcombine.high %v80_v57, %v84_v58  ;;  %v793_v4 = vcombine.low %v79_v55, %v83_v56  ;;  %v15_v5 = vld [vmem:[%s1198_s0] sm:$0xff]  ;;  %v16_v6 = vld [vmem:[%s1198_s0 + $0x8] sm:$0xff]  ;;  %v795_v7 = vcombine.low %v80_v57, %v84_v58  ;;  %v53_v30 = vld [vmem:[%s1197_s1 + $0xf0] sm:$0xff] }
  0x12   :  { %456 = vmatpush1.bf16.msra.mxu0 %v761_v35  ;;  %517 = vmatpush1.bf16.msra.mxu1 %v763_v36  ;;  %v945_v12 = vpack.c.bf16 %v16_v6, %v15_v5  ;;  %v50_v31 = vld [vmem:[%s1197_s1 + $0xd8] sm:$0xff]  ;;  %v759_v35 = vcombine.low %v42_v21, %v46_v22  ;;  %v766_v36 = vcombine.high %v49_v29, %v53_v30  ;;  %v61_v39 = vld [vmem:[%s1197_s1 + $0x130] sm:$0xff] }
  0x13   :  { %457 = vmatprep.subr.bf16.mxu0 %v770_v37  ;;  %518 = vmatprep.subr.bf16.mxu1 %v772_v38  ;;  %v54_v32 = vld [vmem:[%s1197_s1 + $0xf8] sm:$0xff]  ;;  %v57_v38 = vld [vmem:[%s1197_s1 + $0x110] sm:$0xff]  ;;  %v765_v42 = vcombine.low %v49_v29, %v53_v30 }
  0x14   :  { %v768_v37 = vcombine.high %v50_v31, %v54_v32  ;;  %v58_v40 = vld [vmem:[%s1197_s1 + $0x118] sm:$0xff]  ;;  %v65_v47 = vld [vmem:[%s1197_s1 + $0x150] sm:$0xff] }
  0x15   :  { %v62_v41 = vld [vmem:[%s1197_s1 + $0x138] sm:$0xff]  ;;  %v69_v48 = vld [vmem:[%s1197_s1 + $0x170] sm:$0xff] }
  0x16   :  { %458 = vmatpush1.bf16.msra.mxu0 %v769_v43  ;;  %519 = vmatpush1.bf16.msra.mxu1 %v771_v44  ;;  %v19_v43 = vld [vmem:[%s1198_s0 + $0x20] sm:$0xff]  ;;  %v767_v44 = vcombine.low %v50_v31, %v54_v32  ;;  %v66_v49 = vld [vmem:[%s1197_s1 + $0x158] sm:$0xff]  ;;  %v73_v56 = vld [vmem:[%s1197_s1 + $0x190] sm:$0xff] }
  0x17   :  { %459 = vmatprep.subr.bf16.mxu0 %v778_v45  ;;  %520 = vmatprep.subr.bf16.mxu1 %v780_v46  ;;  %v774_v45 = vcombine.high %v57_v38, %v61_v39  ;;  %v776_v46 = vcombine.high %v58_v40, %v62_v41  ;;  %v70_v50 = vld [vmem:[%s1197_s1 + $0x178] sm:$0xff]  ;;  %v77_v57 = vld [vmem:[%s1197_s1 + $0x1b0] sm:$0xff] }
  0x18   :  { %v784_v55 = vcombine.high %v66_v49, %v70_v50  ;;  %v74_v58 = vld [vmem:[%s1197_s1 + $0x198] sm:$0xff]  ;;  %v81_v0 = vld [vmem:[%s1197_s1 + $0x1d0] sm:$0xff]  ;;  %v789_v5 = vcombine.low %v73_v56, %v77_v57 }
  0x19   :  { %v85_v1 = vld [vmem:[%s1197_s1 + $0x1f0] sm:$0xff]  ;;  %v82_v2 = vld [vmem:[%s1197_s1 + $0x1d8] sm:$0xff] }
  0x1a   :  { %460 = vmatpush1.bf16.msra.mxu0 %v777_v51  ;;  %521 = vmatpush1.bf16.msra.mxu1 %v779_v52  ;;  %v22_v51 = vpack.c.bf16 %v19_v43, %v19_v43  ;;  %v773_v52 = vcombine.low %v57_v38, %v61_v39 }
  0x1b   :  { %461 = vmatprep.subr.bf16.mxu0 %v786_v53  ;;  %522 = vmatprep.subr.bf16.mxu1 %v788_v54  ;;  %v775_v53 = vcombine.low %v58_v40, %v62_v41  ;;  %v782_v54 = vcombine.high %v65_v47, %v69_v48 }
  0x1e   :  { %462 = vmatpush1.bf16.msra.mxu0 %v785_v59  ;;  %523 = vmatpush1.bf16.msra.mxu1 %v787_v60  ;;  %v78_v59 = vld [vmem:[%s1197_s1 + $0x1b8] sm:$0xff]  ;;  %v781_v60 = vcombine.low %v65_v47, %v69_v48 }
  0x1f   :  { %463 = vmatprep.subr.bf16.mxu0 %v794_v61  ;;  %524 = vmatprep.subr.bf16.mxu1 %v796_v62  ;;  %v783_v61 = vcombine.low %v66_v49, %v70_v50  ;;  %v790_v62 = vcombine.high %v73_v56, %v77_v57  ;;  %v792_v63 = vcombine.high %v74_v58, %v78_v59 }
  0x20   :  { %v791_v6 = vcombine.low %v74_v58, %v78_v59 }
  0x22   :  { %464 = vmatpush1.bf16.msra.mxu0 %v793_v4  ;;  %525 = vmatpush1.bf16.msra.mxu1 %v795_v7  ;;  %v86_v4 = vld [vmem:[%s1197_s1 + $0x1f8] sm:$0xff]  ;;  %v798_v7 = vcombine.high %v81_v0, %v85_v1 }
  0x23   :  { %571 = vmatprep.subr.bf16.mxu0 %v742_v8  ;;  %632 = vmatprep.subr.bf16.mxu1 %v744_v9  ;;  %v800_v8 = vcombine.high %v82_v2, %v86_v4  ;;  %v797_v9 = vcombine.low %v81_v0, %v85_v1  ;;  %v799_v10 = vcombine.low %v82_v2, %v86_v4  ;;  %v107_v1 = vsub.s32 4, %v1054_v13 }
  0x24   :  { %v115_v2 = vsub.s32 6, %v1054_v13  ;;  %v111_v4 = vsub.s32 5, %v1054_v13 }
  0x25   :  { %482 = vmatmul.mubr.bf16.vlgmr.msra.gmra.mrb[0].mxu0 %v945_v12  ;;  %543 = vmatmul.mubr.bf16.vlgmr.msra.gmra.mrb[0].mxu1 %v945_v12 }
  0x26   :  { %572 = vmatpush1.bf16.msra.mxu0 %v741_v15  ;;  %633 = vmatpush1.bf16.msra.mxu1 %v743_v16  ;;  %v99_v15 = vsub.s32 2, %v1054_v13  ;;  %v95_v16 = vsub.s32 1, %v1054_v13 }
  0x27   :  { %573 = vmatprep.subr.bf16.mxu0 %v750_v17  ;;  %634 = vmatprep.subr.bf16.mxu1 %v752_v18  ;;  %v103_v17 = vsub.s32 3, %v1054_v13 }
  0x28   :  { %491 = vmatprep.mubr.bf16.mxu0 %v802_v3  ;;  %552 = vmatprep.mubr.bf16.mxu1 %v802_v3 }
  0x2a   :  { %574 = vmatpush1.bf16.msra.mxu0 %v749_v23  ;;  %635 = vmatpush1.bf16.msra.mxu1 %v751_v26 }
  0x2b   :  { %575 = vmatprep.subr.bf16.mxu0 %v758_v27  ;;  %636 = vmatprep.subr.bf16.mxu1 %v760_v28 }
  0x2d   :  { %492 = vmatmul.mubr.bf16.gmra.mrb[4].mxu0 %v987_v33  ;;  %553 = vmatmul.mubr.bf16.gmra.mrb[4].mxu1 %v987_v33 }
  0x2e   :  { %576 = vmatpush1.bf16.msra.mxu0 %v757_v34  ;;  %637 = vmatpush1.bf16.msra.mxu1 %v759_v35 }
  0x2f   :  { %577 = vmatprep.subr.bf16.mxu0 %v766_v36  ;;  %638 = vmatprep.subr.bf16.mxu1 %v768_v37 }
  0x30   :  { %501 = vmatprep.mubr.bf16.mxu0 %v802_v3  ;;  %562 = vmatprep.mubr.bf16.mxu1 %v802_v3 }
  0x32   :  { %578 = vmatpush1.bf16.msra.mxu0 %v765_v42  ;;  %639 = vmatpush1.bf16.msra.mxu1 %v767_v44 }
  0x33   :  { %579 = vmatprep.subr.bf16.mxu0 %v774_v45  ;;  %640 = vmatprep.subr.bf16.mxu1 %v776_v46 }
  0x35   :  { %502 = vmatmul.mubr.bf16.gmra.mrb[8].mxu0 %v22_v51  ;;  %563 = vmatmul.mubr.bf16.gmra.mrb[8].mxu1 %v22_v51 }
  0x36   :  { %580 = vmatpush1.bf16.msra.mxu0 %v773_v52  ;;  %641 = vmatpush1.bf16.msra.mxu1 %v775_v53 }
  0x37   :  { %581 = vmatprep.subr.bf16.mxu0 %v782_v54  ;;  %642 = vmatprep.subr.bf16.mxu1 %v784_v55 }
  0x38   :  { %603 = vmatprep.mubr.bf16.mxu0 %v802_v3  ;;  %664 = vmatprep.mubr.bf16.mxu1 %v802_v3 }
  0x3a   :  { %582 = vmatpush1.bf16.msra.mxu0 %v781_v60  ;;  %643 = vmatpush1.bf16.msra.mxu1 %v783_v61 }
  0x3b   :  { %583 = vmatprep.subr.bf16.mxu0 %v790_v62  ;;  %644 = vmatprep.subr.bf16.mxu1 %v792_v63 }
  0x3e   :  { %584 = vmatpush1.bf16.msra.mxu0 %v789_v5  ;;  %645 = vmatpush1.bf16.msra.mxu1 %v791_v6  ;;  %v119_v5 = vsub.s32 7, %v1054_v13 }
  0x3f   :  { %585 = vmatprep.subr.bf16.mxu0 %v798_v7  ;;  %646 = vmatprep.subr.bf16.mxu1 %v800_v8 }
  0x42   :  { %586 = vmatpush1.bf16.msra.mxu0 %v797_v9  ;;  %647 = vmatpush1.bf16.msra.mxu1 %v799_v10 }
  0x45   :  { %604 = vmatmul.mubr.bf16.vlgmr.msra.gmra.mrb[12].mxu0 %v945_v12  ;;  %665 = vmatmul.mubr.bf16.vlgmr.msra.gmra.mrb[12].mxu1 %v945_v12  ;;  %v1060_v12 = vld [vmem:[%s1199_s2] sm:$0xff] }
  0x46   :  { %613 = vmatprep.mubr.bf16.mxu0 %v802_v3  ;;  %674 = vmatprep.mubr.bf16.mxu1 %v802_v3  ;;  %v100_v18 = vrot.slane %v1060_v12, %v99_v15  ;;  %v96_v19 = vrot.slane %v1060_v12, %v95_v16  ;;  %v104_v20 = vrot.slane %v1060_v12, %v103_v17 }
  0x47   :  { %v108_v6 = vrot.slane %v1060_v12, %v107_v1  ;;  %v116_v7 = vrot.slane %v1060_v12, %v115_v2  ;;  %v112_v8 = vrot.slane %v1060_v12, %v111_v4  ;;  %v120_v9 = vrot.slane %v1060_v12, %v119_v5 }
  0x4d   :  { %614 = vmatmul.mubr.bf16.gmra.mrb[16].mxu0 %v987_v33  ;;  %675 = vmatmul.mubr.bf16.gmra.mrb[16].mxu1 %v987_v33 }
  0x4e   :  { %623 = vmatprep.mubr.bf16.mxu0 %v802_v3  ;;  %684 = vmatprep.mubr.bf16.mxu1 %v802_v3  ;;  %v92_v3 = vrot.slane %v1060_v12, %v91_v14 }
  0x55   :  { %624 = vmatmul.mubr.bf16.gmra.mrb[20].mxu0 %v22_v51  ;;  %685 = vmatmul.mubr.bf16.gmra.mrb[20].mxu1 %v22_v51 }
  0xf8   :  { %v483_v21 = vpop.f32.mrb[0].mxu0  ;;  %v544_v23 = vpop.f32.mrb[0].mxu1 }
  0xf9   :  { %v484_v22 = vadd.f32 %v483_v21, %v92_v3  ;;  %v485_v24 = vpop.f32.mrb[1].mxu0  ;;  %v545_v25 = vadd.f32 %v544_v23, %v100_v18  ;;  %v546_v27 = vpop.f32.mrb[1].mxu1 }
  0xfa   :  { %v486_v26 = vadd.f32 %v485_v24, %v96_v19  ;;  %v487_v28 = vpop.f32.mrb[2].mxu0  ;;  %v547_v29 = vadd.f32 %v546_v27, %v104_v20  ;;  %v548_v31 = vpop.f32.mrb[2].mxu1 }
  0xfb   :  { %693 = vst [vmem:[%s1200_s3] sm:$0xff] %v484_v22  ;;  %v488_v30 = vadd.f32 %v487_v28, %v92_v3  ;;  %v489_v32 = vpop.f32.mrb[3].mxu0  ;;  %695 = vst [vmem:[%s1200_s3 + $0x10] sm:$0xff] %v545_v25  ;;  %v549_v33 = vadd.f32 %v548_v31, %v100_v18  ;;  %v550_v35 = vpop.f32.mrb[3].mxu1 }
  0xfc   :  { %694 = vst [vmem:[%s1200_s3 + $0x8] sm:$0xff] %v486_v26  ;;  %v490_v34 = vadd.f32 %v489_v32, %v96_v19  ;;  %696 = vst [vmem:[%s1200_s3 + $0x18] sm:$0xff] %v547_v29  ;;  %v551_v36 = vadd.f32 %v550_v35, %v104_v20 }
  0xfd   :  { %701 = vst [vmem:[%s1200_s3 + $0x40] sm:$0xff] %v488_v30  ;;  %703 = vst [vmem:[%s1200_s3 + $0x50] sm:$0xff] %v549_v33 }
  0xfe   :  { %702 = vst [vmem:[%s1200_s3 + $0x48] sm:$0xff] %v490_v34  ;;  %704 = vst [vmem:[%s1200_s3 + $0x58] sm:$0xff] %v551_v36 }
 0x100   :  { %v493_v37 = vpop.f32.mrb[4].mxu0  ;;  %v554_v39 = vpop.f32.mrb[4].mxu1 }
 0x101   :  { %v494_v38 = vadd.f32 %v493_v37, %v92_v3  ;;  %v495_v40 = vpop.f32.mrb[5].mxu0  ;;  %v555_v41 = vadd.f32 %v554_v39, %v100_v18  ;;  %v556_v43 = vpop.f32.mrb[5].mxu1 }
 0x102   :  { %v496_v42 = vadd.f32 %v495_v40, %v96_v19  ;;  %v497_v44 = vpop.f32.mrb[6].mxu0  ;;  %v557_v45 = vadd.f32 %v556_v43, %v104_v20  ;;  %v558_v47 = vpop.f32.mrb[6].mxu1 }
 0x103   :  { %709 = vst [vmem:[%s1200_s3 + $0x80] sm:$0xff] %v494_v38  ;;  %v498_v46 = vadd.f32 %v497_v44, %v92_v3  ;;  %v499_v48 = vpop.f32.mrb[7].mxu0  ;;  %711 = vst [vmem:[%s1200_s3 + $0x90] sm:$0xff] %v555_v41  ;;  %v559_v49 = vadd.f32 %v558_v47, %v100_v18  ;;  %v560_v51 = vpop.f32.mrb[7].mxu1 }
 0x104   :  { %710 = vst [vmem:[%s1200_s3 + $0x88] sm:$0xff] %v496_v42  ;;  %v500_v50 = vadd.f32 %v499_v48, %v96_v19  ;;  %712 = vst [vmem:[%s1200_s3 + $0x98] sm:$0xff] %v557_v45  ;;  %v561_v52 = vadd.f32 %v560_v51, %v104_v20 }
 0x105   :  { %717 = vst [vmem:[%s1200_s3 + $0xc0] sm:$0xff] %v498_v46  ;;  %719 = vst [vmem:[%s1200_s3 + $0xd0] sm:$0xff] %v559_v49 }
 0x106   :  { %718 = vst [vmem:[%s1200_s3 + $0xc8] sm:$0xff] %v500_v50  ;;  %720 = vst [vmem:[%s1200_s3 + $0xd8] sm:$0xff] %v561_v52 }
 0x108   :  { %v503_v53 = vpop.f32.mrb[8].mxu0  ;;  %v564_v55 = vpop.f32.mrb[8].mxu1 }
 0x109   :  { %v504_v54 = vadd.f32 %v503_v53, %v92_v3  ;;  %v505_v56 = vpop.f32.mrb[9].mxu0  ;;  %v565_v57 = vadd.f32 %v564_v55, %v100_v18  ;;  %v566_v59 = vpop.f32.mrb[9].mxu1 }
 0x10a   :  { %v506_v58 = vadd.f32 %v505_v56, %v96_v19  ;;  %v507_v60 = vpop.f32.mrb[10].mxu0  ;;  %v567_v61 = vadd.f32 %v566_v59, %v104_v20  ;;  %v568_v62 = vpop.f32.mrb[10].mxu1 }
 0x10b   :  { %725 = vst [vmem:[%s1200_s3 + $0x100] sm:$0xff] %v504_v54  ;;  %v508_v63 = vpop.f32.mrb[11].mxu0  ;;  %727 = vst [vmem:[%s1200_s3 + $0x110] sm:$0xff] %v565_v57  ;;  %v569_v0 = vpop.f32.mrb[11].mxu1 }
 0x10c   :  { %726 = vst [vmem:[%s1200_s3 + $0x108] sm:$0xff] %v506_v58  ;;  %728 = vst [vmem:[%s1200_s3 + $0x118] sm:$0xff] %v567_v61 }
 0x118   :  { %v605_v10 = vpop.f32.mrb[12].mxu0  ;;  %v666_v14 = vpop.f32.mrb[12].mxu1 }
 0x119   :  { %v606_v11 = vadd.f32 %v605_v10, %v108_v6  ;;  %v607_v15 = vpop.f32.mrb[13].mxu0  ;;  %v667_v16 = vadd.f32 %v666_v14, %v116_v7  ;;  %v668_v3 = vpop.f32.mrb[13].mxu1 }
 0x11a   :  { %v608_v17 = vadd.f32 %v607_v15, %v112_v8  ;;  %v609_v18 = vpop.f32.mrb[14].mxu0  ;;  %v669_v13 = vadd.f32 %v668_v3, %v120_v9  ;;  %v670_v20 = vpop.f32.mrb[14].mxu1 }
 0x11b   :  { %697 = vst [vmem:[%s1200_s3 + $0x20] sm:$0xff] %v606_v11  ;;  %v610_v19 = vadd.f32 %v609_v18, %v108_v6  ;;  %v611_v21 = vpop.f32.mrb[15].mxu0  ;;  %699 = vst [vmem:[%s1200_s3 + $0x30] sm:$0xff] %v667_v16  ;;  %v671_v12 = vadd.f32 %v670_v20, %v116_v7  ;;  %v672_v23 = vpop.f32.mrb[15].mxu1 }
 0x11c   :  { %698 = vst [vmem:[%s1200_s3 + $0x28] sm:$0xff] %v608_v17  ;;  %v612_v22 = vadd.f32 %v611_v21, %v112_v8  ;;  %700 = vst [vmem:[%s1200_s3 + $0x38] sm:$0xff] %v669_v13  ;;  %v673_v24 = vadd.f32 %v672_v23, %v120_v9 }
 0x11d   :  { %705 = vst [vmem:[%s1200_s3 + $0x60] sm:$0xff] %v610_v19  ;;  %707 = vst [vmem:[%s1200_s3 + $0x70] sm:$0xff] %v671_v12 }
 0x11e   :  { %706 = vst [vmem:[%s1200_s3 + $0x68] sm:$0xff] %v612_v22  ;;  %708 = vst [vmem:[%s1200_s3 + $0x78] sm:$0xff] %v673_v24 }
 0x120   :  { %v615_v25 = vpop.f32.mrb[16].mxu0  ;;  %v676_v27 = vpop.f32.mrb[16].mxu1 }
 0x121   :  { %v616_v26 = vadd.f32 %v615_v25, %v108_v6  ;;  %v617_v28 = vpop.f32.mrb[17].mxu0  ;;  %v677_v29 = vadd.f32 %v676_v27, %v116_v7  ;;  %v678_v31 = vpop.f32.mrb[17].mxu1 }
 0x122   :  { %v618_v30 = vadd.f32 %v617_v28, %v112_v8  ;;  %v619_v32 = vpop.f32.mrb[18].mxu0  ;;  %v679_v33 = vadd.f32 %v678_v31, %v120_v9  ;;  %v680_v35 = vpop.f32.mrb[18].mxu1 }
 0x123   :  { %713 = vst [vmem:[%s1200_s3 + $0xa0] sm:$0xff] %v616_v26  ;;  %v620_v34 = vadd.f32 %v619_v32, %v108_v6  ;;  %v621_v36 = vpop.f32.mrb[19].mxu0  ;;  %715 = vst [vmem:[%s1200_s3 + $0xb0] sm:$0xff] %v677_v29  ;;  %v681_v37 = vadd.f32 %v680_v35, %v116_v7  ;;  %v682_v39 = vpop.f32.mrb[19].mxu1 }
 0x124   :  { %714 = vst [vmem:[%s1200_s3 + $0xa8] sm:$0xff] %v618_v30  ;;  %v622_v38 = vadd.f32 %v621_v36, %v112_v8  ;;  %716 = vst [vmem:[%s1200_s3 + $0xb8] sm:$0xff] %v679_v33  ;;  %v683_v40 = vadd.f32 %v682_v39, %v120_v9 }
 0x125   :  { %721 = vst [vmem:[%s1200_s3 + $0xe0] sm:$0xff] %v620_v34  ;;  %723 = vst [vmem:[%s1200_s3 + $0xf0] sm:$0xff] %v681_v37 }
 0x126   :  { %722 = vst [vmem:[%s1200_s3 + $0xe8] sm:$0xff] %v622_v38  ;;  %724 = vst [vmem:[%s1200_s3 + $0xf8] sm:$0xff] %v683_v40 }
 0x128   :  { %v625_v41 = vpop.f32.mrb[20].mxu0  ;;  %v686_v43 = vpop.f32.mrb[20].mxu1 }
 0x129   :  { %v626_v42 = vadd.f32 %v625_v41, %v108_v6  ;;  %v627_v44 = vpop.f32.mrb[21].mxu0  ;;  %v687_v45 = vadd.f32 %v686_v43, %v116_v7  ;;  %v688_v47 = vpop.f32.mrb[21].mxu1 }
 0x12a   :  { %v628_v46 = vadd.f32 %v627_v44, %v112_v8  ;;  %v629_v48 = vpop.f32.mrb[22].mxu0  ;;  %v689_v49 = vadd.f32 %v688_v47, %v120_v9  ;;  %v690_v50 = vpop.f32.mrb[22].mxu1 }
 0x12b   :  { %729 = vst [vmem:[%s1200_s3 + $0x120] sm:$0xff] %v626_v42  ;;  %v630_v51 = vpop.f32.mrb[23].mxu0  ;;  %731 = vst [vmem:[%s1200_s3 + $0x130] sm:$0xff] %v687_v45  ;;  %v691_v52 = vpop.f32.mrb[23].mxu1 }
 0x12c   :  { %730 = vst [vmem:[%s1200_s3 + $0x128] sm:$0xff] %v628_v46  ;;  %732 = vst [vmem:[%s1200_s3 + $0x138] sm:$0xff] %v689_v49 }

// kernel: drgcn_forward.72
= control target key start
LH: loop header
LB: loop body
LE: loop exit
PB: predicated region body
PF: predicated region fallthrough
CT: control target
= control target key end

     0   :  { %s1833_s18 = smov 0   ;;  %s2053_s0 = inlined_call_operand.vmem [shape: f32[2,4,5,128], index: 0, kind: input, shape index: {}]   ;;  %s2054_s1 = inlined_call_operand.vmem [shape: bf16[3,128,128], index: 1, kind: input, shape index: {}]   ;;  %s2055_s2 = inlined_call_operand.vmem [shape: f32[1,128], index: 2, kind: input, shape index: {}]   ;;  %s2056_s3 = inlined_call_operand.vmem [shape: f32[1,128], index: 3, kind: input, shape index: {}]   ;;  %s2057_s4 = inlined_call_operand.vmem [shape: f32[1,128], index: 4, kind: input, shape index: {}]   ;;  %s2058_s5 = inlined_call_operand.vmem [shape: f32[2,4,5,128], index: 5, kind: output, shape index: {}]  }
   0x1 LB: > { %s1567_s19 = sadd.s32 4294967295, %s1800_s18   ;;  %p1571_p0 = scmp.ge.s32.totalorder %s1800_s18, 1  ;;  %s1800_s18 = sphi %s1833_s18, %s15_s18  }
   0x2   : > { %p187_p1 = scmp.lt.s32.totalorder %s1800_s18, 3 }
   0x4   : > { %p188_p2 = pnand %p1571_p0, %p187_p1 }
   0x5   : > { %v1770_v0 = vld [vmem:[%s2054_s1 + $0x40] sm:$0xff] (!%p188_p2)   ;;  %v1772_v2 = vld [vmem:[%s2054_s1 + $0x48] sm:$0xff] (!%p188_p2)   ;;  %p215_p3 = scmp.lt.s32.totalorder (!%p188_p2), %s1567_s19, 1  ;;  %v1774_v4 = vld [vmem:[%s2054_s1 + $0x50] sm:$0xff] (!%p188_p2)   ;;  %vm260_vm0 = vcmask (!%p188_p2), 1042432   ;;  %v302_v18 = vlaneseq (!%p188_p2) }
   0x6   : > { %191 = sbr.rel (%p188_p2) target bundleno = 328 (0x148), region = 40  ;;  %v1771_v1 = vld [vmem:[%s2054_s1] sm:$0xff] (!%p188_p2)   ;;  %1701 = vmatprep.subr.bf16.mxu0 (!%p188_p2), %v1770_v0  ;;  %v1773_v3 = vld [vmem:[%s2054_s1 + $0x8] sm:$0xff] (!%p188_p2)   ;;  %v1775_v5 = vld [vmem:[%s2054_s1 + $0x10] sm:$0xff] (!%p188_p2)   ;;  %vm261_vm1 = vsmask.f32 (!%p188_p2), 2304 }
   0x7   : > { %1702 = vmatpush3.bf16.msra.mxu0 (!%p188_p2), %v1770_v0  ;;  %1721 = vmatprep.subr.bf16.mxu1 (!%p188_p2), %v1771_v1  ;;  %v1776_v6 = vld [vmem:[%s2054_s1 + $0x58] sm:$0xff] (!%p188_p2)   ;;  %v1778_v8 = vld [vmem:[%s2054_s1 + $0x60] sm:$0xff] (!%p188_p2)   ;;  %v1780_v10 = vld [vmem:[%s2054_s1 + $0x68] sm:$0xff] (!%p188_p2)   ;;  %v1802_v28 = vmov (!%p188_p2), 1966171168   ;;  %v303_v40 = vshrl.u32 (!%p188_p2), %v302_v18, 7 }
   0x8   : > { %1722 = vmatpush3.bf16.msra.mxu1 (!%p188_p2), %v1771_v1  ;;  %1703 = vmatprep.subr.bf16.mxu0 (!%p188_p2), %v1772_v2  ;;  %v1777_v7 = vld [vmem:[%s2054_s1 + $0x18] sm:$0xff] (!%p188_p2)   ;;  %v1779_v9 = vld [vmem:[%s2054_s1 + $0x20] sm:$0xff] (!%p188_p2)   ;;  %v1781_v11 = vld [vmem:[%s2054_s1 + $0x28] sm:$0xff] (!%p188_p2)   ;;  %v300_v29 = vunpack.c.l.s4 (!%p188_p2), %v1802_v28 }
   0x9   : > { %1723 = vmatprep.subr.bf16.mxu1 (!%p188_p2), %v1773_v3  ;;  %v1576_v16 = vld [vmem:[%s2056_s3] ss:$0 sm:$0xff] (!%p188_p2)  ;;  %v1782_v23 = vld [vmem:[%s2054_s1 + $0x70] sm:$0xff] (!%p188_p2)   ;;  %vm1895_vm2 = vmand (!%p188_p2), %vm260_vm0, %vm261_vm1 }
   0xa   : > { %v1577_v17 = vld [vmem:[%s2057_s4] ss:$0 sm:$0xff] (!%p188_p2)  ;;  %v1783_v31 = vld [vmem:[%s2054_s1 + $0x30] sm:$0xff] (!%p188_p2)   ;;  %v267_v33 = vld [vmem:[#allocation2 + $0x4] sm:$0x7] (!%p188_p2)  ;;  %v301_v47 = vunpack.c.0.s8 (!%p188_p2), %v300_v29 }
   0xb   : > { %1704 = vmatpush3.bf16.msra.mxu0 (!%p188_p2), %v1772_v2  ;;  %v263_v30 = vld [vmem:[#allocation2] sm:$0x7] (!%p188_p2)  ;;  %v270_v34 = vld [vmem:[#allocation2 + $0x8] sm:$0x7] (!%p188_p2)  ;;  %v273_v35 = vld [vmem:[#allocation2 + $0xc] sm:$0x7] (!%p188_p2) }
   0xc   : > { %1724 = vmatpush3.bf16.msra.mxu1 (!%p188_p2), %v1773_v3  ;;  %1705 = vmatprep.subr.bf16.mxu0 (!%p188_p2), %v1774_v4  ;;  %v264_v36 = vsel (!%p188_p2), %vm1895_vm2, 0, %v263_v30  ;;  %v1784_v41 = vld [vmem:[%s2054_s1 + $0x78] sm:$0xff] (!%p188_p2)   ;;  %v276_v46 = vld [vmem:[#allocation2 + $0x10] sm:$0x7] (!%p188_p2)  ;;  %v1918_v54 = vsub.s32 (!%p188_p2), %v301_v47, %v303_v40  ;;  %v1923_v55 = vld [vmem:[%s2054_s1 + $0x80] sm:$0xff] (!%p188_p2)  }
   0xd   : > { %s2062_s19 = smov (!%p215_p3, %s1567_s19), 1  ;;  %1725 = vmatprep.subr.bf16.mxu1 %v1775_v5  ;;  %265 = vst [vmem:[#allocation2] sm:$0x7] %v264_v36  ;;  %v1785_v48 = vld [vmem:[%s2054_s1 + $0x38] sm:$0xff]   ;;  %v280_v57 = vld [vmem:[#allocation2 + $0x14] sm:$0x7] }
   0xe   : > { %s1669_s11 = sshll.u32 %s2062_s19, 5  ;;  %v281_v59 = vsel %vm1895_vm2, 0, %v280_v57 }
   0xf   : > { %1706 = vmatpush3.bf16.msra.mxu0 %v1774_v4  ;;  %s219_s20 = scalar_lea.vmem %s2053_s0, %s1669_s11  ;;  %282 = vst [vmem:[#allocation2 + $0x14] sm:$0x7] %v281_v59  ;;  %s224_s10 = scalar_lea.vmem %s2058_s5, %s1669_s11 }
  0x10   : > { %1726 = vmatpush3.bf16.msra.mxu1 %v1775_v5  ;;  %1707 = vmatprep.subr.bf16.mxu0 %v1776_v6  ;;  %v226_v12 = vld [vmem:[%s219_s20] sm:$0x1f]  ;;  %v227_v13 = vld [vmem:[%s219_s20 + $0x8] sm:$0x1f]  ;;  %v228_v14 = vld [vmem:[%s219_s20 + $0x10] sm:$0x1f] }
  0x11   : > { %1727 = vmatprep.subr.bf16.mxu1 %v1777_v7  ;;  %v229_v15 = vld [vmem:[%s219_s20 + $0x18] sm:$0x1f]  ;;  %v237_v19 = vmul.f32 %v1576_v16, %v226_v12  ;;  %v238_v20 = vmul.f32 %v1576_v16, %v227_v13  ;;  %v239_v21 = vmul.f32 %v1576_v16, %v228_v14 }
  0x12   : > { %v240_v22 = vmul.f32 %v1576_v16, %v229_v15 }
  0x13   : > { %1708 = vmatpush3.bf16.msra.mxu0 %v1776_v6  ;;  %v248_v24 = vadd.f32 %v1577_v17, %v237_v19  ;;  %v249_v25 = vadd.f32 %v1577_v17, %v238_v20  ;;  %v250_v26 = vadd.f32 %v1577_v17, %v239_v21 }
  0x14   : > { %1728 = vmatpush3.bf16.msra.mxu1 %v1777_v7  ;;  %1709 = vmatprep.subr.bf16.mxu0 %v1778_v8  ;;  %v251_v32 = vadd.f32 %v1577_v17, %v240_v22  ;;  %v1578_v56 = vld.sshfl [vmem:[#allocation2] sm:$0x13 pattern:$0x75316420] }
  0x15   : > { %1729 = vmatprep.subr.bf16.mxu1 %v1779_v9  ;;  %v252_v37 = vmax.f32 %v248_v24, 0.0  ;;  %v253_v38 = vmax.f32 %v249_v25, 0.0  ;;  %v254_v39 = vmax.f32 %v250_v26, 0.0  ;;  %v298_v58 = vcombine.high %v1578_v56, %v1578_v56 }
  0x16   : > { %v255_v42 = vmax.f32 %v251_v32, 0.0  ;;  %v305_v60 = vrot.slane %v1578_v56, %v1918_v54 }
  0x17   : > { %1710 = vmatpush3.bf16.msra.mxu0 %v1778_v8  ;;  %v256_v43 = vpack.c.bf16 %v252_v37, %v252_v37  ;;  %v257_v44 = vpack.c.bf16 %v253_v38, %v253_v38  ;;  %v258_v45 = vpack.c.bf16 %v254_v39, %v254_v39  ;;  %v312_v61 = vrot.slane %v298_v58, %v1918_v54 }
  0x18   : > { %1730 = vmatpush3.bf16.msra.mxu1 %v1779_v9  ;;  %1711 = vmatprep.subr.bf16.mxu0 %v1780_v10  ;;  %v259_v49 = vpack.c.bf16 %v255_v42, %v255_v42  ;;  %v313_v6 = vcombine.high %v305_v60, %v305_v60 }
  0x19   : > { %1731 = vmatprep.subr.bf16.mxu1 %v1781_v11  ;;  %v268_v50 = vsel %vm1895_vm2, %v256_v43, %v267_v33  ;;  %v271_v51 = vsel %vm1895_vm2, %v257_v44, %v270_v34  ;;  %v274_v52 = vsel %vm1895_vm2, %v258_v45, %v273_v35  ;;  %v738_v63 = vcombine.low %v305_v60, %v312_v61 }
  0x1a   : > { %269 = vst [vmem:[#allocation2 + $0x4] sm:$0x7] %v268_v50  ;;  %272 = vst [vmem:[#allocation2 + $0x8] sm:$0x7] %v271_v51  ;;  %v277_v53 = vsel %vm1895_vm2, %v259_v49, %v276_v46 }
  0x1b   : > { %1712 = vmatpush3.bf16.msra.mxu0 %v1780_v10  ;;  %275 = vst [vmem:[#allocation2 + $0xc] sm:$0x7] %v274_v52  ;;  %278 = vst [vmem:[#allocation2 + $0x10] sm:$0x7] %v277_v53  ;;  %v748_v7 = vrot.slane %v738_v63, %v1918_v54 }
  0x1c   : > { %1732 = vmatpush3.bf16.msra.mxu1 %v1781_v11  ;;  %1713 = vmatprep.subr.bf16.mxu0 %v1782_v23  ;;  %v1633_v49 = vld.sshfl [vmem:[#allocation2 + $0x14] sm:$0x13 pattern:$0x75316420] }
  0x1d   : > { %1733 = vmatprep.subr.bf16.mxu1 %v1783_v31  ;;  %v992_v63 = vrot.slane %v1633_v49, %v1918_v54 }
  0x1f   : > { %1714 = vmatpush3.bf16.msra.mxu0 %v1782_v23 }
  0x20   : > { %1734 = vmatpush3.bf16.msra.mxu1 %v1783_v31  ;;  %1715 = vmatprep.subr.bf16.mxu0 %v1784_v41 }
  0x21   : > { %1735 = vmatprep.subr.bf16.mxu1 %v1785_v48  ;;  %v1582_v62 = vld.sshfl [vmem:[#allocation2 + $0x4] sm:$0x13 pattern:$0x75316420] }
  0x22   : > { %v1583_v0 = vld.sshfl [vmem:[#allocation2 + $0x8] sm:$0x13 pattern:$0x75316420]  ;;  %v434_v1 = vcombine.high %v1582_v62, %v1582_v62  ;;  %v441_v2 = vrot.slane %v1582_v62, %v1918_v54 }
  0x23   : > { %1716 = vmatpush3.bf16.msra.mxu0 %v1784_v41  ;;  %v1584_v3 = vld.sshfl [vmem:[#allocation2 + $0xc] sm:$0x13 pattern:$0x75316420]  ;;  %v457_v4 = vcombine.high %v1583_v0, %v1583_v0  ;;  %v1932_v5 = vrot.slane %v1583_v0, %v1918_v54 }
  0x24   : > { %1736 = vmatpush3.bf16.msra.mxu1 %v1785_v48  ;;  %1741 = vmatprep.subr.bf16.mxu0 %v1923_v55  ;;  %v1585_v8 = vld.sshfl [vmem:[#allocation2 + $0x10] sm:$0x13 pattern:$0x75316420]  ;;  %v448_v9 = vrot.slane %v434_v1, %v1918_v54  ;;  %v449_v10 = vcombine.high %v441_v2, %v441_v2  ;;  %v480_v11 = vcombine.high %v1584_v3, %v1584_v3  ;;  %v389_v23 = vunpack.i.h.s16 %v441_v2 }
  0x25   : > { %v487_v12 = vrot.slane %v1584_v3, %v1918_v54  ;;  %v1938_v13 = vrot.slane %v457_v4, %v1918_v54  ;;  %v472_v14 = vcombine.high %v1932_v5, %v1932_v5  ;;  %v1943_v15 = vrot.slane %v1585_v8, %v1918_v54 }
  0x26   : > { %v525_v16 = vunpack.i.h.s16 %v1932_v5  ;;  %v494_v17 = vrot.slane %v480_v11, %v1918_v54  ;;  %v1602_v19 = vpack.i.b16 %v1932_v5, %v449_v10  ;;  %v566_v20 = vcombine.low %v441_v2, %v448_v9 }
  0x27   : > { %v495_v18 = vcombine.high %v487_v12, %v487_v12  ;;  %v527_v21 = vunpack.i.h.s16 %v1938_v13  ;;  %v391_v24 = vunpack.i.h.s16 %v448_v9  ;;  %v1616_v27 = vpack.i.b16 %v441_v2, %v313_v6 }
  0x28   : > { %v1603_v22 = vpack.i.b16 %v1938_v13, %v525_v16  ;;  %v576_v26 = vrot.slane %v566_v20, %v1918_v54  ;;  %v1619_v28 = vpack.i.b16 %v487_v12, %v472_v14  ;;  %v1617_v31 = vpack.i.b16 %v448_v9, %v389_v23  ;;  %v1788_v23 = vld [vmem:[%s2054_s1 + $0x90] sm:$0xff]  }
  0x29   : > { %v1605_v25 = vpack.i.b16 %v1943_v15, %v495_v18  ;;  %v1604_v29 = vpack.i.b16 %v472_v14, %v527_v21  ;;  %v1618_v32 = vpack.i.b16 %v449_v10, %v391_v24  ;;  %v503_v35 = vcombine.high %v1585_v8, %v1585_v8 }
  0x2a   : > { %v567_v30 = vcombine.low %v1602_v19, %v1603_v22  ;;  %v741_v34 = vcombine.low %v1938_v13, %v1619_v28  ;;  %v518_v36 = vcombine.high %v1943_v15, %v1943_v15  ;;  %v739_v39 = vcombine.low %v1616_v27, %v1617_v31  ;;  %v1789_v27 = vld [vmem:[%s2054_s1 + $0x98] sm:$0xff]  }
  0x2b   : > { %v569_v33 = vcombine.low %v494_v17, %v1605_v25  ;;  %v568_v37 = vcombine.low %v1604_v29, %v487_v12  ;;  %v740_v40 = vcombine.low %v1618_v32, %v1932_v5  ;;  %v517_v43 = vrot.slane %v503_v35, %v1918_v54  ;;  %v1790_v29 = vld [vmem:[%s2054_s1 + $0xa0] sm:$0xff]  }
  0x2c   : > { %v583_v38 = vrot.slane %v567_v30, %v1918_v54  ;;  %v769_v42 = vrot.slane %v741_v34, %v1918_v54  ;;  %v535_v44 = vunpack.i.h.s16 %v1943_v15  ;;  %v755_v47 = vrot.slane %v739_v39, %v1918_v54 }
  0x2d   : > { %v597_v41 = vrot.slane %v569_v33, %v1918_v54  ;;  %v590_v45 = vrot.slane %v568_v37, %v1918_v54  ;;  %v762_v48 = vrot.slane %v740_v40, %v1918_v54  ;;  %v537_v50 = vunpack.i.h.s16 %v517_v43  ;;  %v1791_v33 = vld [vmem:[%s2054_s1 + $0xa8] sm:$0xff]  }
  0x2e   : > { %v598_v46 = vcombine.low %v576_v26, %v583_v38  ;;  %v1606_v51 = vpack.i.b16 %v517_v43, %v535_v44  ;;  %v399_v52 = vunpack.i.h.s16 %v487_v12  ;;  %v401_v53 = vunpack.i.h.s16 %v494_v17  ;;  %v1793_v38 = vld [vmem:[%s2054_s1 + $0xb8] sm:$0xff]  }
  0x2f   : > { %v599_v56 = vcombine.low %v590_v45, %v597_v41  ;;  %v770_v58 = vcombine.low %v748_v7, %v755_v47  ;;  %v771_v59 = vcombine.low %v762_v48, %v769_v42  ;;  %v1607_v60 = vpack.i.b16 %v518_v36, %v537_v50 }
  0x30   : > { %v606_v57 = vrot.slane %v598_v46, %v1918_v54  ;;  %v1620_v61 = vpack.i.b16 %v494_v17, %v399_v52  ;;  %v1621_v62 = vpack.i.b16 %v495_v18, %v401_v53  ;;  %v1653_v9 = vpack.i.b16 %v992_v63, %v518_v36  ;;  %v1787_v18 = vld [vmem:[%s2054_s1 + $0x88] sm:$0xff]   ;;  %v1792_v36 = vld [vmem:[%s2054_s1 + $0xb0] sm:$0xff]   ;;  %v1664_v53 = vld [vmem:[%s2055_s2] ss:$0 sm:$0xff] }
  0x31   : > { %v613_v0 = vrot.slane %v599_v56, %v1918_v54  ;;  %v778_v1 = vrot.slane %v770_v58, %v1918_v54  ;;  %v785_v2 = vrot.slane %v771_v59, %v1918_v54  ;;  %v615_v3 = vcombine.low %v1606_v51, %v1607_v60 }
  0x32   : > { %v787_v4 = vcombine.low %v1620_v61, %v1621_v62  ;;  %v1048_v11 = vcombine.low %v1932_v5, %v1938_v13  ;;  %v1049_v12 = vcombine.low %v1619_v28, %v1620_v61  ;;  %v1051_v14 = vcombine.low %v517_v43, %v1653_v9 }
  0x33   : > { %v614_v6 = vcombine.low %v606_v57, %v613_v0  ;;  %v786_v8 = vcombine.low %v778_v1, %v785_v2  ;;  %v622_v10 = vrot.slane %v615_v3, %v1918_v54  ;;  %v1050_v19 = vcombine.low %v1621_v62, %v1943_v15 }
  0x34   : > { %v794_v7 = vrot.slane %v787_v4, %v1918_v54  ;;  %v1058_v20 = vrot.slane %v1048_v11, %v1918_v54  ;;  %v1065_v21 = vrot.slane %v1049_v12, %v1918_v54  ;;  %v1079_v5 = vrot.slane %v1051_v14, %v1918_v54 }
  0x35   : > { %1717 = vmatprep.mubr.bf16.mxu0 %v614_v6  ;;  %1737 = vmatprep.mubr.bf16.mxu1 %v786_v8  ;;  %v629_v16 = vrot.slane %v622_v10, %v1918_v54  ;;  %v1072_v13 = vrot.slane %v1050_v19, %v1918_v54  ;;  %v985_v26 = vcombine.high %v1633_v49, %v1633_v49  ;;  %v1017_v31 = vunpack.i.h.s16 %v992_v63 }
  0x36   : > { %v801_v17 = vrot.slane %v794_v7, %v1918_v54  ;;  %v1080_v22 = vcombine.low %v1058_v20, %v1065_v21  ;;  %v1000_v30 = vcombine.high %v992_v63, %v992_v63 }
  0x37   : > { %1718 = vmatmul.mubr.bf16.vlgmr.msra.gmra.mrb[0].mxu0 %v629_v16  ;;  %v1081_v24 = vcombine.low %v1072_v13, %v1079_v5 }
  0x38   : > { %1738 = vmatmul.mubr.bf16.vlgmr.msra.gmra.mrb[0].mxu1 %v801_v17  ;;  %1742 = vmatpush3.bf16.msra.mxu0 %v1923_v55  ;;  %v1088_v15 = vrot.slane %v1080_v22, %v1918_v54  ;;  %v999_v55 = vrot.slane %v985_v26, %v1918_v54 }
  0x39   : > { %1743 = vmatprep.subr.bf16.mxu0 %v1787_v18  ;;  %v1095_v25 = vrot.slane %v1081_v24, %v1918_v54 }
  0x3a   : > { %v1019_v32 = vunpack.i.h.s16 %v999_v55  ;;  %v1654_v34 = vpack.i.b16 %v999_v55, %v1017_v31 }
  0x3b   : > { %v1096_v28 = vcombine.low %v1088_v15, %v1095_v25 }
  0x3c   : > { %1744 = vmatpush3.bf16.msra.mxu0 %v1787_v18  ;;  %v1655_v35 = vpack.i.b16 %v1000_v30, %v1019_v32 }
  0x3d   : > { %1745 = vmatprep.subr.bf16.mxu0 %v1788_v23  ;;  %1757 = vmatprep.mubr.bf16.mxu0 %v1096_v28 }
  0x3e   : > { %v1097_v37 = vcombine.low %v1654_v34, %v1655_v35 }
  0x40   : > { %1746 = vmatpush3.bf16.msra.mxu0 %v1788_v23  ;;  %v1104_v39 = vrot.slane %v1097_v37, %v1918_v54 }
  0x41   : > { %1747 = vmatprep.subr.bf16.mxu0 %v1789_v27 }
  0x42   : > { %v1111_v40 = vrot.slane %v1104_v39, %v1918_v54 }
  0x44   : > { %1748 = vmatpush3.bf16.msra.mxu0 %v1789_v27 }
  0x45   : > { %1749 = vmatprep.subr.bf16.mxu0 %v1790_v29 }
  0x48   : > { %1750 = vmatpush3.bf16.msra.mxu0 %v1790_v29 }
  0x49   : > { %1751 = vmatprep.subr.bf16.mxu0 %v1791_v33 }
  0x4c   : > { %1752 = vmatpush3.bf16.msra.mxu0 %v1791_v33 }
  0x4d   : > { %1753 = vmatprep.subr.bf16.mxu0 %v1792_v36 }
  0x50   : > { %1754 = vmatpush3.bf16.msra.mxu0 %v1792_v36 }
  0x51   : > { %1755 = vmatprep.subr.bf16.mxu0 %v1793_v38 }
  0x54   : > { %1756 = vmatpush3.bf16.msra.mxu0 %v1793_v38 }
  0x57   : > { %1758 = vmatmul.mubr.bf16.vlgmr.msra.gmra.mrb[4].mxu0 %v1111_v40 }
 0x10a   : > { %v1719_v41 = vpop.f32.mrb[0].mxu0 }
 0x10b   : > { %v1739_v42 = vpop.f32.mrb[0].mxu1  ;;  %v714_v44 = vpop.f32.mrb[1].mxu0 }
 0x10c   : > { %v895_v43 = vadd.f32 %v1739_v42, %v1719_v41  ;;  %v886_v45 = vpop.f32.mrb[1].mxu1  ;;  %v1720_v47 = vpop.f32.mrb[2].mxu0 }
 0x10d   : > { %v887_v46 = vadd.f32 %v886_v45, %v714_v44  ;;  %v1740_v48 = vpop.f32.mrb[2].mxu1  ;;  %v717_v49 = vpop.f32.mrb[3].mxu0 }
 0x10e   : > { %v889_v50 = vpop.f32.mrb[3].mxu1 }
 0x10f   : > { %v890_v51 = vadd.f32 %v889_v50, %v717_v49 }
 0x12a   : > { %v1759_v52 = vpop.f32.mrb[4].mxu0 }
 0x12b   : > { %v1212_v56 = vadd.f32 %v1759_v52, %v895_v43  ;;  %v1196_v57 = vpop.f32.mrb[5].mxu0 }
 0x12c   : > { %v1210_v58 = vadd.f32 %v1196_v57, %v887_v46  ;;  %v1760_v59 = vpop.f32.mrb[6].mxu0 }
 0x12d   : > { %v1222_v60 = vadd.f32 %v1664_v53, %v1212_v56  ;;  %v1199_v61 = vpop.f32.mrb[7].mxu0 }
 0x12e   : > { %v1220_v62 = vadd.f32 %v1664_v53, %v1210_v58  ;;  %v1211_v63 = vadd.f32 %v1199_v61, %v890_v51 }
 0x12f   : > { %v1330_v0 = vrot.slane %v1222_v60, %v1918_v54 }
 0x130   : > { %v1226_v1 = vcombine.high %v1220_v62, %v1220_v62  ;;  %v1233_v2 = vrot.slane %v1220_v62, %v1918_v54  ;;  %v1221_v3 = vadd.f32 %v1664_v53, %v1211_v63 }
 0x131   : > { %v1331_v4 = vcombine.high %v1330_v0, %v1330_v0  ;;  %v1338_v6 = vrot.slane %v1330_v0, %v1918_v54 }
 0x132   : > { %v1240_v8 = vrot.slane %v1226_v1, %v1918_v54  ;;  %v1241_v9 = vcombine.high %v1233_v2, %v1233_v2  ;;  %v1275_v10 = vcombine.high %v1221_v3, %v1221_v3  ;;  %v1249_v7 = vrot.slane %v1233_v2, %v1918_v54 }
 0x133   : > { %v1282_v11 = vrot.slane %v1221_v3, %v1918_v54  ;;  %v1345_v18 = vrot.slane %v1331_v4, %v1918_v54  ;;  %v1346_v19 = vcombine.high %v1338_v6, %v1338_v6 }
 0x134   : > { %v1242_v12 = vcombine.high %v1240_v8, %v1240_v8  ;;  %v1256_v14 = vrot.slane %v1240_v8, %v1918_v54  ;;  %v1263_v16 = vrot.slane %v1241_v9, %v1918_v54  ;;  %v1289_v17 = vrot.slane %v1275_v10, %v1918_v54 }
 0x135   : > { %v1290_v20 = vcombine.high %v1282_v11, %v1282_v11  ;;  %v1298_v15 = vrot.slane %v1282_v11, %v1918_v54  ;;  %v1347_v55 = vcombine.high %v1345_v18, %v1345_v18  ;;  %v1466_v29 = vcombine.low %v1345_v18, %v1346_v19 }
 0x136   : > { %v1270_v21 = vrot.slane %v1242_v12, %v1918_v54  ;;  %v1272_v5 = vcombine.high %v1256_v14, %v1256_v14  ;;  %v1348_v13 = vcombine.low %v1249_v7, %v1263_v16  ;;  %v1665_v22 = vcombine.high %v1249_v7, %v1263_v16 }
 0x137   : > { %v1370_v23 = vrot.slane %v1256_v14, %v1918_v54  ;;  %v1291_v24 = vcombine.high %v1289_v17, %v1289_v17  ;;  %v1305_v30 = vrot.slane %v1289_v17, %v1918_v54  ;;  %v1312_v31 = vrot.slane %v1290_v20, %v1918_v54 }
 0x138   : > { %v1356_v25 = vrot.slane %v1348_v13, %v1918_v54  ;;  %v1363_v26 = vrot.slane %v1665_v22, %v1918_v54  ;;  %v1387_v27 = vcombine.low %v1270_v21, %v1272_v5  ;;  %v1274_v28 = vcombine.high %v1270_v21, %v1270_v21 }
 0x139   : > { %v1385_v33 = vrot.slane %v1370_v23, %v1918_v54  ;;  %v1319_v34 = vrot.slane %v1291_v24, %v1918_v54  ;;  %v1321_v36 = vcombine.high %v1305_v30, %v1305_v30  ;;  %v1409_v38 = vrot.slane %v1312_v31, %v1918_v54 }
 0x13a   : > { %v1371_v32 = vcombine.low %v1356_v25, %v1363_v26  ;;  %v1388_v35 = vcombine.low %v1274_v28, %v1298_v15  ;;  %v1395_v37 = vrot.slane %v1387_v27, %v1918_v54  ;;  %v1666_v39 = vcombine.high %v1298_v15, %v1312_v31 }
 0x13b   : > { %v1323_v41 = vcombine.high %v1319_v34, %v1319_v34  ;;  %v1427_v43 = vcombine.low %v1305_v30, %v1319_v34  ;;  %v1448_v45 = vrot.slane %v1321_v36, %v1918_v54  ;;  %v1480_v50 = vrot.slane %v1466_v29, %v1918_v54 }
 0x13c   : > { %v1378_v40 = vrot.slane %v1371_v32, %v1918_v54  ;;  %v1402_v42 = vrot.slane %v1388_v35, %v1918_v54  ;;  %v1434_v44 = vrot.slane %v1666_v39, %v1918_v54  ;;  %v1487_v51 = vrot.slane %v1347_v55, %v1918_v54 }
 0x13d   : > { %v1441_v48 = vrot.slane %v1427_v43, %v1918_v54  ;;  %v1465_v49 = vcombine.low %v1323_v41, %v1338_v6  ;;  %v1424_v53 = vrot.slane %v1409_v38, %v1918_v54  ;;  %v1463_v60 = vrot.slane %v1448_v45, %v1918_v54 }
 0x13e   : > { %v1386_v46 = vcombine.low %v1378_v40, %v1385_v33  ;;  %v1410_v47 = vcombine.low %v1395_v37, %v1402_v42  ;;  %v1502_v62 = vrot.slane %v1487_v51, %v1918_v54 }
 0x13f   : > { %v1449_v56 = vcombine.low %v1434_v44, %v1441_v48  ;;  %v1473_v57 = vrot.slane %v1465_v49, %v1918_v54 }
 0x140   : > { %1508 = vst [vmem:[%s224_s10] sm:$0x1f] %v1386_v46  ;;  %v1417_v52 = vrot.slane %v1410_v47, %v1918_v54 }
 0x141   : > { %v1456_v59 = vrot.slane %v1449_v56, %v1918_v54  ;;  %v1488_v61 = vcombine.low %v1473_v57, %v1480_v50 }
 0x142   : > { %v1425_v58 = vcombine.low %v1417_v52, %v1424_v53 }
 0x143   : > { %v1464_v63 = vcombine.low %v1456_v59, %v1463_v60  ;;  %v1495_v0 = vrot.slane %v1488_v61, %v1918_v54 }
 0x144   : > { %1509 = vst [vmem:[%s224_s10 + $0x8] sm:$0x1f] %v1425_v58 }
 0x145   : > { %v1503_v1 = vcombine.low %v1495_v0, %v1502_v62  ;;  %1510 = vst [vmem:[%s224_s10 + $0x10] sm:$0x1f] %v1464_v63 }
 0x147   : > { %1511 = vst [vmem:[%s224_s10 + $0x18] sm:$0x1f] %v1503_v1 }
 0x148 PF: > { %s15_s18 = sadd.s32 1, %s1800_s18  }
 0x149   : > { %p12_p4 = scmp.ge.s32.totalorder %s15_s18, 4  }
 0x14b   :  { %14 = sbr.rel (!%p12_p4) target bundleno = 1 (0x1), region = 75 }

// kernel: drgcn_forward.82
= control target key start
LH: loop header
LB: loop body
LE: loop exit
PB: predicated region body
PF: predicated region fallthrough
CT: control target
= control target key end

     0   :  { %v31_v0 = vlaneseq  ;;  %s230_s1 = inlined_call_operand.vmem [shape: f32[1,256], index: 1, kind: input, shape index: {}]   ;;  %s231_s2 = inlined_call_operand.vmem [shape: f32[1,256], index: 2, kind: input, shape index: {}]   ;;  %s232_s4 = inlined_call_operand.vmem [shape: f32[1,256], index: 4, kind: input, shape index: {}]   ;;  %s233_s5 = inlined_call_operand.vmem [shape: f32[1,256], index: 5, kind: input, shape index: {}]   ;;  %s234_s0 = inlined_call_operand.vmem [shape: f32[24,256], index: 0, kind: input, shape index: {}]   ;;  %s235_s3 = inlined_call_operand.vmem [shape: f32[24,256], index: 3, kind: input, shape index: {}]   ;;  %s236_s6 = inlined_call_operand.vmem [shape: f32[24,256], index: 6, kind: output, shape index: {}]  }
   0x1   :  { %v29_v1 = vld [vmem:[%s230_s1] sm:$0x3]  ;;  %v24_v10 = vld [vmem:[%s234_s0 + $0x8] sm:$0xff]  ;;  %v25_v11 = vld [vmem:[%s234_s0 + $0x10] sm:$0xff] }
   0x2   :  { %v32_v2 = vshrl.u32 %v31_v0, 7  ;;  %v47_v3 = vld [vmem:[%s231_s2] sm:$0x3]  ;;  %v67_v12 = vld [vmem:[%s235_s3 + $0x10] sm:$0xff]  ;;  %v66_v17 = vld [vmem:[%s235_s3 + $0x8] sm:$0xff] }
   0x3   :  { %v71_v4 = vld [vmem:[%s232_s4] sm:$0x3]  ;;  %v26_v18 = vld [vmem:[%s234_s0 + $0x18] sm:$0xff]  ;;  %v28_v30 = vld [vmem:[%s234_s0 + $0x28] sm:$0xff] }
   0x4   :  { %v95_v5 = vld [vmem:[%s233_s5] sm:$0x3]  ;;  %v33_v7 = vsub.s32 0, %v32_v2  ;;  %v37_v9 = vsub.s32 1, %v32_v2  ;;  %v68_v19 = vld [vmem:[%s235_s3 + $0x18] sm:$0xff]  ;;  %v70_v31 = vld [vmem:[%s235_s3 + $0x28] sm:$0xff] }
   0x5   :  { %v23_v6 = vld [vmem:[%s234_s0] sm:$0xff] }
   0x6   :  { %v65_v8 = vld [vmem:[%s235_s3] sm:$0xff]  ;;  %v34_v13 = vrot.slane %v29_v1, %v33_v7  ;;  %v52_v14 = vrot.slane %v47_v3, %v33_v7  ;;  %v76_v15 = vrot.slane %v71_v4, %v33_v7  ;;  %v100_v16 = vrot.slane %v95_v5, %v33_v7 }
   0x7   :  { %v38_v20 = vrot.slane %v29_v1, %v37_v9  ;;  %v56_v21 = vrot.slane %v47_v3, %v37_v9  ;;  %v80_v22 = vrot.slane %v71_v4, %v37_v9  ;;  %v104_v23 = vrot.slane %v95_v5, %v37_v9  ;;  %v27_v24 = vld [vmem:[%s234_s0 + $0x20] sm:$0xff] }
   0x8   :  { %v69_v25 = vld [vmem:[%s235_s3 + $0x20] sm:$0xff]  ;;  %v41_v26 = vmul.f32 %v34_v13, %v23_v6  ;;  %v83_v27 = vmul.f32 %v76_v15, %v65_v8  ;;  %v43_v28 = vmul.f32 %v34_v13, %v25_v11  ;;  %v85_v29 = vmul.f32 %v76_v15, %v67_v12 }
   0x9   :  { %v42_v32 = vmul.f32 %v38_v20, %v24_v10  ;;  %v84_v33 = vmul.f32 %v80_v22, %v66_v17  ;;  %v44_v34 = vmul.f32 %v38_v20, %v26_v18  ;;  %v86_v35 = vmul.f32 %v80_v22, %v68_v19 }
   0xa   :  { %v59_v36 = vadd.f32 %v52_v14, %v41_v26  ;;  %v61_v37 = vadd.f32 %v52_v14, %v43_v28  ;;  %v45_v38 = vmul.f32 %v34_v13, %v27_v24  ;;  %v87_v39 = vmul.f32 %v76_v15, %v69_v25 }
   0xb   :  { %v60_v40 = vadd.f32 %v56_v21, %v42_v32  ;;  %v62_v41 = vadd.f32 %v56_v21, %v44_v34  ;;  %v46_v42 = vmul.f32 %v38_v20, %v28_v30  ;;  %v88_v43 = vmul.f32 %v80_v22, %v70_v31 }
   0xc   :  { %v89_v44 = vadd.f32 %v83_v27, %v59_v36  ;;  %v91_v45 = vadd.f32 %v85_v29, %v61_v37  ;;  %v63_v46 = vadd.f32 %v52_v14, %v45_v38 }
   0xd   :  { %v90_v47 = vadd.f32 %v84_v33, %v60_v40  ;;  %v92_v48 = vadd.f32 %v86_v35, %v62_v41  ;;  %v64_v49 = vadd.f32 %v56_v21, %v46_v42 }
   0xe   :  { %v107_v50 = vadd.f32 %v100_v16, %v89_v44  ;;  %v109_v51 = vadd.f32 %v100_v16, %v91_v45  ;;  %v93_v52 = vadd.f32 %v87_v39, %v63_v46 }
   0xf   :  { %v108_v53 = vadd.f32 %v104_v23, %v90_v47  ;;  %v110_v54 = vadd.f32 %v104_v23, %v92_v48  ;;  %v94_v55 = vadd.f32 %v88_v43, %v64_v49 }
  0x10   :  { %v113_v56 = vmax.f32 %v107_v50, 0.0  ;;  %v115_v57 = vmax.f32 %v109_v51, 0.0  ;;  %v111_v58 = vadd.f32 %v100_v16, %v93_v52 }
  0x11   :  { %v114_v59 = vmax.f32 %v108_v53, 0.0  ;;  %v116_v60 = vmax.f32 %v110_v54, 0.0  ;;  %v112_v61 = vadd.f32 %v104_v23, %v94_v55 }
  0x12   :  { %119 = vst [vmem:[%s236_s6] sm:$0xff] %v113_v56  ;;  %121 = vst [vmem:[%s236_s6 + $0x10] sm:$0xff] %v115_v57  ;;  %v117_v62 = vmax.f32 %v111_v58, 0.0 }
  0x13   :  { %120 = vst [vmem:[%s236_s6 + $0x8] sm:$0xff] %v114_v59  ;;  %122 = vst [vmem:[%s236_s6 + $0x18] sm:$0xff] %v116_v60  ;;  %v118_v63 = vmax.f32 %v112_v61, 0.0 }
  0x14   :  { %123 = vst [vmem:[%s236_s6 + $0x20] sm:$0xff] %v117_v62 }
  0x15   :  { %124 = vst [vmem:[%s236_s6 + $0x28] sm:$0xff] %v118_v63 }

// kernel: drgcn_forward.81
= control target key start
LH: loop header
LB: loop body
LE: loop exit
PB: predicated region body
PF: predicated region fallthrough
CT: control target
= control target key end

     0   :  { %s2087_s18 = smov 0   ;;  %s2546_s0 = inlined_call_operand.vmem [shape: f32[2,4,5,256], index: 0, kind: input, shape index: {}]   ;;  %s2547_s1 = inlined_call_operand.vmem [shape: bf16[3,256,256], index: 1, kind: input, shape index: {}]   ;;  %s2548_s2 = inlined_call_operand.vmem [shape: f32[1,256], index: 2, kind: input, shape index: {}]   ;;  %s2549_s3 = inlined_call_operand.vmem [shape: f32[1,256], index: 3, kind: input, shape index: {}]   ;;  %s2550_s4 = inlined_call_operand.vmem [shape: f32[1,256], index: 4, kind: input, shape index: {}]   ;;  %s2551_s5 = inlined_call_operand.vmem [shape: f32[2,2,5,256], index: 5, kind: output, shape index: {}]  }
   0x1 LB: > { %s1690_s19 = sadd.s32 4294967295, %s2054_s18   ;;  %p1694_p0 = scmp.ge.s32.totalorder %s2054_s18, 1  ;;  %s2054_s18 = sphi %s2087_s18, %s15_s18  }
   0x2   : > { %p187_p1 = scmp.lt.s32.totalorder %s2054_s18, 3 }
   0x4   : > { %p188_p2 = pnand %p1694_p0, %p187_p1 }
   0x5   : > { %v1904_v0 = vld [vmem:[%s2547_s1 + $0x4] ss:$8 sps:$4 sm:$0xff] (!%p188_p2)   ;;  %v1906_v1 = vld [vmem:[%s2547_s1] ss:$8 sps:$4 sm:$0xff] (!%p188_p2)   ;;  %v1907_v2 = vld [vmem:[%s2547_s1 + $0x14] ss:$8 sps:$4 sm:$0xff] (!%p188_p2)   ;;  %v236_v9 = vlaneseq (!%p188_p2) }
   0x6   : > { %191 = sbr.rel (%p188_p2) target bundleno = 372 (0x174), region = 40  ;;  %1015 = vmatprep.subr.bf16.mxu0 (!%p188_p2), %v1904_v0  ;;  %v1909_v3 = vld [vmem:[%s2547_s1 + $0x10] ss:$8 sps:$4 sm:$0xff] (!%p188_p2)   ;;  %v1910_v4 = vld [vmem:[%s2547_s1 + $0x24] ss:$8 sps:$4 sm:$0xff] (!%p188_p2)   ;;  %p215_p3 = scmp.lt.s32.totalorder (!%p188_p2), %s1690_s19, 1 }
   0x7   : > { %1016 = vmatpush1.bf16.msra.mxu0 (!%p188_p2), %v1906_v1  ;;  %v1912_v5 = vld [vmem:[%s2547_s1 + $0x20] ss:$8 sps:$4 sm:$0xff] (!%p188_p2)   ;;  %v1913_v6 = vld [vmem:[%s2547_s1 + $0x34] ss:$8 sps:$4 sm:$0xff] (!%p188_p2)   ;;  %v1915_v7 = vld [vmem:[%s2547_s1 + $0x30] ss:$8 sps:$4 sm:$0xff] (!%p188_p2)  }
   0x8   : > { %1017 = vmatprep.subr.bf16.mxu0 (!%p188_p2), %v1907_v2  ;;  %v1916_v8 = vld [vmem:[%s2547_s1 + $0x44] ss:$8 sps:$4 sm:$0xff] (!%p188_p2)   ;;  %v1918_v10 = vld [vmem:[%s2547_s1 + $0x40] ss:$8 sps:$4 sm:$0xff] (!%p188_p2)   ;;  %v1919_v11 = vld [vmem:[%s2547_s1 + $0x54] ss:$8 sps:$4 sm:$0xff] (!%p188_p2)  }
   0x9   : > { %v2131_v12 = vshrl.u32 (!%p188_p2), %v236_v9, 7  ;;  %vm290_vm0 = vcmask (!%p188_p2), 1042432   ;;  %v1921_v13 = vld [vmem:[%s2547_s1 + $0x50] ss:$8 sps:$4 sm:$0xff] (!%p188_p2)   ;;  %vm291_vm1 = vsmask.f32 (!%p188_p2), 2304 }
   0xa   : > { %vm293_vm2 = vcmask (!%p188_p2), 1046532   ;;  %v1922_v14 = vld [vmem:[%s2547_s1 + $0x64] ss:$8 sps:$4 sm:$0xff] (!%p188_p2)   ;;  %v1924_v17 = vld [vmem:[%s2547_s1 + $0x60] ss:$8 sps:$4 sm:$0xff] (!%p188_p2)   ;;  %vm292_vm4 = vmand (!%p188_p2), %vm290_vm0, %vm291_vm1 }
   0xb   : > { %1018 = vmatpush1.bf16.msra.mxu0 (!%p188_p2), %v1909_v3  ;;  %v2145_v15 = vsub.s32 (!%p188_p2), 0, %v2131_v12  ;;  %v2148_v16 = vsub.s32 (!%p188_p2), 1, %v2131_v12  ;;  %v1951_v18 = vld [vmem:[%s2547_s1 + $0x104] ss:$8 sps:$4 sm:$0xff] (!%p188_p2)   ;;  %vm294_vm3 = vsmask.f32 (!%p188_p2), 6400 }
   0xc   : > { %1019 = vmatprep.subr.bf16.mxu0 (!%p188_p2), %v1910_v4  ;;  %v1954_v19 = vld [vmem:[%s2547_s1 + $0x100] ss:$8 sps:$4 sm:$0xff] (!%p188_p2)   ;;  %749 = vmatprep.subr.bf16.mxu1 (!%p188_p2), %v1951_v18  ;;  %v1925_v24 = vld [vmem:[%s2547_s1 + $0x74] ss:$8 sps:$4 sm:$0xff] (!%p188_p2)   ;;  %vm295_vm5 = vmand (!%p188_p2), %vm293_vm2, %vm294_vm3  ;;  %v2056_v31 = vmov (!%p188_p2), 1966171168  }
   0xd   : > { %s2555_s19 = smov (!%p215_p3, %s1690_s19), 1  ;;  %v234_v22 = vld [vmem:[%s2549_s3] sm:$0x3]  ;;  %750 = vmatpush1.bf16.msra.mxu1 %v1954_v19  ;;  %v338_v30 = vld [vmem:[#allocation2 + $0x28] sm:$0x77]  ;;  %v354_v32 = vunpack.c.l.s4 %v2056_v31  ;;  %vm2191_vm6 = vmor %vm295_vm5, %vm292_vm4 }
   0xe   : > { %s1881_s17 = sshll.u32 %s2555_s19, 6  ;;  %v254_v23 = vld [vmem:[%s2550_s4] sm:$0x3]  ;;  %v2171_v25 = vrot.slane %v234_v22, %v2145_v15  ;;  %v2174_v26 = vrot.slane %v234_v22, %v2148_v16  ;;  %v1927_v33 = vld [vmem:[%s2547_s1 + $0x70] ss:$8 sps:$4 sm:$0xff]   ;;  %v339_v39 = vsel %vm2191_vm6, 0, %v338_v30 }
   0xf   : > { %1020 = vmatpush1.bf16.msra.mxu0 %v1912_v5  ;;  %s2139_s24 = scalar_lea.vmem %s2546_s0, %s1881_s17  ;;  %v2177_v27 = vrot.slane %v254_v23, %v2145_v15  ;;  %v297_v28 = vld [vmem:[#allocation2] sm:$0x77]  ;;  %v2182_v29 = vrot.slane %v254_v23, %v2148_v16  ;;  %340 = vst [vmem:[#allocation2 + $0x28] sm:$0x77] %v339_v39  ;;  %v1958_v42 = vld [vmem:[%s2547_s1 + $0x114] ss:$8 sps:$4 sm:$0xff]   ;;  %v355_v46 = vunpack.c.0.s8 %v354_v32 }
  0x10   : > { %1021 = vmatprep.subr.bf16.mxu0 %v1913_v6  ;;  %v228_v20 = vld [vmem:[%s2139_s24 + $0x10] sm:$0x1f]  ;;  %v229_v21 = vld [vmem:[%s2139_s24 + $0x18] sm:$0x1f]  ;;  %v1928_v37 = vld [vmem:[%s2547_s1 + $0x84] ss:$8 sps:$4 sm:$0xff]   ;;  %751 = vmatprep.subr.bf16.mxu1 %v1958_v42 }
  0x11   : > { %v248_v34 = vmul.f32 %v2171_v25, %v228_v20  ;;  %v249_v35 = vmul.f32 %v2174_v26, %v229_v21  ;;  %v298_v38 = vsel %vm2191_vm6, 0, %v297_v28  ;;  %v1960_v43 = vld [vmem:[%s2547_s1 + $0x110] ss:$8 sps:$4 sm:$0xff]   ;;  %v1930_v44 = vld [vmem:[%s2547_s1 + $0x80] ss:$8 sps:$4 sm:$0xff]   ;;  %v2226_v54 = vsub.s32 %v355_v46, %v2131_v12  ;;  %s1882_s17 = sshll.u32 %s2555_s19, 5 }
  0x12   : > { %299 = vst [vmem:[#allocation2] sm:$0x77] %v298_v38  ;;  %v328_v45 = vld [vmem:[#allocation2 + $0x10] sm:$0x77]  ;;  %v1964_v49 = vld [vmem:[%s2547_s1 + $0x124] ss:$8 sps:$4 sm:$0xff]   ;;  %752 = vmatpush1.bf16.msra.mxu1 %v1960_v43  ;;  %s224_s22 = scalar_lea.vmem %s2551_s5, %s1882_s17 }
  0x13   : > { %1022 = vmatpush1.bf16.msra.mxu0 %v1915_v7  ;;  %v268_v40 = vadd.f32 %v2177_v27, %v248_v34  ;;  %v269_v41 = vadd.f32 %v2182_v29, %v249_v35  ;;  %v1966_v50 = vld [vmem:[%s2547_s1 + $0x120] ss:$8 sps:$4 sm:$0xff]   ;;  %v1931_v51 = vld [vmem:[%s2547_s1 + $0x94] ss:$8 sps:$4 sm:$0xff]   ;;  %753 = vmatprep.subr.bf16.mxu1 %v1964_v49  ;;  %v1933_v53 = vld [vmem:[%s2547_s1 + $0x90] ss:$8 sps:$4 sm:$0xff]  }
  0x14   : > { %1023 = vmatprep.subr.bf16.mxu0 %v1916_v8  ;;  %v1970_v55 = vld [vmem:[%s2547_s1 + $0x134] ss:$8 sps:$4 sm:$0xff]   ;;  %v1934_v56 = vld [vmem:[%s2547_s1 + $0xa4] ss:$8 sps:$4 sm:$0xff]   ;;  %v1972_v59 = vld [vmem:[%s2547_s1 + $0x130] ss:$8 sps:$4 sm:$0xff]  }
  0x15   : > { %v276_v47 = vmax.f32 %v268_v40, 0.0  ;;  %v277_v48 = vmax.f32 %v269_v41, 0.0  ;;  %v1976_v61 = vld [vmem:[%s2547_s1 + $0x144] ss:$8 sps:$4 sm:$0xff]   ;;  %v1936_v63 = vld [vmem:[%s2547_s1 + $0xa0] ss:$8 sps:$4 sm:$0xff]  }
  0x16   : > { %754 = vmatpush1.bf16.msra.mxu1 %v1966_v50  ;;  %v1937_v0 = vld [vmem:[%s2547_s1 + $0xb4] ss:$8 sps:$4 sm:$0xff]   ;;  %v1978_v1 = vld [vmem:[%s2547_s1 + $0x140] ss:$8 sps:$4 sm:$0xff]   ;;  %v1939_v5 = vld [vmem:[%s2547_s1 + $0xb0] ss:$8 sps:$4 sm:$0xff]  }
  0x17   : > { %1024 = vmatpush1.bf16.msra.mxu0 %v1918_v10  ;;  %v1884_v52 = vpack.c.bf16 %v277_v48, %v276_v47  ;;  %755 = vmatprep.subr.bf16.mxu1 %v1970_v55  ;;  %v1982_v3 = vld [vmem:[%s2547_s1 + $0x154] ss:$8 sps:$4 sm:$0xff]   ;;  %v1984_v9 = vld [vmem:[%s2547_s1 + $0x150] ss:$8 sps:$4 sm:$0xff]   ;;  %v1940_v10 = vld [vmem:[%s2547_s1 + $0xc4] ss:$8 sps:$4 sm:$0xff]  }
  0x18   : > { %1025 = vmatprep.subr.bf16.mxu0 %v1919_v11  ;;  %v1988_v12 = vld [vmem:[%s2547_s1 + $0x164] ss:$8 sps:$4 sm:$0xff]   ;;  %v1942_v19 = vld [vmem:[%s2547_s1 + $0xc0] ss:$8 sps:$4 sm:$0xff]   ;;  %v1943_v23 = vld [vmem:[%s2547_s1 + $0xd4] ss:$8 sps:$4 sm:$0xff]  }
  0x19   : > { %v329_v57 = vsel %vm2191_vm6, %v1884_v52, %v328_v45  ;;  %v1703_v58 = vld.sshfl [vmem:[#allocation2] sm:$0x5f pattern:$0x75316420]  ;;  %v1945_v32 = vld [vmem:[%s2547_s1 + $0xd0] ss:$8 sps:$4 sm:$0xff]  }
  0x1a   : > { %330 = vst [vmem:[#allocation2 + $0x10] sm:$0x77] %v329_v57  ;;  %v352_v60 = vcombine.high %v1703_v58, %v1703_v58  ;;  %v359_v62 = vrot.slane %v1703_v58, %v2226_v54  ;;  %756 = vmatpush1.bf16.msra.mxu1 %v1972_v59  ;;  %v1990_v22 = vld [vmem:[%s2547_s1 + $0x160] ss:$8 sps:$4 sm:$0xff]   ;;  %v1996_v35 = vld [vmem:[%s2547_s1 + $0x170] ss:$8 sps:$4 sm:$0xff]  }
  0x1b   : > { %1026 = vmatpush1.bf16.msra.mxu0 %v1921_v13  ;;  %757 = vmatprep.subr.bf16.mxu1 %v1976_v61  ;;  %v2000_v38 = vld [vmem:[%s2547_s1 + $0x184] ss:$8 sps:$4 sm:$0xff]   ;;  %v1948_v42 = vld [vmem:[%s2547_s1 + $0xe0] ss:$8 sps:$4 sm:$0xff]   ;;  %v1949_v45 = vld [vmem:[%s2547_s1 + $0xf4] ss:$8 sps:$4 sm:$0xff]  }
  0x1c   : > { %1027 = vmatprep.subr.bf16.mxu0 %v1922_v14  ;;  %v366_v2 = vrot.slane %v352_v60, %v2226_v54  ;;  %v367_v4 = vcombine.high %v359_v62, %v359_v62  ;;  %v2002_v46 = vld [vmem:[%s2547_s1 + $0x180] ss:$8 sps:$4 sm:$0xff]   ;;  %v2006_v48 = vld [vmem:[%s2547_s1 + $0x194] ss:$8 sps:$4 sm:$0xff]   ;;  %v1957_v52 = vld [vmem:[%s2547_s1 + $0x204] ss:$8 sps:$4 sm:$0xff]  }
  0x1d   : > { %v2012_v55 = vld [vmem:[%s2547_s1 + $0x1a4] ss:$8 sps:$4 sm:$0xff]   ;;  %v1955_v57 = vld [vmem:[%s2547_s1 + $0x200] ss:$8 sps:$4 sm:$0xff]   ;;  %v1963_v58 = vld [vmem:[%s2547_s1 + $0x214] ss:$8 sps:$4 sm:$0xff]  }
  0x1e   : > { %758 = vmatpush1.bf16.msra.mxu1 %v1978_v1  ;;  %v797_v11 = vcombine.low %v359_v62, %v366_v2  ;;  %v2014_v59 = vld [vmem:[%s2547_s1 + $0x1a0] ss:$8 sps:$4 sm:$0xff]   ;;  %v2018_v60 = vld [vmem:[%s2547_s1 + $0x1b4] ss:$8 sps:$4 sm:$0xff]   ;;  %v1961_v61 = vld [vmem:[%s2547_s1 + $0x210] ss:$8 sps:$4 sm:$0xff]  }
  0x1f   : > { %1028 = vmatpush1.bf16.msra.mxu0 %v1924_v17  ;;  %759 = vmatprep.subr.bf16.mxu1 %v1982_v3  ;;  %v1969_v62 = vld [vmem:[%s2547_s1 + $0x224] ss:$8 sps:$4 sm:$0xff]   ;;  %v2020_v1 = vld [vmem:[%s2547_s1 + $0x1b0] ss:$8 sps:$4 sm:$0xff]  }
  0x20   : > { %1029 = vmatprep.subr.bf16.mxu0 %v1925_v24  ;;  %v1994_v24 = vld [vmem:[%s2547_s1 + $0x174] ss:$8 sps:$4 sm:$0xff]   ;;  %v805_v31 = vrot.slane %v797_v11, %v2226_v54  ;;  %v230_v2 = vld [vmem:[%s2139_s24 + $0x20] sm:$0x1f]  ;;  %v231_v3 = vld [vmem:[%s2139_s24 + $0x28] sm:$0x1f] }
  0x21   : > { %v1704_v6 = vld.sshfl [vmem:[#allocation2 + $0x10] sm:$0x5f pattern:$0x75316420] }
  0x22   : > { %v375_v7 = vcombine.high %v1704_v6, %v1704_v6  ;;  %v2260_v8 = vrot.slane %v1704_v6, %v2226_v54  ;;  %760 = vmatpush1.bf16.msra.mxu1 %v1984_v9  ;;  %v2024_v6 = vld [vmem:[%s2547_s1 + $0x1c4] ss:$8 sps:$4 sm:$0xff]   ;;  %v251_v9 = vmul.f32 %v2174_v26, %v231_v3  ;;  %v2044_v36 = vld [vmem:[%s2547_s1 + $0x1f0] ss:$8 sps:$4 sm:$0xff]  }
  0x23   : > { %1030 = vmatpush1.bf16.msra.mxu0 %v1927_v33  ;;  %761 = vmatprep.subr.bf16.mxu1 %v1988_v12  ;;  %v232_v12 = vld [vmem:[%s2139_s24 + $0x30] sm:$0x1f] }
  0x24   : > { %1031 = vmatprep.subr.bf16.mxu0 %v1928_v37  ;;  %v2272_v13 = vrot.slane %v375_v7, %v2226_v54  ;;  %v2276_v14 = vcombine.high %v2260_v8, %v2260_v8  ;;  %v397_v17 = vunpack.i.h.s16 %v2260_v8  ;;  %v1774_v18 = vpack.i.b16 %v2260_v8, %v367_v4  ;;  %v1946_v37 = vld [vmem:[%s2547_s1 + $0xe4] ss:$8 sps:$4 sm:$0xff]  }
  0x25   : > { %v250_v7 = vmul.f32 %v2171_v25, %v230_v2 }
  0x26   : > { %v399_v20 = vunpack.i.h.s16 %v2272_v13  ;;  %v1775_v21 = vpack.i.b16 %v2272_v13, %v397_v17  ;;  %762 = vmatpush1.bf16.msra.mxu1 %v1990_v22  ;;  %v1967_v17 = vld [vmem:[%s2547_s1 + $0x220] ss:$8 sps:$4 sm:$0xff]   ;;  %v1975_v22 = vld [vmem:[%s2547_s1 + $0x234] ss:$8 sps:$4 sm:$0xff]  }
  0x27   : > { %1032 = vmatpush1.bf16.msra.mxu0 %v1930_v44  ;;  %763 = vmatprep.subr.bf16.mxu1 %v1994_v24 }
  0x28   : > { %1033 = vmatprep.subr.bf16.mxu0 %v1931_v51  ;;  %v1776_v28 = vpack.i.b16 %v2276_v14, %v399_v20  ;;  %v798_v30 = vcombine.low %v1774_v18, %v1775_v21  ;;  %v1953_v51 = vld [vmem:[%s2547_s1 + $0xf0] ss:$8 sps:$4 sm:$0xff]   ;;  %v270_v18 = vadd.f32 %v2177_v27, %v250_v7  ;;  %v252_v21 = vmul.f32 %v2171_v25, %v232_v12 }
  0x29   : > { %v233_v20 = vld [vmem:[%s2139_s24 + $0x38] sm:$0x1f] }
  0x2a   : > { %v812_v33 = vrot.slane %v798_v30, %v2226_v54  ;;  %v819_v34 = vrot.slane %v1776_v28, %v2226_v54  ;;  %764 = vmatpush1.bf16.msra.mxu1 %v1996_v35  ;;  %v253_v30 = vmul.f32 %v2174_v26, %v233_v20  ;;  %v1997_v12 = vld [vmem:[%s2547_s1 + $0x270] ss:$8 sps:$4 sm:$0xff]   ;;  %v1157_v20 = vcombine.low %v2260_v8, %v2272_v13  ;;  %v2003_v8 = vld [vmem:[%s2547_s1 + $0x280] ss:$8 sps:$4 sm:$0xff]  }
  0x2b   : > { %1034 = vmatpush1.bf16.msra.mxu0 %v1933_v53  ;;  %765 = vmatprep.subr.bf16.mxu1 %v2000_v38  ;;  %v2008_v53 = vld [vmem:[%s2547_s1 + $0x190] ss:$8 sps:$4 sm:$0xff]  }
  0x2c   : > { %1035 = vmatprep.subr.bf16.mxu0 %v1934_v56  ;;  %v821_v39 = vcombine.high %v805_v31, %v812_v33  ;;  %v822_v40 = vcombine.high %v819_v34, %v819_v34  ;;  %v820_v41 = vcombine.low %v805_v31, %v812_v33  ;;  %v843_v50 = vrot.slane %v819_v34, %v2226_v54  ;;  %v2030_v31 = vld [vmem:[%s2547_s1 + $0x1d4] ss:$8 sps:$4 sm:$0xff]   ;;  %v325_v33 = vld [vmem:[#allocation2 + $0x8] sm:$0x77] }
  0x2d   : > { %v272_v34 = vadd.f32 %v2177_v27, %v252_v21  ;;  %v273_v38 = vadd.f32 %v2182_v29, %v253_v30  ;;  %v2005_v21 = vld [vmem:[%s2547_s1 + $0x284] ss:$8 sps:$4 sm:$0xff]  }
  0x2e   : > { %v836_v43 = vrot.slane %v821_v39, %v2226_v54  ;;  %v850_v44 = vrot.slane %v822_v40, %v2226_v54  ;;  %v829_v49 = vrot.slane %v820_v41, %v2226_v54  ;;  %766 = vmatpush1.bf16.msra.mxu1 %v2002_v46  ;;  %v1973_v39 = vld [vmem:[%s2547_s1 + $0x230] ss:$8 sps:$4 sm:$0xff]   ;;  %v1981_v41 = vld [vmem:[%s2547_s1 + $0x244] ss:$8 sps:$4 sm:$0xff]  }
  0x2f   : > { %1036 = vmatpush1.bf16.msra.mxu0 %v1936_v63  ;;  %767 = vmatprep.subr.bf16.mxu1 %v2006_v48  ;;  %v226_v63 = vld [vmem:[%s2139_s24] sm:$0x1f]  ;;  %v280_v40 = vmax.f32 %v272_v34, 0.0  ;;  %v1987_v48 = vld [vmem:[%s2547_s1 + $0x254] ss:$8 sps:$4 sm:$0xff]   ;;  %v1165_v34 = vrot.slane %v1157_v20, %v2226_v54 }
  0x30   : > { %1037 = vmatprep.subr.bf16.mxu0 %v1937_v0  ;;  %v852_v47 = vcombine.low %v836_v43, %v850_v44  ;;  %v851_v56 = vcombine.low %v829_v49, %v843_v50  ;;  %v227_v0 = vld [vmem:[%s2139_s24 + $0x8] sm:$0x1f]  ;;  %v246_v4 = vmul.f32 %v2171_v25, %v226_v63  ;;  %v278_v25 = vmax.f32 %v270_v18, 0.0 }
  0x31   : > { %v2036_v43 = vld [vmem:[%s2547_s1 + $0x1e4] ss:$8 sps:$4 sm:$0xff]   ;;  %v2038_v49 = vld [vmem:[%s2547_s1 + $0x1e0] ss:$8 sps:$4 sm:$0xff]  }
  0x32   : > { %1047 = vmatprep.mubr.bf16.mxu0 %v852_v47  ;;  %768 = vmatpush1.bf16.msra.mxu1 %v2008_v53  ;;  %v1979_v47 = vld [vmem:[%s2547_s1 + $0x240] ss:$8 sps:$4 sm:$0xff]   ;;  %v1993_v53 = vld [vmem:[%s2547_s1 + $0x264] ss:$8 sps:$4 sm:$0xff]  }
  0x33   : > { %1038 = vmatpush1.bf16.msra.mxu0 %v1939_v5  ;;  %769 = vmatprep.subr.bf16.mxu1 %v2012_v55  ;;  %v247_v5 = vmul.f32 %v2174_v26, %v227_v0  ;;  %v1999_v0 = vld [vmem:[%s2547_s1 + $0x274] ss:$8 sps:$4 sm:$0xff]  }
  0x34   : > { %1039 = vmatprep.subr.bf16.mxu0 %v1940_v10  ;;  %v266_v10 = vadd.f32 %v2177_v27, %v246_v4  ;;  %v2032_v27 = vld [vmem:[%s2547_s1 + $0x1d0] ss:$8 sps:$4 sm:$0xff]  }
  0x35   : > { %v267_v11 = vadd.f32 %v2182_v29, %v247_v5 }
  0x36   : > { %770 = vmatpush1.bf16.msra.mxu1 %v2014_v59  ;;  %v274_v24 = vmax.f32 %v266_v10, 0.0 }
  0x37   : > { %1040 = vmatpush1.bf16.msra.mxu0 %v1942_v19  ;;  %771 = vmatprep.subr.bf16.mxu1 %v2018_v60  ;;  %v271_v19 = vadd.f32 %v2182_v29, %v251_v9  ;;  %v275_v28 = vmax.f32 %v267_v11, 0.0 }
  0x38   : > { %1041 = vmatprep.subr.bf16.mxu0 %v1943_v23  ;;  %v2026_v23 = vld [vmem:[%s2547_s1 + $0x1c0] ss:$8 sps:$4 sm:$0xff]  }
  0x39   : > { %v1883_v35 = vpack.c.bf16 %v275_v28, %v274_v24 }
  0x3a   : > { %772 = vmatpush1.bf16.msra.mxu1 %v2020_v1 }
  0x3b   : > { %1042 = vmatpush1.bf16.msra.mxu0 %v1945_v32  ;;  %773 = vmatprep.subr.bf16.mxu1 %v2024_v6  ;;  %v279_v32 = vmax.f32 %v271_v19, 0.0  ;;  %v326_v29 = vsel %vm2191_vm6, %v1883_v35, %v325_v33 }
  0x3c   : > { %1043 = vmatprep.subr.bf16.mxu0 %v1946_v37  ;;  %v331_v37 = vld [vmem:[#allocation2 + $0x18] sm:$0x77]  ;;  %327 = vst [vmem:[#allocation2 + $0x8] sm:$0x77] %v326_v29 }
  0x3d   : > { %v1885_v26 = vpack.c.bf16 %v279_v32, %v278_v25 }
  0x3e   : > { %774 = vmatpush1.bf16.msra.mxu1 %v2026_v23 }
  0x3f   : > { %1044 = vmatpush1.bf16.msra.mxu0 %v1948_v42  ;;  %v281_v42 = vmax.f32 %v273_v38, 0.0  ;;  %775 = vmatprep.subr.bf16.mxu1 %v2030_v31  ;;  %v332_v44 = vsel %vm2191_vm6, %v1885_v26, %v331_v37 }
  0x40   : > { %1045 = vmatprep.subr.bf16.mxu0 %v1949_v45  ;;  %v334_v45 = vld [vmem:[#allocation2 + $0x20] sm:$0x77]  ;;  %333 = vst [vmem:[#allocation2 + $0x18] sm:$0x77] %v332_v44 }
  0x41   : > { %v1886_v46 = vpack.c.bf16 %v281_v42, %v280_v40  ;;  %v2009_v42 = vld [vmem:[%s2547_s1 + $0x290] ss:$8 sps:$4 sm:$0xff]  }
  0x42   : > { %776 = vmatpush1.bf16.msra.mxu1 %v2032_v27 }
  0x43   : > { %1046 = vmatpush1.bf16.msra.mxu0 %v1953_v51  ;;  %v335_v50 = vsel %vm2191_vm6, %v1886_v46, %v334_v45  ;;  %777 = vmatprep.subr.bf16.mxu1 %v2036_v43  ;;  %v2042_v51 = vld [vmem:[%s2547_s1 + $0x1f4] ss:$8 sps:$4 sm:$0xff]   ;;  %v1705_v55 = vld.sshfl [vmem:[#allocation2 + $0x8] sm:$0x5f pattern:$0x75316420] }
  0x44   : > { %1375 = vmatprep.subr.bf16.mxu0 %v1957_v52  ;;  %336 = vst [vmem:[#allocation2 + $0x20] sm:$0x77] %v335_v50  ;;  %v1985_v52 = vld [vmem:[%s2547_s1 + $0x250] ss:$8 sps:$4 sm:$0xff]   ;;  %v2017_v45 = vld [vmem:[%s2547_s1 + $0x2a4] ss:$8 sps:$4 sm:$0xff]  }
  0x45   : > { %v2015_v50 = vld [vmem:[%s2547_s1 + $0x2a0] ss:$8 sps:$4 sm:$0xff]  }
  0x46   : > { %1048 = vmatmul.mubr.bf16.vlgmr.msra.gmra.mrb[0].mxu0 %v851_v56  ;;  %778 = vmatpush1.bf16.msra.mxu1 %v2038_v49 }
  0x47   : > { %1376 = vmatpush1.bf16.msra.mxu0 %v1955_v57  ;;  %779 = vmatprep.subr.bf16.mxu1 %v2042_v51  ;;  %v1706_v56 = vld.sshfl [vmem:[#allocation2 + $0x18] sm:$0x5f pattern:$0x75316420]  ;;  %v444_v57 = vcombine.high %v1705_v55, %v1705_v55 }
  0x48   : > { %1377 = vmatprep.subr.bf16.mxu0 %v1963_v58  ;;  %v451_v58 = vrot.slane %v1705_v55, %v2226_v54  ;;  %v467_v59 = vcombine.high %v1706_v56, %v1706_v56  ;;  %v474_v60 = vrot.slane %v1706_v56, %v2226_v54  ;;  %v2027_v55 = vld [vmem:[%s2547_s1 + $0x2c0] ss:$8 sps:$4 sm:$0xff]   ;;  %v2035_v56 = vld [vmem:[%s2547_s1 + $0x2d4] ss:$8 sps:$4 sm:$0xff]  }
  0x4a   : > { %v459_v63 = vcombine.high %v451_v58, %v451_v58  ;;  %780 = vmatpush1.bf16.msra.mxu1 %v2044_v36  ;;  %v481_v1 = vrot.slane %v467_v59, %v2226_v54  ;;  %v482_v2 = vcombine.high %v474_v60, %v474_v60  ;;  %v489_v3 = vunpack.i.h.s16 %v474_v60  ;;  %v2029_v36 = vld [vmem:[%s2547_s1 + $0x2c4] ss:$8 sps:$4 sm:$0xff]  }
  0x4b   : > { %1378 = vmatpush1.bf16.msra.mxu0 %v1961_v61  ;;  %v1991_v61 = vld [vmem:[%s2547_s1 + $0x260] ss:$8 sps:$4 sm:$0xff]  }
  0x4c   : > { %1379 = vmatprep.subr.bf16.mxu0 %v1969_v62  ;;  %v458_v62 = vrot.slane %v444_v57, %v2226_v54  ;;  %v1810_v4 = vld.sshfl [vmem:[#allocation2 + $0x20] sm:$0x5f pattern:$0x75316420]  ;;  %v1739_v5 = vpack.i.b16 %v474_v60, %v459_v63  ;;  %v491_v10 = vunpack.i.h.s16 %v481_v1  ;;  %v1740_v11 = vpack.i.b16 %v481_v1, %v489_v3  ;;  %v2033_v57 = vld [vmem:[%s2547_s1 + $0x2d0] ss:$8 sps:$4 sm:$0xff]  }
  0x4d   : > { %v1093_v7 = vcombine.high %v1810_v4, %v1810_v4  ;;  %v1100_v9 = vrot.slane %v1810_v4, %v2226_v54  ;;  %v2039_v60 = vld [vmem:[%s2547_s1 + $0x2e0] ss:$8 sps:$4 sm:$0xff]  }
  0x4e   : > { %v531_v6 = vcombine.low %v451_v58, %v458_v62  ;;  %v532_v23 = vcombine.low %v1739_v5, %v1740_v11  ;;  %v2041_v58 = vld [vmem:[%s2547_s1 + $0x2e4] ss:$8 sps:$4 sm:$0xff]  }
  0x4f   : > { %1380 = vmatpush1.bf16.msra.mxu0 %v1967_v17  ;;  %v1107_v17 = vrot.slane %v1093_v7, %v2226_v54  ;;  %v1108_v18 = vcombine.high %v1100_v9, %v1100_v9  ;;  %v1115_v19 = vunpack.i.h.s16 %v1100_v9  ;;  %v1843_v28 = vpack.i.b16 %v1100_v9, %v2276_v14  ;;  %v2011_v14 = vld [vmem:[%s2547_s1 + $0x294] ss:$8 sps:$4 sm:$0xff]  }
  0x50   : > { %1381 = vmatprep.subr.bf16.mxu0 %v1975_v22  ;;  %v1741_v22 = vpack.i.b16 %v482_v2, %v491_v10  ;;  %v539_v24 = vrot.slane %v531_v6, %v2226_v54  ;;  %v546_v25 = vrot.slane %v532_v23, %v2226_v54  ;;  %v1422_v6 = vld [vmem:[%s2548_s2] sm:$0x3] }
  0x51   : > { %v1117_v30 = vunpack.i.h.s16 %v1107_v17  ;;  %v1844_v31 = vpack.i.b16 %v1107_v17, %v1115_v19  ;;  %v1427_v7 = vrot.slane %v1422_v6, %v2145_v15  ;;  %v1431_v10 = vrot.slane %v1422_v6, %v2148_v16 }
  0x52   : > { %v553_v32 = vrot.slane %v1741_v22, %v2226_v54  ;;  %v555_v35 = vcombine.high %v539_v24, %v546_v25  ;;  %v554_v38 = vcombine.low %v539_v24, %v546_v25 }
  0x53   : > { %1382 = vmatpush1.bf16.msra.mxu0 %v1973_v39  ;;  %v1845_v13 = vpack.i.b16 %v1108_v18, %v1117_v30  ;;  %v1158_v33 = vcombine.low %v1843_v28, %v1844_v31 }
  0x54   : > { %1383 = vmatprep.subr.bf16.mxu0 %v1981_v41  ;;  %v556_v37 = vcombine.high %v553_v32, %v553_v32  ;;  %v577_v39 = vrot.slane %v553_v32, %v2226_v54  ;;  %v570_v41 = vrot.slane %v555_v35, %v2226_v54  ;;  %v563_v29 = vrot.slane %v554_v38, %v2226_v54 }
  0x55   : > { %v1172_v26 = vrot.slane %v1158_v33, %v2226_v54  ;;  %v1179_v40 = vrot.slane %v1845_v13, %v2226_v54 }
  0x56   : > { %v584_v27 = vrot.slane %v556_v37, %v2226_v54 }
  0x57   : > { %1384 = vmatpush1.bf16.msra.mxu0 %v1979_v47  ;;  %v1181_v43 = vcombine.high %v1165_v34, %v1172_v26  ;;  %v1182_v44 = vcombine.high %v1179_v40, %v1179_v40  ;;  %v585_v47 = vcombine.low %v563_v29, %v577_v39  ;;  %v1180_v59 = vcombine.low %v1165_v34, %v1172_v26 }
  0x58   : > { %1385 = vmatprep.subr.bf16.mxu0 %v1987_v48  ;;  %v586_v46 = vcombine.low %v570_v41, %v584_v27  ;;  %v1203_v63 = vrot.slane %v1179_v40, %v2226_v54 }
  0x59   : > { %v1196_v48 = vrot.slane %v1181_v43, %v2226_v54  ;;  %v1210_v49 = vrot.slane %v1182_v44, %v2226_v54  ;;  %v1189_v62 = vrot.slane %v1180_v59, %v2226_v54 }
  0x5a   : > { %781 = vmatprep.mubr.bf16.mxu1 %v586_v46 }
  0x5b   : > { %1386 = vmatpush1.bf16.msra.mxu0 %v1985_v52  ;;  %782 = vmatmul.mubr.bf16.vlgmr.msra.gmra.mrb[0].mxu1 %v585_v47  ;;  %v1212_v51 = vcombine.low %v1196_v48, %v1210_v49  ;;  %v2023_v52 = vld [vmem:[%s2547_s1 + $0x2b4] ss:$8 sps:$4 sm:$0xff]   ;;  %v1211_v1 = vcombine.low %v1189_v62, %v1203_v63 }
  0x5c   : > { %1387 = vmatprep.subr.bf16.mxu0 %v1993_v53  ;;  %v2021_v53 = vld [vmem:[%s2547_s1 + $0x2b0] ss:$8 sps:$4 sm:$0xff]  }
  0x5d   : > { %1407 = vmatprep.mubr.bf16.mxu0 %v1212_v51 }
  0x5f   : > { %1388 = vmatpush1.bf16.msra.mxu0 %v1991_v61  ;;  %v2047_v61 = vld [vmem:[%s2547_s1 + $0x2f4] ss:$8 sps:$4 sm:$0xff]  }
  0x60   : > { %1389 = vmatprep.subr.bf16.mxu0 %v1999_v0  ;;  %v2045_v0 = vld [vmem:[%s2547_s1 + $0x2f0] ss:$8 sps:$4 sm:$0xff]  }
  0x63   : > { %1390 = vmatpush1.bf16.msra.mxu0 %v1997_v12 }
  0x64   : > { %1391 = vmatprep.subr.bf16.mxu0 %v2005_v21 }
  0x67   : > { %1392 = vmatpush1.bf16.msra.mxu0 %v2003_v8 }
  0x68   : > { %1393 = vmatprep.subr.bf16.mxu0 %v2011_v14 }
  0x6b   : > { %1394 = vmatpush1.bf16.msra.mxu0 %v2009_v42 }
  0x6c   : > { %1395 = vmatprep.subr.bf16.mxu0 %v2017_v45 }
  0x6f   : > { %1396 = vmatpush1.bf16.msra.mxu0 %v2015_v50 }
  0x70   : > { %1397 = vmatprep.subr.bf16.mxu0 %v2023_v52 }
  0x73   : > { %1398 = vmatpush1.bf16.msra.mxu0 %v2021_v53 }
  0x74   : > { %1399 = vmatprep.subr.bf16.mxu0 %v2029_v36 }
  0x77   : > { %1400 = vmatpush1.bf16.msra.mxu0 %v2027_v55 }
  0x78   : > { %1401 = vmatprep.subr.bf16.mxu0 %v2035_v56 }
  0x7b   : > { %1402 = vmatpush1.bf16.msra.mxu0 %v2033_v57 }
  0x7c   : > { %1403 = vmatprep.subr.bf16.mxu0 %v2041_v58 }
  0x7f   : > { %1404 = vmatpush1.bf16.msra.mxu0 %v2039_v60 }
  0x80   : > { %1405 = vmatprep.subr.bf16.mxu0 %v2047_v61 }
  0x83   : > { %1406 = vmatpush1.bf16.msra.mxu0 %v2045_v0 }
  0x86   : > { %1408 = vmatmul.mubr.bf16.vlgmr.msra.gmra.mrb[0].mxu0 %v1211_v1 }
 0x12e   : > { %v783_v2 = vpop.f32.mrb[0].mxu1 }
 0x12f   : > { %v785_v3 = vpop.f32.mrb[1].mxu1 }
 0x130   : > { %v787_v4 = vpop.f32.mrb[2].mxu1 }
 0x131   : > { %v789_v5 = vpop.f32.mrb[3].mxu1 }
 0x159   : > { %v1409_v9 = vpop.f32.mrb[0].mxu0 }
 0x15a   : > { %v1887_v11 = vadd.f32 %v1409_v9, %v783_v2  ;;  %v1411_v12 = vpop.f32.mrb[1].mxu0 }
 0x15b   : > { %v1888_v17 = vadd.f32 %v1411_v12, %v785_v3  ;;  %v1413_v18 = vpop.f32.mrb[2].mxu0 }
 0x15c   : > { %v1434_v19 = vadd.f32 %v1887_v11, %v1427_v7  ;;  %v1889_v20 = vadd.f32 %v1413_v18, %v787_v4  ;;  %v1415_v21 = vpop.f32.mrb[3].mxu0 }
 0x15d   : > { %v1435_v22 = vadd.f32 %v1888_v17, %v1431_v10  ;;  %v1890_v23 = vadd.f32 %v1415_v21, %v789_v5 }
 0x15e   : > { %v1436_v24 = vadd.f32 %v1889_v20, %v1427_v7 }
 0x15f   : > { %v1442_v28 = vcombine.low %v1434_v19, %v1435_v22  ;;  %v1443_v30 = vcombine.high %v1434_v19, %v1435_v22  ;;  %v1437_v31 = vadd.f32 %v1890_v23, %v1431_v10 }
 0x161   : > { %v1450_v25 = vrot.slane %v1442_v28, %v2226_v54  ;;  %v1457_v15 = vrot.slane %v1443_v30, %v2226_v54  ;;  %v1492_v32 = vcombine.low %v1436_v24, %v1437_v31 }
 0x163   : > { %v1458_v8 = vcombine.high %v1450_v25, %v1450_v25  ;;  %v1459_v16 = vcombine.high %v1457_v15, %v1457_v15  ;;  %v1473_v13 = vrot.slane %v1457_v15, %v2226_v54  ;;  %v1466_v33 = vrot.slane %v1450_v25, %v2226_v54 }
 0x164   : > { %v1499_v34 = vrot.slane %v1492_v32, %v2226_v54 }
 0x165   : > { %v1480_v14 = vrot.slane %v1458_v8, %v2226_v54  ;;  %v1487_v35 = vrot.slane %v1459_v16, %v2226_v54  ;;  %v1489_v37 = vcombine.high %v1473_v13, %v1473_v13  ;;  %v1537_v38 = vrot.slane %v1473_v13, %v2226_v54 }
 0x166   : > { %v1500_v39 = vcombine.high %v1499_v34, %v1499_v34  ;;  %v1507_v29 = vrot.slane %v1499_v34, %v2226_v54 }
 0x167   : > { %v1515_v26 = vcombine.low %v1466_v33, %v1480_v14  ;;  %v1878_v40 = vcombine.high %v1466_v33, %v1480_v14  ;;  %v1571_v41 = vcombine.low %v1487_v35, %v1489_v37  ;;  %v1491_v27 = vcombine.high %v1487_v35, %v1487_v35 }
 0x168   : > { %v1514_v42 = vrot.slane %v1500_v39, %v2226_v54  ;;  %v1540_v45 = vcombine.high %v1537_v38, %v1537_v38  ;;  %v1561_v55 = vrot.slane %v1537_v38, %v2226_v54 }
 0x169   : > { %v1523_v43 = vrot.slane %v1515_v26, %v2226_v54  ;;  %v1530_v44 = vrot.slane %v1878_v40, %v2226_v54  ;;  %v1572_v46 = vcombine.low %v1491_v27, %v1507_v29  ;;  %v1579_v50 = vrot.slane %v1571_v41, %v2226_v54 }
 0x16a   : > { %v1593_v47 = vrot.slane %v1514_v42, %v2226_v54  ;;  %v1568_v56 = vrot.slane %v1540_v45, %v2226_v54 }
 0x16b   : > { %v1538_v48 = vcombine.low %v1523_v43, %v1530_v44  ;;  %v1539_v49 = vcombine.high %v1523_v43, %v1530_v44  ;;  %v1586_v51 = vrot.slane %v1572_v46, %v2226_v54 }
 0x16c   : > { %v1596_v52 = vcombine.high %v1593_v47, %v1593_v47  ;;  %v1617_v63 = vrot.slane %v1593_v47, %v2226_v54 }
 0x16d   : > { %v1547_v53 = vrot.slane %v1538_v48, %v2226_v54  ;;  %v1554_v36 = vrot.slane %v1539_v49, %v2226_v54  ;;  %v1594_v57 = vcombine.low %v1579_v50, %v1586_v51  ;;  %v1595_v58 = vcombine.high %v1579_v50, %v1586_v51 }
 0x16e   : > { %v1624_v0 = vrot.slane %v1596_v52, %v2226_v54 }
 0x16f   : > { %v1569_v59 = vcombine.low %v1547_v53, %v1561_v55  ;;  %v1570_v60 = vcombine.low %v1554_v36, %v1568_v56  ;;  %v1603_v61 = vrot.slane %v1594_v57, %v2226_v54  ;;  %v1610_v62 = vrot.slane %v1595_v58, %v2226_v54 }
 0x171   : > { %1631 = vst [vmem:[%s224_s22] sm:$0x1f] %v1569_v59  ;;  %1632 = vst [vmem:[%s224_s22 + $0x8] sm:$0x1f] %v1570_v60  ;;  %v1625_v1 = vcombine.low %v1603_v61, %v1617_v63  ;;  %v1626_v2 = vcombine.low %v1610_v62, %v1624_v0 }
 0x173   : > { %1633 = vst [vmem:[%s224_s22 + $0x10] sm:$0x1f] %v1625_v1  ;;  %1634 = vst [vmem:[%s224_s22 + $0x18] sm:$0x1f] %v1626_v2 }
 0x174 PF: > { %s15_s18 = sadd.s32 1, %s2054_s18  }
 0x175   : > { %p12_p4 = scmp.ge.s32.totalorder %s15_s18, 4  }
 0x177   :  { %14 = sbr.rel (!%p12_p4) target bundleno = 1 (0x1), region = 75 }

// kernel: drgcn_forward.84
= control target key start
LH: loop header
LB: loop body
LE: loop exit
PB: predicated region body
PF: predicated region fallthrough
CT: control target
= control target key end

     0   :  { %s1715_s1 = inlined_call_operand.vmem [shape: bf16[256,1024], index: 1, kind: input, shape index: {}]   ;;  %s1716_s0 = inlined_call_operand.vmem [shape: f32[24,256], index: 0, kind: input, shape index: {}]   ;;  %s1717_s2 = inlined_call_operand.vmem [shape: f32[1,1024], index: 2, kind: input, shape index: {}]   ;;  %s1718_s3 = inlined_call_operand.vmem [shape: f32[24,1024], index: 3, kind: output, shape index: {}]  }
   0x1   :  { %v24_v0 = vld [vmem:[%s1715_s1] sm:$0xff]  ;;  %v25_v2 = vld [vmem:[%s1715_s1 + $0x8] sm:$0xff]  ;;  %v17_v54 = vld [vmem:[%s1716_s0 + $0x18] sm:$0xff] }
   0x2   :  { %v28_v1 = vld [vmem:[%s1715_s1 + $0x20] sm:$0xff]  ;;  %v29_v4 = vld [vmem:[%s1715_s1 + $0x28] sm:$0xff] }
   0x3   :  { %v1067_v3 = vcombine.high %v24_v0, %v28_v1  ;;  %v1066_v5 = vcombine.low %v24_v0, %v28_v1  ;;  %v32_v6 = vld [vmem:[%s1715_s1 + $0x40] sm:$0xff]  ;;  %v1069_v8 = vcombine.high %v25_v2, %v29_v4  ;;  %v1068_v9 = vcombine.low %v25_v2, %v29_v4  ;;  %v33_v11 = vld [vmem:[%s1715_s1 + $0x48] sm:$0xff] }
   0x4   :  { %v36_v7 = vld [vmem:[%s1715_s1 + $0x60] sm:$0xff]  ;;  %v37_v12 = vld [vmem:[%s1715_s1 + $0x68] sm:$0xff] }
   0x5   :  { %v1075_v10 = vcombine.high %v32_v6, %v36_v7  ;;  %v40_v13 = vld [vmem:[%s1715_s1 + $0x80] sm:$0xff]  ;;  %834 = vmatprep.subr.bf16.mxu0 %v1067_v3  ;;  %v1077_v14 = vcombine.high %v33_v11, %v37_v12  ;;  %v41_v16 = vld [vmem:[%s1715_s1 + $0x88] sm:$0xff]  ;;  %885 = vmatprep.subr.bf16.mxu1 %v1069_v8  ;;  %v1074_v18 = vcombine.low %v32_v6, %v36_v7 }
   0x6   :  { %v44_v15 = vld [vmem:[%s1715_s1 + $0xa0] sm:$0xff]  ;;  %v45_v17 = vld [vmem:[%s1715_s1 + $0xa8] sm:$0xff]  ;;  %835 = vmatpush1.bf16.msra.mxu0 %v1066_v5  ;;  %886 = vmatpush1.bf16.msra.mxu1 %v1068_v9  ;;  %v1076_v19 = vcombine.low %v33_v11, %v37_v12 }
   0x7   :  { %836 = vmatprep.subr.bf16.mxu0 %v1075_v10  ;;  %v1083_v20 = vcombine.high %v40_v13, %v44_v15  ;;  %887 = vmatprep.subr.bf16.mxu1 %v1077_v14  ;;  %v1085_v21 = vcombine.high %v41_v16, %v45_v17  ;;  %v48_v22 = vld [vmem:[%s1715_s1 + $0xc0] sm:$0xff]  ;;  %v49_v24 = vld [vmem:[%s1715_s1 + $0xc8] sm:$0xff]  ;;  %v1082_v26 = vcombine.low %v40_v13, %v44_v15 }
   0x8   :  { %v52_v23 = vld [vmem:[%s1715_s1 + $0xe0] sm:$0xff]  ;;  %v53_v25 = vld [vmem:[%s1715_s1 + $0xe8] sm:$0xff]  ;;  %v1084_v27 = vcombine.low %v41_v16, %v45_v17 }
   0x9   :  { %v1091_v28 = vcombine.high %v48_v22, %v52_v23  ;;  %v1093_v29 = vcombine.high %v49_v24, %v53_v25  ;;  %v56_v30 = vld [vmem:[%s1715_s1 + $0x100] sm:$0xff]  ;;  %v57_v32 = vld [vmem:[%s1715_s1 + $0x108] sm:$0xff]  ;;  %v1090_v34 = vcombine.low %v48_v22, %v52_v23  ;;  %v1092_v35 = vcombine.low %v49_v24, %v53_v25 }
   0xa   :  { %837 = vmatpush1.bf16.msra.mxu0 %v1074_v18  ;;  %888 = vmatpush1.bf16.msra.mxu1 %v1076_v19  ;;  %v60_v31 = vld [vmem:[%s1715_s1 + $0x120] sm:$0xff]  ;;  %v61_v33 = vld [vmem:[%s1715_s1 + $0x128] sm:$0xff] }
   0xb   :  { %838 = vmatprep.subr.bf16.mxu0 %v1083_v20  ;;  %889 = vmatprep.subr.bf16.mxu1 %v1085_v21  ;;  %v1099_v36 = vcombine.high %v56_v30, %v60_v31  ;;  %v1101_v37 = vcombine.high %v57_v32, %v61_v33  ;;  %v64_v38 = vld [vmem:[%s1715_s1 + $0x140] sm:$0xff]  ;;  %v65_v40 = vld [vmem:[%s1715_s1 + $0x148] sm:$0xff]  ;;  %v1098_v42 = vcombine.low %v56_v30, %v60_v31 }
   0xc   :  { %v68_v39 = vld [vmem:[%s1715_s1 + $0x160] sm:$0xff]  ;;  %v69_v41 = vld [vmem:[%s1715_s1 + $0x168] sm:$0xff]  ;;  %v1100_v43 = vcombine.low %v57_v32, %v61_v33 }
   0xd   :  { %v1107_v44 = vcombine.high %v64_v38, %v68_v39  ;;  %v1109_v45 = vcombine.high %v65_v40, %v69_v41  ;;  %v72_v46 = vld [vmem:[%s1715_s1 + $0x180] sm:$0xff]  ;;  %v73_v48 = vld [vmem:[%s1715_s1 + $0x188] sm:$0xff]  ;;  %v1106_v50 = vcombine.low %v64_v38, %v68_v39  ;;  %v1108_v51 = vcombine.low %v65_v40, %v69_v41 }
   0xe   :  { %839 = vmatpush1.bf16.msra.mxu0 %v1082_v26  ;;  %890 = vmatpush1.bf16.msra.mxu1 %v1084_v27  ;;  %v76_v47 = vld [vmem:[%s1715_s1 + $0x1a0] sm:$0xff]  ;;  %v77_v49 = vld [vmem:[%s1715_s1 + $0x1a8] sm:$0xff] }
   0xf   :  { %840 = vmatprep.subr.bf16.mxu0 %v1091_v28  ;;  %891 = vmatprep.subr.bf16.mxu1 %v1093_v29  ;;  %v1115_v52 = vcombine.high %v72_v46, %v76_v47  ;;  %v15_v53 = vld [vmem:[%s1716_s0 + $0x8] sm:$0xff]  ;;  %v1117_v55 = vcombine.high %v73_v48, %v77_v49  ;;  %v80_v56 = vld [vmem:[%s1715_s1 + $0x1c0] sm:$0xff]  ;;  %v1114_v61 = vcombine.low %v72_v46, %v76_v47 }
  0x10   :  { %v84_v57 = vld [vmem:[%s1715_s1 + $0x1e0] sm:$0xff]  ;;  %v1310_v58 = vpack.c.bf16 %v17_v54, %v15_v53  ;;  %v81_v59 = vld [vmem:[%s1715_s1 + $0x1c8] sm:$0xff]  ;;  %v1116_v62 = vcombine.low %v73_v48, %v77_v49 }
  0x11   :  { %v85_v60 = vld [vmem:[%s1715_s1 + $0x1e8] sm:$0xff]  ;;  %v1123_v63 = vcombine.high %v80_v56, %v84_v57  ;;  %v88_v1 = vld [vmem:[%s1715_s1 + $0x200] sm:$0xff]  ;;  %v1122_v5 = vcombine.low %v80_v56, %v84_v57 }
  0x12   :  { %841 = vmatpush1.bf16.msra.mxu0 %v1090_v34  ;;  %892 = vmatpush1.bf16.msra.mxu1 %v1092_v35  ;;  %v1125_v0 = vcombine.high %v81_v59, %v85_v60  ;;  %v92_v2 = vld [vmem:[%s1715_s1 + $0x220] sm:$0xff]  ;;  %v89_v3 = vld [vmem:[%s1715_s1 + $0x208] sm:$0xff]  ;;  %v1124_v6 = vcombine.low %v81_v59, %v85_v60 }
  0x13   :  { %842 = vmatprep.subr.bf16.mxu0 %v1099_v36  ;;  %893 = vmatprep.subr.bf16.mxu1 %v1101_v37  ;;  %v93_v4 = vld [vmem:[%s1715_s1 + $0x228] sm:$0xff]  ;;  %v1131_v7 = vcombine.high %v88_v1, %v92_v2  ;;  %v96_v9 = vld [vmem:[%s1715_s1 + $0x240] sm:$0xff]  ;;  %v1130_v13 = vcombine.low %v88_v1, %v92_v2  ;;  %v26_v2 = vld [vmem:[%s1715_s1 + $0x10] sm:$0xff] }
  0x14   :  { %866 = vmatprep.mubr.bf16.mxu0 %v1310_v58  ;;  %917 = vmatprep.mubr.bf16.mxu1 %v1310_v58  ;;  %v1133_v8 = vcombine.high %v89_v3, %v93_v4  ;;  %v100_v10 = vld [vmem:[%s1715_s1 + $0x260] sm:$0xff]  ;;  %v97_v11 = vld [vmem:[%s1715_s1 + $0x248] sm:$0xff]  ;;  %v1132_v14 = vcombine.low %v89_v3, %v93_v4  ;;  %v30_v3 = vld [vmem:[%s1715_s1 + $0x30] sm:$0xff] }
  0x15   :  { %v101_v12 = vld [vmem:[%s1715_s1 + $0x268] sm:$0xff]  ;;  %v1139_v15 = vcombine.high %v96_v9, %v100_v10  ;;  %v104_v17 = vld [vmem:[%s1715_s1 + $0x280] sm:$0xff]  ;;  %v1138_v21 = vcombine.low %v96_v9, %v100_v10  ;;  %v27_v4 = vld [vmem:[%s1715_s1 + $0x18] sm:$0xff]  ;;  %v1071_v10 = vcombine.high %v26_v2, %v30_v3 }
  0x16   :  { %843 = vmatpush1.bf16.msra.mxu0 %v1098_v42  ;;  %894 = vmatpush1.bf16.msra.mxu1 %v1100_v43  ;;  %v1141_v16 = vcombine.high %v97_v11, %v101_v12  ;;  %v108_v18 = vld [vmem:[%s1715_s1 + $0x2a0] sm:$0xff]  ;;  %v105_v19 = vld [vmem:[%s1715_s1 + $0x288] sm:$0xff]  ;;  %v1140_v22 = vcombine.low %v97_v11, %v101_v12  ;;  %v34_v12 = vld [vmem:[%s1715_s1 + $0x50] sm:$0xff] }
  0x17   :  { %844 = vmatprep.subr.bf16.mxu0 %v1107_v44  ;;  %895 = vmatprep.subr.bf16.mxu1 %v1109_v45  ;;  %v109_v20 = vld [vmem:[%s1715_s1 + $0x2a8] sm:$0xff]  ;;  %v1147_v23 = vcombine.high %v104_v17, %v108_v18  ;;  %v112_v25 = vld [vmem:[%s1715_s1 + $0x2c0] sm:$0xff]  ;;  %v1146_v29 = vcombine.low %v104_v17, %v108_v18  ;;  %v1070_v18 = vcombine.low %v26_v2, %v30_v3  ;;  %v86_v2 = vld [vmem:[%s1715_s1 + $0x1f0] sm:$0xff] }
  0x18   :  { %v1149_v24 = vcombine.high %v105_v19, %v109_v20  ;;  %v116_v26 = vld [vmem:[%s1715_s1 + $0x2e0] sm:$0xff]  ;;  %v113_v27 = vld [vmem:[%s1715_s1 + $0x2c8] sm:$0xff]  ;;  %v1148_v30 = vcombine.low %v105_v19, %v109_v20  ;;  %v83_v3 = vld [vmem:[%s1715_s1 + $0x1d8] sm:$0xff] }
  0x19   :  { %v117_v28 = vld [vmem:[%s1715_s1 + $0x2e8] sm:$0xff]  ;;  %v1155_v31 = vcombine.high %v112_v25, %v116_v26  ;;  %v120_v33 = vld [vmem:[%s1715_s1 + $0x300] sm:$0xff]  ;;  %v1154_v37 = vcombine.low %v112_v25, %v116_v26  ;;  %v43_v25 = vld [vmem:[%s1715_s1 + $0x98] sm:$0xff] }
  0x1a   :  { %845 = vmatpush1.bf16.msra.mxu0 %v1106_v50  ;;  %896 = vmatpush1.bf16.msra.mxu1 %v1108_v51  ;;  %v1157_v32 = vcombine.high %v113_v27, %v117_v28  ;;  %v124_v34 = vld [vmem:[%s1715_s1 + $0x320] sm:$0xff]  ;;  %v121_v35 = vld [vmem:[%s1715_s1 + $0x308] sm:$0xff]  ;;  %v1156_v38 = vcombine.low %v113_v27, %v117_v28  ;;  %v47_v26 = vld [vmem:[%s1715_s1 + $0xb8] sm:$0xff] }
  0x1b   :  { %846 = vmatprep.subr.bf16.mxu0 %v1115_v52  ;;  %897 = vmatprep.subr.bf16.mxu1 %v1117_v55  ;;  %v125_v36 = vld [vmem:[%s1715_s1 + $0x328] sm:$0xff]  ;;  %v1163_v39 = vcombine.high %v120_v33, %v124_v34  ;;  %v128_v41 = vld [vmem:[%s1715_s1 + $0x340] sm:$0xff]  ;;  %v1162_v45 = vcombine.low %v120_v33, %v124_v34  ;;  %v54_v33 = vld [vmem:[%s1715_s1 + $0xf0] sm:$0xff] }
  0x1c   :  { %v1165_v40 = vcombine.high %v121_v35, %v125_v36  ;;  %v132_v42 = vld [vmem:[%s1715_s1 + $0x360] sm:$0xff]  ;;  %v129_v43 = vld [vmem:[%s1715_s1 + $0x348] sm:$0xff]  ;;  %v1164_v46 = vcombine.low %v121_v35, %v125_v36  ;;  %v51_v34 = vld [vmem:[%s1715_s1 + $0xd8] sm:$0xff] }
  0x1d   :  { %v133_v44 = vld [vmem:[%s1715_s1 + $0x368] sm:$0xff]  ;;  %v1171_v47 = vcombine.high %v128_v41, %v132_v42  ;;  %v136_v49 = vld [vmem:[%s1715_s1 + $0x380] sm:$0xff]  ;;  %v1170_v53 = vcombine.low %v128_v41, %v132_v42  ;;  %v55_v35 = vld [vmem:[%s1715_s1 + $0xf8] sm:$0xff] }
  0x1e   :  { %847 = vmatpush1.bf16.msra.mxu0 %v1114_v61  ;;  %898 = vmatpush1.bf16.msra.mxu1 %v1116_v62  ;;  %v1173_v48 = vcombine.high %v129_v43, %v133_v44  ;;  %v140_v50 = vld [vmem:[%s1715_s1 + $0x3a0] sm:$0xff]  ;;  %v137_v51 = vld [vmem:[%s1715_s1 + $0x388] sm:$0xff]  ;;  %v1172_v54 = vcombine.low %v129_v43, %v133_v44  ;;  %v58_v41 = vld [vmem:[%s1715_s1 + $0x110] sm:$0xff] }
  0x1f   :  { %848 = vmatprep.subr.bf16.mxu0 %v1123_v63  ;;  %899 = vmatprep.subr.bf16.mxu1 %v1125_v0  ;;  %v141_v52 = vld [vmem:[%s1715_s1 + $0x3a8] sm:$0xff]  ;;  %v1179_v55 = vcombine.high %v136_v49, %v140_v50  ;;  %v144_v57 = vld [vmem:[%s1715_s1 + $0x3c0] sm:$0xff]  ;;  %v1178_v62 = vcombine.low %v136_v49, %v140_v50  ;;  %v62_v42 = vld [vmem:[%s1715_s1 + $0x130] sm:$0xff] }
  0x20   :  { %v1181_v56 = vcombine.high %v137_v51, %v141_v52  ;;  %v148_v59 = vld [vmem:[%s1715_s1 + $0x3e0] sm:$0xff]  ;;  %v145_v60 = vld [vmem:[%s1715_s1 + $0x3c8] sm:$0xff]  ;;  %v1180_v63 = vcombine.low %v137_v51, %v141_v52  ;;  %v59_v43 = vld [vmem:[%s1715_s1 + $0x118] sm:$0xff] }
  0x21   :  { %v149_v61 = vld [vmem:[%s1715_s1 + $0x3e8] sm:$0xff]  ;;  %v1187_v0 = vcombine.high %v144_v57, %v148_v59  ;;  %v18_v28 = vld [vmem:[%s1716_s0 + $0x20] sm:$0xff]  ;;  %v63_v44 = vld [vmem:[%s1715_s1 + $0x138] sm:$0xff] }
  0x22   :  { %849 = vmatpush1.bf16.msra.mxu0 %v1122_v5  ;;  %900 = vmatpush1.bf16.msra.mxu1 %v1124_v6  ;;  %v1189_v1 = vcombine.high %v145_v60, %v149_v61  ;;  %v31_v5 = vld [vmem:[%s1715_s1 + $0x38] sm:$0xff]  ;;  %v1186_v6 = vcombine.low %v144_v57, %v148_v59  ;;  %v1188_v9 = vcombine.low %v145_v60, %v149_v61  ;;  %v19_v17 = vld [vmem:[%s1716_s0 + $0x28] sm:$0xff]  ;;  %v66_v49 = vld [vmem:[%s1715_s1 + $0x150] sm:$0xff] }
  0x23   :  { %850 = vmatprep.subr.bf16.mxu0 %v1131_v7  ;;  %901 = vmatprep.subr.bf16.mxu1 %v1133_v8  ;;  %v14_v7 = vld [vmem:[%s1716_s0] sm:$0xff]  ;;  %v16_v8 = vld [vmem:[%s1716_s0 + $0x10] sm:$0xff]  ;;  %v1073_v11 = vcombine.high %v27_v4, %v31_v5  ;;  %v1072_v19 = vcombine.low %v27_v4, %v31_v5  ;;  %v1484_v36 = vpack.c.bf16 %v18_v28, %v18_v28  ;;  %v67_v51 = vld [vmem:[%s1715_s1 + $0x158] sm:$0xff] }
  0x24   :  { %v70_v50 = vld [vmem:[%s1715_s1 + $0x170] sm:$0xff]  ;;  %v71_v52 = vld [vmem:[%s1715_s1 + $0x178] sm:$0xff] }
  0x25   :  { %v74_v57 = vld [vmem:[%s1715_s1 + $0x190] sm:$0xff]  ;;  %v79_v60 = vld [vmem:[%s1715_s1 + $0x1b8] sm:$0xff]  ;;  %v1110_v61 = vcombine.low %v66_v49, %v70_v50 }
  0x26   :  { %851 = vmatpush1.bf16.msra.mxu0 %v1130_v13  ;;  %902 = vmatpush1.bf16.msra.mxu1 %v1132_v14  ;;  %v38_v13 = vld [vmem:[%s1715_s1 + $0x70] sm:$0xff]  ;;  %v1440_v14 = vpack.c.bf16 %v16_v8, %v14_v7  ;;  %v87_v4 = vld [vmem:[%s1715_s1 + $0x1f8] sm:$0xff] }
  0x27   :  { %852 = vmatprep.subr.bf16.mxu0 %v1139_v15  ;;  %903 = vmatprep.subr.bf16.mxu1 %v1141_v16  ;;  %v35_v15 = vld [vmem:[%s1715_s1 + $0x58] sm:$0xff]  ;;  %v1079_v20 = vcombine.high %v34_v12, %v38_v13  ;;  %v1078_v27 = vcombine.low %v34_v12, %v38_v13  ;;  %v78_v59 = vld [vmem:[%s1715_s1 + $0x1b0] sm:$0xff]  ;;  %v1129_v8 = vcombine.high %v83_v3, %v87_v4 }
  0x28   :  { %v39_v16 = vld [vmem:[%s1715_s1 + $0x78] sm:$0xff]  ;;  %v1118_v5 = vcombine.low %v74_v57, %v78_v59  ;;  %v110_v28 = vld [vmem:[%s1715_s1 + $0x2b0] sm:$0xff] }
  0x29   :  { %v95_v12 = vld [vmem:[%s1715_s1 + $0x238] sm:$0xff] }
  0x2a   :  { %853 = vmatpush1.bf16.msra.mxu0 %v1138_v21  ;;  %904 = vmatpush1.bf16.msra.mxu1 %v1140_v22  ;;  %v1081_v21 = vcombine.high %v35_v15, %v39_v16  ;;  %v42_v22 = vld [vmem:[%s1715_s1 + $0x90] sm:$0xff] }
  0x2b   :  { %854 = vmatprep.subr.bf16.mxu0 %v1147_v23  ;;  %905 = vmatprep.subr.bf16.mxu1 %v1149_v24  ;;  %v46_v23 = vld [vmem:[%s1715_s1 + $0xb0] sm:$0xff]  ;;  %v1457_v24 = vpack.c.bf16 %v19_v17, %v19_v17 }
  0x2e   :  { %855 = vmatpush1.bf16.msra.mxu0 %v1146_v29  ;;  %906 = vmatpush1.bf16.msra.mxu1 %v1148_v30  ;;  %v1080_v29 = vcombine.low %v35_v15, %v39_v16  ;;  %v1087_v30 = vcombine.high %v42_v22, %v46_v23  ;;  %v1128_v15 = vcombine.low %v83_v3, %v87_v4  ;;  %v146_v4 = vld [vmem:[%s1715_s1 + $0x3d0] sm:$0xff] }
  0x2f   :  { %856 = vmatprep.subr.bf16.mxu0 %v1155_v31  ;;  %907 = vmatprep.subr.bf16.mxu1 %v1157_v32  ;;  %v1089_v31 = vcombine.high %v43_v25, %v47_v26  ;;  %v50_v32 = vld [vmem:[%s1715_s1 + $0xd0] sm:$0xff] }
  0x32   :  { %857 = vmatpush1.bf16.msra.mxu0 %v1154_v37  ;;  %908 = vmatpush1.bf16.msra.mxu1 %v1156_v38  ;;  %v1086_v37 = vcombine.low %v42_v22, %v46_v23  ;;  %v1088_v38 = vcombine.low %v43_v25, %v47_v26 }
  0x33   :  { %858 = vmatprep.subr.bf16.mxu0 %v1163_v39  ;;  %909 = vmatprep.subr.bf16.mxu1 %v1165_v40  ;;  %v1095_v39 = vcombine.high %v50_v32, %v54_v33  ;;  %v1097_v40 = vcombine.high %v51_v34, %v55_v35 }
  0x36   :  { %859 = vmatpush1.bf16.msra.mxu0 %v1162_v45  ;;  %910 = vmatpush1.bf16.msra.mxu1 %v1164_v46  ;;  %v1094_v45 = vcombine.low %v50_v32, %v54_v33  ;;  %v1096_v46 = vcombine.low %v51_v34, %v55_v35  ;;  %v114_v35 = vld [vmem:[%s1715_s1 + $0x2d0] sm:$0xff] }
  0x37   :  { %860 = vmatprep.subr.bf16.mxu0 %v1171_v47  ;;  %911 = vmatprep.subr.bf16.mxu1 %v1173_v48  ;;  %v1103_v47 = vcombine.high %v58_v41, %v62_v42  ;;  %v1105_v48 = vcombine.high %v59_v43, %v63_v44 }
  0x3a   :  { %861 = vmatpush1.bf16.msra.mxu0 %v1170_v53  ;;  %912 = vmatpush1.bf16.msra.mxu1 %v1172_v54  ;;  %v1102_v53 = vcombine.low %v58_v41, %v62_v42  ;;  %v1104_v54 = vcombine.low %v59_v43, %v63_v44  ;;  %v122_v44 = vld [vmem:[%s1715_s1 + $0x310] sm:$0xff] }
  0x3b   :  { %862 = vmatprep.subr.bf16.mxu0 %v1179_v55  ;;  %913 = vmatprep.subr.bf16.mxu1 %v1181_v56  ;;  %v1111_v55 = vcombine.high %v66_v49, %v70_v50  ;;  %v1113_v56 = vcombine.high %v67_v51, %v71_v52 }
  0x3e   :  { %863 = vmatpush1.bf16.msra.mxu0 %v1178_v62  ;;  %914 = vmatpush1.bf16.msra.mxu1 %v1180_v63  ;;  %v1112_v62 = vcombine.low %v67_v51, %v71_v52  ;;  %v1119_v63 = vcombine.high %v74_v57, %v78_v59  ;;  %v130_v52 = vld [vmem:[%s1715_s1 + $0x350] sm:$0xff] }
  0x3f   :  { %864 = vmatprep.subr.bf16.mxu0 %v1187_v0  ;;  %915 = vmatprep.subr.bf16.mxu1 %v1189_v1  ;;  %v82_v1 = vld [vmem:[%s1715_s1 + $0x1d0] sm:$0xff] }
  0x40   :  { %v1127_v7 = vcombine.high %v82_v1, %v86_v2  ;;  %v1126_v13 = vcombine.low %v82_v1, %v86_v2 }
  0x42   :  { %865 = vmatpush1.bf16.msra.mxu0 %v1186_v6  ;;  %916 = vmatpush1.bf16.msra.mxu1 %v1188_v9  ;;  %v90_v9 = vld [vmem:[%s1715_s1 + $0x210] sm:$0xff] }
  0x43   :  { %936 = vmatprep.subr.bf16.mxu0 %v1071_v10  ;;  %987 = vmatprep.subr.bf16.mxu1 %v1073_v11  ;;  %v94_v10 = vld [vmem:[%s1715_s1 + $0x230] sm:$0xff]  ;;  %v91_v11 = vld [vmem:[%s1715_s1 + $0x218] sm:$0xff] }
  0x44   :  { %v1135_v16 = vcombine.high %v90_v9, %v94_v10  ;;  %v1137_v17 = vcombine.high %v91_v11, %v95_v12  ;;  %v1134_v22 = vcombine.low %v90_v9, %v94_v10  ;;  %v1136_v23 = vcombine.low %v91_v11, %v95_v12 }
  0x45   :  { %867 = vmatmul.mubr.bf16.vlgmr.msra.gmra.mrb[0].mxu0 %v1440_v14  ;;  %918 = vmatmul.mubr.bf16.vlgmr.msra.gmra.mrb[0].mxu1 %v1440_v14 }
  0x46   :  { %937 = vmatpush1.bf16.msra.mxu0 %v1070_v18  ;;  %988 = vmatpush1.bf16.msra.mxu1 %v1072_v19  ;;  %v98_v18 = vld [vmem:[%s1715_s1 + $0x250] sm:$0xff] }
  0x47   :  { %938 = vmatprep.subr.bf16.mxu0 %v1079_v20  ;;  %989 = vmatprep.subr.bf16.mxu1 %v1081_v21  ;;  %v102_v19 = vld [vmem:[%s1715_s1 + $0x270] sm:$0xff]  ;;  %v99_v20 = vld [vmem:[%s1715_s1 + $0x258] sm:$0xff] }
  0x48   :  { %876 = vmatprep.mubr.bf16.mxu0 %v1457_v24  ;;  %927 = vmatprep.mubr.bf16.mxu1 %v1457_v24  ;;  %v103_v21 = vld [vmem:[%s1715_s1 + $0x278] sm:$0xff]  ;;  %v1143_v25 = vcombine.high %v98_v18, %v102_v19 }
  0x49   :  { %v1145_v26 = vcombine.high %v99_v20, %v103_v21  ;;  %v1144_v32 = vcombine.low %v99_v20, %v103_v21 }
  0x4a   :  { %939 = vmatpush1.bf16.msra.mxu0 %v1078_v27  ;;  %990 = vmatpush1.bf16.msra.mxu1 %v1080_v29  ;;  %v106_v27 = vld [vmem:[%s1715_s1 + $0x290] sm:$0xff]  ;;  %v107_v29 = vld [vmem:[%s1715_s1 + $0x298] sm:$0xff] }
  0x4b   :  { %940 = vmatprep.subr.bf16.mxu0 %v1087_v30  ;;  %991 = vmatprep.subr.bf16.mxu1 %v1089_v31  ;;  %v111_v30 = vld [vmem:[%s1715_s1 + $0x2b8] sm:$0xff]  ;;  %v1142_v31 = vcombine.low %v98_v18, %v102_v19  ;;  %v1151_v33 = vcombine.high %v106_v27, %v110_v28  ;;  %v152_v18 = vld [vmem:[%s1717_s2] sm:$0xff] }
  0x4c   :  { %v1153_v34 = vcombine.high %v107_v29, %v111_v30  ;;  %v1152_v41 = vcombine.low %v107_v29, %v111_v30 }
  0x4d   :  { %877 = vmatmul.mubr.bf16.gmra.mrb[4].mxu0 %v1484_v36  ;;  %928 = vmatmul.mubr.bf16.gmra.mrb[4].mxu1 %v1484_v36 }
  0x4e   :  { %941 = vmatpush1.bf16.msra.mxu0 %v1086_v37  ;;  %992 = vmatpush1.bf16.msra.mxu1 %v1088_v38  ;;  %v118_v37 = vld [vmem:[%s1715_s1 + $0x2f0] sm:$0xff]  ;;  %v115_v38 = vld [vmem:[%s1715_s1 + $0x2d8] sm:$0xff] }
  0x4f   :  { %942 = vmatprep.subr.bf16.mxu0 %v1095_v39  ;;  %993 = vmatprep.subr.bf16.mxu1 %v1097_v40  ;;  %v119_v39 = vld [vmem:[%s1715_s1 + $0x2f8] sm:$0xff]  ;;  %v1150_v40 = vcombine.low %v106_v27, %v110_v28  ;;  %v1159_v42 = vcombine.high %v114_v35, %v118_v37 }
  0x50   :  { %968 = vmatprep.mubr.bf16.mxu0 %v1310_v58  ;;  %1019 = vmatprep.mubr.bf16.mxu1 %v1310_v58  ;;  %v75_v58 = vld [vmem:[%s1715_s1 + $0x198] sm:$0xff]  ;;  %v1161_v43 = vcombine.high %v115_v38, %v119_v39  ;;  %v1160_v49 = vcombine.low %v115_v38, %v119_v39 }
  0x51   :  { %v1121_v0 = vcombine.high %v75_v58, %v79_v60  ;;  %v1120_v6 = vcombine.low %v75_v58, %v79_v60  ;;  %v138_v60 = vld [vmem:[%s1715_s1 + $0x390] sm:$0xff] }
  0x52   :  { %943 = vmatpush1.bf16.msra.mxu0 %v1094_v45  ;;  %994 = vmatpush1.bf16.msra.mxu1 %v1096_v46  ;;  %v126_v45 = vld [vmem:[%s1715_s1 + $0x330] sm:$0xff]  ;;  %v123_v46 = vld [vmem:[%s1715_s1 + $0x318] sm:$0xff] }
  0x53   :  { %944 = vmatprep.subr.bf16.mxu0 %v1103_v47  ;;  %995 = vmatprep.subr.bf16.mxu1 %v1105_v48  ;;  %v127_v47 = vld [vmem:[%s1715_s1 + $0x338] sm:$0xff]  ;;  %v1158_v48 = vcombine.low %v114_v35, %v118_v37  ;;  %v1167_v50 = vcombine.high %v122_v44, %v126_v45 }
  0x54   :  { %v1169_v51 = vcombine.high %v123_v46, %v127_v47  ;;  %v1168_v57 = vcombine.low %v123_v46, %v127_v47 }
  0x56   :  { %945 = vmatpush1.bf16.msra.mxu0 %v1102_v53  ;;  %996 = vmatpush1.bf16.msra.mxu1 %v1104_v54  ;;  %v134_v53 = vld [vmem:[%s1715_s1 + $0x370] sm:$0xff]  ;;  %v131_v54 = vld [vmem:[%s1715_s1 + $0x358] sm:$0xff] }
  0x57   :  { %946 = vmatprep.subr.bf16.mxu0 %v1111_v55  ;;  %997 = vmatprep.subr.bf16.mxu1 %v1113_v56  ;;  %v135_v55 = vld [vmem:[%s1715_s1 + $0x378] sm:$0xff]  ;;  %v1166_v56 = vcombine.low %v122_v44, %v126_v45  ;;  %v1175_v59 = vcombine.high %v130_v52, %v134_v53 }
  0x58   :  { %v1177_v58 = vcombine.high %v131_v54, %v135_v55  ;;  %v1176_v1 = vcombine.low %v131_v54, %v135_v55 }
  0x5a   :  { %947 = vmatpush1.bf16.msra.mxu0 %v1110_v61  ;;  %998 = vmatpush1.bf16.msra.mxu1 %v1112_v62  ;;  %v142_v61 = vld [vmem:[%s1715_s1 + $0x3b0] sm:$0xff]  ;;  %v139_v62 = vld [vmem:[%s1715_s1 + $0x398] sm:$0xff] }
  0x5b   :  { %948 = vmatprep.subr.bf16.mxu0 %v1119_v63  ;;  %999 = vmatprep.subr.bf16.mxu1 %v1121_v0  ;;  %v143_v63 = vld [vmem:[%s1715_s1 + $0x3b8] sm:$0xff]  ;;  %v1174_v0 = vcombine.low %v130_v52, %v134_v53  ;;  %v1183_v2 = vcombine.high %v138_v60, %v142_v61 }
  0x5c   :  { %v1185_v3 = vcombine.high %v139_v62, %v143_v63  ;;  %v1184_v9 = vcombine.low %v139_v62, %v143_v63 }
  0x5e   :  { %949 = vmatpush1.bf16.msra.mxu0 %v1118_v5  ;;  %1000 = vmatpush1.bf16.msra.mxu1 %v1120_v6  ;;  %v150_v5 = vld [vmem:[%s1715_s1 + $0x3f0] sm:$0xff]  ;;  %v147_v6 = vld [vmem:[%s1715_s1 + $0x3d8] sm:$0xff] }
  0x5f   :  { %950 = vmatprep.subr.bf16.mxu0 %v1127_v7  ;;  %1001 = vmatprep.subr.bf16.mxu1 %v1129_v8  ;;  %v151_v7 = vld [vmem:[%s1715_s1 + $0x3f8] sm:$0xff]  ;;  %v1182_v8 = vcombine.low %v138_v60, %v142_v61  ;;  %v1191_v10 = vcombine.high %v146_v4, %v150_v5  ;;  %v1190_v12 = vcombine.low %v146_v4, %v150_v5 }
  0x60   :  { %v1193_v11 = vcombine.high %v147_v6, %v151_v7 }
  0x62   :  { %951 = vmatpush1.bf16.msra.mxu0 %v1126_v13  ;;  %1002 = vmatpush1.bf16.msra.mxu1 %v1128_v15  ;;  %v1192_v13 = vcombine.low %v147_v6, %v151_v7  ;;  %v154_v15 = vlaneseq }
  0x63   :  { %952 = vmatprep.subr.bf16.mxu0 %v1135_v16  ;;  %1003 = vmatprep.subr.bf16.mxu1 %v1137_v17 }
  0x64   :  { %v155_v16 = vshrl.u32 %v154_v15, 7 }
  0x66   :  { %953 = vmatpush1.bf16.msra.mxu0 %v1134_v22  ;;  %1004 = vmatpush1.bf16.msra.mxu1 %v1136_v23  ;;  %v156_v17 = vsub.s32 0, %v155_v16  ;;  %v164_v19 = vsub.s32 2, %v155_v16  ;;  %v160_v20 = vsub.s32 1, %v155_v16  ;;  %v168_v21 = vsub.s32 3, %v155_v16 }
  0x67   :  { %954 = vmatprep.subr.bf16.mxu0 %v1143_v25  ;;  %1005 = vmatprep.subr.bf16.mxu1 %v1145_v26  ;;  %v172_v53 = vsub.s32 4, %v155_v16  ;;  %v180_v54 = vsub.s32 6, %v155_v16  ;;  %v176_v55 = vsub.s32 5, %v155_v16 }
  0x68   :  { %v157_v22 = vrot.slane %v152_v18, %v156_v17  ;;  %v161_v23 = vrot.slane %v152_v18, %v160_v20  ;;  %v169_v25 = vrot.slane %v152_v18, %v168_v21 }
  0x6a   :  { %955 = vmatpush1.bf16.msra.mxu0 %v1142_v31  ;;  %1006 = vmatpush1.bf16.msra.mxu1 %v1144_v32 }
  0x6b   :  { %956 = vmatprep.subr.bf16.mxu0 %v1151_v33  ;;  %1007 = vmatprep.subr.bf16.mxu1 %v1153_v34 }
  0x6e   :  { %957 = vmatpush1.bf16.msra.mxu0 %v1150_v40  ;;  %1008 = vmatpush1.bf16.msra.mxu1 %v1152_v41 }
  0x6f   :  { %958 = vmatprep.subr.bf16.mxu0 %v1159_v42  ;;  %1009 = vmatprep.subr.bf16.mxu1 %v1161_v43 }
  0x72   :  { %959 = vmatpush1.bf16.msra.mxu0 %v1158_v48  ;;  %1010 = vmatpush1.bf16.msra.mxu1 %v1160_v49 }
  0x73   :  { %960 = vmatprep.subr.bf16.mxu0 %v1167_v50  ;;  %1011 = vmatprep.subr.bf16.mxu1 %v1169_v51 }
  0x76   :  { %961 = vmatpush1.bf16.msra.mxu0 %v1166_v56  ;;  %1012 = vmatpush1.bf16.msra.mxu1 %v1168_v57  ;;  %v184_v56 = vsub.s32 7, %v155_v16  ;;  %v173_v57 = vrot.slane %v152_v18, %v172_v53 }
  0x77   :  { %962 = vmatprep.subr.bf16.mxu0 %v1175_v59  ;;  %1013 = vmatprep.subr.bf16.mxu1 %v1177_v58  ;;  %v181_v59 = vrot.slane %v152_v18, %v180_v54  ;;  %v177_v58 = vrot.slane %v152_v18, %v176_v55 }
  0x78   :  { %v185_v60 = vrot.slane %v152_v18, %v184_v56 }
  0x7a   :  { %963 = vmatpush1.bf16.msra.mxu0 %v1174_v0  ;;  %1014 = vmatpush1.bf16.msra.mxu1 %v1176_v1 }
  0x7b   :  { %964 = vmatprep.subr.bf16.mxu0 %v1183_v2  ;;  %1015 = vmatprep.subr.bf16.mxu1 %v1185_v3 }
  0x7e   :  { %965 = vmatpush1.bf16.msra.mxu0 %v1182_v8  ;;  %1016 = vmatpush1.bf16.msra.mxu1 %v1184_v9 }
  0x7f   :  { %966 = vmatprep.subr.bf16.mxu0 %v1191_v10  ;;  %1017 = vmatprep.subr.bf16.mxu1 %v1193_v11 }
  0x82   :  { %967 = vmatpush1.bf16.msra.mxu0 %v1190_v12  ;;  %1018 = vmatpush1.bf16.msra.mxu1 %v1192_v13 }
  0x85   :  { %969 = vmatmul.mubr.bf16.vlgmr.msra.gmra.mrb[8].mxu0 %v1440_v14  ;;  %1020 = vmatmul.mubr.bf16.vlgmr.msra.gmra.mrb[8].mxu1 %v1440_v14  ;;  %v165_v14 = vrot.slane %v152_v18, %v164_v19 }
  0x86   :  { %978 = vmatprep.mubr.bf16.mxu0 %v1457_v24  ;;  %1029 = vmatprep.mubr.bf16.mxu1 %v1457_v24 }
  0x8d   :  { %979 = vmatmul.mubr.bf16.gmra.mrb[12].mxu0 %v1484_v36  ;;  %1030 = vmatmul.mubr.bf16.gmra.mrb[12].mxu1 %v1484_v36 }
 0x118   :  { %v868_v26 = vpop.f32.mrb[0].mxu0  ;;  %v919_v27 = vpop.f32.mrb[0].mxu1 }
 0x119   :  { %v869_v24 = vadd.f32 %v868_v26, %v157_v22  ;;  %v870_v28 = vpop.f32.mrb[1].mxu0  ;;  %v920_v29 = vadd.f32 %v919_v27, %v165_v14  ;;  %v921_v30 = vpop.f32.mrb[1].mxu1 }
 0x11a   :  { %v871_v36 = vadd.f32 %v870_v28, %v161_v23  ;;  %v872_v31 = vpop.f32.mrb[2].mxu0  ;;  %v922_v32 = vadd.f32 %v921_v30, %v169_v25  ;;  %v923_v34 = vpop.f32.mrb[2].mxu1 }
 0x11b   :  { %1038 = vst [vmem:[%s1718_s3] sm:$0xff] %v869_v24  ;;  %v873_v33 = vadd.f32 %v872_v31, %v157_v22  ;;  %v874_v35 = vpop.f32.mrb[3].mxu0  ;;  %1040 = vst [vmem:[%s1718_s3 + $0x10] sm:$0xff] %v920_v29  ;;  %v924_v37 = vadd.f32 %v923_v34, %v165_v14  ;;  %v925_v39 = vpop.f32.mrb[3].mxu1 }
 0x11c   :  { %1039 = vst [vmem:[%s1718_s3 + $0x8] sm:$0xff] %v871_v36  ;;  %v875_v38 = vadd.f32 %v874_v35, %v161_v23  ;;  %1041 = vst [vmem:[%s1718_s3 + $0x18] sm:$0xff] %v922_v32  ;;  %v926_v40 = vadd.f32 %v925_v39, %v169_v25 }
 0x11d   :  { %1046 = vst [vmem:[%s1718_s3 + $0x40] sm:$0xff] %v873_v33  ;;  %1048 = vst [vmem:[%s1718_s3 + $0x50] sm:$0xff] %v924_v37 }
 0x11e   :  { %1047 = vst [vmem:[%s1718_s3 + $0x48] sm:$0xff] %v875_v38  ;;  %1049 = vst [vmem:[%s1718_s3 + $0x58] sm:$0xff] %v926_v40 }
 0x120   :  { %v878_v41 = vpop.f32.mrb[4].mxu0  ;;  %v929_v43 = vpop.f32.mrb[4].mxu1 }
 0x121   :  { %v879_v42 = vadd.f32 %v878_v41, %v157_v22  ;;  %v880_v44 = vpop.f32.mrb[5].mxu0  ;;  %v930_v45 = vadd.f32 %v929_v43, %v165_v14  ;;  %v931_v47 = vpop.f32.mrb[5].mxu1 }
 0x122   :  { %v881_v46 = vadd.f32 %v880_v44, %v161_v23  ;;  %v882_v48 = vpop.f32.mrb[6].mxu0  ;;  %v932_v49 = vadd.f32 %v931_v47, %v169_v25  ;;  %v933_v50 = vpop.f32.mrb[6].mxu1 }
 0x123   :  { %1054 = vst [vmem:[%s1718_s3 + $0x80] sm:$0xff] %v879_v42  ;;  %v883_v51 = vpop.f32.mrb[7].mxu0  ;;  %1056 = vst [vmem:[%s1718_s3 + $0x90] sm:$0xff] %v930_v45  ;;  %v934_v52 = vpop.f32.mrb[7].mxu1 }
 0x124   :  { %1055 = vst [vmem:[%s1718_s3 + $0x88] sm:$0xff] %v881_v46  ;;  %1057 = vst [vmem:[%s1718_s3 + $0x98] sm:$0xff] %v932_v49 }
 0x158   :  { %v970_v61 = vpop.f32.mrb[8].mxu0  ;;  %v1021_v63 = vpop.f32.mrb[8].mxu1 }
 0x159   :  { %v971_v62 = vadd.f32 %v970_v61, %v173_v57  ;;  %v972_v0 = vpop.f32.mrb[9].mxu0  ;;  %v1022_v1 = vadd.f32 %v1021_v63, %v181_v59  ;;  %v1023_v3 = vpop.f32.mrb[9].mxu1 }
 0x15a   :  { %v973_v2 = vadd.f32 %v972_v0, %v177_v58  ;;  %v974_v4 = vpop.f32.mrb[10].mxu0  ;;  %v1024_v5 = vadd.f32 %v1023_v3, %v185_v60  ;;  %v1025_v7 = vpop.f32.mrb[10].mxu1 }
 0x15b   :  { %1042 = vst [vmem:[%s1718_s3 + $0x20] sm:$0xff] %v971_v62  ;;  %v975_v6 = vadd.f32 %v974_v4, %v173_v57  ;;  %v976_v8 = vpop.f32.mrb[11].mxu0  ;;  %1044 = vst [vmem:[%s1718_s3 + $0x30] sm:$0xff] %v1022_v1  ;;  %v1026_v9 = vadd.f32 %v1025_v7, %v181_v59  ;;  %v1027_v11 = vpop.f32.mrb[11].mxu1 }
 0x15c   :  { %1043 = vst [vmem:[%s1718_s3 + $0x28] sm:$0xff] %v973_v2  ;;  %v977_v10 = vadd.f32 %v976_v8, %v177_v58  ;;  %1045 = vst [vmem:[%s1718_s3 + $0x38] sm:$0xff] %v1024_v5  ;;  %v1028_v12 = vadd.f32 %v1027_v11, %v185_v60 }
 0x15d   :  { %1050 = vst [vmem:[%s1718_s3 + $0x60] sm:$0xff] %v975_v6  ;;  %1052 = vst [vmem:[%s1718_s3 + $0x70] sm:$0xff] %v1026_v9 }
 0x15e   :  { %1051 = vst [vmem:[%s1718_s3 + $0x68] sm:$0xff] %v977_v10  ;;  %1053 = vst [vmem:[%s1718_s3 + $0x78] sm:$0xff] %v1028_v12 }
 0x160   :  { %v980_v13 = vpop.f32.mrb[12].mxu0  ;;  %v1031_v16 = vpop.f32.mrb[12].mxu1 }
 0x161   :  { %v981_v15 = vadd.f32 %v980_v13, %v173_v57  ;;  %v982_v17 = vpop.f32.mrb[13].mxu0  ;;  %v1032_v18 = vadd.f32 %v1031_v16, %v181_v59  ;;  %v1033_v20 = vpop.f32.mrb[13].mxu1 }
 0x162   :  { %v983_v19 = vadd.f32 %v982_v17, %v177_v58  ;;  %v984_v21 = vpop.f32.mrb[14].mxu0  ;;  %v1034_v22 = vadd.f32 %v1033_v20, %v185_v60  ;;  %v1035_v14 = vpop.f32.mrb[14].mxu1 }
 0x163   :  { %1058 = vst [vmem:[%s1718_s3 + $0xa0] sm:$0xff] %v981_v15  ;;  %v985_v23 = vpop.f32.mrb[15].mxu0  ;;  %1060 = vst [vmem:[%s1718_s3 + $0xb0] sm:$0xff] %v1032_v18  ;;  %v1036_v25 = vpop.f32.mrb[15].mxu1 }
 0x164   :  { %1059 = vst [vmem:[%s1718_s3 + $0xa8] sm:$0xff] %v983_v19  ;;  %1061 = vst [vmem:[%s1718_s3 + $0xb8] sm:$0xff] %v1034_v22 }

// kernel: drgcn_forward.83
= control target key start
LH: loop header
LB: loop body
LE: loop exit
PB: predicated region body
PF: predicated region fallthrough
CT: control target
= control target key end

     0   :  { %vm14_vm0 = vcmask 39936   ;;  %s67_s0 = inlined_call_operand.vmem [shape: f32[16,5], index: 0, kind: input, shape index: {}]   ;;  %s68_s1 = inlined_call_operand.vmem [shape: f32[16,5], index: 1, kind: output, shape index: {}]  }
   0x1   :  { %v8_v0 = vld [vmem:[%s67_s0] sm:$0xff]  ;;  %v9_v1 = vld [vmem:[%s67_s0 + $0x8] sm:$0xff] }
   0x2   :  { %33 = vtanh.f32 %v8_v0 }
   0x3   :  { %35 = vtanh.f32 %v9_v1 }
   0xc   :  { %v34_v2 = vpop.eup %33 }
   0xd   :  { %v36_v3 = vpop.eup %35  ;;  %v12_v4 = vand.u32 2147483647, %v34_v2 }
   0xe   :  { %v13_v5 = vand.u32 2147483647, %v36_v3 }
   0xf   :  { %v15_v6 = vsel %vm14_vm0, %v12_v4, 0.0 }
  0x10   :  { %16 = vadd.xlane.f32.xlu0 %v15_v6  ;;  %v18_v7 = vsel %vm14_vm0, %v13_v5, 0.0 }
  0x14   :  { %19 = vadd.xlane.f32.xlu0 %v18_v7 }
  0x9d   :  { %v17_v8 = vpop.xlane.xlu0 %16 }
  0x9e   :  { %v21_v9 = vadd.f32 1e-06, %v17_v8 }
  0xa0   :  { %37 = vrcp.f32 %v21_v9 }
  0xa1   :  { %v20_v10 = vpop.xlane.xlu0 %19 }
  0xa2   :  { %v22_v11 = vadd.f32 1e-06, %v20_v10 }
  0xa4   :  { %39 = vrcp.f32 %v22_v11 }
  0xaa   :  { %v38_v12 = vpop.eup %37 }
  0xab   :  { %v24_v13 = vmul.f32 %v38_v12, %v34_v2 }
  0xad   :  { %27 = vst.msk [vmem:[%s68_s1] sm:$0xff] %vm14_vm0, %v24_v13 }
  0xae   :  { %v40_v14 = vpop.eup %39 }
  0xaf   :  { %v26_v15 = vmul.f32 %v40_v14, %v36_v3 }
  0xb1   :  { %28 = vst.msk [vmem:[%s68_s1 + $0x8] sm:$0xff] %vm14_vm0, %v26_v15 }

// kernel: drgcn_forward.91
= control target key start
LH: loop header
LB: loop body
LE: loop exit
PB: predicated region body
PF: predicated region fallthrough
CT: control target
= control target key end

     0   :  { %vm194_vm0 = vcmask 31744   ;;  %s335_s1 = inlined_call_operand.vmem [shape: bf16[256,4], index: 1, kind: input, shape index: {}]   ;;  %s336_s0 = inlined_call_operand.vmem [shape: f32[8,256], index: 0, kind: input, shape index: {}]   ;;  %s337_s2 = inlined_call_operand.vmem [shape: f32[1,4], index: 2, kind: input, shape index: {}]   ;;  %s338_s3 = inlined_call_operand.vmem [shape: f32[8,4], index: 3, kind: output, shape index: {}]  }
   0x1   :  { %v239_v0 = vld [vmem:[%s335_s1 + $0x40] sm:$0xff]   ;;  %v241_v2 = vld [vmem:[%s335_s1 + $0x48] sm:$0xff]   ;;  %v243_v4 = vld [vmem:[%s335_s1 + $0x50] sm:$0xff]  }
   0x2   :  { %v240_v1 = vld [vmem:[%s335_s1] sm:$0xff]   ;;  %217 = vmatprep.subr.bf16.mxu0 %v239_v0  ;;  %v242_v3 = vld [vmem:[%s335_s1 + $0x8] sm:$0xff]   ;;  %v244_v5 = vld [vmem:[%s335_s1 + $0x10] sm:$0xff]  }
   0x3   :  { %218 = vmatpush3.bf16.msra.mxu0 %v240_v1  ;;  %v245_v6 = vld [vmem:[%s335_s1 + $0x58] sm:$0xff]   ;;  %v247_v8 = vld [vmem:[%s335_s1 + $0x60] sm:$0xff]   ;;  %v249_v10 = vld [vmem:[%s335_s1 + $0x68] sm:$0xff]  }
   0x4   :  { %219 = vmatprep.subr.bf16.mxu0 %v241_v2  ;;  %v246_v7 = vld [vmem:[%s335_s1 + $0x18] sm:$0xff]   ;;  %v248_v9 = vld [vmem:[%s335_s1 + $0x20] sm:$0xff]   ;;  %v16_v11 = vld [vmem:[%s336_s0 + $0x8] sm:$0xff] }
   0x5   :  { %v18_v12 = vpack.c.bf16 %v16_v11, %v16_v11  ;;  %v250_v13 = vld [vmem:[%s335_s1 + $0x28] sm:$0xff]   ;;  %v251_v14 = vld [vmem:[%s335_s1 + $0x70] sm:$0xff]   ;;  %v253_v16 = vld [vmem:[%s335_s1 + $0x78] sm:$0xff]  }
   0x6   :  { %v252_v15 = vld [vmem:[%s335_s1 + $0x30] sm:$0xff]   ;;  %v254_v17 = vld [vmem:[%s335_s1 + $0x38] sm:$0xff]   ;;  %v15_v18 = vld [vmem:[%s336_s0] sm:$0xff] }
   0x7   :  { %220 = vmatpush3.bf16.msra.mxu0 %v242_v3  ;;  %186 = vmatprep.mubr.bf16.mxu0 %v18_v12  ;;  %v17_v19 = vpack.c.bf16 %v15_v18, %v15_v18  ;;  %v200_v21 = vld [vmem:[%s337_s2] ss:$0 sm:$0xff] }
   0x8   :  { %221 = vmatprep.subr.bf16.mxu0 %v243_v4 }
   0xb   :  { %222 = vmatpush3.bf16.msra.mxu0 %v244_v5 }
   0xc   :  { %223 = vmatprep.subr.bf16.mxu0 %v245_v6 }
   0xf   :  { %224 = vmatpush3.bf16.msra.mxu0 %v246_v7 }
  0x10   :  { %225 = vmatprep.subr.bf16.mxu0 %v247_v8 }
  0x13   :  { %226 = vmatpush3.bf16.msra.mxu0 %v248_v9 }
  0x14   :  { %227 = vmatprep.subr.bf16.mxu0 %v249_v10 }
  0x17   :  { %228 = vmatpush3.bf16.msra.mxu0 %v250_v13 }
  0x18   :  { %229 = vmatprep.subr.bf16.mxu0 %v251_v14 }
  0x1b   :  { %230 = vmatpush3.bf16.msra.mxu0 %v252_v15 }
  0x1c   :  { %231 = vmatprep.subr.bf16.mxu0 %v253_v16 }
  0x1f   :  { %232 = vmatpush3.bf16.msra.mxu0 %v254_v17 }
  0x22   :  { %187 = vmatmul.mubr.bf16.vlgmr.msra.gmra.mrb[0].mxu0 %v17_v19 }
  0xf5   :  { %v233_v20 = vpop.f32.mrb[0].mxu0 }
  0xf6   :  { %v234_v22 = vpop.f32.mrb[1].mxu0 }
  0xf7   :  { %v235_v23 = vadd.f32 %v234_v22, %v233_v20  ;;  %v236_v24 = vpop.f32.mrb[2].mxu0 }
  0xf8   :  { %v237_v25 = vpop.f32.mrb[3].mxu0 }
  0xf9   :  { %v189_v26 = vadd.f32 %v235_v23, %v200_v21 }
  0xfb   :  { %195 = vst.msk [vmem:[%s338_s3] sm:$0xff] %vm194_vm0, %v189_v26 }

// kernel: drgcn_forward.85
= control target key start
LH: loop header
LB: loop body
LE: loop exit
PB: predicated region body
PF: predicated region fallthrough
CT: control target
= control target key end

     0   :  { %s2045_s18 = smov 0   ;;  %s2489_s0 = inlined_call_operand.vmem [shape: f32[2,2,5,256], index: 0, kind: input, shape index: {}]   ;;  %s2490_s1 = inlined_call_operand.vmem [shape: bf16[3,256,256], index: 1, kind: input, shape index: {}]   ;;  %s2491_s2 = inlined_call_operand.vmem [shape: f32[1,256], index: 2, kind: input, shape index: {}]   ;;  %s2492_s3 = inlined_call_operand.vmem [shape: f32[1,256], index: 3, kind: input, shape index: {}]   ;;  %s2493_s4 = inlined_call_operand.vmem [shape: f32[1,256], index: 4, kind: input, shape index: {}]   ;;  %s2494_s5 = inlined_call_operand.vmem [shape: f32[2,2,5,256], index: 5, kind: output, shape index: {}]  }
   0x1 LB: > { %s1652_s19 = sadd.s32 4294967295, %s2012_s18   ;;  %p1656_p0 = scmp.ge.s32.totalorder %s2012_s18, 1  ;;  %s2012_s18 = sphi %s2045_s18, %s15_s18  }
   0x2   : > { %p187_p1 = scmp.lt.s32.totalorder %s2012_s18, 3 }
   0x4   : > { %p188_p2 = pnand %p1656_p0, %p187_p1 }
   0x5   : > { %v1862_v0 = vld [vmem:[%s2490_s1 + $0x4] ss:$8 sps:$4 sm:$0xff] (!%p188_p2)   ;;  %v1864_v1 = vld [vmem:[%s2490_s1] ss:$8 sps:$4 sm:$0xff] (!%p188_p2)   ;;  %v1865_v2 = vld [vmem:[%s2490_s1 + $0x14] ss:$8 sps:$4 sm:$0xff] (!%p188_p2)   ;;  %v232_v9 = vlaneseq (!%p188_p2) }
   0x6   : > { %191 = sbr.rel (%p188_p2) target bundleno = 372 (0x174), region = 40  ;;  %977 = vmatprep.subr.bf16.mxu0 (!%p188_p2), %v1862_v0  ;;  %v1867_v3 = vld [vmem:[%s2490_s1 + $0x10] ss:$8 sps:$4 sm:$0xff] (!%p188_p2)   ;;  %v1868_v4 = vld [vmem:[%s2490_s1 + $0x24] ss:$8 sps:$4 sm:$0xff] (!%p188_p2)   ;;  %p215_p3 = scmp.lt.s32.totalorder (!%p188_p2), %s1652_s19, 1 }
   0x7   : > { %978 = vmatpush1.bf16.msra.mxu0 (!%p188_p2), %v1864_v1  ;;  %v1870_v5 = vld [vmem:[%s2490_s1 + $0x20] ss:$8 sps:$4 sm:$0xff] (!%p188_p2)   ;;  %v1871_v6 = vld [vmem:[%s2490_s1 + $0x34] ss:$8 sps:$4 sm:$0xff] (!%p188_p2)   ;;  %v1873_v7 = vld [vmem:[%s2490_s1 + $0x30] ss:$8 sps:$4 sm:$0xff] (!%p188_p2)  }
   0x8   : > { %979 = vmatprep.subr.bf16.mxu0 (!%p188_p2), %v1865_v2  ;;  %v1874_v8 = vld [vmem:[%s2490_s1 + $0x44] ss:$8 sps:$4 sm:$0xff] (!%p188_p2)   ;;  %v1876_v10 = vld [vmem:[%s2490_s1 + $0x40] ss:$8 sps:$4 sm:$0xff] (!%p188_p2)   ;;  %v1877_v11 = vld [vmem:[%s2490_s1 + $0x54] ss:$8 sps:$4 sm:$0xff] (!%p188_p2)  }
   0x9   : > { %v233_v12 = vshrl.u32 (!%p188_p2), %v232_v9, 7  ;;  %vm270_vm0 = vcmask (!%p188_p2), 1042432   ;;  %v1879_v13 = vld [vmem:[%s2490_s1 + $0x50] ss:$8 sps:$4 sm:$0xff] (!%p188_p2)   ;;  %vm271_vm1 = vsmask.f32 (!%p188_p2), 2304 }
   0xa   : > { %vm273_vm2 = vcmask (!%p188_p2), 1046532   ;;  %v1880_v14 = vld [vmem:[%s2490_s1 + $0x64] ss:$8 sps:$4 sm:$0xff] (!%p188_p2)   ;;  %v1882_v17 = vld [vmem:[%s2490_s1 + $0x60] ss:$8 sps:$4 sm:$0xff] (!%p188_p2)   ;;  %vm272_vm4 = vmand (!%p188_p2), %vm270_vm0, %vm271_vm1 }
   0xb   : > { %980 = vmatpush1.bf16.msra.mxu0 (!%p188_p2), %v1867_v3  ;;  %v2102_v15 = vsub.s32 (!%p188_p2), 0, %v233_v12  ;;  %v2104_v16 = vsub.s32 (!%p188_p2), 1, %v233_v12  ;;  %v1909_v18 = vld [vmem:[%s2490_s1 + $0x104] ss:$8 sps:$4 sm:$0xff] (!%p188_p2)   ;;  %vm274_vm3 = vsmask.f32 (!%p188_p2), 6400 }
   0xc   : > { %981 = vmatprep.subr.bf16.mxu0 (!%p188_p2), %v1868_v4  ;;  %v1912_v19 = vld [vmem:[%s2490_s1 + $0x100] ss:$8 sps:$4 sm:$0xff] (!%p188_p2)   ;;  %711 = vmatprep.subr.bf16.mxu1 (!%p188_p2), %v1909_v18  ;;  %v1883_v24 = vld [vmem:[%s2490_s1 + $0x74] ss:$8 sps:$4 sm:$0xff] (!%p188_p2)   ;;  %vm275_vm5 = vmand (!%p188_p2), %vm273_vm2, %vm274_vm3  ;;  %v2014_v30 = vmov (!%p188_p2), 1966171168  }
   0xd   : > { %s2498_s19 = smov (!%p215_p3, %s1652_s19), 1  ;;  %v230_v22 = vld [vmem:[%s2492_s3] sm:$0x3]  ;;  %712 = vmatpush1.bf16.msra.mxu1 %v1912_v19  ;;  %v316_v31 = vunpack.c.l.s4 %v2014_v30  ;;  %v1885_v32 = vld [vmem:[%s2490_s1 + $0x70] ss:$8 sps:$4 sm:$0xff]   ;;  %vm2150_vm6 = vmor %vm275_vm5, %vm272_vm4 }
   0xe   : > { %s1841_s17 = sshll.u32 %s2498_s19, 5  ;;  %v246_v23 = vld [vmem:[%s2493_s4] sm:$0x3]  ;;  %v2127_v25 = vrot.slane %v230_v22, %v2102_v15  ;;  %v2130_v26 = vrot.slane %v230_v22, %v2104_v16  ;;  %v1886_v33 = vld [vmem:[%s2490_s1 + $0x84] ss:$8 sps:$4 sm:$0xff]  }
   0xf   : > { %982 = vmatpush1.bf16.msra.mxu0 %v1870_v5  ;;  %s2097_s24 = scalar_lea.vmem %s2489_s0, %s1841_s17  ;;  %v2133_v27 = vrot.slane %v246_v23, %v2102_v15  ;;  %v277_v28 = vld [vmem:[#allocation2] sm:$0x77]  ;;  %v2138_v29 = vrot.slane %v246_v23, %v2104_v16  ;;  %v1916_v38 = vld [vmem:[%s2490_s1 + $0x114] ss:$8 sps:$4 sm:$0xff]   ;;  %v1918_v41 = vld [vmem:[%s2490_s1 + $0x110] ss:$8 sps:$4 sm:$0xff]   ;;  %v317_v43 = vunpack.c.0.s8 %v316_v31  ;;  %s224_s29 = scalar_lea.vmem %s2494_s5, %s1841_s17 }
  0x10   : > { %983 = vmatprep.subr.bf16.mxu0 %v1871_v6  ;;  %v226_v20 = vld [vmem:[%s2097_s24] sm:$0x1f]  ;;  %v227_v21 = vld [vmem:[%s2097_s24 + $0x8] sm:$0x1f]  ;;  %v278_v37 = vsel %vm2150_vm6, 0, %v277_v28  ;;  %713 = vmatprep.subr.bf16.mxu1 %v1916_v38 }
  0x11   : > { %v242_v34 = vmul.f32 %v2127_v25, %v226_v20  ;;  %v243_v35 = vmul.f32 %v2130_v26, %v227_v21  ;;  %279 = vst [vmem:[#allocation2] sm:$0x77] %v278_v37  ;;  %v1888_v42 = vld [vmem:[%s2490_s1 + $0x80] ss:$8 sps:$4 sm:$0xff]   ;;  %714 = vmatpush1.bf16.msra.mxu1 %v1918_v41  ;;  %v1922_v46 = vld [vmem:[%s2490_s1 + $0x124] ss:$8 sps:$4 sm:$0xff]   ;;  %v2176_v51 = vsub.s32 %v317_v43, %v233_v12 }
  0x12   : > { %v293_v47 = vld [vmem:[#allocation2 + $0x8] sm:$0x77]  ;;  %v1889_v49 = vld [vmem:[%s2490_s1 + $0x94] ss:$8 sps:$4 sm:$0xff]   ;;  %715 = vmatprep.subr.bf16.mxu1 %v1922_v46  ;;  %v1891_v53 = vld [vmem:[%s2490_s1 + $0x90] ss:$8 sps:$4 sm:$0xff]  }
  0x13   : > { %984 = vmatpush1.bf16.msra.mxu0 %v1873_v7  ;;  %v258_v39 = vadd.f32 %v2133_v27, %v242_v34  ;;  %v259_v40 = vadd.f32 %v2138_v29, %v243_v35  ;;  %v1924_v48 = vld [vmem:[%s2490_s1 + $0x120] ss:$8 sps:$4 sm:$0xff]   ;;  %v1928_v52 = vld [vmem:[%s2490_s1 + $0x134] ss:$8 sps:$4 sm:$0xff]   ;;  %v1930_v55 = vld [vmem:[%s2490_s1 + $0x130] ss:$8 sps:$4 sm:$0xff]  }
  0x14   : > { %985 = vmatprep.subr.bf16.mxu0 %v1874_v8  ;;  %v1892_v57 = vld [vmem:[%s2490_s1 + $0xa4] ss:$8 sps:$4 sm:$0xff]   ;;  %v1894_v60 = vld [vmem:[%s2490_s1 + $0xa0] ss:$8 sps:$4 sm:$0xff]   ;;  %v1940_v63 = vld [vmem:[%s2490_s1 + $0x154] ss:$8 sps:$4 sm:$0xff]  }
  0x15   : > { %v262_v44 = vmax.f32 %v258_v39, 0.0  ;;  %v263_v45 = vmax.f32 %v259_v40, 0.0  ;;  %716 = vmatpush1.bf16.msra.mxu1 %v1924_v48  ;;  %v1934_v59 = vld [vmem:[%s2490_s1 + $0x144] ss:$8 sps:$4 sm:$0xff]   ;;  %v1936_v62 = vld [vmem:[%s2490_s1 + $0x140] ss:$8 sps:$4 sm:$0xff]  }
  0x16   : > { %717 = vmatprep.subr.bf16.mxu1 %v1928_v52  ;;  %v1895_v0 = vld [vmem:[%s2490_s1 + $0xb4] ss:$8 sps:$4 sm:$0xff]   ;;  %v1942_v3 = vld [vmem:[%s2490_s1 + $0x150] ss:$8 sps:$4 sm:$0xff]   ;;  %v1946_v8 = vld [vmem:[%s2490_s1 + $0x164] ss:$8 sps:$4 sm:$0xff]  }
  0x17   : > { %986 = vmatpush1.bf16.msra.mxu0 %v1876_v10  ;;  %v1843_v50 = vpack.c.bf16 %v263_v45, %v262_v44  ;;  %v1897_v5 = vld [vmem:[%s2490_s1 + $0xb0] ss:$8 sps:$4 sm:$0xff]   ;;  %v1898_v9 = vld [vmem:[%s2490_s1 + $0xc4] ss:$8 sps:$4 sm:$0xff]   ;;  %v1900_v18 = vld [vmem:[%s2490_s1 + $0xc0] ss:$8 sps:$4 sm:$0xff]  }
  0x18   : > { %987 = vmatprep.subr.bf16.mxu0 %v1877_v11  ;;  %v1663_v56 = vld.sshfl [vmem:[#allocation2] sm:$0x5f pattern:$0x75316420]  ;;  %v1952_v21 = vld [vmem:[%s2490_s1 + $0x174] ss:$8 sps:$4 sm:$0xff]  }
  0x19   : > { %v294_v54 = vsel %vm2150_vm6, %v1843_v50, %v293_v47  ;;  %v314_v58 = vcombine.high %v1663_v56, %v1663_v56  ;;  %v321_v61 = vrot.slane %v1663_v56, %v2176_v51  ;;  %718 = vmatpush1.bf16.msra.mxu1 %v1930_v55  ;;  %v1901_v22 = vld [vmem:[%s2490_s1 + $0xd4] ss:$8 sps:$4 sm:$0xff]   ;;  %v1954_v30 = vld [vmem:[%s2490_s1 + $0x170] ss:$8 sps:$4 sm:$0xff]   ;;  %v1958_v34 = vld [vmem:[%s2490_s1 + $0x184] ss:$8 sps:$4 sm:$0xff]  }
  0x1a   : > { %295 = vst [vmem:[#allocation2 + $0x8] sm:$0x77] %v294_v54  ;;  %719 = vmatprep.subr.bf16.mxu1 %v1934_v59  ;;  %v1903_v31 = vld [vmem:[%s2490_s1 + $0xd0] ss:$8 sps:$4 sm:$0xff]   ;;  %v1904_v35 = vld [vmem:[%s2490_s1 + $0xe4] ss:$8 sps:$4 sm:$0xff]  }
  0x1b   : > { %988 = vmatpush1.bf16.msra.mxu0 %v1879_v13  ;;  %v328_v1 = vrot.slane %v314_v58, %v2176_v51  ;;  %v329_v2 = vcombine.high %v321_v61, %v321_v61  ;;  %v1960_v40 = vld [vmem:[%s2490_s1 + $0x180] ss:$8 sps:$4 sm:$0xff]   ;;  %v1907_v44 = vld [vmem:[%s2490_s1 + $0xf4] ss:$8 sps:$4 sm:$0xff]   ;;  %v1911_v50 = vld [vmem:[%s2490_s1 + $0xf0] ss:$8 sps:$4 sm:$0xff]  }
  0x1c   : > { %989 = vmatprep.subr.bf16.mxu0 %v1880_v14  ;;  %v1906_v41 = vld [vmem:[%s2490_s1 + $0xe0] ss:$8 sps:$4 sm:$0xff]   ;;  %v1964_v45 = vld [vmem:[%s2490_s1 + $0x194] ss:$8 sps:$4 sm:$0xff]   ;;  %v1970_v52 = vld [vmem:[%s2490_s1 + $0x1a4] ss:$8 sps:$4 sm:$0xff]  }
  0x1d   : > { %720 = vmatpush1.bf16.msra.mxu1 %v1936_v62  ;;  %v759_v10 = vcombine.low %v321_v61, %v328_v1  ;;  %v1972_v55 = vld [vmem:[%s2490_s1 + $0x1a0] ss:$8 sps:$4 sm:$0xff]   ;;  %v1921_v58 = vld [vmem:[%s2490_s1 + $0x214] ss:$8 sps:$4 sm:$0xff]   ;;  %v1919_v59 = vld [vmem:[%s2490_s1 + $0x210] ss:$8 sps:$4 sm:$0xff]  }
  0x1e   : > { %721 = vmatprep.subr.bf16.mxu1 %v1940_v63  ;;  %v1913_v56 = vld [vmem:[%s2490_s1 + $0x200] ss:$8 sps:$4 sm:$0xff]   ;;  %v228_v61 = vld [vmem:[%s2097_s24 + $0x10] sm:$0x1f]  ;;  %v229_v62 = vld [vmem:[%s2097_s24 + $0x18] sm:$0x1f] }
  0x1f   : > { %990 = vmatpush1.bf16.msra.mxu0 %v1882_v17  ;;  %v1948_v17 = vld [vmem:[%s2490_s1 + $0x160] ss:$8 sps:$4 sm:$0xff]   ;;  %v767_v28 = vrot.slane %v759_v10, %v2176_v51  ;;  %v1982_v63 = vld [vmem:[%s2490_s1 + $0x1c4] ss:$8 sps:$4 sm:$0xff]   ;;  %v245_v1 = vmul.f32 %v2130_v26, %v229_v62  ;;  %v296_v10 = vld [vmem:[#allocation2 + $0x10] sm:$0x77] }
  0x20   : > { %991 = vmatprep.subr.bf16.mxu0 %v1883_v24  ;;  %v1925_v26 = vld [vmem:[%s2490_s1 + $0x220] ss:$8 sps:$4 sm:$0xff]  }
  0x21   : > { %v1664_v4 = vld.sshfl [vmem:[#allocation2 + $0x8] sm:$0x5f pattern:$0x75316420]  ;;  %722 = vmatpush1.bf16.msra.mxu1 %v1942_v3  ;;  %v300_v3 = vld [vmem:[#allocation2 + $0x18] sm:$0x77] }
  0x22   : > { %v337_v6 = vcombine.high %v1664_v4, %v1664_v4  ;;  %v2216_v7 = vrot.slane %v1664_v4, %v2176_v51  ;;  %723 = vmatprep.subr.bf16.mxu1 %v1946_v8  ;;  %v1937_v36 = vld [vmem:[%s2490_s1 + $0x240] ss:$8 sps:$4 sm:$0xff]  }
  0x23   : > { %992 = vmatpush1.bf16.msra.mxu0 %v1885_v32 }
  0x24   : > { %993 = vmatprep.subr.bf16.mxu0 %v1886_v33  ;;  %v2225_v11 = vrot.slane %v337_v6, %v2176_v51  ;;  %v2229_v12 = vcombine.high %v2216_v7, %v2216_v7  ;;  %v359_v13 = vunpack.i.h.s16 %v2216_v7  ;;  %v1734_v14 = vpack.i.b16 %v2216_v7, %v329_v2  ;;  %v1927_v2 = vld [vmem:[%s2490_s1 + $0x224] ss:$8 sps:$4 sm:$0xff]  }
  0x25   : > { %724 = vmatpush1.bf16.msra.mxu1 %v1948_v17  ;;  %v301_v6 = vsel %vm2150_vm6, 0, %v300_v3  ;;  %v1931_v17 = vld [vmem:[%s2490_s1 + $0x230] ss:$8 sps:$4 sm:$0xff]  }
  0x26   : > { %v361_v19 = vunpack.i.h.s16 %v2225_v11  ;;  %v1735_v20 = vpack.i.b16 %v2225_v11, %v359_v13  ;;  %725 = vmatprep.subr.bf16.mxu1 %v1952_v21  ;;  %302 = vst [vmem:[#allocation2 + $0x18] sm:$0x77] %v301_v6 }
  0x27   : > { %994 = vmatpush1.bf16.msra.mxu0 %v1888_v42 }
  0x28   : > { %995 = vmatprep.subr.bf16.mxu0 %v1889_v49  ;;  %v1736_v23 = vpack.i.b16 %v2229_v12, %v361_v19  ;;  %v760_v24 = vcombine.low %v1734_v14, %v1735_v20  ;;  %v1966_v49 = vld [vmem:[%s2490_s1 + $0x190] ss:$8 sps:$4 sm:$0xff]   ;;  %v1939_v20 = vld [vmem:[%s2490_s1 + $0x244] ss:$8 sps:$4 sm:$0xff]  }
  0x29   : > { %726 = vmatpush1.bf16.msra.mxu1 %v1954_v30  ;;  %v1990_v14 = vld [vmem:[%s2490_s1 + $0x1d0] ss:$8 sps:$4 sm:$0xff]   ;;  %v1945_v30 = vld [vmem:[%s2490_s1 + $0x254] ss:$8 sps:$4 sm:$0xff]  }
  0x2a   : > { %v774_v32 = vrot.slane %v760_v24, %v2176_v51  ;;  %v781_v33 = vrot.slane %v1736_v23, %v2176_v51  ;;  %727 = vmatprep.subr.bf16.mxu1 %v1958_v34  ;;  %v2002_v34 = vld [vmem:[%s2490_s1 + $0x1f0] ss:$8 sps:$4 sm:$0xff]  }
  0x2b   : > { %996 = vmatpush1.bf16.msra.mxu0 %v1891_v53  ;;  %v1915_v53 = vld [vmem:[%s2490_s1 + $0x204] ss:$8 sps:$4 sm:$0xff]  }
  0x2c   : > { %997 = vmatprep.subr.bf16.mxu0 %v1892_v57  ;;  %v783_v37 = vcombine.high %v767_v28, %v774_v32  ;;  %v784_v38 = vcombine.high %v781_v33, %v781_v33  ;;  %v782_v39 = vcombine.low %v767_v28, %v774_v32  ;;  %v805_v48 = vrot.slane %v781_v33, %v2176_v51  ;;  %v1976_v57 = vld [vmem:[%s2490_s1 + $0x1b4] ss:$8 sps:$4 sm:$0xff]  }
  0x2d   : > { %728 = vmatpush1.bf16.msra.mxu1 %v1960_v40  ;;  %v1770_v21 = vld.sshfl [vmem:[#allocation2 + $0x18] sm:$0x5f pattern:$0x75316420] }
  0x2e   : > { %v798_v42 = vrot.slane %v783_v37, %v2176_v51  ;;  %v812_v43 = vrot.slane %v784_v38, %v2176_v51  ;;  %v791_v47 = vrot.slane %v782_v39, %v2176_v51  ;;  %729 = vmatprep.subr.bf16.mxu1 %v1964_v45  ;;  %v1055_v23 = vcombine.high %v1770_v21, %v1770_v21  ;;  %v2000_v28 = vld [vmem:[%s2490_s1 + $0x1f4] ss:$8 sps:$4 sm:$0xff]   ;;  %v1943_v37 = vld [vmem:[%s2490_s1 + $0x250] ss:$8 sps:$4 sm:$0xff]   ;;  %v1951_v39 = vld [vmem:[%s2490_s1 + $0x264] ss:$8 sps:$4 sm:$0xff]  }
  0x2f   : > { %998 = vmatpush1.bf16.msra.mxu0 %v1894_v60  ;;  %v1978_v60 = vld [vmem:[%s2490_s1 + $0x1b0] ss:$8 sps:$4 sm:$0xff]   ;;  %v1062_v24 = vrot.slane %v1770_v21, %v2176_v51 }
  0x30   : > { %999 = vmatprep.subr.bf16.mxu0 %v1895_v0  ;;  %v814_v46 = vcombine.low %v798_v42, %v812_v43  ;;  %v813_v54 = vcombine.low %v791_v47, %v805_v48  ;;  %v244_v0 = vmul.f32 %v2127_v25, %v228_v61  ;;  %v1984_v25 = vld [vmem:[%s2490_s1 + $0x1c0] ss:$8 sps:$4 sm:$0xff]   ;;  %v493_v43 = vcombine.low %v2216_v7, %v2225_v11  ;;  %v1957_v7 = vld [vmem:[%s2490_s1 + $0x274] ss:$8 sps:$4 sm:$0xff]   ;;  %v1963_v61 = vld [vmem:[%s2490_s1 + $0x284] ss:$8 sps:$4 sm:$0xff]  }
  0x31   : > { %730 = vmatpush1.bf16.msra.mxu1 %v1966_v49  ;;  %v1070_v32 = vcombine.high %v1062_v24, %v1062_v24  ;;  %v1077_v33 = vunpack.i.h.s16 %v1062_v24  ;;  %v1949_v49 = vld [vmem:[%s2490_s1 + $0x260] ss:$8 sps:$4 sm:$0xff]   ;;  %v1979_v21 = vld [vmem:[%s2490_s1 + $0x2b0] ss:$8 sps:$4 sm:$0xff]  }
  0x32   : > { %1009 = vmatprep.mubr.bf16.mxu0 %v814_v46  ;;  %731 = vmatprep.subr.bf16.mxu1 %v1970_v52  ;;  %v260_v4 = vadd.f32 %v2133_v27, %v244_v0  ;;  %v1988_v27 = vld [vmem:[%s2490_s1 + $0x1d4] ss:$8 sps:$4 sm:$0xff]  }
  0x33   : > { %1000 = vmatpush1.bf16.msra.mxu0 %v1897_v5  ;;  %v261_v5 = vadd.f32 %v2138_v29, %v245_v1 }
  0x34   : > { %1001 = vmatprep.subr.bf16.mxu0 %v1898_v9  ;;  %v264_v29 = vmax.f32 %v260_v4, 0.0  ;;  %v1933_v9 = vld [vmem:[%s2490_s1 + $0x234] ss:$8 sps:$4 sm:$0xff]  }
  0x35   : > { %732 = vmatpush1.bf16.msra.mxu1 %v1972_v55  ;;  %v265_v8 = vmax.f32 %v261_v5, 0.0  ;;  %v1961_v5 = vld [vmem:[%s2490_s1 + $0x280] ss:$8 sps:$4 sm:$0xff]  }
  0x36   : > { %733 = vmatprep.subr.bf16.mxu1 %v1976_v57 }
  0x37   : > { %1002 = vmatpush1.bf16.msra.mxu0 %v1900_v18  ;;  %v1844_v13 = vpack.c.bf16 %v265_v8, %v264_v29  ;;  %v1994_v18 = vld [vmem:[%s2490_s1 + $0x1e4] ss:$8 sps:$4 sm:$0xff]  }
  0x38   : > { %1003 = vmatprep.subr.bf16.mxu0 %v1901_v22  ;;  %v1996_v22 = vld [vmem:[%s2490_s1 + $0x1e0] ss:$8 sps:$4 sm:$0xff]  }
  0x39   : > { %734 = vmatpush1.bf16.msra.mxu1 %v1978_v60  ;;  %v297_v19 = vsel %vm2150_vm6, %v1844_v13, %v296_v10 }
  0x3a   : > { %735 = vmatprep.subr.bf16.mxu1 %v1982_v63  ;;  %298 = vst [vmem:[#allocation2 + $0x10] sm:$0x77] %v297_v19  ;;  %v1973_v19 = vld [vmem:[%s2490_s1 + $0x2a0] ss:$8 sps:$4 sm:$0xff]  }
  0x3b   : > { %1004 = vmatpush1.bf16.msra.mxu0 %v1903_v31  ;;  %v1069_v31 = vrot.slane %v1055_v23, %v2176_v51  ;;  %v1985_v23 = vld [vmem:[%s2490_s1 + $0x2c0] ss:$8 sps:$4 sm:$0xff]  }
  0x3c   : > { %1005 = vmatprep.subr.bf16.mxu0 %v1904_v35 }
  0x3d   : > { %736 = vmatpush1.bf16.msra.mxu1 %v1984_v25  ;;  %v1079_v35 = vunpack.i.h.s16 %v1069_v31 }
  0x3e   : > { %737 = vmatprep.subr.bf16.mxu1 %v1988_v27 }
  0x3f   : > { %1006 = vmatpush1.bf16.msra.mxu0 %v1906_v41  ;;  %v1805_v42 = vpack.i.b16 %v1070_v32, %v1079_v35  ;;  %v2005_v32 = vld [vmem:[%s2490_s1 + $0x2f4] ss:$8 sps:$4 sm:$0xff]   ;;  %v2003_v35 = vld [vmem:[%s2490_s1 + $0x2f0] ss:$8 sps:$4 sm:$0xff]  }
  0x40   : > { %1007 = vmatprep.subr.bf16.mxu0 %v1907_v44  ;;  %v1804_v44 = vpack.i.b16 %v1069_v31, %v1077_v33  ;;  %v1997_v31 = vld [vmem:[%s2490_s1 + $0x2e0] ss:$8 sps:$4 sm:$0xff]  }
  0x41   : > { %738 = vmatpush1.bf16.msra.mxu1 %v1990_v14  ;;  %v1666_v38 = vld.sshfl [vmem:[#allocation2 + $0x10] sm:$0x5f pattern:$0x75316420] }
  0x42   : > { %739 = vmatprep.subr.bf16.mxu1 %v1994_v18  ;;  %v429_v40 = vcombine.high %v1666_v38, %v1666_v38  ;;  %v436_v41 = vrot.slane %v1666_v38, %v2176_v51  ;;  %v1967_v14 = vld [vmem:[%s2490_s1 + $0x290] ss:$8 sps:$4 sm:$0xff]   ;;  %v1975_v18 = vld [vmem:[%s2490_s1 + $0x2a4] ss:$8 sps:$4 sm:$0xff]  }
  0x43   : > { %1008 = vmatpush1.bf16.msra.mxu0 %v1911_v50  ;;  %v2381_v50 = vrot.slane %v1805_v42, %v2176_v51  ;;  %v1384_v42 = vld [vmem:[%s2491_s2] sm:$0x3] }
  0x44   : > { %1337 = vmatprep.subr.bf16.mxu0 %v1915_v53  ;;  %v443_v45 = vrot.slane %v429_v40, %v2176_v51  ;;  %v444_v46 = vcombine.high %v436_v41, %v436_v41  ;;  %v451_v47 = vunpack.i.h.s16 %v436_v41  ;;  %v1699_v48 = vpack.i.b16 %v436_v41, %v2229_v12 }
  0x45   : > { %740 = vmatpush1.bf16.msra.mxu1 %v1996_v22  ;;  %v501_v12 = vrot.slane %v493_v43, %v2176_v51  ;;  %v1144_v60 = vcombine.high %v2381_v50, %v2381_v50  ;;  %v1987_v22 = vld [vmem:[%s2490_s1 + $0x2c4] ss:$8 sps:$4 sm:$0xff]   ;;  %v1389_v43 = vrot.slane %v1384_v42, %v2102_v15 }
  0x46   : > { %1010 = vmatmul.mubr.bf16.vlgmr.msra.gmra.mrb[0].mxu0 %v813_v54  ;;  %741 = vmatprep.subr.bf16.mxu1 %v2000_v28  ;;  %v453_v11 = vunpack.i.h.s16 %v443_v45  ;;  %v1700_v52 = vpack.i.b16 %v443_v45, %v451_v47  ;;  %v1803_v53 = vpack.i.b16 %v1062_v24, %v444_v46  ;;  %v1119_v54 = vcombine.low %v436_v41, %v443_v45  ;;  %v1993_v24 = vld [vmem:[%s2490_s1 + $0x2d4] ss:$8 sps:$4 sm:$0xff]   ;;  %v1999_v28 = vld [vmem:[%s2490_s1 + $0x2e4] ss:$8 sps:$4 sm:$0xff]  }
  0x47   : > { %1338 = vmatpush1.bf16.msra.mxu0 %v1913_v56  ;;  %v1172_v25 = vrot.slane %v1144_v60, %v2176_v51  ;;  %v1393_v45 = vrot.slane %v1384_v42, %v2104_v16 }
  0x48   : > { %1339 = vmatprep.subr.bf16.mxu0 %v1921_v58  ;;  %v1701_v55 = vpack.i.b16 %v444_v46, %v453_v11  ;;  %v494_v56 = vcombine.low %v1699_v48, %v1700_v52  ;;  %v1120_v57 = vcombine.low %v1803_v53, %v1804_v44  ;;  %v1955_v58 = vld [vmem:[%s2490_s1 + $0x270] ss:$8 sps:$4 sm:$0xff]  }
  0x49   : > { %742 = vmatpush1.bf16.msra.mxu1 %v2002_v34  ;;  %v1165_v34 = vrot.slane %v2381_v50, %v2176_v51 }
  0x4a   : > { %v508_v62 = vrot.slane %v494_v56, %v2176_v51  ;;  %v515_v63 = vrot.slane %v1701_v55, %v2176_v51  ;;  %v1134_v0 = vrot.slane %v1120_v57, %v2176_v51 }
  0x4b   : > { %1340 = vmatpush1.bf16.msra.mxu0 %v1919_v59  ;;  %v1127_v59 = vrot.slane %v1119_v54, %v2176_v51 }
  0x4c   : > { %1341 = vmatprep.subr.bf16.mxu0 %v1927_v2  ;;  %v517_v1 = vcombine.high %v501_v12, %v508_v62  ;;  %v518_v2 = vcombine.high %v515_v63, %v515_v63  ;;  %v516_v3 = vcombine.low %v501_v12, %v508_v62  ;;  %v539_v4 = vrot.slane %v515_v63, %v2176_v51 }
  0x4d   : > { %v1143_v6 = vcombine.high %v1127_v59, %v1134_v0 }
  0x4e   : > { %v532_v27 = vrot.slane %v517_v1, %v2176_v51  ;;  %v546_v29 = vrot.slane %v518_v2, %v2176_v51  ;;  %v525_v8 = vrot.slane %v516_v3, %v2176_v51 }
  0x4f   : > { %1342 = vmatpush1.bf16.msra.mxu0 %v1925_v26  ;;  %v1969_v26 = vld [vmem:[%s2490_s1 + $0x294] ss:$8 sps:$4 sm:$0xff]  }
  0x50   : > { %1343 = vmatprep.subr.bf16.mxu0 %v1933_v9  ;;  %v1158_v9 = vrot.slane %v1143_v6, %v2176_v51  ;;  %v548_v10 = vcombine.low %v532_v27, %v546_v29  ;;  %v547_v13 = vcombine.low %v525_v8, %v539_v4 }
  0x52   : > { %743 = vmatprep.mubr.bf16.mxu1 %v548_v10 }
  0x53   : > { %1344 = vmatpush1.bf16.msra.mxu0 %v1931_v17  ;;  %v1174_v17 = vcombine.low %v1158_v9, %v1172_v25  ;;  %744 = vmatmul.mubr.bf16.vlgmr.msra.gmra.mrb[0].mxu1 %v547_v13 }
  0x54   : > { %1345 = vmatprep.subr.bf16.mxu0 %v1939_v20  ;;  %v1981_v20 = vld [vmem:[%s2490_s1 + $0x2b4] ss:$8 sps:$4 sm:$0xff]  }
  0x55   : > { %1369 = vmatprep.mubr.bf16.mxu0 %v1174_v17 }
  0x57   : > { %1346 = vmatpush1.bf16.msra.mxu0 %v1937_v36  ;;  %v1991_v36 = vld [vmem:[%s2490_s1 + $0x2d0] ss:$8 sps:$4 sm:$0xff]  }
  0x58   : > { %1347 = vmatprep.subr.bf16.mxu0 %v1945_v30  ;;  %v1142_v30 = vcombine.low %v1127_v59, %v1134_v0 }
  0x5a   : > { %v1151_v33 = vrot.slane %v1142_v30, %v2176_v51 }
  0x5b   : > { %1348 = vmatpush1.bf16.msra.mxu0 %v1943_v37 }
  0x5c   : > { %1349 = vmatprep.subr.bf16.mxu0 %v1951_v39  ;;  %v1173_v37 = vcombine.low %v1151_v33, %v1165_v34 }
  0x5f   : > { %1350 = vmatpush1.bf16.msra.mxu0 %v1949_v49 }
  0x60   : > { %1351 = vmatprep.subr.bf16.mxu0 %v1957_v7 }
  0x63   : > { %1352 = vmatpush1.bf16.msra.mxu0 %v1955_v58 }
  0x64   : > { %1353 = vmatprep.subr.bf16.mxu0 %v1963_v61 }
  0x67   : > { %1354 = vmatpush1.bf16.msra.mxu0 %v1961_v5 }
  0x68   : > { %1355 = vmatprep.subr.bf16.mxu0 %v1969_v26 }
  0x6b   : > { %1356 = vmatpush1.bf16.msra.mxu0 %v1967_v14 }
  0x6c   : > { %1357 = vmatprep.subr.bf16.mxu0 %v1975_v18 }
  0x6f   : > { %1358 = vmatpush1.bf16.msra.mxu0 %v1973_v19 }
  0x70   : > { %1359 = vmatprep.subr.bf16.mxu0 %v1981_v20 }
  0x73   : > { %1360 = vmatpush1.bf16.msra.mxu0 %v1979_v21 }
  0x74   : > { %1361 = vmatprep.subr.bf16.mxu0 %v1987_v22 }
  0x77   : > { %1362 = vmatpush1.bf16.msra.mxu0 %v1985_v23 }
  0x78   : > { %1363 = vmatprep.subr.bf16.mxu0 %v1993_v24 }
  0x7b   : > { %1364 = vmatpush1.bf16.msra.mxu0 %v1991_v36 }
  0x7c   : > { %1365 = vmatprep.subr.bf16.mxu0 %v1999_v28 }
  0x7f   : > { %1366 = vmatpush1.bf16.msra.mxu0 %v1997_v31 }
  0x80   : > { %1367 = vmatprep.subr.bf16.mxu0 %v2005_v32 }
  0x83   : > { %1368 = vmatpush1.bf16.msra.mxu0 %v2003_v35 }
  0x86   : > { %1370 = vmatmul.mubr.bf16.vlgmr.msra.gmra.mrb[0].mxu0 %v1173_v37 }
 0x126   : > { %v745_v38 = vpop.f32.mrb[0].mxu1 }
 0x127   : > { %v747_v39 = vpop.f32.mrb[1].mxu1 }
 0x128   : > { %v749_v40 = vpop.f32.mrb[2].mxu1 }
 0x129   : > { %v751_v41 = vpop.f32.mrb[3].mxu1 }
 0x159   : > { %v1371_v44 = vpop.f32.mrb[0].mxu0 }
 0x15a   : > { %v1845_v46 = vadd.f32 %v1371_v44, %v745_v38  ;;  %v1373_v47 = vpop.f32.mrb[1].mxu0 }
 0x15b   : > { %v1846_v48 = vadd.f32 %v1373_v47, %v747_v39  ;;  %v1375_v49 = vpop.f32.mrb[2].mxu0 }
 0x15c   : > { %v1396_v50 = vadd.f32 %v1845_v46, %v1389_v43  ;;  %v1847_v7 = vadd.f32 %v1375_v49, %v749_v40  ;;  %v1377_v11 = vpop.f32.mrb[3].mxu0 }
 0x15d   : > { %v1397_v52 = vadd.f32 %v1846_v48, %v1393_v45  ;;  %v1848_v53 = vadd.f32 %v1377_v11, %v751_v41 }
 0x15e   : > { %v1398_v54 = vadd.f32 %v1847_v7, %v1389_v43 }
 0x15f   : > { %v1404_v55 = vcombine.low %v1396_v50, %v1397_v52  ;;  %v1405_v56 = vcombine.high %v1396_v50, %v1397_v52  ;;  %v1399_v12 = vadd.f32 %v1848_v53, %v1393_v45 }
 0x161   : > { %v1412_v57 = vrot.slane %v1404_v55, %v2176_v51  ;;  %v1419_v15 = vrot.slane %v1405_v56, %v2176_v51  ;;  %v1454_v58 = vcombine.low %v1398_v54, %v1399_v12 }
 0x163   : > { %v1420_v59 = vcombine.high %v1412_v57, %v1412_v57  ;;  %v1421_v16 = vcombine.high %v1419_v15, %v1419_v15  ;;  %v1435_v60 = vrot.slane %v1419_v15, %v2176_v51  ;;  %v1428_v61 = vrot.slane %v1412_v57, %v2176_v51 }
 0x164   : > { %v1461_v62 = vrot.slane %v1454_v58, %v2176_v51 }
 0x165   : > { %v1442_v63 = vrot.slane %v1420_v59, %v2176_v51  ;;  %v1449_v0 = vrot.slane %v1421_v16, %v2176_v51  ;;  %v1451_v1 = vcombine.high %v1435_v60, %v1435_v60  ;;  %v1499_v2 = vrot.slane %v1435_v60, %v2176_v51 }
 0x166   : > { %v1462_v3 = vcombine.high %v1461_v62, %v1461_v62  ;;  %v1469_v26 = vrot.slane %v1461_v62, %v2176_v51 }
 0x167   : > { %v1477_v4 = vcombine.low %v1428_v61, %v1442_v63  ;;  %v1838_v5 = vcombine.high %v1428_v61, %v1442_v63  ;;  %v1533_v6 = vcombine.low %v1449_v0, %v1451_v1  ;;  %v1453_v25 = vcombine.high %v1449_v0, %v1449_v0 }
 0x168   : > { %v1476_v27 = vrot.slane %v1462_v3, %v2176_v51  ;;  %v1502_v9 = vcombine.high %v1499_v2, %v1499_v2  ;;  %v1523_v23 = vrot.slane %v1499_v2, %v2176_v51 }
 0x169   : > { %v1485_v29 = vrot.slane %v1477_v4, %v2176_v51  ;;  %v1492_v8 = vrot.slane %v1838_v5, %v2176_v51  ;;  %v1534_v10 = vcombine.low %v1453_v25, %v1469_v26  ;;  %v1541_v18 = vrot.slane %v1533_v6, %v2176_v51 }
 0x16a   : > { %v1555_v13 = vrot.slane %v1476_v27, %v2176_v51  ;;  %v1530_v24 = vrot.slane %v1502_v9, %v2176_v51 }
 0x16b   : > { %v1500_v14 = vcombine.low %v1485_v29, %v1492_v8  ;;  %v1501_v17 = vcombine.high %v1485_v29, %v1492_v8  ;;  %v1548_v19 = vrot.slane %v1534_v10, %v2176_v51 }
 0x16c   : > { %v1558_v20 = vcombine.high %v1555_v13, %v1555_v13  ;;  %v1579_v34 = vrot.slane %v1555_v13, %v2176_v51 }
 0x16d   : > { %v1509_v21 = vrot.slane %v1500_v14, %v2176_v51  ;;  %v1516_v22 = vrot.slane %v1501_v17, %v2176_v51  ;;  %v1556_v36 = vcombine.low %v1541_v18, %v1548_v19  ;;  %v1557_v28 = vcombine.high %v1541_v18, %v1548_v19 }
 0x16e   : > { %v1586_v35 = vrot.slane %v1558_v20, %v2176_v51 }
 0x16f   : > { %v1531_v30 = vcombine.low %v1509_v21, %v1523_v23  ;;  %v1532_v31 = vcombine.low %v1516_v22, %v1530_v24  ;;  %v1565_v32 = vrot.slane %v1556_v36, %v2176_v51  ;;  %v1572_v33 = vrot.slane %v1557_v28, %v2176_v51 }
 0x171   : > { %1593 = vst [vmem:[%s224_s29] sm:$0x1f] %v1531_v30  ;;  %1594 = vst [vmem:[%s224_s29 + $0x8] sm:$0x1f] %v1532_v31  ;;  %v1587_v37 = vcombine.low %v1565_v32, %v1579_v34  ;;  %v1588_v38 = vcombine.low %v1572_v33, %v1586_v35 }
 0x173   : > { %1595 = vst [vmem:[%s224_s29 + $0x10] sm:$0x1f] %v1587_v37  ;;  %1596 = vst [vmem:[%s224_s29 + $0x18] sm:$0x1f] %v1588_v38 }
 0x174 PF: > { %s15_s18 = sadd.s32 1, %s2012_s18  }
 0x175   : > { %p12_p4 = scmp.ge.s32.totalorder %s15_s18, 4  }
 0x177   :  { %14 = sbr.rel (!%p12_p4) target bundleno = 1 (0x1), region = 75 }

</bundles_post_ra>
